<compile_context>
chip_gen: v7x
topology: tpu7x:2x2x1
jax: 0.10.0
libtpu: 0.0.40
codegen_flags: <defaults>
</compile_context>

<pallas_src>
import jax
import jax.numpy as jnp
from jax import lax
from jax.experimental import pallas as pl
from jax.experimental.pallas import tpu as pltpu


# ----------------------------------------------------------------------------
# Fused kernel: conv1 -> conv2 -> (encoder + decoder LSTM stack) -> fc(last t).
# ----------------------------------------------------------------------------
def fused_kernel(x_ref,                      # (T, B, Cin)   time-major input
                 c1w_ref, c1b_ref,           # (3*Cin, H), (1, H)
                 c2w_ref, c2b_ref,           # (3*H,  H), (1, H)
                 wih_ref, whh_ref, b_ref,    # (2L,4,H,H), (2L,4,H,H), (2L,4,1,H)
                 fcw_ref, fcb_ref,           # (H, O), (1, O)
                 out_ref,                    # (B, O)
                 act_ref,                    # VMEM scratch (T, B, H)
                 xw_ref):                    # VMEM scratch (4, T, B, H)
    T, B, _ = x_ref.shape
    n_lstm = wih_ref.shape[0]
    H = whh_ref.shape[-1]

    # ---- Conv1d (kernel_size=3, padding=1) along T, single K=3*Cin matmul ----
    def conv1d_k3(x, w_r, b_r):
        # x: (T, B, C) f32 value; w: (3C, Cout) with rows = taps [t-1 | t | t+1]
        Tv, Bv, C = x.shape
        zero = jnp.zeros((1, Bv, C), jnp.float32)
        x_prev = jnp.concatenate([zero, x[:-1]], axis=0)     # x[t-1], zero pad
        x_next = jnp.concatenate([x[1:], zero], axis=0)      # x[t+1], zero pad
        xcat = jnp.concatenate([x_prev, x, x_next], axis=-1)  # (T, B, 3C)
        w = w_r[...].astype(jnp.float32)
        b = b_r[...].astype(jnp.float32)
        y = jnp.dot(xcat.reshape(Tv * Bv, 3 * C), w,
                    preferred_element_type=jnp.float32) + b
        return y.reshape(Tv, Bv, w.shape[1])

    x = x_ref[...].astype(jnp.float32)
    y = conv1d_k3(x, c1w_ref, c1b_ref)
    y = conv1d_k3(y, c2w_ref, c2b_ref)
    act_ref[...] = y                      # (T, B, H) stays resident in VMEM

    # ---- LSTM stack (encoder layers then decoder layers) --------------------
    # PyTorch gate order (i, f, g, o); bias = b_ih + b_hh folded into the
    # hoisted input projection; zero initial (h, c) per layer.
    def run_layer(layer, write_out):
        # Hoisted input projection: one (T*B, H) x (H, H) matmul per gate,
        # staged per gate so the recurrence never lane-slices a 4H vector.
        x_all = act_ref[...].reshape(T * B, H)
        for g in range(4):
            w_g = wih_ref[layer, g].astype(jnp.float32)      # (H, H)
            b_g = b_ref[layer, g].astype(jnp.float32)        # (1, H)
            xw_ref[g] = (jnp.dot(x_all, w_g, preferred_element_type=jnp.float32)
                         + b_g).reshape(T, B, H)

        whh = [whh_ref[layer, g].astype(jnp.float32) for g in range(4)]

        def step(t, carry):
            h, c = carry
            i_g = jax.nn.sigmoid(
                xw_ref[0, t] + jnp.dot(h, whh[0], preferred_element_type=jnp.float32))
            f_g = jax.nn.sigmoid(
                xw_ref[1, t] + jnp.dot(h, whh[1], preferred_element_type=jnp.float32))
            g_g = jnp.tanh(
                xw_ref[2, t] + jnp.dot(h, whh[2], preferred_element_type=jnp.float32))
            o_g = jax.nn.sigmoid(
                xw_ref[3, t] + jnp.dot(h, whh[3], preferred_element_type=jnp.float32))
            c_n = f_g * c + i_g * g_g
            h_n = o_g * jnp.tanh(c_n)
            if write_out:                 # last layer: only h at t=T-1 is needed
                act_ref[t] = h_n
            return h_n, c_n

        h0 = jnp.zeros((B, H), jnp.float32)
        c0 = jnp.zeros((B, H), jnp.float32)
        h_fin, _ = lax.fori_loop(0, T, step, (h0, c0), unroll=True)
        return h_fin

    h_last = jnp.zeros((B, H), jnp.float32)
    for layer in range(n_lstm):
        h_last = run_layer(layer, write_out=(layer != n_lstm - 1))

    # ---- Dropout is inference-mode identity; fused final Linear -------------
    out_ref[...] = (jnp.dot(h_last, fcw_ref[...].astype(jnp.float32),
                            preferred_element_type=jnp.float32)
                    + fcb_ref[...].astype(jnp.float32)).astype(out_ref.dtype)


# ----------------------------------------------------------------------------
# Wrapper: one pallas_call, whole (tiny) arrays resident in VMEM.
# ----------------------------------------------------------------------------
@jax.jit
def lstm_encoder_decoder_forward(params, x_btc):
    # PyTorch permutes to NCW for the convs; here we only transpose the tiny
    # raw input once to time-major (T, B, Cin) — everything downstream,
    # including the conv outputs, is produced time-major inside the kernel.
    x_tm = jnp.transpose(x_btc, (1, 0, 2))
    T, B, _ = x_tm.shape
    H = params["whh"].shape[-1]
    O = params["fc_w"].shape[1]
    return pl.pallas_call(
        fused_kernel,
        out_shape=jax.ShapeDtypeStruct((B, O), jnp.float32),
        scratch_shapes=[
            pltpu.VMEM((T, B, H), jnp.float32),      # inter-layer activations
            pltpu.VMEM((4, T, B, H), jnp.float32),   # hoisted per-gate x @ W_ih
        ],
    )(x_tm,
      params["conv1_w"], params["conv1_b"],
      params["conv2_w"], params["conv2_b"],
      params["wih"], params["whh"], params["b"],
      params["fc_w"], params["fc_b"])


# ----------------------------------------------------------------------------
# Parameter construction (deterministic, synthetic — mirrors __init__ shapes).
# Conv weights are stored flattened as (3*Cin, Cout) with rows ordered
# [tap t-1 | tap t | tap t+1]  (PyTorch layout (Cout, Cin, 3) would map via
# transpose(2, 1, 0).reshape(3*Cin, Cout)).  LSTM weights are stored per layer
# and per gate (i, f, g, o) as (H, H); bias is the summed b_ih + b_hh.
# ----------------------------------------------------------------------------
def init_params(key, input_size, hidden_size, num_layers, output_size):
    H = hidden_size
    n_lstm = 2 * num_layers
    keys = iter(jax.random.split(key, 16))

    def u(k, shape, bound):
        return jax.random.uniform(k, shape, jnp.float32, -bound, bound)

    k1 = 1.0 / (input_size * 3) ** 0.5
    k2 = 1.0 / (H * 3) ** 0.5
    kl = 1.0 / H ** 0.5

    return {
        "conv1_w": u(next(keys), (3 * input_size, H), k1),
        "conv1_b": u(next(keys), (1, H), k1),
        "conv2_w": u(next(keys), (3 * H, H), k2),
        "conv2_b": u(next(keys), (1, H), k2),
        "wih": u(next(keys), (n_lstm, 4, H, H), kl),
        "whh": u(next(keys), (n_lstm, 4, H, H), kl),
        "b": (u(next(keys), (n_lstm, 4, 1, H), kl)
              + u(next(keys), (n_lstm, 4, 1, H), kl)),
        "fc_w": u(next(keys), (H, output_size), kl),
        "fc_b": u(next(keys), (1, output_size), kl),
    }


# ----------------------------------------------------------------------------
# Pure-JAX reference (same math, independent code path) for a sanity check.
# ----------------------------------------------------------------------------
def forward_reference(params, x_btc):
    hp = lax.Precision.HIGHEST
    B, T, _ = x_btc.shape
    H = params["whh"].shape[-1]

    def conv(xv, w, b):
        Bv, Tv, C = xv.shape
        zero = jnp.zeros((Bv, 1, C), jnp.float32)
        xp = jnp.concatenate([zero, xv[:, :-1]], axis=1)
        xn = jnp.concatenate([xv[:, 1:], zero], axis=1)
        xcat = jnp.concatenate([xp, xv, xn], axis=-1)
        yv = jnp.dot(xcat.reshape(Bv * Tv, 3 * C), w, precision=hp) + b
        return yv.reshape(Bv, Tv, -1)

    h = conv(x_btc, params["conv1_w"], params["conv1_b"])
    h = conv(h, params["conv2_w"], params["conv2_b"])
    h = jnp.transpose(h, (1, 0, 2))                       # (T, B, H)

    for layer in range(params["wih"].shape[0]):
        wih, whh, bb = params["wih"][layer], params["whh"][layer], params["b"][layer]

        def step(carry, x_t):
            hh, cc = carry
            i = jax.nn.sigmoid(jnp.dot(x_t, wih[0], precision=hp) + bb[0]
                               + jnp.dot(hh, whh[0], precision=hp))
            f = jax.nn.sigmoid(jnp.dot(x_t, wih[1], precision=hp) + bb[1]
                               + jnp.dot(hh, whh[1], precision=hp))
            g = jnp.tanh(jnp.dot(x_t, wih[2], precision=hp) + bb[2]
                         + jnp.dot(hh, whh[2], precision=hp))
            o = jax.nn.sigmoid(jnp.dot(x_t, wih[3], precision=hp) + bb[3]
                               + jnp.dot(hh, whh[3], precision=hp))
            cc = f * cc + i * g
            hh = o * jnp.tanh(cc)
            return (hh, cc), hh

        init = (jnp.zeros((B, H), jnp.float32), jnp.zeros((B, H), jnp.float32))
        (_, _), h = lax.scan(step, init, h)

    return jnp.dot(h[-1], params["fc_w"], precision=hp) + params["fc_b"]


if __name__ == "__main__":
    # Small shapes consistent with the module's forward: (batch, seq, features).
    B, T = 2, 8
    input_size, hidden_size, num_layers, output_size = 4, 32, 2, 3

    key = jax.random.PRNGKey(0)
    k_params, k_x = jax.random.split(key)
    params = init_params(k_params, input_size, hidden_size, num_layers, output_size)
    x = jax.random.normal(k_x, (B, T, input_size), jnp.float32)

    out = lstm_encoder_decoder_forward(params, x)
    out = jax.block_until_ready(out)
    assert out.shape == (B, output_size) and out.dtype == jnp.float32
    assert bool(jnp.all(jnp.isfinite(out)))

    ref = forward_reference(params, x)
    assert bool(jnp.allclose(out, ref, atol=2e-2, rtol=2e-2)), (out, ref)
    print("KERNEL_OK")
</pallas_src>

<mosaic_0001>
module attributes {stable_mosaic.version = 11 : i64} {
  func.func @fused_kernel(%arg0: memref<8x2x4xf32, #tpu.memory_space<vmem>>, %arg1: memref<12x32xf32, #tpu.memory_space<vmem>>, %arg2: memref<1x32xf32, #tpu.memory_space<vmem>>, %arg3: memref<96x32xf32, #tpu.memory_space<vmem>>, %arg4: memref<1x32xf32, #tpu.memory_space<vmem>>, %arg5: memref<4x4x32x32xf32, #tpu.memory_space<vmem>>, %arg6: memref<4x4x32x32xf32, #tpu.memory_space<vmem>>, %arg7: memref<4x4x1x32xf32, #tpu.memory_space<vmem>>, %arg8: memref<32x3xf32, #tpu.memory_space<vmem>>, %arg9: memref<1x3xf32, #tpu.memory_space<vmem>>, %arg10: memref<2x3xf32, #tpu.memory_space<vmem>>, %arg11: memref<8x2x32xf32, #tpu.memory_space<vmem>>, %arg12: memref<4x8x2x32xf32, #tpu.memory_space<vmem>>) attributes {dimension_semantics = [], scalar_prefetch = 0 : i64, scratch_operands = 2 : i64, tpu.core_type = #tpu.core_type<tc>} {
    %c0 = arith.constant 0 : index
    %c0_0 = arith.constant 0 : index
    %c0_1 = arith.constant 0 : index
    %0 = vector.load %arg0[%c0, %c0_0, %c0_1] : memref<8x2x4xf32, #tpu.memory_space<vmem>>, vector<8x2x4xf32>
    %cst = arith.constant 0.000000e+00 : f32
    %1 = vector.broadcast %cst : f32 to vector<1x2x4xf32>
    %2 = vector.extract_strided_slice %0 {offsets = [0, 0, 0], sizes = [7, 2, 4], strides = [1, 1, 1]} : vector<8x2x4xf32> to vector<7x2x4xf32>
    %3 = tpu.concatenate %1, %2 in 0 : vector<1x2x4xf32>, vector<7x2x4xf32> -> vector<8x2x4xf32>
    %4 = vector.extract_strided_slice %0 {offsets = [1, 0, 0], sizes = [7, 2, 4], strides = [1, 1, 1]} : vector<8x2x4xf32> to vector<7x2x4xf32>
    %5 = tpu.concatenate %4, %1 in 0 : vector<7x2x4xf32>, vector<1x2x4xf32> -> vector<8x2x4xf32>
    %6 = tpu.concatenate %3, %0, %5 in 2 : vector<8x2x4xf32>, vector<8x2x4xf32>, vector<8x2x4xf32> -> vector<8x2x12xf32>
    %c0_2 = arith.constant 0 : index
    %c0_3 = arith.constant 0 : index
    %7 = vector.load %arg1[%c0_2, %c0_3] : memref<12x32xf32, #tpu.memory_space<vmem>>, vector<12x32xf32>
    %c0_4 = arith.constant 0 : index
    %c0_5 = arith.constant 0 : index
    %8 = vector.load %arg2[%c0_4, %c0_5] : memref<1x32xf32, #tpu.memory_space<vmem>>, vector<1x32xf32>
    %9 = vector.shape_cast %6 : vector<8x2x12xf32> to vector<16x12xf32>
    %cst_6 = arith.constant dense<0.000000e+00> : vector<16x32xf32>
    %10 = tpu.matmul %9, %7, %cst_6 {dimension_numbers = #tpu.dot_dimension_numbers<[1], [0], [0], [1], [0, 0, 1, 1], [], []>} : vector<16x12xf32>, vector<12x32xf32>, vector<16x32xf32> -> vector<16x32xf32>
    %11 = vector.broadcast %8 : vector<1x32xf32> to vector<16x32xf32>
    %12 = arith.addf %10, %11 : vector<16x32xf32>
    %13 = vector.shape_cast %12 : vector<16x32xf32> to vector<8x2x32xf32>
    %cst_7 = arith.constant 0.000000e+00 : f32
    %14 = vector.broadcast %cst_7 : f32 to vector<1x2x32xf32>
    %15 = vector.extract_strided_slice %13 {offsets = [0, 0, 0], sizes = [7, 2, 32], strides = [1, 1, 1]} : vector<8x2x32xf32> to vector<7x2x32xf32>
    %16 = tpu.concatenate %14, %15 in 0 : vector<1x2x32xf32>, vector<7x2x32xf32> -> vector<8x2x32xf32>
    %17 = vector.extract_strided_slice %13 {offsets = [1, 0, 0], sizes = [7, 2, 32], strides = [1, 1, 1]} : vector<8x2x32xf32> to vector<7x2x32xf32>
    %18 = tpu.concatenate %17, %14 in 0 : vector<7x2x32xf32>, vector<1x2x32xf32> -> vector<8x2x32xf32>
    %19 = tpu.concatenate %16, %13, %18 in 2 : vector<8x2x32xf32>, vector<8x2x32xf32>, vector<8x2x32xf32> -> vector<8x2x96xf32>
    %c0_8 = arith.constant 0 : index
    %c0_9 = arith.constant 0 : index
    %20 = vector.load %arg3[%c0_8, %c0_9] : memref<96x32xf32, #tpu.memory_space<vmem>>, vector<96x32xf32>
    %c0_10 = arith.constant 0 : index
    %c0_11 = arith.constant 0 : index
    %21 = vector.load %arg4[%c0_10, %c0_11] : memref<1x32xf32, #tpu.memory_space<vmem>>, vector<1x32xf32>
    %22 = vector.shape_cast %19 : vector<8x2x96xf32> to vector<16x96xf32>
    %cst_12 = arith.constant dense<0.000000e+00> : vector<16x32xf32>
    %23 = tpu.matmul %22, %20, %cst_12 {dimension_numbers = #tpu.dot_dimension_numbers<[1], [0], [0], [1], [0, 0, 1, 1], [], []>} : vector<16x96xf32>, vector<96x32xf32>, vector<16x32xf32> -> vector<16x32xf32>
    %24 = vector.broadcast %21 : vector<1x32xf32> to vector<16x32xf32>
    %25 = arith.addf %23, %24 : vector<16x32xf32>
    %26 = vector.shape_cast %25 : vector<16x32xf32> to vector<8x2x32xf32>
    %c0_13 = arith.constant 0 : index
    %c0_14 = arith.constant 0 : index
    %c0_15 = arith.constant 0 : index
    %27 = vector.load %arg11[%c0_13, %c0_14, %c0_15] : memref<8x2x32xf32, #tpu.memory_space<vmem>>, vector<8x2x32xf32>
    tpu.vector_store %arg11[%c0_13, %c0_14, %c0_15], %26 {strides = array<i32>} : memref<8x2x32xf32, #tpu.memory_space<vmem>>, vector<8x2x32xf32>,
    %c0_16 = arith.constant 0 : index
    %c0_17 = arith.constant 0 : index
    %c0_18 = arith.constant 0 : index
    %28 = vector.load %arg11[%c0_16, %c0_17, %c0_18] : memref<8x2x32xf32, #tpu.memory_space<vmem>>, vector<8x2x32xf32>
    %29 = vector.shape_cast %28 : vector<8x2x32xf32> to vector<16x32xf32>
    %c0_19 = arith.constant 0 : index
    %c0_20 = arith.constant 0 : index
    %c0_21 = arith.constant 0 : index
    %c0_22 = arith.constant 0 : index
    %30 = vector.load %arg5[%c0_19, %c0_20, %c0_21, %c0_22] : memref<4x4x32x32xf32, #tpu.memory_space<vmem>>, vector<1x1x32x32xf32>
    %31 = vector.shape_cast %30 : vector<1x1x32x32xf32> to vector<32x32xf32>
    %c0_23 = arith.constant 0 : index
    %c0_24 = arith.constant 0 : index
    %c0_25 = arith.constant 0 : index
    %c0_26 = arith.constant 0 : index
    %32 = vector.load %arg7[%c0_23, %c0_24, %c0_25, %c0_26] : memref<4x4x1x32xf32, #tpu.memory_space<vmem>>, vector<1x1x1x32xf32>
    %33 = vector.shape_cast %32 : vector<1x1x1x32xf32> to vector<1x32xf32>
    %cst_27 = arith.constant dense<0.000000e+00> : vector<16x32xf32>
    %34 = tpu.matmul %29, %31, %cst_27 {dimension_numbers = #tpu.dot_dimension_numbers<[1], [0], [0], [1], [0, 0, 1, 1], [], []>} : vector<16x32xf32>, vector<32x32xf32>, vector<16x32xf32> -> vector<16x32xf32>
    %35 = vector.broadcast %33 : vector<1x32xf32> to vector<16x32xf32>
    %36 = arith.addf %34, %35 : vector<16x32xf32>
    %37 = vector.shape_cast %36 : vector<16x32xf32> to vector<8x2x32xf32>
    %c0_28 = arith.constant 0 : index
    %c0_29 = arith.constant 0 : index
    %c0_30 = arith.constant 0 : index
    %c0_31 = arith.constant 0 : index
    %38 = vector.load %arg12[%c0_28, %c0_29, %c0_30, %c0_31] : memref<4x8x2x32xf32, #tpu.memory_space<vmem>>, vector<1x8x2x32xf32>
    %39 = vector.shape_cast %38 : vector<1x8x2x32xf32> to vector<8x2x32xf32>
    %40 = vector.shape_cast %37 : vector<8x2x32xf32> to vector<1x8x2x32xf32>
    tpu.vector_store %arg12[%c0_28, %c0_29, %c0_30, %c0_31], %40 {strides = array<i32>} : memref<4x8x2x32xf32, #tpu.memory_space<vmem>>, vector<1x8x2x32xf32>,
    %c0_32 = arith.constant 0 : index
    %c1 = arith.constant 1 : index
    %c0_33 = arith.constant 0 : index
    %c0_34 = arith.constant 0 : index
    %41 = vector.load %arg5[%c0_32, %c1, %c0_33, %c0_34] : memref<4x4x32x32xf32, #tpu.memory_space<vmem>>, vector<1x1x32x32xf32>
    %42 = vector.shape_cast %41 : vector<1x1x32x32xf32> to vector<32x32xf32>
    %c0_35 = arith.constant 0 : index
    %c1_36 = arith.constant 1 : index
    %c0_37 = arith.constant 0 : index
    %c0_38 = arith.constant 0 : index
    %43 = vector.load %arg7[%c0_35, %c1_36, %c0_37, %c0_38] : memref<4x4x1x32xf32, #tpu.memory_space<vmem>>, vector<1x1x1x32xf32>
    %44 = vector.shape_cast %43 : vector<1x1x1x32xf32> to vector<1x32xf32>
    %cst_39 = arith.constant dense<0.000000e+00> : vector<16x32xf32>
    %45 = tpu.matmul %29, %42, %cst_39 {dimension_numbers = #tpu.dot_dimension_numbers<[1], [0], [0], [1], [0, 0, 1, 1], [], []>} : vector<16x32xf32>, vector<32x32xf32>, vector<16x32xf32> -> vector<16x32xf32>
    %46 = vector.broadcast %44 : vector<1x32xf32> to vector<16x32xf32>
    %47 = arith.addf %45, %46 : vector<16x32xf32>
    %48 = vector.shape_cast %47 : vector<16x32xf32> to vector<8x2x32xf32>
    %c1_40 = arith.constant 1 : index
    %c0_41 = arith.constant 0 : index
    %c0_42 = arith.constant 0 : index
    %c0_43 = arith.constant 0 : index
    %49 = vector.load %arg12[%c1_40, %c0_41, %c0_42, %c0_43] : memref<4x8x2x32xf32, #tpu.memory_space<vmem>>, vector<1x8x2x32xf32>
    %50 = vector.shape_cast %49 : vector<1x8x2x32xf32> to vector<8x2x32xf32>
    %51 = vector.shape_cast %48 : vector<8x2x32xf32> to vector<1x8x2x32xf32>
    tpu.vector_store %arg12[%c1_40, %c0_41, %c0_42, %c0_43], %51 {strides = array<i32>} : memref<4x8x2x32xf32, #tpu.memory_space<vmem>>, vector<1x8x2x32xf32>,
    %c0_44 = arith.constant 0 : index
    %c2 = arith.constant 2 : index
    %c0_45 = arith.constant 0 : index
    %c0_46 = arith.constant 0 : index
    %52 = vector.load %arg5[%c0_44, %c2, %c0_45, %c0_46] : memref<4x4x32x32xf32, #tpu.memory_space<vmem>>, vector<1x1x32x32xf32>
    %53 = vector.shape_cast %52 : vector<1x1x32x32xf32> to vector<32x32xf32>
    %c0_47 = arith.constant 0 : index
    %c2_48 = arith.constant 2 : index
    %c0_49 = arith.constant 0 : index
    %c0_50 = arith.constant 0 : index
    %54 = vector.load %arg7[%c0_47, %c2_48, %c0_49, %c0_50] : memref<4x4x1x32xf32, #tpu.memory_space<vmem>>, vector<1x1x1x32xf32>
    %55 = vector.shape_cast %54 : vector<1x1x1x32xf32> to vector<1x32xf32>
    %cst_51 = arith.constant dense<0.000000e+00> : vector<16x32xf32>
    %56 = tpu.matmul %29, %53, %cst_51 {dimension_numbers = #tpu.dot_dimension_numbers<[1], [0], [0], [1], [0, 0, 1, 1], [], []>} : vector<16x32xf32>, vector<32x32xf32>, vector<16x32xf32> -> vector<16x32xf32>
    %57 = vector.broadcast %55 : vector<1x32xf32> to vector<16x32xf32>
    %58 = arith.addf %56, %57 : vector<16x32xf32>
    %59 = vector.shape_cast %58 : vector<16x32xf32> to vector<8x2x32xf32>
    %c2_52 = arith.constant 2 : index
    %c0_53 = arith.constant 0 : index
    %c0_54 = arith.constant 0 : index
    %c0_55 = arith.constant 0 : index
    %60 = vector.load %arg12[%c2_52, %c0_53, %c0_54, %c0_55] : memref<4x8x2x32xf32, #tpu.memory_space<vmem>>, vector<1x8x2x32xf32>
    %61 = vector.shape_cast %60 : vector<1x8x2x32xf32> to vector<8x2x32xf32>
    %62 = vector.shape_cast %59 : vector<8x2x32xf32> to vector<1x8x2x32xf32>
    tpu.vector_store %arg12[%c2_52, %c0_53, %c0_54, %c0_55], %62 {strides = array<i32>} : memref<4x8x2x32xf32, #tpu.memory_space<vmem>>, vector<1x8x2x32xf32>,
    %c0_56 = arith.constant 0 : index
    %c3 = arith.constant 3 : index
    %c0_57 = arith.constant 0 : index
    %c0_58 = arith.constant 0 : index
    %63 = vector.load %arg5[%c0_56, %c3, %c0_57, %c0_58] : memref<4x4x32x32xf32, #tpu.memory_space<vmem>>, vector<1x1x32x32xf32>
    %64 = vector.shape_cast %63 : vector<1x1x32x32xf32> to vector<32x32xf32>
    %c0_59 = arith.constant 0 : index
    %c3_60 = arith.constant 3 : index
    %c0_61 = arith.constant 0 : index
    %c0_62 = arith.constant 0 : index
    %65 = vector.load %arg7[%c0_59, %c3_60, %c0_61, %c0_62] : memref<4x4x1x32xf32, #tpu.memory_space<vmem>>, vector<1x1x1x32xf32>
    %66 = vector.shape_cast %65 : vector<1x1x1x32xf32> to vector<1x32xf32>
    %cst_63 = arith.constant dense<0.000000e+00> : vector<16x32xf32>
    %67 = tpu.matmul %29, %64, %cst_63 {dimension_numbers = #tpu.dot_dimension_numbers<[1], [0], [0], [1], [0, 0, 1, 1], [], []>} : vector<16x32xf32>, vector<32x32xf32>, vector<16x32xf32> -> vector<16x32xf32>
    %68 = vector.broadcast %66 : vector<1x32xf32> to vector<16x32xf32>
    %69 = arith.addf %67, %68 : vector<16x32xf32>
    %70 = vector.shape_cast %69 : vector<16x32xf32> to vector<8x2x32xf32>
    %c3_64 = arith.constant 3 : index
    %c0_65 = arith.constant 0 : index
    %c0_66 = arith.constant 0 : index
    %c0_67 = arith.constant 0 : index
    %71 = vector.load %arg12[%c3_64, %c0_65, %c0_66, %c0_67] : memref<4x8x2x32xf32, #tpu.memory_space<vmem>>, vector<1x8x2x32xf32>
    %72 = vector.shape_cast %71 : vector<1x8x2x32xf32> to vector<8x2x32xf32>
    %73 = vector.shape_cast %70 : vector<8x2x32xf32> to vector<1x8x2x32xf32>
    tpu.vector_store %arg12[%c3_64, %c0_65, %c0_66, %c0_67], %73 {strides = array<i32>} : memref<4x8x2x32xf32, #tpu.memory_space<vmem>>, vector<1x8x2x32xf32>,
    %c0_68 = arith.constant 0 : index
    %c0_69 = arith.constant 0 : index
    %c0_70 = arith.constant 0 : index
    %c0_71 = arith.constant 0 : index
    %74 = vector.load %arg6[%c0_68, %c0_69, %c0_70, %c0_71] : memref<4x4x32x32xf32, #tpu.memory_space<vmem>>, vector<1x1x32x32xf32>
    %75 = vector.shape_cast %74 : vector<1x1x32x32xf32> to vector<32x32xf32>
    %c0_72 = arith.constant 0 : index
    %c1_73 = arith.constant 1 : index
    %c0_74 = arith.constant 0 : index
    %c0_75 = arith.constant 0 : index
    %76 = vector.load %arg6[%c0_72, %c1_73, %c0_74, %c0_75] : memref<4x4x32x32xf32, #tpu.memory_space<vmem>>, vector<1x1x32x32xf32>
    %77 = vector.shape_cast %76 : vector<1x1x32x32xf32> to vector<32x32xf32>
    %c0_76 = arith.constant 0 : index
    %c2_77 = arith.constant 2 : index
    %c0_78 = arith.constant 0 : index
    %c0_79 = arith.constant 0 : index
    %78 = vector.load %arg6[%c0_76, %c2_77, %c0_78, %c0_79] : memref<4x4x32x32xf32, #tpu.memory_space<vmem>>, vector<1x1x32x32xf32>
    %79 = vector.shape_cast %78 : vector<1x1x32x32xf32> to vector<32x32xf32>
    %c0_80 = arith.constant 0 : index
    %c3_81 = arith.constant 3 : index
    %c0_82 = arith.constant 0 : index
    %c0_83 = arith.constant 0 : index
    %80 = vector.load %arg6[%c0_80, %c3_81, %c0_82, %c0_83] : memref<4x4x32x32xf32, #tpu.memory_space<vmem>>, vector<1x1x32x32xf32>
    %81 = vector.shape_cast %80 : vector<1x1x32x32xf32> to vector<32x32xf32>
    %cst_84 = arith.constant 0.000000e+00 : f32
    %82 = vector.broadcast %cst_84 : f32 to vector<2x32xf32>
    %cst_85 = arith.constant 0.000000e+00 : f32
    %83 = vector.broadcast %cst_85 : f32 to vector<2x32xf32>
    %c0_i32 = arith.constant 0 : i32
    %c0_86 = arith.constant 0 : index
    %84 = arith.index_cast %c0_i32 : i32 to index
    %c0_87 = arith.constant 0 : index
    %c0_88 = arith.constant 0 : index
    %85 = vector.load %arg12[%c0_86, %84, %c0_87, %c0_88] : memref<4x8x2x32xf32, #tpu.memory_space<vmem>>, vector<1x1x2x32xf32>
    %86 = vector.shape_cast %85 : vector<1x1x2x32xf32> to vector<2x32xf32>
    %cst_89 = arith.constant dense<0.000000e+00> : vector<2x32xf32>
    %87 = tpu.matmul %82, %75, %cst_89 {dimension_numbers = #tpu.dot_dimension_numbers<[1], [0], [0], [1], [0, 0, 1, 1], [], []>} : vector<2x32xf32>, vector<32x32xf32>, vector<2x32xf32> -> vector<2x32xf32>
    %88 = arith.addf %86, %87 : vector<2x32xf32>
    %89 = arith.negf %88 : vector<2x32xf32>
    %90 = math.exp %89 : vector<2x32xf32>
    %cst_90 = arith.constant 1.000000e+00 : f32
    %91 = vector.broadcast %cst_90 : f32 to vector<2x32xf32>
    %92 = arith.addf %91, %90 : vector<2x32xf32>
    %93 = arith.divf %91, %92 : vector<2x32xf32>
    %c1_91 = arith.constant 1 : index
    %94 = arith.index_cast %c0_i32 : i32 to index
    %c0_92 = arith.constant 0 : index
    %c0_93 = arith.constant 0 : index
    %95 = vector.load %arg12[%c1_91, %94, %c0_92, %c0_93] : memref<4x8x2x32xf32, #tpu.memory_space<vmem>>, vector<1x1x2x32xf32>
    %96 = vector.shape_cast %95 : vector<1x1x2x32xf32> to vector<2x32xf32>
    %cst_94 = arith.constant dense<0.000000e+00> : vector<2x32xf32>
    %97 = tpu.matmul %82, %77, %cst_94 {dimension_numbers = #tpu.dot_dimension_numbers<[1], [0], [0], [1], [0, 0, 1, 1], [], []>} : vector<2x32xf32>, vector<32x32xf32>, vector<2x32xf32> -> vector<2x32xf32>
    %98 = arith.addf %96, %97 : vector<2x32xf32>
    %99 = arith.negf %98 : vector<2x32xf32>
    %100 = math.exp %99 : vector<2x32xf32>
    %cst_95 = arith.constant 1.000000e+00 : f32
    %101 = vector.broadcast %cst_95 : f32 to vector<2x32xf32>
    %102 = arith.addf %101, %100 : vector<2x32xf32>
    %103 = arith.divf %101, %102 : vector<2x32xf32>
    %c2_96 = arith.constant 2 : index
    %104 = arith.index_cast %c0_i32 : i32 to index
    %c0_97 = arith.constant 0 : index
    %c0_98 = arith.constant 0 : index
    %105 = vector.load %arg12[%c2_96, %104, %c0_97, %c0_98] : memref<4x8x2x32xf32, #tpu.memory_space<vmem>>, vector<1x1x2x32xf32>
    %106 = vector.shape_cast %105 : vector<1x1x2x32xf32> to vector<2x32xf32>
    %cst_99 = arith.constant dense<0.000000e+00> : vector<2x32xf32>
    %107 = tpu.matmul %82, %79, %cst_99 {dimension_numbers = #tpu.dot_dimension_numbers<[1], [0], [0], [1], [0, 0, 1, 1], [], []>} : vector<2x32xf32>, vector<32x32xf32>, vector<2x32xf32> -> vector<2x32xf32>
    %108 = arith.addf %106, %107 : vector<2x32xf32>
    %109 = math.tanh %108 : vector<2x32xf32>
    %c3_100 = arith.constant 3 : index
    %110 = arith.index_cast %c0_i32 : i32 to index
    %c0_101 = arith.constant 0 : index
    %c0_102 = arith.constant 0 : index
    %111 = vector.load %arg12[%c3_100, %110, %c0_101, %c0_102] : memref<4x8x2x32xf32, #tpu.memory_space<vmem>>, vector<1x1x2x32xf32>
    %112 = vector.shape_cast %111 : vector<1x1x2x32xf32> to vector<2x32xf32>
    %cst_103 = arith.constant dense<0.000000e+00> : vector<2x32xf32>
    %113 = tpu.matmul %82, %81, %cst_103 {dimension_numbers = #tpu.dot_dimension_numbers<[1], [0], [0], [1], [0, 0, 1, 1], [], []>} : vector<2x32xf32>, vector<32x32xf32>, vector<2x32xf32> -> vector<2x32xf32>
    %114 = arith.addf %112, %113 : vector<2x32xf32>
    %115 = arith.negf %114 : vector<2x32xf32>
    %116 = math.exp %115 : vector<2x32xf32>
    %cst_104 = arith.constant 1.000000e+00 : f32
    %117 = vector.broadcast %cst_104 : f32 to vector<2x32xf32>
    %118 = arith.addf %117, %116 : vector<2x32xf32>
    %119 = arith.divf %117, %118 : vector<2x32xf32>
    %120 = arith.mulf %103, %83 : vector<2x32xf32>
    %121 = arith.mulf %93, %109 : vector<2x32xf32>
    %122 = arith.addf %120, %121 : vector<2x32xf32>
    %123 = math.tanh %122 : vector<2x32xf32>
    %124 = arith.mulf %119, %123 : vector<2x32xf32>
    %125 = arith.index_cast %c0_i32 : i32 to index
    %c0_105 = arith.constant 0 : index
    %c0_106 = arith.constant 0 : index
    %126 = vector.load %arg11[%125, %c0_105, %c0_106] : memref<8x2x32xf32, #tpu.memory_space<vmem>>, vector<1x2x32xf32>
    %127 = vector.shape_cast %126 : vector<1x2x32xf32> to vector<2x32xf32>
    %128 = vector.shape_cast %124 : vector<2x32xf32> to vector<1x2x32xf32>
    tpu.vector_store %arg11[%125, %c0_105, %c0_106], %128 {strides = array<i32>} : memref<8x2x32xf32, #tpu.memory_space<vmem>>, vector<1x2x32xf32>,
    %c1_i32 = arith.constant 1 : i32
    %c0_107 = arith.constant 0 : index
    %129 = arith.index_cast %c1_i32 : i32 to index
    %c0_108 = arith.constant 0 : index
    %c0_109 = arith.constant 0 : index
    %130 = vector.load %arg12[%c0_107, %129, %c0_108, %c0_109] : memref<4x8x2x32xf32, #tpu.memory_space<vmem>>, vector<1x1x2x32xf32>
    %131 = vector.shape_cast %130 : vector<1x1x2x32xf32> to vector<2x32xf32>
    %cst_110 = arith.constant dense<0.000000e+00> : vector<2x32xf32>
    %132 = tpu.matmul %124, %75, %cst_110 {dimension_numbers = #tpu.dot_dimension_numbers<[1], [0], [0], [1], [0, 0, 1, 1], [], []>} : vector<2x32xf32>, vector<32x32xf32>, vector<2x32xf32> -> vector<2x32xf32>
    %133 = arith.addf %131, %132 : vector<2x32xf32>
    %134 = arith.negf %133 : vector<2x32xf32>
    %135 = math.exp %134 : vector<2x32xf32>
    %cst_111 = arith.constant 1.000000e+00 : f32
    %136 = vector.broadcast %cst_111 : f32 to vector<2x32xf32>
    %137 = arith.addf %136, %135 : vector<2x32xf32>
    %138 = arith.divf %136, %137 : vector<2x32xf32>
    %c1_112 = arith.constant 1 : index
    %139 = arith.index_cast %c1_i32 : i32 to index
    %c0_113 = arith.constant 0 : index
    %c0_114 = arith.constant 0 : index
    %140 = vector.load %arg12[%c1_112, %139, %c0_113, %c0_114] : memref<4x8x2x32xf32, #tpu.memory_space<vmem>>, vector<1x1x2x32xf32>
    %141 = vector.shape_cast %140 : vector<1x1x2x32xf32> to vector<2x32xf32>
    %cst_115 = arith.constant dense<0.000000e+00> : vector<2x32xf32>
    %142 = tpu.matmul %124, %77, %cst_115 {dimension_numbers = #tpu.dot_dimension_numbers<[1], [0], [0], [1], [0, 0, 1, 1], [], []>} : vector<2x32xf32>, vector<32x32xf32>, vector<2x32xf32> -> vector<2x32xf32>
    %143 = arith.addf %141, %142 : vector<2x32xf32>
    %144 = arith.negf %143 : vector<2x32xf32>
    %145 = math.exp %144 : vector<2x32xf32>
    %cst_116 = arith.constant 1.000000e+00 : f32
    %146 = vector.broadcast %cst_116 : f32 to vector<2x32xf32>
    %147 = arith.addf %146, %145 : vector<2x32xf32>
    %148 = arith.divf %146, %147 : vector<2x32xf32>
    %c2_117 = arith.constant 2 : index
    %149 = arith.index_cast %c1_i32 : i32 to index
    %c0_118 = arith.constant 0 : index
    %c0_119 = arith.constant 0 : index
    %150 = vector.load %arg12[%c2_117, %149, %c0_118, %c0_119] : memref<4x8x2x32xf32, #tpu.memory_space<vmem>>, vector<1x1x2x32xf32>
    %151 = vector.shape_cast %150 : vector<1x1x2x32xf32> to vector<2x32xf32>
    %cst_120 = arith.constant dense<0.000000e+00> : vector<2x32xf32>
    %152 = tpu.matmul %124, %79, %cst_120 {dimension_numbers = #tpu.dot_dimension_numbers<[1], [0], [0], [1], [0, 0, 1, 1], [], []>} : vector<2x32xf32>, vector<32x32xf32>, vector<2x32xf32> -> vector<2x32xf32>
    %153 = arith.addf %151, %152 : vector<2x32xf32>
    %154 = math.tanh %153 : vector<2x32xf32>
    %c3_121 = arith.constant 3 : index
    %155 = arith.index_cast %c1_i32 : i32 to index
    %c0_122 = arith.constant 0 : index
    %c0_123 = arith.constant 0 : index
    %156 = vector.load %arg12[%c3_121, %155, %c0_122, %c0_123] : memref<4x8x2x32xf32, #tpu.memory_space<vmem>>, vector<1x1x2x32xf32>
    %157 = vector.shape_cast %156 : vector<1x1x2x32xf32> to vector<2x32xf32>
    %cst_124 = arith.constant dense<0.000000e+00> : vector<2x32xf32>
    %158 = tpu.matmul %124, %81, %cst_124 {dimension_numbers = #tpu.dot_dimension_numbers<[1], [0], [0], [1], [0, 0, 1, 1], [], []>} : vector<2x32xf32>, vector<32x32xf32>, vector<2x32xf32> -> vector<2x32xf32>
    %159 = arith.addf %157, %158 : vector<2x32xf32>
    %160 = arith.negf %159 : vector<2x32xf32>
    %161 = math.exp %160 : vector<2x32xf32>
    %cst_125 = arith.constant 1.000000e+00 : f32
    %162 = vector.broadcast %cst_125 : f32 to vector<2x32xf32>
    %163 = arith.addf %162, %161 : vector<2x32xf32>
    %164 = arith.divf %162, %163 : vector<2x32xf32>
    %165 = arith.mulf %148, %122 : vector<2x32xf32>
    %166 = arith.mulf %138, %154 : vector<2x32xf32>
    %167 = arith.addf %165, %166 : vector<2x32xf32>
    %168 = math.tanh %167 : vector<2x32xf32>
    %169 = arith.mulf %164, %168 : vector<2x32xf32>
    %170 = arith.index_cast %c1_i32 : i32 to index
    %c0_126 = arith.constant 0 : index
    %c0_127 = arith.constant 0 : index
    %171 = vector.load %arg11[%170, %c0_126, %c0_127] : memref<8x2x32xf32, #tpu.memory_space<vmem>>, vector<1x2x32xf32>
    %172 = vector.shape_cast %171 : vector<1x2x32xf32> to vector<2x32xf32>
    %173 = vector.shape_cast %169 : vector<2x32xf32> to vector<1x2x32xf32>
    tpu.vector_store %arg11[%170, %c0_126, %c0_127], %173 {strides = array<i32>} : memref<8x2x32xf32, #tpu.memory_space<vmem>>, vector<1x2x32xf32>,
    %c2_i32 = arith.constant 2 : i32
    %c0_128 = arith.constant 0 : index
    %174 = arith.index_cast %c2_i32 : i32 to index
    %c0_129 = arith.constant 0 : index
    %c0_130 = arith.constant 0 : index
    %175 = vector.load %arg12[%c0_128, %174, %c0_129, %c0_130] : memref<4x8x2x32xf32, #tpu.memory_space<vmem>>, vector<1x1x2x32xf32>
    %176 = vector.shape_cast %175 : vector<1x1x2x32xf32> to vector<2x32xf32>
    %cst_131 = arith.constant dense<0.000000e+00> : vector<2x32xf32>
    %177 = tpu.matmul %169, %75, %cst_131 {dimension_numbers = #tpu.dot_dimension_numbers<[1], [0], [0], [1], [0, 0, 1, 1], [], []>} : vector<2x32xf32>, vector<32x32xf32>, vector<2x32xf32> -> vector<2x32xf32>
    %178 = arith.addf %176, %177 : vector<2x32xf32>
    %179 = arith.negf %178 : vector<2x32xf32>
    %180 = math.exp %179 : vector<2x32xf32>
    %cst_132 = arith.constant 1.000000e+00 : f32
    %181 = vector.broadcast %cst_132 : f32 to vector<2x32xf32>
    %182 = arith.addf %181, %180 : vector<2x32xf32>
    %183 = arith.divf %181, %182 : vector<2x32xf32>
    %c1_133 = arith.constant 1 : index
    %184 = arith.index_cast %c2_i32 : i32 to index
    %c0_134 = arith.constant 0 : index
    %c0_135 = arith.constant 0 : index
    %185 = vector.load %arg12[%c1_133, %184, %c0_134, %c0_135] : memref<4x8x2x32xf32, #tpu.memory_space<vmem>>, vector<1x1x2x32xf32>
    %186 = vector.shape_cast %185 : vector<1x1x2x32xf32> to vector<2x32xf32>
    %cst_136 = arith.constant dense<0.000000e+00> : vector<2x32xf32>
    %187 = tpu.matmul %169, %77, %cst_136 {dimension_numbers = #tpu.dot_dimension_numbers<[1], [0], [0], [1], [0, 0, 1, 1], [], []>} : vector<2x32xf32>, vector<32x32xf32>, vector<2x32xf32> -> vector<2x32xf32>
    %188 = arith.addf %186, %187 : vector<2x32xf32>
    %189 = arith.negf %188 : vector<2x32xf32>
    %190 = math.exp %189 : vector<2x32xf32>
    %cst_137 = arith.constant 1.000000e+00 : f32
    %191 = vector.broadcast %cst_137 : f32 to vector<2x32xf32>
    %192 = arith.addf %191, %190 : vector<2x32xf32>
    %193 = arith.divf %191, %192 : vector<2x32xf32>
    %c2_138 = arith.constant 2 : index
    %194 = arith.index_cast %c2_i32 : i32 to index
    %c0_139 = arith.constant 0 : index
    %c0_140 = arith.constant 0 : index
    %195 = vector.load %arg12[%c2_138, %194, %c0_139, %c0_140] : memref<4x8x2x32xf32, #tpu.memory_space<vmem>>, vector<1x1x2x32xf32>
    %196 = vector.shape_cast %195 : vector<1x1x2x32xf32> to vector<2x32xf32>
    %cst_141 = arith.constant dense<0.000000e+00> : vector<2x32xf32>
    %197 = tpu.matmul %169, %79, %cst_141 {dimension_numbers = #tpu.dot_dimension_numbers<[1], [0], [0], [1], [0, 0, 1, 1], [], []>} : vector<2x32xf32>, vector<32x32xf32>, vector<2x32xf32> -> vector<2x32xf32>
    %198 = arith.addf %196, %197 : vector<2x32xf32>
    %199 = math.tanh %198 : vector<2x32xf32>
    %c3_142 = arith.constant 3 : index
    %200 = arith.index_cast %c2_i32 : i32 to index
    %c0_143 = arith.constant 0 : index
    %c0_144 = arith.constant 0 : index
    %201 = vector.load %arg12[%c3_142, %200, %c0_143, %c0_144] : memref<4x8x2x32xf32, #tpu.memory_space<vmem>>, vector<1x1x2x32xf32>
    %202 = vector.shape_cast %201 : vector<1x1x2x32xf32> to vector<2x32xf32>
    %cst_145 = arith.constant dense<0.000000e+00> : vector<2x32xf32>
    %203 = tpu.matmul %169, %81, %cst_145 {dimension_numbers = #tpu.dot_dimension_numbers<[1], [0], [0], [1], [0, 0, 1, 1], [], []>} : vector<2x32xf32>, vector<32x32xf32>, vector<2x32xf32> -> vector<2x32xf32>
    %204 = arith.addf %202, %203 : vector<2x32xf32>
    %205 = arith.negf %204 : vector<2x32xf32>
    %206 = math.exp %205 : vector<2x32xf32>
    %cst_146 = arith.constant 1.000000e+00 : f32
    %207 = vector.broadcast %cst_146 : f32 to vector<2x32xf32>
    %208 = arith.addf %207, %206 : vector<2x32xf32>
    %209 = arith.divf %207, %208 : vector<2x32xf32>
    %210 = arith.mulf %193, %167 : vector<2x32xf32>
    %211 = arith.mulf %183, %199 : vector<2x32xf32>
    %212 = arith.addf %210, %211 : vector<2x32xf32>
    %213 = math.tanh %212 : vector<2x32xf32>
    %214 = arith.mulf %209, %213 : vector<2x32xf32>
    %215 = arith.index_cast %c2_i32 : i32 to index
    %c0_147 = arith.constant 0 : index
    %c0_148 = arith.constant 0 : index
    %216 = vector.load %arg11[%215, %c0_147, %c0_148] : memref<8x2x32xf32, #tpu.memory_space<vmem>>, vector<1x2x32xf32>
    %217 = vector.shape_cast %216 : vector<1x2x32xf32> to vector<2x32xf32>
    %218 = vector.shape_cast %214 : vector<2x32xf32> to vector<1x2x32xf32>
    tpu.vector_store %arg11[%215, %c0_147, %c0_148], %218 {strides = array<i32>} : memref<8x2x32xf32, #tpu.memory_space<vmem>>, vector<1x2x32xf32>,
    %c3_i32 = arith.constant 3 : i32
    %c0_149 = arith.constant 0 : index
    %219 = arith.index_cast %c3_i32 : i32 to index
    %c0_150 = arith.constant 0 : index
    %c0_151 = arith.constant 0 : index
    %220 = vector.load %arg12[%c0_149, %219, %c0_150, %c0_151] : memref<4x8x2x32xf32, #tpu.memory_space<vmem>>, vector<1x1x2x32xf32>
    %221 = vector.shape_cast %220 : vector<1x1x2x32xf32> to vector<2x32xf32>
    %cst_152 = arith.constant dense<0.000000e+00> : vector<2x32xf32>
    %222 = tpu.matmul %214, %75, %cst_152 {dimension_numbers = #tpu.dot_dimension_numbers<[1], [0], [0], [1], [0, 0, 1, 1], [], []>} : vector<2x32xf32>, vector<32x32xf32>, vector<2x32xf32> -> vector<2x32xf32>
    %223 = arith.addf %221, %222 : vector<2x32xf32>
    %224 = arith.negf %223 : vector<2x32xf32>
    %225 = math.exp %224 : vector<2x32xf32>
    %cst_153 = arith.constant 1.000000e+00 : f32
    %226 = vector.broadcast %cst_153 : f32 to vector<2x32xf32>
    %227 = arith.addf %226, %225 : vector<2x32xf32>
    %228 = arith.divf %226, %227 : vector<2x32xf32>
    %c1_154 = arith.constant 1 : index
    %229 = arith.index_cast %c3_i32 : i32 to index
    %c0_155 = arith.constant 0 : index
    %c0_156 = arith.constant 0 : index
    %230 = vector.load %arg12[%c1_154, %229, %c0_155, %c0_156] : memref<4x8x2x32xf32, #tpu.memory_space<vmem>>, vector<1x1x2x32xf32>
    %231 = vector.shape_cast %230 : vector<1x1x2x32xf32> to vector<2x32xf32>
    %cst_157 = arith.constant dense<0.000000e+00> : vector<2x32xf32>
    %232 = tpu.matmul %214, %77, %cst_157 {dimension_numbers = #tpu.dot_dimension_numbers<[1], [0], [0], [1], [0, 0, 1, 1], [], []>} : vector<2x32xf32>, vector<32x32xf32>, vector<2x32xf32> -> vector<2x32xf32>
    %233 = arith.addf %231, %232 : vector<2x32xf32>
    %234 = arith.negf %233 : vector<2x32xf32>
    %235 = math.exp %234 : vector<2x32xf32>
    %cst_158 = arith.constant 1.000000e+00 : f32
    %236 = vector.broadcast %cst_158 : f32 to vector<2x32xf32>
    %237 = arith.addf %236, %235 : vector<2x32xf32>
    %238 = arith.divf %236, %237 : vector<2x32xf32>
    %c2_159 = arith.constant 2 : index
    %239 = arith.index_cast %c3_i32 : i32 to index
    %c0_160 = arith.constant 0 : index
    %c0_161 = arith.constant 0 : index
    %240 = vector.load %arg12[%c2_159, %239, %c0_160, %c0_161] : memref<4x8x2x32xf32, #tpu.memory_space<vmem>>, vector<1x1x2x32xf32>
    %241 = vector.shape_cast %240 : vector<1x1x2x32xf32> to vector<2x32xf32>
    %cst_162 = arith.constant dense<0.000000e+00> : vector<2x32xf32>
    %242 = tpu.matmul %214, %79, %cst_162 {dimension_numbers = #tpu.dot_dimension_numbers<[1], [0], [0], [1], [0, 0, 1, 1], [], []>} : vector<2x32xf32>, vector<32x32xf32>, vector<2x32xf32> -> vector<2x32xf32>
    %243 = arith.addf %241, %242 : vector<2x32xf32>
    %244 = math.tanh %243 : vector<2x32xf32>
    %c3_163 = arith.constant 3 : index
    %245 = arith.index_cast %c3_i32 : i32 to index
    %c0_164 = arith.constant 0 : index
    %c0_165 = arith.constant 0 : index
    %246 = vector.load %arg12[%c3_163, %245, %c0_164, %c0_165] : memref<4x8x2x32xf32, #tpu.memory_space<vmem>>, vector<1x1x2x32xf32>
    %247 = vector.shape_cast %246 : vector<1x1x2x32xf32> to vector<2x32xf32>
    %cst_166 = arith.constant dense<0.000000e+00> : vector<2x32xf32>
    %248 = tpu.matmul %214, %81, %cst_166 {dimension_numbers = #tpu.dot_dimension_numbers<[1], [0], [0], [1], [0, 0, 1, 1], [], []>} : vector<2x32xf32>, vector<32x32xf32>, vector<2x32xf32> -> vector<2x32xf32>
    %249 = arith.addf %247, %248 : vector<2x32xf32>
    %250 = arith.negf %249 : vector<2x32xf32>
    %251 = math.exp %250 : vector<2x32xf32>
    %cst_167 = arith.constant 1.000000e+00 : f32
    %252 = vector.broadcast %cst_167 : f32 to vector<2x32xf32>
    %253 = arith.addf %252, %251 : vector<2x32xf32>
    %254 = arith.divf %252, %253 : vector<2x32xf32>
    %255 = arith.mulf %238, %212 : vector<2x32xf32>
    %256 = arith.mulf %228, %244 : vector<2x32xf32>
    %257 = arith.addf %255, %256 : vector<2x32xf32>
    %258 = math.tanh %257 : vector<2x32xf32>
    %259 = arith.mulf %254, %258 : vector<2x32xf32>
    %260 = arith.index_cast %c3_i32 : i32 to index
    %c0_168 = arith.constant 0 : index
    %c0_169 = arith.constant 0 : index
    %261 = vector.load %arg11[%260, %c0_168, %c0_169] : memref<8x2x32xf32, #tpu.memory_space<vmem>>, vector<1x2x32xf32>
    %262 = vector.shape_cast %261 : vector<1x2x32xf32> to vector<2x32xf32>
    %263 = vector.shape_cast %259 : vector<2x32xf32> to vector<1x2x32xf32>
    tpu.vector_store %arg11[%260, %c0_168, %c0_169], %263 {strides = array<i32>} : memref<8x2x32xf32, #tpu.memory_space<vmem>>, vector<1x2x32xf32>,
    %c4_i32 = arith.constant 4 : i32
    %c0_170 = arith.constant 0 : index
    %264 = arith.index_cast %c4_i32 : i32 to index
    %c0_171 = arith.constant 0 : index
    %c0_172 = arith.constant 0 : index
    %265 = vector.load %arg12[%c0_170, %264, %c0_171, %c0_172] : memref<4x8x2x32xf32, #tpu.memory_space<vmem>>, vector<1x1x2x32xf32>
    %266 = vector.shape_cast %265 : vector<1x1x2x32xf32> to vector<2x32xf32>
    %cst_173 = arith.constant dense<0.000000e+00> : vector<2x32xf32>
    %267 = tpu.matmul %259, %75, %cst_173 {dimension_numbers = #tpu.dot_dimension_numbers<[1], [0], [0], [1], [0, 0, 1, 1], [], []>} : vector<2x32xf32>, vector<32x32xf32>, vector<2x32xf32> -> vector<2x32xf32>
    %268 = arith.addf %266, %267 : vector<2x32xf32>
    %269 = arith.negf %268 : vector<2x32xf32>
    %270 = math.exp %269 : vector<2x32xf32>
    %cst_174 = arith.constant 1.000000e+00 : f32
    %271 = vector.broadcast %cst_174 : f32 to vector<2x32xf32>
    %272 = arith.addf %271, %270 : vector<2x32xf32>
    %273 = arith.divf %271, %272 : vector<2x32xf32>
    %c1_175 = arith.constant 1 : index
    %274 = arith.index_cast %c4_i32 : i32 to index
    %c0_176 = arith.constant 0 : index
    %c0_177 = arith.constant 0 : index
    %275 = vector.load %arg12[%c1_175, %274, %c0_176, %c0_177] : memref<4x8x2x32xf32, #tpu.memory_space<vmem>>, vector<1x1x2x32xf32>
    %276 = vector.shape_cast %275 : vector<1x1x2x32xf32> to vector<2x32xf32>
    %cst_178 = arith.constant dense<0.000000e+00> : vector<2x32xf32>
    %277 = tpu.matmul %259, %77, %cst_178 {dimension_numbers = #tpu.dot_dimension_numbers<[1], [0], [0], [1], [0, 0, 1, 1], [], []>} : vector<2x32xf32>, vector<32x32xf32>, vector<2x32xf32> -> vector<2x32xf32>
    %278 = arith.addf %276, %277 : vector<2x32xf32>
    %279 = arith.negf %278 : vector<2x32xf32>
    %280 = math.exp %279 : vector<2x32xf32>
    %cst_179 = arith.constant 1.000000e+00 : f32
    %281 = vector.broadcast %cst_179 : f32 to vector<2x32xf32>
    %282 = arith.addf %281, %280 : vector<2x32xf32>
    %283 = arith.divf %281, %282 : vector<2x32xf32>
    %c2_180 = arith.constant 2 : index
    %284 = arith.index_cast %c4_i32 : i32 to index
    %c0_181 = arith.constant 0 : index
    %c0_182 = arith.constant 0 : index
    %285 = vector.load %arg12[%c2_180, %284, %c0_181, %c0_182] : memref<4x8x2x32xf32, #tpu.memory_space<vmem>>, vector<1x1x2x32xf32>
    %286 = vector.shape_cast %285 : vector<1x1x2x32xf32> to vector<2x32xf32>
    %cst_183 = arith.constant dense<0.000000e+00> : vector<2x32xf32>
    %287 = tpu.matmul %259, %79, %cst_183 {dimension_numbers = #tpu.dot_dimension_numbers<[1], [0], [0], [1], [0, 0, 1, 1], [], []>} : vector<2x32xf32>, vector<32x32xf32>, vector<2x32xf32> -> vector<2x32xf32>
    %288 = arith.addf %286, %287 : vector<2x32xf32>
    %289 = math.tanh %288 : vector<2x32xf32>
    %c3_184 = arith.constant 3 : index
    %290 = arith.index_cast %c4_i32 : i32 to index
    %c0_185 = arith.constant 0 : index
    %c0_186 = arith.constant 0 : index
    %291 = vector.load %arg12[%c3_184, %290, %c0_185, %c0_186] : memref<4x8x2x32xf32, #tpu.memory_space<vmem>>, vector<1x1x2x32xf32>
    %292 = vector.shape_cast %291 : vector<1x1x2x32xf32> to vector<2x32xf32>
    %cst_187 = arith.constant dense<0.000000e+00> : vector<2x32xf32>
    %293 = tpu.matmul %259, %81, %cst_187 {dimension_numbers = #tpu.dot_dimension_numbers<[1], [0], [0], [1], [0, 0, 1, 1], [], []>} : vector<2x32xf32>, vector<32x32xf32>, vector<2x32xf32> -> vector<2x32xf32>
    %294 = arith.addf %292, %293 : vector<2x32xf32>
    %295 = arith.negf %294 : vector<2x32xf32>
    %296 = math.exp %295 : vector<2x32xf32>
    %cst_188 = arith.constant 1.000000e+00 : f32
    %297 = vector.broadcast %cst_188 : f32 to vector<2x32xf32>
    %298 = arith.addf %297, %296 : vector<2x32xf32>
    %299 = arith.divf %297, %298 : vector<2x32xf32>
    %300 = arith.mulf %283, %257 : vector<2x32xf32>
    %301 = arith.mulf %273, %289 : vector<2x32xf32>
    %302 = arith.addf %300, %301 : vector<2x32xf32>
    %303 = math.tanh %302 : vector<2x32xf32>
    %304 = arith.mulf %299, %303 : vector<2x32xf32>
    %305 = arith.index_cast %c4_i32 : i32 to index
    %c0_189 = arith.constant 0 : index
    %c0_190 = arith.constant 0 : index
    %306 = vector.load %arg11[%305, %c0_189, %c0_190] : memref<8x2x32xf32, #tpu.memory_space<vmem>>, vector<1x2x32xf32>
    %307 = vector.shape_cast %306 : vector<1x2x32xf32> to vector<2x32xf32>
    %308 = vector.shape_cast %304 : vector<2x32xf32> to vector<1x2x32xf32>
    tpu.vector_store %arg11[%305, %c0_189, %c0_190], %308 {strides = array<i32>} : memref<8x2x32xf32, #tpu.memory_space<vmem>>, vector<1x2x32xf32>,
    %c5_i32 = arith.constant 5 : i32
    %c0_191 = arith.constant 0 : index
    %309 = arith.index_cast %c5_i32 : i32 to index
    %c0_192 = arith.constant 0 : index
    %c0_193 = arith.constant 0 : index
    %310 = vector.load %arg12[%c0_191, %309, %c0_192, %c0_193] : memref<4x8x2x32xf32, #tpu.memory_space<vmem>>, vector<1x1x2x32xf32>
    %311 = vector.shape_cast %310 : vector<1x1x2x32xf32> to vector<2x32xf32>
    %cst_194 = arith.constant dense<0.000000e+00> : vector<2x32xf32>
    %312 = tpu.matmul %304, %75, %cst_194 {dimension_numbers = #tpu.dot_dimension_numbers<[1], [0], [0], [1], [0, 0, 1, 1], [], []>} : vector<2x32xf32>, vector<32x32xf32>, vector<2x32xf32> -> vector<2x32xf32>
    %313 = arith.addf %311, %312 : vector<2x32xf32>
    %314 = arith.negf %313 : vector<2x32xf32>
    %315 = math.exp %314 : vector<2x32xf32>
    %cst_195 = arith.constant 1.000000e+00 : f32
    %316 = vector.broadcast %cst_195 : f32 to vector<2x32xf32>
    %317 = arith.addf %316, %315 : vector<2x32xf32>
    %318 = arith.divf %316, %317 : vector<2x32xf32>
    %c1_196 = arith.constant 1 : index
    %319 = arith.index_cast %c5_i32 : i32 to index
    %c0_197 = arith.constant 0 : index
    %c0_198 = arith.constant 0 : index
    %320 = vector.load %arg12[%c1_196, %319, %c0_197, %c0_198] : memref<4x8x2x32xf32, #tpu.memory_space<vmem>>, vector<1x1x2x32xf32>
    %321 = vector.shape_cast %320 : vector<1x1x2x32xf32> to vector<2x32xf32>
    %cst_199 = arith.constant dense<0.000000e+00> : vector<2x32xf32>
    %322 = tpu.matmul %304, %77, %cst_199 {dimension_numbers = #tpu.dot_dimension_numbers<[1], [0], [0], [1], [0, 0, 1, 1], [], []>} : vector<2x32xf32>, vector<32x32xf32>, vector<2x32xf32> -> vector<2x32xf32>
    %323 = arith.addf %321, %322 : vector<2x32xf32>
    %324 = arith.negf %323 : vector<2x32xf32>
    %325 = math.exp %324 : vector<2x32xf32>
    %cst_200 = arith.constant 1.000000e+00 : f32
    %326 = vector.broadcast %cst_200 : f32 to vector<2x32xf32>
    %327 = arith.addf %326, %325 : vector<2x32xf32>
    %328 = arith.divf %326, %327 : vector<2x32xf32>
    %c2_201 = arith.constant 2 : index
    %329 = arith.index_cast %c5_i32 : i32 to index
    %c0_202 = arith.constant 0 : index
    %c0_203 = arith.constant 0 : index
    %330 = vector.load %arg12[%c2_201, %329, %c0_202, %c0_203] : memref<4x8x2x32xf32, #tpu.memory_space<vmem>>, vector<1x1x2x32xf32>
    %331 = vector.shape_cast %330 : vector<1x1x2x32xf32> to vector<2x32xf32>
    %cst_204 = arith.constant dense<0.000000e+00> : vector<2x32xf32>
    %332 = tpu.matmul %304, %79, %cst_204 {dimension_numbers = #tpu.dot_dimension_numbers<[1], [0], [0], [1], [0, 0, 1, 1], [], []>} : vector<2x32xf32>, vector<32x32xf32>, vector<2x32xf32> -> vector<2x32xf32>
    %333 = arith.addf %331, %332 : vector<2x32xf32>
    %334 = math.tanh %333 : vector<2x32xf32>
    %c3_205 = arith.constant 3 : index
    %335 = arith.index_cast %c5_i32 : i32 to index
    %c0_206 = arith.constant 0 : index
    %c0_207 = arith.constant 0 : index
    %336 = vector.load %arg12[%c3_205, %335, %c0_206, %c0_207] : memref<4x8x2x32xf32, #tpu.memory_space<vmem>>, vector<1x1x2x32xf32>
    %337 = vector.shape_cast %336 : vector<1x1x2x32xf32> to vector<2x32xf32>
    %cst_208 = arith.constant dense<0.000000e+00> : vector<2x32xf32>
    %338 = tpu.matmul %304, %81, %cst_208 {dimension_numbers = #tpu.dot_dimension_numbers<[1], [0], [0], [1], [0, 0, 1, 1], [], []>} : vector<2x32xf32>, vector<32x32xf32>, vector<2x32xf32> -> vector<2x32xf32>
    %339 = arith.addf %337, %338 : vector<2x32xf32>
    %340 = arith.negf %339 : vector<2x32xf32>
    %341 = math.exp %340 : vector<2x32xf32>
    %cst_209 = arith.constant 1.000000e+00 : f32
    %342 = vector.broadcast %cst_209 : f32 to vector<2x32xf32>
    %343 = arith.addf %342, %341 : vector<2x32xf32>
    %344 = arith.divf %342, %343 : vector<2x32xf32>
    %345 = arith.mulf %328, %302 : vector<2x32xf32>
    %346 = arith.mulf %318, %334 : vector<2x32xf32>
    %347 = arith.addf %345, %346 : vector<2x32xf32>
    %348 = math.tanh %347 : vector<2x32xf32>
    %349 = arith.mulf %344, %348 : vector<2x32xf32>
    %350 = arith.index_cast %c5_i32 : i32 to index
    %c0_210 = arith.constant 0 : index
    %c0_211 = arith.constant 0 : index
    %351 = vector.load %arg11[%350, %c0_210, %c0_211] : memref<8x2x32xf32, #tpu.memory_space<vmem>>, vector<1x2x32xf32>
    %352 = vector.shape_cast %351 : vector<1x2x32xf32> to vector<2x32xf32>
    %353 = vector.shape_cast %349 : vector<2x32xf32> to vector<1x2x32xf32>
    tpu.vector_store %arg11[%350, %c0_210, %c0_211], %353 {strides = array<i32>} : memref<8x2x32xf32, #tpu.memory_space<vmem>>, vector<1x2x32xf32>,
    %c6_i32 = arith.constant 6 : i32
    %c0_212 = arith.constant 0 : index
    %354 = arith.index_cast %c6_i32 : i32 to index
    %c0_213 = arith.constant 0 : index
    %c0_214 = arith.constant 0 : index
    %355 = vector.load %arg12[%c0_212, %354, %c0_213, %c0_214] : memref<4x8x2x32xf32, #tpu.memory_space<vmem>>, vector<1x1x2x32xf32>
    %356 = vector.shape_cast %355 : vector<1x1x2x32xf32> to vector<2x32xf32>
    %cst_215 = arith.constant dense<0.000000e+00> : vector<2x32xf32>
    %357 = tpu.matmul %349, %75, %cst_215 {dimension_numbers = #tpu.dot_dimension_numbers<[1], [0], [0], [1], [0, 0, 1, 1], [], []>} : vector<2x32xf32>, vector<32x32xf32>, vector<2x32xf32> -> vector<2x32xf32>
    %358 = arith.addf %356, %357 : vector<2x32xf32>
    %359 = arith.negf %358 : vector<2x32xf32>
    %360 = math.exp %359 : vector<2x32xf32>
    %cst_216 = arith.constant 1.000000e+00 : f32
    %361 = vector.broadcast %cst_216 : f32 to vector<2x32xf32>
    %362 = arith.addf %361, %360 : vector<2x32xf32>
    %363 = arith.divf %361, %362 : vector<2x32xf32>
    %c1_217 = arith.constant 1 : index
    %364 = arith.index_cast %c6_i32 : i32 to index
    %c0_218 = arith.constant 0 : index
    %c0_219 = arith.constant 0 : index
    %365 = vector.load %arg12[%c1_217, %364, %c0_218, %c0_219] : memref<4x8x2x32xf32, #tpu.memory_space<vmem>>, vector<1x1x2x32xf32>
    %366 = vector.shape_cast %365 : vector<1x1x2x32xf32> to vector<2x32xf32>
    %cst_220 = arith.constant dense<0.000000e+00> : vector<2x32xf32>
    %367 = tpu.matmul %349, %77, %cst_220 {dimension_numbers = #tpu.dot_dimension_numbers<[1], [0], [0], [1], [0, 0, 1, 1], [], []>} : vector<2x32xf32>, vector<32x32xf32>, vector<2x32xf32> -> vector<2x32xf32>
    %368 = arith.addf %366, %367 : vector<2x32xf32>
    %369 = arith.negf %368 : vector<2x32xf32>
    %370 = math.exp %369 : vector<2x32xf32>
    %cst_221 = arith.constant 1.000000e+00 : f32
    %371 = vector.broadcast %cst_221 : f32 to vector<2x32xf32>
    %372 = arith.addf %371, %370 : vector<2x32xf32>
    %373 = arith.divf %371, %372 : vector<2x32xf32>
    %c2_222 = arith.constant 2 : index
    %374 = arith.index_cast %c6_i32 : i32 to index
    %c0_223 = arith.constant 0 : index
    %c0_224 = arith.constant 0 : index
    %375 = vector.load %arg12[%c2_222, %374, %c0_223, %c0_224] : memref<4x8x2x32xf32, #tpu.memory_space<vmem>>, vector<1x1x2x32xf32>
    %376 = vector.shape_cast %375 : vector<1x1x2x32xf32> to vector<2x32xf32>
    %cst_225 = arith.constant dense<0.000000e+00> : vector<2x32xf32>
    %377 = tpu.matmul %349, %79, %cst_225 {dimension_numbers = #tpu.dot_dimension_numbers<[1], [0], [0], [1], [0, 0, 1, 1], [], []>} : vector<2x32xf32>, vector<32x32xf32>, vector<2x32xf32> -> vector<2x32xf32>
    %378 = arith.addf %376, %377 : vector<2x32xf32>
    %379 = math.tanh %378 : vector<2x32xf32>
    %c3_226 = arith.constant 3 : index
    %380 = arith.index_cast %c6_i32 : i32 to index
    %c0_227 = arith.constant 0 : index
    %c0_228 = arith.constant 0 : index
    %381 = vector.load %arg12[%c3_226, %380, %c0_227, %c0_228] : memref<4x8x2x32xf32, #tpu.memory_space<vmem>>, vector<1x1x2x32xf32>
    %382 = vector.shape_cast %381 : vector<1x1x2x32xf32> to vector<2x32xf32>
    %cst_229 = arith.constant dense<0.000000e+00> : vector<2x32xf32>
    %383 = tpu.matmul %349, %81, %cst_229 {dimension_numbers = #tpu.dot_dimension_numbers<[1], [0], [0], [1], [0, 0, 1, 1], [], []>} : vector<2x32xf32>, vector<32x32xf32>, vector<2x32xf32> -> vector<2x32xf32>
    %384 = arith.addf %382, %383 : vector<2x32xf32>
    %385 = arith.negf %384 : vector<2x32xf32>
    %386 = math.exp %385 : vector<2x32xf32>
    %cst_230 = arith.constant 1.000000e+00 : f32
    %387 = vector.broadcast %cst_230 : f32 to vector<2x32xf32>
    %388 = arith.addf %387, %386 : vector<2x32xf32>
    %389 = arith.divf %387, %388 : vector<2x32xf32>
    %390 = arith.mulf %373, %347 : vector<2x32xf32>
    %391 = arith.mulf %363, %379 : vector<2x32xf32>
    %392 = arith.addf %390, %391 : vector<2x32xf32>
    %393 = math.tanh %392 : vector<2x32xf32>
    %394 = arith.mulf %389, %393 : vector<2x32xf32>
    %395 = arith.index_cast %c6_i32 : i32 to index
    %c0_231 = arith.constant 0 : index
    %c0_232 = arith.constant 0 : index
    %396 = vector.load %arg11[%395, %c0_231, %c0_232] : memref<8x2x32xf32, #tpu.memory_space<vmem>>, vector<1x2x32xf32>
    %397 = vector.shape_cast %396 : vector<1x2x32xf32> to vector<2x32xf32>
    %398 = vector.shape_cast %394 : vector<2x32xf32> to vector<1x2x32xf32>
    tpu.vector_store %arg11[%395, %c0_231, %c0_232], %398 {strides = array<i32>} : memref<8x2x32xf32, #tpu.memory_space<vmem>>, vector<1x2x32xf32>,
    %c7_i32 = arith.constant 7 : i32
    %c0_233 = arith.constant 0 : index
    %399 = arith.index_cast %c7_i32 : i32 to index
    %c0_234 = arith.constant 0 : index
    %c0_235 = arith.constant 0 : index
    %400 = vector.load %arg12[%c0_233, %399, %c0_234, %c0_235] : memref<4x8x2x32xf32, #tpu.memory_space<vmem>>, vector<1x1x2x32xf32>
    %401 = vector.shape_cast %400 : vector<1x1x2x32xf32> to vector<2x32xf32>
    %cst_236 = arith.constant dense<0.000000e+00> : vector<2x32xf32>
    %402 = tpu.matmul %394, %75, %cst_236 {dimension_numbers = #tpu.dot_dimension_numbers<[1], [0], [0], [1], [0, 0, 1, 1], [], []>} : vector<2x32xf32>, vector<32x32xf32>, vector<2x32xf32> -> vector<2x32xf32>
    %403 = arith.addf %401, %402 : vector<2x32xf32>
    %404 = arith.negf %403 : vector<2x32xf32>
    %405 = math.exp %404 : vector<2x32xf32>
    %cst_237 = arith.constant 1.000000e+00 : f32
    %406 = vector.broadcast %cst_237 : f32 to vector<2x32xf32>
    %407 = arith.addf %406, %405 : vector<2x32xf32>
    %408 = arith.divf %406, %407 : vector<2x32xf32>
    %c1_238 = arith.constant 1 : index
    %409 = arith.index_cast %c7_i32 : i32 to index
    %c0_239 = arith.constant 0 : index
    %c0_240 = arith.constant 0 : index
    %410 = vector.load %arg12[%c1_238, %409, %c0_239, %c0_240] : memref<4x8x2x32xf32, #tpu.memory_space<vmem>>, vector<1x1x2x32xf32>
    %411 = vector.shape_cast %410 : vector<1x1x2x32xf32> to vector<2x32xf32>
    %cst_241 = arith.constant dense<0.000000e+00> : vector<2x32xf32>
    %412 = tpu.matmul %394, %77, %cst_241 {dimension_numbers = #tpu.dot_dimension_numbers<[1], [0], [0], [1], [0, 0, 1, 1], [], []>} : vector<2x32xf32>, vector<32x32xf32>, vector<2x32xf32> -> vector<2x32xf32>
    %413 = arith.addf %411, %412 : vector<2x32xf32>
    %414 = arith.negf %413 : vector<2x32xf32>
    %415 = math.exp %414 : vector<2x32xf32>
    %cst_242 = arith.constant 1.000000e+00 : f32
    %416 = vector.broadcast %cst_242 : f32 to vector<2x32xf32>
    %417 = arith.addf %416, %415 : vector<2x32xf32>
    %418 = arith.divf %416, %417 : vector<2x32xf32>
    %c2_243 = arith.constant 2 : index
    %419 = arith.index_cast %c7_i32 : i32 to index
    %c0_244 = arith.constant 0 : index
    %c0_245 = arith.constant 0 : index
    %420 = vector.load %arg12[%c2_243, %419, %c0_244, %c0_245] : memref<4x8x2x32xf32, #tpu.memory_space<vmem>>, vector<1x1x2x32xf32>
    %421 = vector.shape_cast %420 : vector<1x1x2x32xf32> to vector<2x32xf32>
    %cst_246 = arith.constant dense<0.000000e+00> : vector<2x32xf32>
    %422 = tpu.matmul %394, %79, %cst_246 {dimension_numbers = #tpu.dot_dimension_numbers<[1], [0], [0], [1], [0, 0, 1, 1], [], []>} : vector<2x32xf32>, vector<32x32xf32>, vector<2x32xf32> -> vector<2x32xf32>
    %423 = arith.addf %421, %422 : vector<2x32xf32>
    %424 = math.tanh %423 : vector<2x32xf32>
    %c3_247 = arith.constant 3 : index
    %425 = arith.index_cast %c7_i32 : i32 to index
    %c0_248 = arith.constant 0 : index
    %c0_249 = arith.constant 0 : index
    %426 = vector.load %arg12[%c3_247, %425, %c0_248, %c0_249] : memref<4x8x2x32xf32, #tpu.memory_space<vmem>>, vector<1x1x2x32xf32>
    %427 = vector.shape_cast %426 : vector<1x1x2x32xf32> to vector<2x32xf32>
    %cst_250 = arith.constant dense<0.000000e+00> : vector<2x32xf32>
    %428 = tpu.matmul %394, %81, %cst_250 {dimension_numbers = #tpu.dot_dimension_numbers<[1], [0], [0], [1], [0, 0, 1, 1], [], []>} : vector<2x32xf32>, vector<32x32xf32>, vector<2x32xf32> -> vector<2x32xf32>
    %429 = arith.addf %427, %428 : vector<2x32xf32>
    %430 = arith.negf %429 : vector<2x32xf32>
    %431 = math.exp %430 : vector<2x32xf32>
    %cst_251 = arith.constant 1.000000e+00 : f32
    %432 = vector.broadcast %cst_251 : f32 to vector<2x32xf32>
    %433 = arith.addf %432, %431 : vector<2x32xf32>
    %434 = arith.divf %432, %433 : vector<2x32xf32>
    %435 = arith.mulf %418, %392 : vector<2x32xf32>
    %436 = arith.mulf %408, %424 : vector<2x32xf32>
    %437 = arith.addf %435, %436 : vector<2x32xf32>
    %438 = math.tanh %437 : vector<2x32xf32>
    %439 = arith.mulf %434, %438 : vector<2x32xf32>
    %440 = arith.index_cast %c7_i32 : i32 to index
    %c0_252 = arith.constant 0 : index
    %c0_253 = arith.constant 0 : index
    %441 = vector.load %arg11[%440, %c0_252, %c0_253] : memref<8x2x32xf32, #tpu.memory_space<vmem>>, vector<1x2x32xf32>
    %442 = vector.shape_cast %441 : vector<1x2x32xf32> to vector<2x32xf32>
    %443 = vector.shape_cast %439 : vector<2x32xf32> to vector<1x2x32xf32>
    tpu.vector_store %arg11[%440, %c0_252, %c0_253], %443 {strides = array<i32>} : memref<8x2x32xf32, #tpu.memory_space<vmem>>, vector<1x2x32xf32>,
    %c8_i32 = arith.constant 8 : i32
    %c0_254 = arith.constant 0 : index
    %c0_255 = arith.constant 0 : index
    %c0_256 = arith.constant 0 : index
    %444 = vector.load %arg11[%c0_254, %c0_255, %c0_256] : memref<8x2x32xf32, #tpu.memory_space<vmem>>, vector<8x2x32xf32>
    %445 = vector.shape_cast %444 : vector<8x2x32xf32> to vector<16x32xf32>
    %c1_257 = arith.constant 1 : index
    %c0_258 = arith.constant 0 : index
    %c0_259 = arith.constant 0 : index
    %c0_260 = arith.constant 0 : index
    %446 = vector.load %arg5[%c1_257, %c0_258, %c0_259, %c0_260] : memref<4x4x32x32xf32, #tpu.memory_space<vmem>>, vector<1x1x32x32xf32>
    %447 = vector.shape_cast %446 : vector<1x1x32x32xf32> to vector<32x32xf32>
    %c1_261 = arith.constant 1 : index
    %c0_262 = arith.constant 0 : index
    %c0_263 = arith.constant 0 : index
    %c0_264 = arith.constant 0 : index
    %448 = vector.load %arg7[%c1_261, %c0_262, %c0_263, %c0_264] : memref<4x4x1x32xf32, #tpu.memory_space<vmem>>, vector<1x1x1x32xf32>
    %449 = vector.shape_cast %448 : vector<1x1x1x32xf32> to vector<1x32xf32>
    %cst_265 = arith.constant dense<0.000000e+00> : vector<16x32xf32>
    %450 = tpu.matmul %445, %447, %cst_265 {dimension_numbers = #tpu.dot_dimension_numbers<[1], [0], [0], [1], [0, 0, 1, 1], [], []>} : vector<16x32xf32>, vector<32x32xf32>, vector<16x32xf32> -> vector<16x32xf32>
    %451 = vector.broadcast %449 : vector<1x32xf32> to vector<16x32xf32>
    %452 = arith.addf %450, %451 : vector<16x32xf32>
    %453 = vector.shape_cast %452 : vector<16x32xf32> to vector<8x2x32xf32>
    %c0_266 = arith.constant 0 : index
    %c0_267 = arith.constant 0 : index
    %c0_268 = arith.constant 0 : index
    %c0_269 = arith.constant 0 : index
    %454 = vector.load %arg12[%c0_266, %c0_267, %c0_268, %c0_269] : memref<4x8x2x32xf32, #tpu.memory_space<vmem>>, vector<1x8x2x32xf32>
    %455 = vector.shape_cast %454 : vector<1x8x2x32xf32> to vector<8x2x32xf32>
    %456 = vector.shape_cast %453 : vector<8x2x32xf32> to vector<1x8x2x32xf32>
    tpu.vector_store %arg12[%c0_266, %c0_267, %c0_268, %c0_269], %456 {strides = array<i32>} : memref<4x8x2x32xf32, #tpu.memory_space<vmem>>, vector<1x8x2x32xf32>,
    %c1_270 = arith.constant 1 : index
    %c1_271 = arith.constant 1 : index
    %c0_272 = arith.constant 0 : index
    %c0_273 = arith.constant 0 : index
    %457 = vector.load %arg5[%c1_270, %c1_271, %c0_272, %c0_273] : memref<4x4x32x32xf32, #tpu.memory_space<vmem>>, vector<1x1x32x32xf32>
    %458 = vector.shape_cast %457 : vector<1x1x32x32xf32> to vector<32x32xf32>
    %c1_274 = arith.constant 1 : index
    %c1_275 = arith.constant 1 : index
    %c0_276 = arith.constant 0 : index
    %c0_277 = arith.constant 0 : index
    %459 = vector.load %arg7[%c1_274, %c1_275, %c0_276, %c0_277] : memref<4x4x1x32xf32, #tpu.memory_space<vmem>>, vector<1x1x1x32xf32>
    %460 = vector.shape_cast %459 : vector<1x1x1x32xf32> to vector<1x32xf32>
    %cst_278 = arith.constant dense<0.000000e+00> : vector<16x32xf32>
    %461 = tpu.matmul %445, %458, %cst_278 {dimension_numbers = #tpu.dot_dimension_numbers<[1], [0], [0], [1], [0, 0, 1, 1], [], []>} : vector<16x32xf32>, vector<32x32xf32>, vector<16x32xf32> -> vector<16x32xf32>
    %462 = vector.broadcast %460 : vector<1x32xf32> to vector<16x32xf32>
    %463 = arith.addf %461, %462 : vector<16x32xf32>
    %464 = vector.shape_cast %463 : vector<16x32xf32> to vector<8x2x32xf32>
    %c1_279 = arith.constant 1 : index
    %c0_280 = arith.constant 0 : index
    %c0_281 = arith.constant 0 : index
    %c0_282 = arith.constant 0 : index
    %465 = vector.load %arg12[%c1_279, %c0_280, %c0_281, %c0_282] : memref<4x8x2x32xf32, #tpu.memory_space<vmem>>, vector<1x8x2x32xf32>
    %466 = vector.shape_cast %465 : vector<1x8x2x32xf32> to vector<8x2x32xf32>
    %467 = vector.shape_cast %464 : vector<8x2x32xf32> to vector<1x8x2x32xf32>
    tpu.vector_store %arg12[%c1_279, %c0_280, %c0_281, %c0_282], %467 {strides = array<i32>} : memref<4x8x2x32xf32, #tpu.memory_space<vmem>>, vector<1x8x2x32xf32>,
    %c1_283 = arith.constant 1 : index
    %c2_284 = arith.constant 2 : index
    %c0_285 = arith.constant 0 : index
    %c0_286 = arith.constant 0 : index
    %468 = vector.load %arg5[%c1_283, %c2_284, %c0_285, %c0_286] : memref<4x4x32x32xf32, #tpu.memory_space<vmem>>, vector<1x1x32x32xf32>
    %469 = vector.shape_cast %468 : vector<1x1x32x32xf32> to vector<32x32xf32>
    %c1_287 = arith.constant 1 : index
    %c2_288 = arith.constant 2 : index
    %c0_289 = arith.constant 0 : index
    %c0_290 = arith.constant 0 : index
    %470 = vector.load %arg7[%c1_287, %c2_288, %c0_289, %c0_290] : memref<4x4x1x32xf32, #tpu.memory_space<vmem>>, vector<1x1x1x32xf32>
    %471 = vector.shape_cast %470 : vector<1x1x1x32xf32> to vector<1x32xf32>
    %cst_291 = arith.constant dense<0.000000e+00> : vector<16x32xf32>
    %472 = tpu.matmul %445, %469, %cst_291 {dimension_numbers = #tpu.dot_dimension_numbers<[1], [0], [0], [1], [0, 0, 1, 1], [], []>} : vector<16x32xf32>, vector<32x32xf32>, vector<16x32xf32> -> vector<16x32xf32>
    %473 = vector.broadcast %471 : vector<1x32xf32> to vector<16x32xf32>
    %474 = arith.addf %472, %473 : vector<16x32xf32>
    %475 = vector.shape_cast %474 : vector<16x32xf32> to vector<8x2x32xf32>
    %c2_292 = arith.constant 2 : index
    %c0_293 = arith.constant 0 : index
    %c0_294 = arith.constant 0 : index
    %c0_295 = arith.constant 0 : index
    %476 = vector.load %arg12[%c2_292, %c0_293, %c0_294, %c0_295] : memref<4x8x2x32xf32, #tpu.memory_space<vmem>>, vector<1x8x2x32xf32>
    %477 = vector.shape_cast %476 : vector<1x8x2x32xf32> to vector<8x2x32xf32>
    %478 = vector.shape_cast %475 : vector<8x2x32xf32> to vector<1x8x2x32xf32>
    tpu.vector_store %arg12[%c2_292, %c0_293, %c0_294, %c0_295], %478 {strides = array<i32>} : memref<4x8x2x32xf32, #tpu.memory_space<vmem>>, vector<1x8x2x32xf32>,
    %c1_296 = arith.constant 1 : index
    %c3_297 = arith.constant 3 : index
    %c0_298 = arith.constant 0 : index
    %c0_299 = arith.constant 0 : index
    %479 = vector.load %arg5[%c1_296, %c3_297, %c0_298, %c0_299] : memref<4x4x32x32xf32, #tpu.memory_space<vmem>>, vector<1x1x32x32xf32>
    %480 = vector.shape_cast %479 : vector<1x1x32x32xf32> to vector<32x32xf32>
    %c1_300 = arith.constant 1 : index
    %c3_301 = arith.constant 3 : index
    %c0_302 = arith.constant 0 : index
    %c0_303 = arith.constant 0 : index
    %481 = vector.load %arg7[%c1_300, %c3_301, %c0_302, %c0_303] : memref<4x4x1x32xf32, #tpu.memory_space<vmem>>, vector<1x1x1x32xf32>
    %482 = vector.shape_cast %481 : vector<1x1x1x32xf32> to vector<1x32xf32>
    %cst_304 = arith.constant dense<0.000000e+00> : vector<16x32xf32>
    %483 = tpu.matmul %445, %480, %cst_304 {dimension_numbers = #tpu.dot_dimension_numbers<[1], [0], [0], [1], [0, 0, 1, 1], [], []>} : vector<16x32xf32>, vector<32x32xf32>, vector<16x32xf32> -> vector<16x32xf32>
    %484 = vector.broadcast %482 : vector<1x32xf32> to vector<16x32xf32>
    %485 = arith.addf %483, %484 : vector<16x32xf32>
    %486 = vector.shape_cast %485 : vector<16x32xf32> to vector<8x2x32xf32>
    %c3_305 = arith.constant 3 : index
    %c0_306 = arith.constant 0 : index
    %c0_307 = arith.constant 0 : index
    %c0_308 = arith.constant 0 : index
    %487 = vector.load %arg12[%c3_305, %c0_306, %c0_307, %c0_308] : memref<4x8x2x32xf32, #tpu.memory_space<vmem>>, vector<1x8x2x32xf32>
    %488 = vector.shape_cast %487 : vector<1x8x2x32xf32> to vector<8x2x32xf32>
    %489 = vector.shape_cast %486 : vector<8x2x32xf32> to vector<1x8x2x32xf32>
    tpu.vector_store %arg12[%c3_305, %c0_306, %c0_307, %c0_308], %489 {strides = array<i32>} : memref<4x8x2x32xf32, #tpu.memory_space<vmem>>, vector<1x8x2x32xf32>,
    %c1_309 = arith.constant 1 : index
    %c0_310 = arith.constant 0 : index
    %c0_311 = arith.constant 0 : index
    %c0_312 = arith.constant 0 : index
    %490 = vector.load %arg6[%c1_309, %c0_310, %c0_311, %c0_312] : memref<4x4x32x32xf32, #tpu.memory_space<vmem>>, vector<1x1x32x32xf32>
    %491 = vector.shape_cast %490 : vector<1x1x32x32xf32> to vector<32x32xf32>
    %c1_313 = arith.constant 1 : index
    %c1_314 = arith.constant 1 : index
    %c0_315 = arith.constant 0 : index
    %c0_316 = arith.constant 0 : index
    %492 = vector.load %arg6[%c1_313, %c1_314, %c0_315, %c0_316] : memref<4x4x32x32xf32, #tpu.memory_space<vmem>>, vector<1x1x32x32xf32>
    %493 = vector.shape_cast %492 : vector<1x1x32x32xf32> to vector<32x32xf32>
    %c1_317 = arith.constant 1 : index
    %c2_318 = arith.constant 2 : index
    %c0_319 = arith.constant 0 : index
    %c0_320 = arith.constant 0 : index
    %494 = vector.load %arg6[%c1_317, %c2_318, %c0_319, %c0_320] : memref<4x4x32x32xf32, #tpu.memory_space<vmem>>, vector<1x1x32x32xf32>
    %495 = vector.shape_cast %494 : vector<1x1x32x32xf32> to vector<32x32xf32>
    %c1_321 = arith.constant 1 : index
    %c3_322 = arith.constant 3 : index
    %c0_323 = arith.constant 0 : index
    %c0_324 = arith.constant 0 : index
    %496 = vector.load %arg6[%c1_321, %c3_322, %c0_323, %c0_324] : memref<4x4x32x32xf32, #tpu.memory_space<vmem>>, vector<1x1x32x32xf32>
    %497 = vector.shape_cast %496 : vector<1x1x32x32xf32> to vector<32x32xf32>
    %cst_325 = arith.constant 0.000000e+00 : f32
    %498 = vector.broadcast %cst_325 : f32 to vector<2x32xf32>
    %cst_326 = arith.constant 0.000000e+00 : f32
    %499 = vector.broadcast %cst_326 : f32 to vector<2x32xf32>
    %c0_i32_327 = arith.constant 0 : i32
    %c0_328 = arith.constant 0 : index
    %500 = arith.index_cast %c0_i32_327 : i32 to index
    %c0_329 = arith.constant 0 : index
    %c0_330 = arith.constant 0 : index
    %501 = vector.load %arg12[%c0_328, %500, %c0_329, %c0_330] : memref<4x8x2x32xf32, #tpu.memory_space<vmem>>, vector<1x1x2x32xf32>
    %502 = vector.shape_cast %501 : vector<1x1x2x32xf32> to vector<2x32xf32>
    %cst_331 = arith.constant dense<0.000000e+00> : vector<2x32xf32>
    %503 = tpu.matmul %498, %491, %cst_331 {dimension_numbers = #tpu.dot_dimension_numbers<[1], [0], [0], [1], [0, 0, 1, 1], [], []>} : vector<2x32xf32>, vector<32x32xf32>, vector<2x32xf32> -> vector<2x32xf32>
    %504 = arith.addf %502, %503 : vector<2x32xf32>
    %505 = arith.negf %504 : vector<2x32xf32>
    %506 = math.exp %505 : vector<2x32xf32>
    %cst_332 = arith.constant 1.000000e+00 : f32
    %507 = vector.broadcast %cst_332 : f32 to vector<2x32xf32>
    %508 = arith.addf %507, %506 : vector<2x32xf32>
    %509 = arith.divf %507, %508 : vector<2x32xf32>
    %c1_333 = arith.constant 1 : index
    %510 = arith.index_cast %c0_i32_327 : i32 to index
    %c0_334 = arith.constant 0 : index
    %c0_335 = arith.constant 0 : index
    %511 = vector.load %arg12[%c1_333, %510, %c0_334, %c0_335] : memref<4x8x2x32xf32, #tpu.memory_space<vmem>>, vector<1x1x2x32xf32>
    %512 = vector.shape_cast %511 : vector<1x1x2x32xf32> to vector<2x32xf32>
    %cst_336 = arith.constant dense<0.000000e+00> : vector<2x32xf32>
    %513 = tpu.matmul %498, %493, %cst_336 {dimension_numbers = #tpu.dot_dimension_numbers<[1], [0], [0], [1], [0, 0, 1, 1], [], []>} : vector<2x32xf32>, vector<32x32xf32>, vector<2x32xf32> -> vector<2x32xf32>
    %514 = arith.addf %512, %513 : vector<2x32xf32>
    %515 = arith.negf %514 : vector<2x32xf32>
    %516 = math.exp %515 : vector<2x32xf32>
    %cst_337 = arith.constant 1.000000e+00 : f32
    %517 = vector.broadcast %cst_337 : f32 to vector<2x32xf32>
    %518 = arith.addf %517, %516 : vector<2x32xf32>
    %519 = arith.divf %517, %518 : vector<2x32xf32>
    %c2_338 = arith.constant 2 : index
    %520 = arith.index_cast %c0_i32_327 : i32 to index
    %c0_339 = arith.constant 0 : index
    %c0_340 = arith.constant 0 : index
    %521 = vector.load %arg12[%c2_338, %520, %c0_339, %c0_340] : memref<4x8x2x32xf32, #tpu.memory_space<vmem>>, vector<1x1x2x32xf32>
    %522 = vector.shape_cast %521 : vector<1x1x2x32xf32> to vector<2x32xf32>
    %cst_341 = arith.constant dense<0.000000e+00> : vector<2x32xf32>
    %523 = tpu.matmul %498, %495, %cst_341 {dimension_numbers = #tpu.dot_dimension_numbers<[1], [0], [0], [1], [0, 0, 1, 1], [], []>} : vector<2x32xf32>, vector<32x32xf32>, vector<2x32xf32> -> vector<2x32xf32>
    %524 = arith.addf %522, %523 : vector<2x32xf32>
    %525 = math.tanh %524 : vector<2x32xf32>
    %c3_342 = arith.constant 3 : index
    %526 = arith.index_cast %c0_i32_327 : i32 to index
    %c0_343 = arith.constant 0 : index
    %c0_344 = arith.constant 0 : index
    %527 = vector.load %arg12[%c3_342, %526, %c0_343, %c0_344] : memref<4x8x2x32xf32, #tpu.memory_space<vmem>>, vector<1x1x2x32xf32>
    %528 = vector.shape_cast %527 : vector<1x1x2x32xf32> to vector<2x32xf32>
    %cst_345 = arith.constant dense<0.000000e+00> : vector<2x32xf32>
    %529 = tpu.matmul %498, %497, %cst_345 {dimension_numbers = #tpu.dot_dimension_numbers<[1], [0], [0], [1], [0, 0, 1, 1], [], []>} : vector<2x32xf32>, vector<32x32xf32>, vector<2x32xf32> -> vector<2x32xf32>
    %530 = arith.addf %528, %529 : vector<2x32xf32>
    %531 = arith.negf %530 : vector<2x32xf32>
    %532 = math.exp %531 : vector<2x32xf32>
    %cst_346 = arith.constant 1.000000e+00 : f32
    %533 = vector.broadcast %cst_346 : f32 to vector<2x32xf32>
    %534 = arith.addf %533, %532 : vector<2x32xf32>
    %535 = arith.divf %533, %534 : vector<2x32xf32>
    %536 = arith.mulf %519, %499 : vector<2x32xf32>
    %537 = arith.mulf %509, %525 : vector<2x32xf32>
    %538 = arith.addf %536, %537 : vector<2x32xf32>
    %539 = math.tanh %538 : vector<2x32xf32>
    %540 = arith.mulf %535, %539 : vector<2x32xf32>
    %541 = arith.index_cast %c0_i32_327 : i32 to index
    %c0_347 = arith.constant 0 : index
    %c0_348 = arith.constant 0 : index
    %542 = vector.load %arg11[%541, %c0_347, %c0_348] : memref<8x2x32xf32, #tpu.memory_space<vmem>>, vector<1x2x32xf32>
    %543 = vector.shape_cast %542 : vector<1x2x32xf32> to vector<2x32xf32>
    %544 = vector.shape_cast %540 : vector<2x32xf32> to vector<1x2x32xf32>
    tpu.vector_store %arg11[%541, %c0_347, %c0_348], %544 {strides = array<i32>} : memref<8x2x32xf32, #tpu.memory_space<vmem>>, vector<1x2x32xf32>,
    %c1_i32_349 = arith.constant 1 : i32
    %c0_350 = arith.constant 0 : index
    %545 = arith.index_cast %c1_i32_349 : i32 to index
    %c0_351 = arith.constant 0 : index
    %c0_352 = arith.constant 0 : index
    %546 = vector.load %arg12[%c0_350, %545, %c0_351, %c0_352] : memref<4x8x2x32xf32, #tpu.memory_space<vmem>>, vector<1x1x2x32xf32>
    %547 = vector.shape_cast %546 : vector<1x1x2x32xf32> to vector<2x32xf32>
    %cst_353 = arith.constant dense<0.000000e+00> : vector<2x32xf32>
    %548 = tpu.matmul %540, %491, %cst_353 {dimension_numbers = #tpu.dot_dimension_numbers<[1], [0], [0], [1], [0, 0, 1, 1], [], []>} : vector<2x32xf32>, vector<32x32xf32>, vector<2x32xf32> -> vector<2x32xf32>
    %549 = arith.addf %547, %548 : vector<2x32xf32>
    %550 = arith.negf %549 : vector<2x32xf32>
    %551 = math.exp %550 : vector<2x32xf32>
    %cst_354 = arith.constant 1.000000e+00 : f32
    %552 = vector.broadcast %cst_354 : f32 to vector<2x32xf32>
    %553 = arith.addf %552, %551 : vector<2x32xf32>
    %554 = arith.divf %552, %553 : vector<2x32xf32>
    %c1_355 = arith.constant 1 : index
    %555 = arith.index_cast %c1_i32_349 : i32 to index
    %c0_356 = arith.constant 0 : index
    %c0_357 = arith.constant 0 : index
    %556 = vector.load %arg12[%c1_355, %555, %c0_356, %c0_357] : memref<4x8x2x32xf32, #tpu.memory_space<vmem>>, vector<1x1x2x32xf32>
    %557 = vector.shape_cast %556 : vector<1x1x2x32xf32> to vector<2x32xf32>
    %cst_358 = arith.constant dense<0.000000e+00> : vector<2x32xf32>
    %558 = tpu.matmul %540, %493, %cst_358 {dimension_numbers = #tpu.dot_dimension_numbers<[1], [0], [0], [1], [0, 0, 1, 1], [], []>} : vector<2x32xf32>, vector<32x32xf32>, vector<2x32xf32> -> vector<2x32xf32>
    %559 = arith.addf %557, %558 : vector<2x32xf32>
    %560 = arith.negf %559 : vector<2x32xf32>
    %561 = math.exp %560 : vector<2x32xf32>
    %cst_359 = arith.constant 1.000000e+00 : f32
    %562 = vector.broadcast %cst_359 : f32 to vector<2x32xf32>
    %563 = arith.addf %562, %561 : vector<2x32xf32>
    %564 = arith.divf %562, %563 : vector<2x32xf32>
    %c2_360 = arith.constant 2 : index
    %565 = arith.index_cast %c1_i32_349 : i32 to index
    %c0_361 = arith.constant 0 : index
    %c0_362 = arith.constant 0 : index
    %566 = vector.load %arg12[%c2_360, %565, %c0_361, %c0_362] : memref<4x8x2x32xf32, #tpu.memory_space<vmem>>, vector<1x1x2x32xf32>
    %567 = vector.shape_cast %566 : vector<1x1x2x32xf32> to vector<2x32xf32>
    %cst_363 = arith.constant dense<0.000000e+00> : vector<2x32xf32>
    %568 = tpu.matmul %540, %495, %cst_363 {dimension_numbers = #tpu.dot_dimension_numbers<[1], [0], [0], [1], [0, 0, 1, 1], [], []>} : vector<2x32xf32>, vector<32x32xf32>, vector<2x32xf32> -> vector<2x32xf32>
    %569 = arith.addf %567, %568 : vector<2x32xf32>
    %570 = math.tanh %569 : vector<2x32xf32>
    %c3_364 = arith.constant 3 : index
    %571 = arith.index_cast %c1_i32_349 : i32 to index
    %c0_365 = arith.constant 0 : index
    %c0_366 = arith.constant 0 : index
    %572 = vector.load %arg12[%c3_364, %571, %c0_365, %c0_366] : memref<4x8x2x32xf32, #tpu.memory_space<vmem>>, vector<1x1x2x32xf32>
    %573 = vector.shape_cast %572 : vector<1x1x2x32xf32> to vector<2x32xf32>
    %cst_367 = arith.constant dense<0.000000e+00> : vector<2x32xf32>
    %574 = tpu.matmul %540, %497, %cst_367 {dimension_numbers = #tpu.dot_dimension_numbers<[1], [0], [0], [1], [0, 0, 1, 1], [], []>} : vector<2x32xf32>, vector<32x32xf32>, vector<2x32xf32> -> vector<2x32xf32>
    %575 = arith.addf %573, %574 : vector<2x32xf32>
    %576 = arith.negf %575 : vector<2x32xf32>
    %577 = math.exp %576 : vector<2x32xf32>
    %cst_368 = arith.constant 1.000000e+00 : f32
    %578 = vector.broadcast %cst_368 : f32 to vector<2x32xf32>
    %579 = arith.addf %578, %577 : vector<2x32xf32>
    %580 = arith.divf %578, %579 : vector<2x32xf32>
    %581 = arith.mulf %564, %538 : vector<2x32xf32>
    %582 = arith.mulf %554, %570 : vector<2x32xf32>
    %583 = arith.addf %581, %582 : vector<2x32xf32>
    %584 = math.tanh %583 : vector<2x32xf32>
    %585 = arith.mulf %580, %584 : vector<2x32xf32>
    %586 = arith.index_cast %c1_i32_349 : i32 to index
    %c0_369 = arith.constant 0 : index
    %c0_370 = arith.constant 0 : index
    %587 = vector.load %arg11[%586, %c0_369, %c0_370] : memref<8x2x32xf32, #tpu.memory_space<vmem>>, vector<1x2x32xf32>
    %588 = vector.shape_cast %587 : vector<1x2x32xf32> to vector<2x32xf32>
    %589 = vector.shape_cast %585 : vector<2x32xf32> to vector<1x2x32xf32>
    tpu.vector_store %arg11[%586, %c0_369, %c0_370], %589 {strides = array<i32>} : memref<8x2x32xf32, #tpu.memory_space<vmem>>, vector<1x2x32xf32>,
    %c2_i32_371 = arith.constant 2 : i32
    %c0_372 = arith.constant 0 : index
    %590 = arith.index_cast %c2_i32_371 : i32 to index
    %c0_373 = arith.constant 0 : index
    %c0_374 = arith.constant 0 : index
    %591 = vector.load %arg12[%c0_372, %590, %c0_373, %c0_374] : memref<4x8x2x32xf32, #tpu.memory_space<vmem>>, vector<1x1x2x32xf32>
    %592 = vector.shape_cast %591 : vector<1x1x2x32xf32> to vector<2x32xf32>
    %cst_375 = arith.constant dense<0.000000e+00> : vector<2x32xf32>
    %593 = tpu.matmul %585, %491, %cst_375 {dimension_numbers = #tpu.dot_dimension_numbers<[1], [0], [0], [1], [0, 0, 1, 1], [], []>} : vector<2x32xf32>, vector<32x32xf32>, vector<2x32xf32> -> vector<2x32xf32>
    %594 = arith.addf %592, %593 : vector<2x32xf32>
    %595 = arith.negf %594 : vector<2x32xf32>
    %596 = math.exp %595 : vector<2x32xf32>
    %cst_376 = arith.constant 1.000000e+00 : f32
    %597 = vector.broadcast %cst_376 : f32 to vector<2x32xf32>
    %598 = arith.addf %597, %596 : vector<2x32xf32>
    %599 = arith.divf %597, %598 : vector<2x32xf32>
    %c1_377 = arith.constant 1 : index
    %600 = arith.index_cast %c2_i32_371 : i32 to index
    %c0_378 = arith.constant 0 : index
    %c0_379 = arith.constant 0 : index
    %601 = vector.load %arg12[%c1_377, %600, %c0_378, %c0_379] : memref<4x8x2x32xf32, #tpu.memory_space<vmem>>, vector<1x1x2x32xf32>
    %602 = vector.shape_cast %601 : vector<1x1x2x32xf32> to vector<2x32xf32>
    %cst_380 = arith.constant dense<0.000000e+00> : vector<2x32xf32>
    %603 = tpu.matmul %585, %493, %cst_380 {dimension_numbers = #tpu.dot_dimension_numbers<[1], [0], [0], [1], [0, 0, 1, 1], [], []>} : vector<2x32xf32>, vector<32x32xf32>, vector<2x32xf32> -> vector<2x32xf32>
    %604 = arith.addf %602, %603 : vector<2x32xf32>
    %605 = arith.negf %604 : vector<2x32xf32>
    %606 = math.exp %605 : vector<2x32xf32>
    %cst_381 = arith.constant 1.000000e+00 : f32
    %607 = vector.broadcast %cst_381 : f32 to vector<2x32xf32>
    %608 = arith.addf %607, %606 : vector<2x32xf32>
    %609 = arith.divf %607, %608 : vector<2x32xf32>
    %c2_382 = arith.constant 2 : index
    %610 = arith.index_cast %c2_i32_371 : i32 to index
    %c0_383 = arith.constant 0 : index
    %c0_384 = arith.constant 0 : index
    %611 = vector.load %arg12[%c2_382, %610, %c0_383, %c0_384] : memref<4x8x2x32xf32, #tpu.memory_space<vmem>>, vector<1x1x2x32xf32>
    %612 = vector.shape_cast %611 : vector<1x1x2x32xf32> to vector<2x32xf32>
    %cst_385 = arith.constant dense<0.000000e+00> : vector<2x32xf32>
    %613 = tpu.matmul %585, %495, %cst_385 {dimension_numbers = #tpu.dot_dimension_numbers<[1], [0], [0], [1], [0, 0, 1, 1], [], []>} : vector<2x32xf32>, vector<32x32xf32>, vector<2x32xf32> -> vector<2x32xf32>
    %614 = arith.addf %612, %613 : vector<2x32xf32>
    %615 = math.tanh %614 : vector<2x32xf32>
    %c3_386 = arith.constant 3 : index
    %616 = arith.index_cast %c2_i32_371 : i32 to index
    %c0_387 = arith.constant 0 : index
    %c0_388 = arith.constant 0 : index
    %617 = vector.load %arg12[%c3_386, %616, %c0_387, %c0_388] : memref<4x8x2x32xf32, #tpu.memory_space<vmem>>, vector<1x1x2x32xf32>
    %618 = vector.shape_cast %617 : vector<1x1x2x32xf32> to vector<2x32xf32>
    %cst_389 = arith.constant dense<0.000000e+00> : vector<2x32xf32>
    %619 = tpu.matmul %585, %497, %cst_389 {dimension_numbers = #tpu.dot_dimension_numbers<[1], [0], [0], [1], [0, 0, 1, 1], [], []>} : vector<2x32xf32>, vector<32x32xf32>, vector<2x32xf32> -> vector<2x32xf32>
    %620 = arith.addf %618, %619 : vector<2x32xf32>
    %621 = arith.negf %620 : vector<2x32xf32>
    %622 = math.exp %621 : vector<2x32xf32>
    %cst_390 = arith.constant 1.000000e+00 : f32
    %623 = vector.broadcast %cst_390 : f32 to vector<2x32xf32>
    %624 = arith.addf %623, %622 : vector<2x32xf32>
    %625 = arith.divf %623, %624 : vector<2x32xf32>
    %626 = arith.mulf %609, %583 : vector<2x32xf32>
    %627 = arith.mulf %599, %615 : vector<2x32xf32>
    %628 = arith.addf %626, %627 : vector<2x32xf32>
    %629 = math.tanh %628 : vector<2x32xf32>
    %630 = arith.mulf %625, %629 : vector<2x32xf32>
    %631 = arith.index_cast %c2_i32_371 : i32 to index
    %c0_391 = arith.constant 0 : index
    %c0_392 = arith.constant 0 : index
    %632 = vector.load %arg11[%631, %c0_391, %c0_392] : memref<8x2x32xf32, #tpu.memory_space<vmem>>, vector<1x2x32xf32>
    %633 = vector.shape_cast %632 : vector<1x2x32xf32> to vector<2x32xf32>
    %634 = vector.shape_cast %630 : vector<2x32xf32> to vector<1x2x32xf32>
    tpu.vector_store %arg11[%631, %c0_391, %c0_392], %634 {strides = array<i32>} : memref<8x2x32xf32, #tpu.memory_space<vmem>>, vector<1x2x32xf32>,
    %c3_i32_393 = arith.constant 3 : i32
    %c0_394 = arith.constant 0 : index
    %635 = arith.index_cast %c3_i32_393 : i32 to index
    %c0_395 = arith.constant 0 : index
    %c0_396 = arith.constant 0 : index
    %636 = vector.load %arg12[%c0_394, %635, %c0_395, %c0_396] : memref<4x8x2x32xf32, #tpu.memory_space<vmem>>, vector<1x1x2x32xf32>
    %637 = vector.shape_cast %636 : vector<1x1x2x32xf32> to vector<2x32xf32>
    %cst_397 = arith.constant dense<0.000000e+00> : vector<2x32xf32>
    %638 = tpu.matmul %630, %491, %cst_397 {dimension_numbers = #tpu.dot_dimension_numbers<[1], [0], [0], [1], [0, 0, 1, 1], [], []>} : vector<2x32xf32>, vector<32x32xf32>, vector<2x32xf32> -> vector<2x32xf32>
    %639 = arith.addf %637, %638 : vector<2x32xf32>
    %640 = arith.negf %639 : vector<2x32xf32>
    %641 = math.exp %640 : vector<2x32xf32>
    %cst_398 = arith.constant 1.000000e+00 : f32
    %642 = vector.broadcast %cst_398 : f32 to vector<2x32xf32>
    %643 = arith.addf %642, %641 : vector<2x32xf32>
    %644 = arith.divf %642, %643 : vector<2x32xf32>
    %c1_399 = arith.constant 1 : index
    %645 = arith.index_cast %c3_i32_393 : i32 to index
    %c0_400 = arith.constant 0 : index
    %c0_401 = arith.constant 0 : index
    %646 = vector.load %arg12[%c1_399, %645, %c0_400, %c0_401] : memref<4x8x2x32xf32, #tpu.memory_space<vmem>>, vector<1x1x2x32xf32>
    %647 = vector.shape_cast %646 : vector<1x1x2x32xf32> to vector<2x32xf32>
    %cst_402 = arith.constant dense<0.000000e+00> : vector<2x32xf32>
    %648 = tpu.matmul %630, %493, %cst_402 {dimension_numbers = #tpu.dot_dimension_numbers<[1], [0], [0], [1], [0, 0, 1, 1], [], []>} : vector<2x32xf32>, vector<32x32xf32>, vector<2x32xf32> -> vector<2x32xf32>
    %649 = arith.addf %647, %648 : vector<2x32xf32>
    %650 = arith.negf %649 : vector<2x32xf32>
    %651 = math.exp %650 : vector<2x32xf32>
    %cst_403 = arith.constant 1.000000e+00 : f32
    %652 = vector.broadcast %cst_403 : f32 to vector<2x32xf32>
    %653 = arith.addf %652, %651 : vector<2x32xf32>
    %654 = arith.divf %652, %653 : vector<2x32xf32>
    %c2_404 = arith.constant 2 : index
    %655 = arith.index_cast %c3_i32_393 : i32 to index
    %c0_405 = arith.constant 0 : index
    %c0_406 = arith.constant 0 : index
    %656 = vector.load %arg12[%c2_404, %655, %c0_405, %c0_406] : memref<4x8x2x32xf32, #tpu.memory_space<vmem>>, vector<1x1x2x32xf32>
    %657 = vector.shape_cast %656 : vector<1x1x2x32xf32> to vector<2x32xf32>
    %cst_407 = arith.constant dense<0.000000e+00> : vector<2x32xf32>
    %658 = tpu.matmul %630, %495, %cst_407 {dimension_numbers = #tpu.dot_dimension_numbers<[1], [0], [0], [1], [0, 0, 1, 1], [], []>} : vector<2x32xf32>, vector<32x32xf32>, vector<2x32xf32> -> vector<2x32xf32>
    %659 = arith.addf %657, %658 : vector<2x32xf32>
    %660 = math.tanh %659 : vector<2x32xf32>
    %c3_408 = arith.constant 3 : index
    %661 = arith.index_cast %c3_i32_393 : i32 to index
    %c0_409 = arith.constant 0 : index
    %c0_410 = arith.constant 0 : index
    %662 = vector.load %arg12[%c3_408, %661, %c0_409, %c0_410] : memref<4x8x2x32xf32, #tpu.memory_space<vmem>>, vector<1x1x2x32xf32>
    %663 = vector.shape_cast %662 : vector<1x1x2x32xf32> to vector<2x32xf32>
    %cst_411 = arith.constant dense<0.000000e+00> : vector<2x32xf32>
    %664 = tpu.matmul %630, %497, %cst_411 {dimension_numbers = #tpu.dot_dimension_numbers<[1], [0], [0], [1], [0, 0, 1, 1], [], []>} : vector<2x32xf32>, vector<32x32xf32>, vector<2x32xf32> -> vector<2x32xf32>
    %665 = arith.addf %663, %664 : vector<2x32xf32>
    %666 = arith.negf %665 : vector<2x32xf32>
    %667 = math.exp %666 : vector<2x32xf32>
    %cst_412 = arith.constant 1.000000e+00 : f32
    %668 = vector.broadcast %cst_412 : f32 to vector<2x32xf32>
    %669 = arith.addf %668, %667 : vector<2x32xf32>
    %670 = arith.divf %668, %669 : vector<2x32xf32>
    %671 = arith.mulf %654, %628 : vector<2x32xf32>
    %672 = arith.mulf %644, %660 : vector<2x32xf32>
    %673 = arith.addf %671, %672 : vector<2x32xf32>
    %674 = math.tanh %673 : vector<2x32xf32>
    %675 = arith.mulf %670, %674 : vector<2x32xf32>
    %676 = arith.index_cast %c3_i32_393 : i32 to index
    %c0_413 = arith.constant 0 : index
    %c0_414 = arith.constant 0 : index
    %677 = vector.load %arg11[%676, %c0_413, %c0_414] : memref<8x2x32xf32, #tpu.memory_space<vmem>>, vector<1x2x32xf32>
    %678 = vector.shape_cast %677 : vector<1x2x32xf32> to vector<2x32xf32>
    %679 = vector.shape_cast %675 : vector<2x32xf32> to vector<1x2x32xf32>
    tpu.vector_store %arg11[%676, %c0_413, %c0_414], %679 {strides = array<i32>} : memref<8x2x32xf32, #tpu.memory_space<vmem>>, vector<1x2x32xf32>,
    %c4_i32_415 = arith.constant 4 : i32
    %c0_416 = arith.constant 0 : index
    %680 = arith.index_cast %c4_i32_415 : i32 to index
    %c0_417 = arith.constant 0 : index
    %c0_418 = arith.constant 0 : index
    %681 = vector.load %arg12[%c0_416, %680, %c0_417, %c0_418] : memref<4x8x2x32xf32, #tpu.memory_space<vmem>>, vector<1x1x2x32xf32>
    %682 = vector.shape_cast %681 : vector<1x1x2x32xf32> to vector<2x32xf32>
    %cst_419 = arith.constant dense<0.000000e+00> : vector<2x32xf32>
    %683 = tpu.matmul %675, %491, %cst_419 {dimension_numbers = #tpu.dot_dimension_numbers<[1], [0], [0], [1], [0, 0, 1, 1], [], []>} : vector<2x32xf32>, vector<32x32xf32>, vector<2x32xf32> -> vector<2x32xf32>
    %684 = arith.addf %682, %683 : vector<2x32xf32>
    %685 = arith.negf %684 : vector<2x32xf32>
    %686 = math.exp %685 : vector<2x32xf32>
    %cst_420 = arith.constant 1.000000e+00 : f32
    %687 = vector.broadcast %cst_420 : f32 to vector<2x32xf32>
    %688 = arith.addf %687, %686 : vector<2x32xf32>
    %689 = arith.divf %687, %688 : vector<2x32xf32>
    %c1_421 = arith.constant 1 : index
    %690 = arith.index_cast %c4_i32_415 : i32 to index
    %c0_422 = arith.constant 0 : index
    %c0_423 = arith.constant 0 : index
    %691 = vector.load %arg12[%c1_421, %690, %c0_422, %c0_423] : memref<4x8x2x32xf32, #tpu.memory_space<vmem>>, vector<1x1x2x32xf32>
    %692 = vector.shape_cast %691 : vector<1x1x2x32xf32> to vector<2x32xf32>
    %cst_424 = arith.constant dense<0.000000e+00> : vector<2x32xf32>
    %693 = tpu.matmul %675, %493, %cst_424 {dimension_numbers = #tpu.dot_dimension_numbers<[1], [0], [0], [1], [0, 0, 1, 1], [], []>} : vector<2x32xf32>, vector<32x32xf32>, vector<2x32xf32> -> vector<2x32xf32>
    %694 = arith.addf %692, %693 : vector<2x32xf32>
    %695 = arith.negf %694 : vector<2x32xf32>
    %696 = math.exp %695 : vector<2x32xf32>
    %cst_425 = arith.constant 1.000000e+00 : f32
    %697 = vector.broadcast %cst_425 : f32 to vector<2x32xf32>
    %698 = arith.addf %697, %696 : vector<2x32xf32>
    %699 = arith.divf %697, %698 : vector<2x32xf32>
    %c2_426 = arith.constant 2 : index
    %700 = arith.index_cast %c4_i32_415 : i32 to index
    %c0_427 = arith.constant 0 : index
    %c0_428 = arith.constant 0 : index
    %701 = vector.load %arg12[%c2_426, %700, %c0_427, %c0_428] : memref<4x8x2x32xf32, #tpu.memory_space<vmem>>, vector<1x1x2x32xf32>
    %702 = vector.shape_cast %701 : vector<1x1x2x32xf32> to vector<2x32xf32>
    %cst_429 = arith.constant dense<0.000000e+00> : vector<2x32xf32>
    %703 = tpu.matmul %675, %495, %cst_429 {dimension_numbers = #tpu.dot_dimension_numbers<[1], [0], [0], [1], [0, 0, 1, 1], [], []>} : vector<2x32xf32>, vector<32x32xf32>, vector<2x32xf32> -> vector<2x32xf32>
    %704 = arith.addf %702, %703 : vector<2x32xf32>
    %705 = math.tanh %704 : vector<2x32xf32>
    %c3_430 = arith.constant 3 : index
    %706 = arith.index_cast %c4_i32_415 : i32 to index
    %c0_431 = arith.constant 0 : index
    %c0_432 = arith.constant 0 : index
    %707 = vector.load %arg12[%c3_430, %706, %c0_431, %c0_432] : memref<4x8x2x32xf32, #tpu.memory_space<vmem>>, vector<1x1x2x32xf32>
    %708 = vector.shape_cast %707 : vector<1x1x2x32xf32> to vector<2x32xf32>
    %cst_433 = arith.constant dense<0.000000e+00> : vector<2x32xf32>
    %709 = tpu.matmul %675, %497, %cst_433 {dimension_numbers = #tpu.dot_dimension_numbers<[1], [0], [0], [1], [0, 0, 1, 1], [], []>} : vector<2x32xf32>, vector<32x32xf32>, vector<2x32xf32> -> vector<2x32xf32>
    %710 = arith.addf %708, %709 : vector<2x32xf32>
    %711 = arith.negf %710 : vector<2x32xf32>
    %712 = math.exp %711 : vector<2x32xf32>
    %cst_434 = arith.constant 1.000000e+00 : f32
    %713 = vector.broadcast %cst_434 : f32 to vector<2x32xf32>
    %714 = arith.addf %713, %712 : vector<2x32xf32>
    %715 = arith.divf %713, %714 : vector<2x32xf32>
    %716 = arith.mulf %699, %673 : vector<2x32xf32>
    %717 = arith.mulf %689, %705 : vector<2x32xf32>
    %718 = arith.addf %716, %717 : vector<2x32xf32>
    %719 = math.tanh %718 : vector<2x32xf32>
    %720 = arith.mulf %715, %719 : vector<2x32xf32>
    %721 = arith.index_cast %c4_i32_415 : i32 to index
    %c0_435 = arith.constant 0 : index
    %c0_436 = arith.constant 0 : index
    %722 = vector.load %arg11[%721, %c0_435, %c0_436] : memref<8x2x32xf32, #tpu.memory_space<vmem>>, vector<1x2x32xf32>
    %723 = vector.shape_cast %722 : vector<1x2x32xf32> to vector<2x32xf32>
    %724 = vector.shape_cast %720 : vector<2x32xf32> to vector<1x2x32xf32>
    tpu.vector_store %arg11[%721, %c0_435, %c0_436], %724 {strides = array<i32>} : memref<8x2x32xf32, #tpu.memory_space<vmem>>, vector<1x2x32xf32>,
    %c5_i32_437 = arith.constant 5 : i32
    %c0_438 = arith.constant 0 : index
    %725 = arith.index_cast %c5_i32_437 : i32 to index
    %c0_439 = arith.constant 0 : index
    %c0_440 = arith.constant 0 : index
    %726 = vector.load %arg12[%c0_438, %725, %c0_439, %c0_440] : memref<4x8x2x32xf32, #tpu.memory_space<vmem>>, vector<1x1x2x32xf32>
    %727 = vector.shape_cast %726 : vector<1x1x2x32xf32> to vector<2x32xf32>
    %cst_441 = arith.constant dense<0.000000e+00> : vector<2x32xf32>
    %728 = tpu.matmul %720, %491, %cst_441 {dimension_numbers = #tpu.dot_dimension_numbers<[1], [0], [0], [1], [0, 0, 1, 1], [], []>} : vector<2x32xf32>, vector<32x32xf32>, vector<2x32xf32> -> vector<2x32xf32>
    %729 = arith.addf %727, %728 : vector<2x32xf32>
    %730 = arith.negf %729 : vector<2x32xf32>
    %731 = math.exp %730 : vector<2x32xf32>
    %cst_442 = arith.constant 1.000000e+00 : f32
    %732 = vector.broadcast %cst_442 : f32 to vector<2x32xf32>
    %733 = arith.addf %732, %731 : vector<2x32xf32>
    %734 = arith.divf %732, %733 : vector<2x32xf32>
    %c1_443 = arith.constant 1 : index
    %735 = arith.index_cast %c5_i32_437 : i32 to index
    %c0_444 = arith.constant 0 : index
    %c0_445 = arith.constant 0 : index
    %736 = vector.load %arg12[%c1_443, %735, %c0_444, %c0_445] : memref<4x8x2x32xf32, #tpu.memory_space<vmem>>, vector<1x1x2x32xf32>
    %737 = vector.shape_cast %736 : vector<1x1x2x32xf32> to vector<2x32xf32>
    %cst_446 = arith.constant dense<0.000000e+00> : vector<2x32xf32>
    %738 = tpu.matmul %720, %493, %cst_446 {dimension_numbers = #tpu.dot_dimension_numbers<[1], [0], [0], [1], [0, 0, 1, 1], [], []>} : vector<2x32xf32>, vector<32x32xf32>, vector<2x32xf32> -> vector<2x32xf32>
    %739 = arith.addf %737, %738 : vector<2x32xf32>
    %740 = arith.negf %739 : vector<2x32xf32>
    %741 = math.exp %740 : vector<2x32xf32>
    %cst_447 = arith.constant 1.000000e+00 : f32
    %742 = vector.broadcast %cst_447 : f32 to vector<2x32xf32>
    %743 = arith.addf %742, %741 : vector<2x32xf32>
    %744 = arith.divf %742, %743 : vector<2x32xf32>
    %c2_448 = arith.constant 2 : index
    %745 = arith.index_cast %c5_i32_437 : i32 to index
    %c0_449 = arith.constant 0 : index
    %c0_450 = arith.constant 0 : index
    %746 = vector.load %arg12[%c2_448, %745, %c0_449, %c0_450] : memref<4x8x2x32xf32, #tpu.memory_space<vmem>>, vector<1x1x2x32xf32>
    %747 = vector.shape_cast %746 : vector<1x1x2x32xf32> to vector<2x32xf32>
    %cst_451 = arith.constant dense<0.000000e+00> : vector<2x32xf32>
    %748 = tpu.matmul %720, %495, %cst_451 {dimension_numbers = #tpu.dot_dimension_numbers<[1], [0], [0], [1], [0, 0, 1, 1], [], []>} : vector<2x32xf32>, vector<32x32xf32>, vector<2x32xf32> -> vector<2x32xf32>
    %749 = arith.addf %747, %748 : vector<2x32xf32>
    %750 = math.tanh %749 : vector<2x32xf32>
    %c3_452 = arith.constant 3 : index
    %751 = arith.index_cast %c5_i32_437 : i32 to index
    %c0_453 = arith.constant 0 : index
    %c0_454 = arith.constant 0 : index
    %752 = vector.load %arg12[%c3_452, %751, %c0_453, %c0_454] : memref<4x8x2x32xf32, #tpu.memory_space<vmem>>, vector<1x1x2x32xf32>
    %753 = vector.shape_cast %752 : vector<1x1x2x32xf32> to vector<2x32xf32>
    %cst_455 = arith.constant dense<0.000000e+00> : vector<2x32xf32>
    %754 = tpu.matmul %720, %497, %cst_455 {dimension_numbers = #tpu.dot_dimension_numbers<[1], [0], [0], [1], [0, 0, 1, 1], [], []>} : vector<2x32xf32>, vector<32x32xf32>, vector<2x32xf32> -> vector<2x32xf32>
    %755 = arith.addf %753, %754 : vector<2x32xf32>
    %756 = arith.negf %755 : vector<2x32xf32>
    %757 = math.exp %756 : vector<2x32xf32>
    %cst_456 = arith.constant 1.000000e+00 : f32
    %758 = vector.broadcast %cst_456 : f32 to vector<2x32xf32>
    %759 = arith.addf %758, %757 : vector<2x32xf32>
    %760 = arith.divf %758, %759 : vector<2x32xf32>
    %761 = arith.mulf %744, %718 : vector<2x32xf32>
    %762 = arith.mulf %734, %750 : vector<2x32xf32>
    %763 = arith.addf %761, %762 : vector<2x32xf32>
    %764 = math.tanh %763 : vector<2x32xf32>
    %765 = arith.mulf %760, %764 : vector<2x32xf32>
    %766 = arith.index_cast %c5_i32_437 : i32 to index
    %c0_457 = arith.constant 0 : index
    %c0_458 = arith.constant 0 : index
    %767 = vector.load %arg11[%766, %c0_457, %c0_458] : memref<8x2x32xf32, #tpu.memory_space<vmem>>, vector<1x2x32xf32>
    %768 = vector.shape_cast %767 : vector<1x2x32xf32> to vector<2x32xf32>
    %769 = vector.shape_cast %765 : vector<2x32xf32> to vector<1x2x32xf32>
    tpu.vector_store %arg11[%766, %c0_457, %c0_458], %769 {strides = array<i32>} : memref<8x2x32xf32, #tpu.memory_space<vmem>>, vector<1x2x32xf32>,
    %c6_i32_459 = arith.constant 6 : i32
    %c0_460 = arith.constant 0 : index
    %770 = arith.index_cast %c6_i32_459 : i32 to index
    %c0_461 = arith.constant 0 : index
    %c0_462 = arith.constant 0 : index
    %771 = vector.load %arg12[%c0_460, %770, %c0_461, %c0_462] : memref<4x8x2x32xf32, #tpu.memory_space<vmem>>, vector<1x1x2x32xf32>
    %772 = vector.shape_cast %771 : vector<1x1x2x32xf32> to vector<2x32xf32>
    %cst_463 = arith.constant dense<0.000000e+00> : vector<2x32xf32>
    %773 = tpu.matmul %765, %491, %cst_463 {dimension_numbers = #tpu.dot_dimension_numbers<[1], [0], [0], [1], [0, 0, 1, 1], [], []>} : vector<2x32xf32>, vector<32x32xf32>, vector<2x32xf32> -> vector<2x32xf32>
    %774 = arith.addf %772, %773 : vector<2x32xf32>
    %775 = arith.negf %774 : vector<2x32xf32>
    %776 = math.exp %775 : vector<2x32xf32>
    %cst_464 = arith.constant 1.000000e+00 : f32
    %777 = vector.broadcast %cst_464 : f32 to vector<2x32xf32>
    %778 = arith.addf %777, %776 : vector<2x32xf32>
    %779 = arith.divf %777, %778 : vector<2x32xf32>
    %c1_465 = arith.constant 1 : index
    %780 = arith.index_cast %c6_i32_459 : i32 to index
    %c0_466 = arith.constant 0 : index
    %c0_467 = arith.constant 0 : index
    %781 = vector.load %arg12[%c1_465, %780, %c0_466, %c0_467] : memref<4x8x2x32xf32, #tpu.memory_space<vmem>>, vector<1x1x2x32xf32>
    %782 = vector.shape_cast %781 : vector<1x1x2x32xf32> to vector<2x32xf32>
    %cst_468 = arith.constant dense<0.000000e+00> : vector<2x32xf32>
    %783 = tpu.matmul %765, %493, %cst_468 {dimension_numbers = #tpu.dot_dimension_numbers<[1], [0], [0], [1], [0, 0, 1, 1], [], []>} : vector<2x32xf32>, vector<32x32xf32>, vector<2x32xf32> -> vector<2x32xf32>
    %784 = arith.addf %782, %783 : vector<2x32xf32>
    %785 = arith.negf %784 : vector<2x32xf32>
    %786 = math.exp %785 : vector<2x32xf32>
    %cst_469 = arith.constant 1.000000e+00 : f32
    %787 = vector.broadcast %cst_469 : f32 to vector<2x32xf32>
    %788 = arith.addf %787, %786 : vector<2x32xf32>
    %789 = arith.divf %787, %788 : vector<2x32xf32>
    %c2_470 = arith.constant 2 : index
    %790 = arith.index_cast %c6_i32_459 : i32 to index
    %c0_471 = arith.constant 0 : index
    %c0_472 = arith.constant 0 : index
    %791 = vector.load %arg12[%c2_470, %790, %c0_471, %c0_472] : memref<4x8x2x32xf32, #tpu.memory_space<vmem>>, vector<1x1x2x32xf32>
    %792 = vector.shape_cast %791 : vector<1x1x2x32xf32> to vector<2x32xf32>
    %cst_473 = arith.constant dense<0.000000e+00> : vector<2x32xf32>
    %793 = tpu.matmul %765, %495, %cst_473 {dimension_numbers = #tpu.dot_dimension_numbers<[1], [0], [0], [1], [0, 0, 1, 1], [], []>} : vector<2x32xf32>, vector<32x32xf32>, vector<2x32xf32> -> vector<2x32xf32>
    %794 = arith.addf %792, %793 : vector<2x32xf32>
    %795 = math.tanh %794 : vector<2x32xf32>
    %c3_474 = arith.constant 3 : index
    %796 = arith.index_cast %c6_i32_459 : i32 to index
    %c0_475 = arith.constant 0 : index
    %c0_476 = arith.constant 0 : index
    %797 = vector.load %arg12[%c3_474, %796, %c0_475, %c0_476] : memref<4x8x2x32xf32, #tpu.memory_space<vmem>>, vector<1x1x2x32xf32>
    %798 = vector.shape_cast %797 : vector<1x1x2x32xf32> to vector<2x32xf32>
    %cst_477 = arith.constant dense<0.000000e+00> : vector<2x32xf32>
    %799 = tpu.matmul %765, %497, %cst_477 {dimension_numbers = #tpu.dot_dimension_numbers<[1], [0], [0], [1], [0, 0, 1, 1], [], []>} : vector<2x32xf32>, vector<32x32xf32>, vector<2x32xf32> -> vector<2x32xf32>
    %800 = arith.addf %798, %799 : vector<2x32xf32>
    %801 = arith.negf %800 : vector<2x32xf32>
    %802 = math.exp %801 : vector<2x32xf32>
    %cst_478 = arith.constant 1.000000e+00 : f32
    %803 = vector.broadcast %cst_478 : f32 to vector<2x32xf32>
    %804 = arith.addf %803, %802 : vector<2x32xf32>
    %805 = arith.divf %803, %804 : vector<2x32xf32>
    %806 = arith.mulf %789, %763 : vector<2x32xf32>
    %807 = arith.mulf %779, %795 : vector<2x32xf32>
    %808 = arith.addf %806, %807 : vector<2x32xf32>
    %809 = math.tanh %808 : vector<2x32xf32>
    %810 = arith.mulf %805, %809 : vector<2x32xf32>
    %811 = arith.index_cast %c6_i32_459 : i32 to index
    %c0_479 = arith.constant 0 : index
    %c0_480 = arith.constant 0 : index
    %812 = vector.load %arg11[%811, %c0_479, %c0_480] : memref<8x2x32xf32, #tpu.memory_space<vmem>>, vector<1x2x32xf32>
    %813 = vector.shape_cast %812 : vector<1x2x32xf32> to vector<2x32xf32>
    %814 = vector.shape_cast %810 : vector<2x32xf32> to vector<1x2x32xf32>
    tpu.vector_store %arg11[%811, %c0_479, %c0_480], %814 {strides = array<i32>} : memref<8x2x32xf32, #tpu.memory_space<vmem>>, vector<1x2x32xf32>,
    %c7_i32_481 = arith.constant 7 : i32
    %c0_482 = arith.constant 0 : index
    %815 = arith.index_cast %c7_i32_481 : i32 to index
    %c0_483 = arith.constant 0 : index
    %c0_484 = arith.constant 0 : index
    %816 = vector.load %arg12[%c0_482, %815, %c0_483, %c0_484] : memref<4x8x2x32xf32, #tpu.memory_space<vmem>>, vector<1x1x2x32xf32>
    %817 = vector.shape_cast %816 : vector<1x1x2x32xf32> to vector<2x32xf32>
    %cst_485 = arith.constant dense<0.000000e+00> : vector<2x32xf32>
    %818 = tpu.matmul %810, %491, %cst_485 {dimension_numbers = #tpu.dot_dimension_numbers<[1], [0], [0], [1], [0, 0, 1, 1], [], []>} : vector<2x32xf32>, vector<32x32xf32>, vector<2x32xf32> -> vector<2x32xf32>
    %819 = arith.addf %817, %818 : vector<2x32xf32>
    %820 = arith.negf %819 : vector<2x32xf32>
    %821 = math.exp %820 : vector<2x32xf32>
    %cst_486 = arith.constant 1.000000e+00 : f32
    %822 = vector.broadcast %cst_486 : f32 to vector<2x32xf32>
    %823 = arith.addf %822, %821 : vector<2x32xf32>
    %824 = arith.divf %822, %823 : vector<2x32xf32>
    %c1_487 = arith.constant 1 : index
    %825 = arith.index_cast %c7_i32_481 : i32 to index
    %c0_488 = arith.constant 0 : index
    %c0_489 = arith.constant 0 : index
    %826 = vector.load %arg12[%c1_487, %825, %c0_488, %c0_489] : memref<4x8x2x32xf32, #tpu.memory_space<vmem>>, vector<1x1x2x32xf32>
    %827 = vector.shape_cast %826 : vector<1x1x2x32xf32> to vector<2x32xf32>
    %cst_490 = arith.constant dense<0.000000e+00> : vector<2x32xf32>
    %828 = tpu.matmul %810, %493, %cst_490 {dimension_numbers = #tpu.dot_dimension_numbers<[1], [0], [0], [1], [0, 0, 1, 1], [], []>} : vector<2x32xf32>, vector<32x32xf32>, vector<2x32xf32> -> vector<2x32xf32>
    %829 = arith.addf %827, %828 : vector<2x32xf32>
    %830 = arith.negf %829 : vector<2x32xf32>
    %831 = math.exp %830 : vector<2x32xf32>
    %cst_491 = arith.constant 1.000000e+00 : f32
    %832 = vector.broadcast %cst_491 : f32 to vector<2x32xf32>
    %833 = arith.addf %832, %831 : vector<2x32xf32>
    %834 = arith.divf %832, %833 : vector<2x32xf32>
    %c2_492 = arith.constant 2 : index
    %835 = arith.index_cast %c7_i32_481 : i32 to index
    %c0_493 = arith.constant 0 : index
    %c0_494 = arith.constant 0 : index
    %836 = vector.load %arg12[%c2_492, %835, %c0_493, %c0_494] : memref<4x8x2x32xf32, #tpu.memory_space<vmem>>, vector<1x1x2x32xf32>
    %837 = vector.shape_cast %836 : vector<1x1x2x32xf32> to vector<2x32xf32>
    %cst_495 = arith.constant dense<0.000000e+00> : vector<2x32xf32>
    %838 = tpu.matmul %810, %495, %cst_495 {dimension_numbers = #tpu.dot_dimension_numbers<[1], [0], [0], [1], [0, 0, 1, 1], [], []>} : vector<2x32xf32>, vector<32x32xf32>, vector<2x32xf32> -> vector<2x32xf32>
    %839 = arith.addf %837, %838 : vector<2x32xf32>
    %840 = math.tanh %839 : vector<2x32xf32>
    %c3_496 = arith.constant 3 : index
    %841 = arith.index_cast %c7_i32_481 : i32 to index
    %c0_497 = arith.constant 0 : index
    %c0_498 = arith.constant 0 : index
    %842 = vector.load %arg12[%c3_496, %841, %c0_497, %c0_498] : memref<4x8x2x32xf32, #tpu.memory_space<vmem>>, vector<1x1x2x32xf32>
    %843 = vector.shape_cast %842 : vector<1x1x2x32xf32> to vector<2x32xf32>
    %cst_499 = arith.constant dense<0.000000e+00> : vector<2x32xf32>
    %844 = tpu.matmul %810, %497, %cst_499 {dimension_numbers = #tpu.dot_dimension_numbers<[1], [0], [0], [1], [0, 0, 1, 1], [], []>} : vector<2x32xf32>, vector<32x32xf32>, vector<2x32xf32> -> vector<2x32xf32>
    %845 = arith.addf %843, %844 : vector<2x32xf32>
    %846 = arith.negf %845 : vector<2x32xf32>
    %847 = math.exp %846 : vector<2x32xf32>
    %cst_500 = arith.constant 1.000000e+00 : f32
    %848 = vector.broadcast %cst_500 : f32 to vector<2x32xf32>
    %849 = arith.addf %848, %847 : vector<2x32xf32>
    %850 = arith.divf %848, %849 : vector<2x32xf32>
    %851 = arith.mulf %834, %808 : vector<2x32xf32>
    %852 = arith.mulf %824, %840 : vector<2x32xf32>
    %853 = arith.addf %851, %852 : vector<2x32xf32>
    %854 = math.tanh %853 : vector<2x32xf32>
    %855 = arith.mulf %850, %854 : vector<2x32xf32>
    %856 = arith.index_cast %c7_i32_481 : i32 to index
    %c0_501 = arith.constant 0 : index
    %c0_502 = arith.constant 0 : index
    %857 = vector.load %arg11[%856, %c0_501, %c0_502] : memref<8x2x32xf32, #tpu.memory_space<vmem>>, vector<1x2x32xf32>
    %858 = vector.shape_cast %857 : vector<1x2x32xf32> to vector<2x32xf32>
    %859 = vector.shape_cast %855 : vector<2x32xf32> to vector<1x2x32xf32>
    tpu.vector_store %arg11[%856, %c0_501, %c0_502], %859 {strides = array<i32>} : memref<8x2x32xf32, #tpu.memory_space<vmem>>, vector<1x2x32xf32>,
    %c8_i32_503 = arith.constant 8 : i32
    %c0_504 = arith.constant 0 : index
    %c0_505 = arith.constant 0 : index
    %c0_506 = arith.constant 0 : index
    %860 = vector.load %arg11[%c0_504, %c0_505, %c0_506] : memref<8x2x32xf32, #tpu.memory_space<vmem>>, vector<8x2x32xf32>
    %861 = vector.shape_cast %860 : vector<8x2x32xf32> to vector<16x32xf32>
    %c2_507 = arith.constant 2 : index
    %c0_508 = arith.constant 0 : index
    %c0_509 = arith.constant 0 : index
    %c0_510 = arith.constant 0 : index
    %862 = vector.load %arg5[%c2_507, %c0_508, %c0_509, %c0_510] : memref<4x4x32x32xf32, #tpu.memory_space<vmem>>, vector<1x1x32x32xf32>
    %863 = vector.shape_cast %862 : vector<1x1x32x32xf32> to vector<32x32xf32>
    %c2_511 = arith.constant 2 : index
    %c0_512 = arith.constant 0 : index
    %c0_513 = arith.constant 0 : index
    %c0_514 = arith.constant 0 : index
    %864 = vector.load %arg7[%c2_511, %c0_512, %c0_513, %c0_514] : memref<4x4x1x32xf32, #tpu.memory_space<vmem>>, vector<1x1x1x32xf32>
    %865 = vector.shape_cast %864 : vector<1x1x1x32xf32> to vector<1x32xf32>
    %cst_515 = arith.constant dense<0.000000e+00> : vector<16x32xf32>
    %866 = tpu.matmul %861, %863, %cst_515 {dimension_numbers = #tpu.dot_dimension_numbers<[1], [0], [0], [1], [0, 0, 1, 1], [], []>} : vector<16x32xf32>, vector<32x32xf32>, vector<16x32xf32> -> vector<16x32xf32>
    %867 = vector.broadcast %865 : vector<1x32xf32> to vector<16x32xf32>
    %868 = arith.addf %866, %867 : vector<16x32xf32>
    %869 = vector.shape_cast %868 : vector<16x32xf32> to vector<8x2x32xf32>
    %c0_516 = arith.constant 0 : index
    %c0_517 = arith.constant 0 : index
    %c0_518 = arith.constant 0 : index
    %c0_519 = arith.constant 0 : index
    %870 = vector.load %arg12[%c0_516, %c0_517, %c0_518, %c0_519] : memref<4x8x2x32xf32, #tpu.memory_space<vmem>>, vector<1x8x2x32xf32>
    %871 = vector.shape_cast %870 : vector<1x8x2x32xf32> to vector<8x2x32xf32>
    %872 = vector.shape_cast %869 : vector<8x2x32xf32> to vector<1x8x2x32xf32>
    tpu.vector_store %arg12[%c0_516, %c0_517, %c0_518, %c0_519], %872 {strides = array<i32>} : memref<4x8x2x32xf32, #tpu.memory_space<vmem>>, vector<1x8x2x32xf32>,
    %c2_520 = arith.constant 2 : index
    %c1_521 = arith.constant 1 : index
    %c0_522 = arith.constant 0 : index
    %c0_523 = arith.constant 0 : index
    %873 = vector.load %arg5[%c2_520, %c1_521, %c0_522, %c0_523] : memref<4x4x32x32xf32, #tpu.memory_space<vmem>>, vector<1x1x32x32xf32>
    %874 = vector.shape_cast %873 : vector<1x1x32x32xf32> to vector<32x32xf32>
    %c2_524 = arith.constant 2 : index
    %c1_525 = arith.constant 1 : index
    %c0_526 = arith.constant 0 : index
    %c0_527 = arith.constant 0 : index
    %875 = vector.load %arg7[%c2_524, %c1_525, %c0_526, %c0_527] : memref<4x4x1x32xf32, #tpu.memory_space<vmem>>, vector<1x1x1x32xf32>
    %876 = vector.shape_cast %875 : vector<1x1x1x32xf32> to vector<1x32xf32>
    %cst_528 = arith.constant dense<0.000000e+00> : vector<16x32xf32>
    %877 = tpu.matmul %861, %874, %cst_528 {dimension_numbers = #tpu.dot_dimension_numbers<[1], [0], [0], [1], [0, 0, 1, 1], [], []>} : vector<16x32xf32>, vector<32x32xf32>, vector<16x32xf32> -> vector<16x32xf32>
    %878 = vector.broadcast %876 : vector<1x32xf32> to vector<16x32xf32>
    %879 = arith.addf %877, %878 : vector<16x32xf32>
    %880 = vector.shape_cast %879 : vector<16x32xf32> to vector<8x2x32xf32>
    %c1_529 = arith.constant 1 : index
    %c0_530 = arith.constant 0 : index
    %c0_531 = arith.constant 0 : index
    %c0_532 = arith.constant 0 : index
    %881 = vector.load %arg12[%c1_529, %c0_530, %c0_531, %c0_532] : memref<4x8x2x32xf32, #tpu.memory_space<vmem>>, vector<1x8x2x32xf32>
    %882 = vector.shape_cast %881 : vector<1x8x2x32xf32> to vector<8x2x32xf32>
    %883 = vector.shape_cast %880 : vector<8x2x32xf32> to vector<1x8x2x32xf32>
    tpu.vector_store %arg12[%c1_529, %c0_530, %c0_531, %c0_532], %883 {strides = array<i32>} : memref<4x8x2x32xf32, #tpu.memory_space<vmem>>, vector<1x8x2x32xf32>,
    %c2_533 = arith.constant 2 : index
    %c2_534 = arith.constant 2 : index
    %c0_535 = arith.constant 0 : index
    %c0_536 = arith.constant 0 : index
    %884 = vector.load %arg5[%c2_533, %c2_534, %c0_535, %c0_536] : memref<4x4x32x32xf32, #tpu.memory_space<vmem>>, vector<1x1x32x32xf32>
    %885 = vector.shape_cast %884 : vector<1x1x32x32xf32> to vector<32x32xf32>
    %c2_537 = arith.constant 2 : index
    %c2_538 = arith.constant 2 : index
    %c0_539 = arith.constant 0 : index
    %c0_540 = arith.constant 0 : index
    %886 = vector.load %arg7[%c2_537, %c2_538, %c0_539, %c0_540] : memref<4x4x1x32xf32, #tpu.memory_space<vmem>>, vector<1x1x1x32xf32>
    %887 = vector.shape_cast %886 : vector<1x1x1x32xf32> to vector<1x32xf32>
    %cst_541 = arith.constant dense<0.000000e+00> : vector<16x32xf32>
    %888 = tpu.matmul %861, %885, %cst_541 {dimension_numbers = #tpu.dot_dimension_numbers<[1], [0], [0], [1], [0, 0, 1, 1], [], []>} : vector<16x32xf32>, vector<32x32xf32>, vector<16x32xf32> -> vector<16x32xf32>
    %889 = vector.broadcast %887 : vector<1x32xf32> to vector<16x32xf32>
    %890 = arith.addf %888, %889 : vector<16x32xf32>
    %891 = vector.shape_cast %890 : vector<16x32xf32> to vector<8x2x32xf32>
    %c2_542 = arith.constant 2 : index
    %c0_543 = arith.constant 0 : index
    %c0_544 = arith.constant 0 : index
    %c0_545 = arith.constant 0 : index
    %892 = vector.load %arg12[%c2_542, %c0_543, %c0_544, %c0_545] : memref<4x8x2x32xf32, #tpu.memory_space<vmem>>, vector<1x8x2x32xf32>
    %893 = vector.shape_cast %892 : vector<1x8x2x32xf32> to vector<8x2x32xf32>
    %894 = vector.shape_cast %891 : vector<8x2x32xf32> to vector<1x8x2x32xf32>
    tpu.vector_store %arg12[%c2_542, %c0_543, %c0_544, %c0_545], %894 {strides = array<i32>} : memref<4x8x2x32xf32, #tpu.memory_space<vmem>>, vector<1x8x2x32xf32>,
    %c2_546 = arith.constant 2 : index
    %c3_547 = arith.constant 3 : index
    %c0_548 = arith.constant 0 : index
    %c0_549 = arith.constant 0 : index
    %895 = vector.load %arg5[%c2_546, %c3_547, %c0_548, %c0_549] : memref<4x4x32x32xf32, #tpu.memory_space<vmem>>, vector<1x1x32x32xf32>
    %896 = vector.shape_cast %895 : vector<1x1x32x32xf32> to vector<32x32xf32>
    %c2_550 = arith.constant 2 : index
    %c3_551 = arith.constant 3 : index
    %c0_552 = arith.constant 0 : index
    %c0_553 = arith.constant 0 : index
    %897 = vector.load %arg7[%c2_550, %c3_551, %c0_552, %c0_553] : memref<4x4x1x32xf32, #tpu.memory_space<vmem>>, vector<1x1x1x32xf32>
    %898 = vector.shape_cast %897 : vector<1x1x1x32xf32> to vector<1x32xf32>
    %cst_554 = arith.constant dense<0.000000e+00> : vector<16x32xf32>
    %899 = tpu.matmul %861, %896, %cst_554 {dimension_numbers = #tpu.dot_dimension_numbers<[1], [0], [0], [1], [0, 0, 1, 1], [], []>} : vector<16x32xf32>, vector<32x32xf32>, vector<16x32xf32> -> vector<16x32xf32>
    %900 = vector.broadcast %898 : vector<1x32xf32> to vector<16x32xf32>
    %901 = arith.addf %899, %900 : vector<16x32xf32>
    %902 = vector.shape_cast %901 : vector<16x32xf32> to vector<8x2x32xf32>
    %c3_555 = arith.constant 3 : index
    %c0_556 = arith.constant 0 : index
    %c0_557 = arith.constant 0 : index
    %c0_558 = arith.constant 0 : index
    %903 = vector.load %arg12[%c3_555, %c0_556, %c0_557, %c0_558] : memref<4x8x2x32xf32, #tpu.memory_space<vmem>>, vector<1x8x2x32xf32>
    %904 = vector.shape_cast %903 : vector<1x8x2x32xf32> to vector<8x2x32xf32>
    %905 = vector.shape_cast %902 : vector<8x2x32xf32> to vector<1x8x2x32xf32>
    tpu.vector_store %arg12[%c3_555, %c0_556, %c0_557, %c0_558], %905 {strides = array<i32>} : memref<4x8x2x32xf32, #tpu.memory_space<vmem>>, vector<1x8x2x32xf32>,
    %c2_559 = arith.constant 2 : index
    %c0_560 = arith.constant 0 : index
    %c0_561 = arith.constant 0 : index
    %c0_562 = arith.constant 0 : index
    %906 = vector.load %arg6[%c2_559, %c0_560, %c0_561, %c0_562] : memref<4x4x32x32xf32, #tpu.memory_space<vmem>>, vector<1x1x32x32xf32>
    %907 = vector.shape_cast %906 : vector<1x1x32x32xf32> to vector<32x32xf32>
    %c2_563 = arith.constant 2 : index
    %c1_564 = arith.constant 1 : index
    %c0_565 = arith.constant 0 : index
    %c0_566 = arith.constant 0 : index
    %908 = vector.load %arg6[%c2_563, %c1_564, %c0_565, %c0_566] : memref<4x4x32x32xf32, #tpu.memory_space<vmem>>, vector<1x1x32x32xf32>
    %909 = vector.shape_cast %908 : vector<1x1x32x32xf32> to vector<32x32xf32>
    %c2_567 = arith.constant 2 : index
    %c2_568 = arith.constant 2 : index
    %c0_569 = arith.constant 0 : index
    %c0_570 = arith.constant 0 : index
    %910 = vector.load %arg6[%c2_567, %c2_568, %c0_569, %c0_570] : memref<4x4x32x32xf32, #tpu.memory_space<vmem>>, vector<1x1x32x32xf32>
    %911 = vector.shape_cast %910 : vector<1x1x32x32xf32> to vector<32x32xf32>
    %c2_571 = arith.constant 2 : index
    %c3_572 = arith.constant 3 : index
    %c0_573 = arith.constant 0 : index
    %c0_574 = arith.constant 0 : index
    %912 = vector.load %arg6[%c2_571, %c3_572, %c0_573, %c0_574] : memref<4x4x32x32xf32, #tpu.memory_space<vmem>>, vector<1x1x32x32xf32>
    %913 = vector.shape_cast %912 : vector<1x1x32x32xf32> to vector<32x32xf32>
    %cst_575 = arith.constant 0.000000e+00 : f32
    %914 = vector.broadcast %cst_575 : f32 to vector<2x32xf32>
    %cst_576 = arith.constant 0.000000e+00 : f32
    %915 = vector.broadcast %cst_576 : f32 to vector<2x32xf32>
    %c0_i32_577 = arith.constant 0 : i32
    %c0_578 = arith.constant 0 : index
    %916 = arith.index_cast %c0_i32_577 : i32 to index
    %c0_579 = arith.constant 0 : index
    %c0_580 = arith.constant 0 : index
    %917 = vector.load %arg12[%c0_578, %916, %c0_579, %c0_580] : memref<4x8x2x32xf32, #tpu.memory_space<vmem>>, vector<1x1x2x32xf32>
    %918 = vector.shape_cast %917 : vector<1x1x2x32xf32> to vector<2x32xf32>
    %cst_581 = arith.constant dense<0.000000e+00> : vector<2x32xf32>
    %919 = tpu.matmul %914, %907, %cst_581 {dimension_numbers = #tpu.dot_dimension_numbers<[1], [0], [0], [1], [0, 0, 1, 1], [], []>} : vector<2x32xf32>, vector<32x32xf32>, vector<2x32xf32> -> vector<2x32xf32>
    %920 = arith.addf %918, %919 : vector<2x32xf32>
    %921 = arith.negf %920 : vector<2x32xf32>
    %922 = math.exp %921 : vector<2x32xf32>
    %cst_582 = arith.constant 1.000000e+00 : f32
    %923 = vector.broadcast %cst_582 : f32 to vector<2x32xf32>
    %924 = arith.addf %923, %922 : vector<2x32xf32>
    %925 = arith.divf %923, %924 : vector<2x32xf32>
    %c1_583 = arith.constant 1 : index
    %926 = arith.index_cast %c0_i32_577 : i32 to index
    %c0_584 = arith.constant 0 : index
    %c0_585 = arith.constant 0 : index
    %927 = vector.load %arg12[%c1_583, %926, %c0_584, %c0_585] : memref<4x8x2x32xf32, #tpu.memory_space<vmem>>, vector<1x1x2x32xf32>
    %928 = vector.shape_cast %927 : vector<1x1x2x32xf32> to vector<2x32xf32>
    %cst_586 = arith.constant dense<0.000000e+00> : vector<2x32xf32>
    %929 = tpu.matmul %914, %909, %cst_586 {dimension_numbers = #tpu.dot_dimension_numbers<[1], [0], [0], [1], [0, 0, 1, 1], [], []>} : vector<2x32xf32>, vector<32x32xf32>, vector<2x32xf32> -> vector<2x32xf32>
    %930 = arith.addf %928, %929 : vector<2x32xf32>
    %931 = arith.negf %930 : vector<2x32xf32>
    %932 = math.exp %931 : vector<2x32xf32>
    %cst_587 = arith.constant 1.000000e+00 : f32
    %933 = vector.broadcast %cst_587 : f32 to vector<2x32xf32>
    %934 = arith.addf %933, %932 : vector<2x32xf32>
    %935 = arith.divf %933, %934 : vector<2x32xf32>
    %c2_588 = arith.constant 2 : index
    %936 = arith.index_cast %c0_i32_577 : i32 to index
    %c0_589 = arith.constant 0 : index
    %c0_590 = arith.constant 0 : index
    %937 = vector.load %arg12[%c2_588, %936, %c0_589, %c0_590] : memref<4x8x2x32xf32, #tpu.memory_space<vmem>>, vector<1x1x2x32xf32>
    %938 = vector.shape_cast %937 : vector<1x1x2x32xf32> to vector<2x32xf32>
    %cst_591 = arith.constant dense<0.000000e+00> : vector<2x32xf32>
    %939 = tpu.matmul %914, %911, %cst_591 {dimension_numbers = #tpu.dot_dimension_numbers<[1], [0], [0], [1], [0, 0, 1, 1], [], []>} : vector<2x32xf32>, vector<32x32xf32>, vector<2x32xf32> -> vector<2x32xf32>
    %940 = arith.addf %938, %939 : vector<2x32xf32>
    %941 = math.tanh %940 : vector<2x32xf32>
    %c3_592 = arith.constant 3 : index
    %942 = arith.index_cast %c0_i32_577 : i32 to index
    %c0_593 = arith.constant 0 : index
    %c0_594 = arith.constant 0 : index
    %943 = vector.load %arg12[%c3_592, %942, %c0_593, %c0_594] : memref<4x8x2x32xf32, #tpu.memory_space<vmem>>, vector<1x1x2x32xf32>
    %944 = vector.shape_cast %943 : vector<1x1x2x32xf32> to vector<2x32xf32>
    %cst_595 = arith.constant dense<0.000000e+00> : vector<2x32xf32>
    %945 = tpu.matmul %914, %913, %cst_595 {dimension_numbers = #tpu.dot_dimension_numbers<[1], [0], [0], [1], [0, 0, 1, 1], [], []>} : vector<2x32xf32>, vector<32x32xf32>, vector<2x32xf32> -> vector<2x32xf32>
    %946 = arith.addf %944, %945 : vector<2x32xf32>
    %947 = arith.negf %946 : vector<2x32xf32>
    %948 = math.exp %947 : vector<2x32xf32>
    %cst_596 = arith.constant 1.000000e+00 : f32
    %949 = vector.broadcast %cst_596 : f32 to vector<2x32xf32>
    %950 = arith.addf %949, %948 : vector<2x32xf32>
    %951 = arith.divf %949, %950 : vector<2x32xf32>
    %952 = arith.mulf %935, %915 : vector<2x32xf32>
    %953 = arith.mulf %925, %941 : vector<2x32xf32>
    %954 = arith.addf %952, %953 : vector<2x32xf32>
    %955 = math.tanh %954 : vector<2x32xf32>
    %956 = arith.mulf %951, %955 : vector<2x32xf32>
    %957 = arith.index_cast %c0_i32_577 : i32 to index
    %c0_597 = arith.constant 0 : index
    %c0_598 = arith.constant 0 : index
    %958 = vector.load %arg11[%957, %c0_597, %c0_598] : memref<8x2x32xf32, #tpu.memory_space<vmem>>, vector<1x2x32xf32>
    %959 = vector.shape_cast %958 : vector<1x2x32xf32> to vector<2x32xf32>
    %960 = vector.shape_cast %956 : vector<2x32xf32> to vector<1x2x32xf32>
    tpu.vector_store %arg11[%957, %c0_597, %c0_598], %960 {strides = array<i32>} : memref<8x2x32xf32, #tpu.memory_space<vmem>>, vector<1x2x32xf32>,
    %c1_i32_599 = arith.constant 1 : i32
    %c0_600 = arith.constant 0 : index
    %961 = arith.index_cast %c1_i32_599 : i32 to index
    %c0_601 = arith.constant 0 : index
    %c0_602 = arith.constant 0 : index
    %962 = vector.load %arg12[%c0_600, %961, %c0_601, %c0_602] : memref<4x8x2x32xf32, #tpu.memory_space<vmem>>, vector<1x1x2x32xf32>
    %963 = vector.shape_cast %962 : vector<1x1x2x32xf32> to vector<2x32xf32>
    %cst_603 = arith.constant dense<0.000000e+00> : vector<2x32xf32>
    %964 = tpu.matmul %956, %907, %cst_603 {dimension_numbers = #tpu.dot_dimension_numbers<[1], [0], [0], [1], [0, 0, 1, 1], [], []>} : vector<2x32xf32>, vector<32x32xf32>, vector<2x32xf32> -> vector<2x32xf32>
    %965 = arith.addf %963, %964 : vector<2x32xf32>
    %966 = arith.negf %965 : vector<2x32xf32>
    %967 = math.exp %966 : vector<2x32xf32>
    %cst_604 = arith.constant 1.000000e+00 : f32
    %968 = vector.broadcast %cst_604 : f32 to vector<2x32xf32>
    %969 = arith.addf %968, %967 : vector<2x32xf32>
    %970 = arith.divf %968, %969 : vector<2x32xf32>
    %c1_605 = arith.constant 1 : index
    %971 = arith.index_cast %c1_i32_599 : i32 to index
    %c0_606 = arith.constant 0 : index
    %c0_607 = arith.constant 0 : index
    %972 = vector.load %arg12[%c1_605, %971, %c0_606, %c0_607] : memref<4x8x2x32xf32, #tpu.memory_space<vmem>>, vector<1x1x2x32xf32>
    %973 = vector.shape_cast %972 : vector<1x1x2x32xf32> to vector<2x32xf32>
    %cst_608 = arith.constant dense<0.000000e+00> : vector<2x32xf32>
    %974 = tpu.matmul %956, %909, %cst_608 {dimension_numbers = #tpu.dot_dimension_numbers<[1], [0], [0], [1], [0, 0, 1, 1], [], []>} : vector<2x32xf32>, vector<32x32xf32>, vector<2x32xf32> -> vector<2x32xf32>
    %975 = arith.addf %973, %974 : vector<2x32xf32>
    %976 = arith.negf %975 : vector<2x32xf32>
    %977 = math.exp %976 : vector<2x32xf32>
    %cst_609 = arith.constant 1.000000e+00 : f32
    %978 = vector.broadcast %cst_609 : f32 to vector<2x32xf32>
    %979 = arith.addf %978, %977 : vector<2x32xf32>
    %980 = arith.divf %978, %979 : vector<2x32xf32>
    %c2_610 = arith.constant 2 : index
    %981 = arith.index_cast %c1_i32_599 : i32 to index
    %c0_611 = arith.constant 0 : index
    %c0_612 = arith.constant 0 : index
    %982 = vector.load %arg12[%c2_610, %981, %c0_611, %c0_612] : memref<4x8x2x32xf32, #tpu.memory_space<vmem>>, vector<1x1x2x32xf32>
    %983 = vector.shape_cast %982 : vector<1x1x2x32xf32> to vector<2x32xf32>
    %cst_613 = arith.constant dense<0.000000e+00> : vector<2x32xf32>
    %984 = tpu.matmul %956, %911, %cst_613 {dimension_numbers = #tpu.dot_dimension_numbers<[1], [0], [0], [1], [0, 0, 1, 1], [], []>} : vector<2x32xf32>, vector<32x32xf32>, vector<2x32xf32> -> vector<2x32xf32>
    %985 = arith.addf %983, %984 : vector<2x32xf32>
    %986 = math.tanh %985 : vector<2x32xf32>
    %c3_614 = arith.constant 3 : index
    %987 = arith.index_cast %c1_i32_599 : i32 to index
    %c0_615 = arith.constant 0 : index
    %c0_616 = arith.constant 0 : index
    %988 = vector.load %arg12[%c3_614, %987, %c0_615, %c0_616] : memref<4x8x2x32xf32, #tpu.memory_space<vmem>>, vector<1x1x2x32xf32>
    %989 = vector.shape_cast %988 : vector<1x1x2x32xf32> to vector<2x32xf32>
    %cst_617 = arith.constant dense<0.000000e+00> : vector<2x32xf32>
    %990 = tpu.matmul %956, %913, %cst_617 {dimension_numbers = #tpu.dot_dimension_numbers<[1], [0], [0], [1], [0, 0, 1, 1], [], []>} : vector<2x32xf32>, vector<32x32xf32>, vector<2x32xf32> -> vector<2x32xf32>
    %991 = arith.addf %989, %990 : vector<2x32xf32>
    %992 = arith.negf %991 : vector<2x32xf32>
    %993 = math.exp %992 : vector<2x32xf32>
    %cst_618 = arith.constant 1.000000e+00 : f32
    %994 = vector.broadcast %cst_618 : f32 to vector<2x32xf32>
    %995 = arith.addf %994, %993 : vector<2x32xf32>
    %996 = arith.divf %994, %995 : vector<2x32xf32>
    %997 = arith.mulf %980, %954 : vector<2x32xf32>
    %998 = arith.mulf %970, %986 : vector<2x32xf32>
    %999 = arith.addf %997, %998 : vector<2x32xf32>
    %1000 = math.tanh %999 : vector<2x32xf32>
    %1001 = arith.mulf %996, %1000 : vector<2x32xf32>
    %1002 = arith.index_cast %c1_i32_599 : i32 to index
    %c0_619 = arith.constant 0 : index
    %c0_620 = arith.constant 0 : index
    %1003 = vector.load %arg11[%1002, %c0_619, %c0_620] : memref<8x2x32xf32, #tpu.memory_space<vmem>>, vector<1x2x32xf32>
    %1004 = vector.shape_cast %1003 : vector<1x2x32xf32> to vector<2x32xf32>
    %1005 = vector.shape_cast %1001 : vector<2x32xf32> to vector<1x2x32xf32>
    tpu.vector_store %arg11[%1002, %c0_619, %c0_620], %1005 {strides = array<i32>} : memref<8x2x32xf32, #tpu.memory_space<vmem>>, vector<1x2x32xf32>,
    %c2_i32_621 = arith.constant 2 : i32
    %c0_622 = arith.constant 0 : index
    %1006 = arith.index_cast %c2_i32_621 : i32 to index
    %c0_623 = arith.constant 0 : index
    %c0_624 = arith.constant 0 : index
    %1007 = vector.load %arg12[%c0_622, %1006, %c0_623, %c0_624] : memref<4x8x2x32xf32, #tpu.memory_space<vmem>>, vector<1x1x2x32xf32>
    %1008 = vector.shape_cast %1007 : vector<1x1x2x32xf32> to vector<2x32xf32>
    %cst_625 = arith.constant dense<0.000000e+00> : vector<2x32xf32>
    %1009 = tpu.matmul %1001, %907, %cst_625 {dimension_numbers = #tpu.dot_dimension_numbers<[1], [0], [0], [1], [0, 0, 1, 1], [], []>} : vector<2x32xf32>, vector<32x32xf32>, vector<2x32xf32> -> vector<2x32xf32>
    %1010 = arith.addf %1008, %1009 : vector<2x32xf32>
    %1011 = arith.negf %1010 : vector<2x32xf32>
    %1012 = math.exp %1011 : vector<2x32xf32>
    %cst_626 = arith.constant 1.000000e+00 : f32
    %1013 = vector.broadcast %cst_626 : f32 to vector<2x32xf32>
    %1014 = arith.addf %1013, %1012 : vector<2x32xf32>
    %1015 = arith.divf %1013, %1014 : vector<2x32xf32>
    %c1_627 = arith.constant 1 : index
    %1016 = arith.index_cast %c2_i32_621 : i32 to index
    %c0_628 = arith.constant 0 : index
    %c0_629 = arith.constant 0 : index
    %1017 = vector.load %arg12[%c1_627, %1016, %c0_628, %c0_629] : memref<4x8x2x32xf32, #tpu.memory_space<vmem>>, vector<1x1x2x32xf32>
    %1018 = vector.shape_cast %1017 : vector<1x1x2x32xf32> to vector<2x32xf32>
    %cst_630 = arith.constant dense<0.000000e+00> : vector<2x32xf32>
    %1019 = tpu.matmul %1001, %909, %cst_630 {dimension_numbers = #tpu.dot_dimension_numbers<[1], [0], [0], [1], [0, 0, 1, 1], [], []>} : vector<2x32xf32>, vector<32x32xf32>, vector<2x32xf32> -> vector<2x32xf32>
    %1020 = arith.addf %1018, %1019 : vector<2x32xf32>
    %1021 = arith.negf %1020 : vector<2x32xf32>
    %1022 = math.exp %1021 : vector<2x32xf32>
    %cst_631 = arith.constant 1.000000e+00 : f32
    %1023 = vector.broadcast %cst_631 : f32 to vector<2x32xf32>
    %1024 = arith.addf %1023, %1022 : vector<2x32xf32>
    %1025 = arith.divf %1023, %1024 : vector<2x32xf32>
    %c2_632 = arith.constant 2 : index
    %1026 = arith.index_cast %c2_i32_621 : i32 to index
    %c0_633 = arith.constant 0 : index
    %c0_634 = arith.constant 0 : index
    %1027 = vector.load %arg12[%c2_632, %1026, %c0_633, %c0_634] : memref<4x8x2x32xf32, #tpu.memory_space<vmem>>, vector<1x1x2x32xf32>
    %1028 = vector.shape_cast %1027 : vector<1x1x2x32xf32> to vector<2x32xf32>
    %cst_635 = arith.constant dense<0.000000e+00> : vector<2x32xf32>
    %1029 = tpu.matmul %1001, %911, %cst_635 {dimension_numbers = #tpu.dot_dimension_numbers<[1], [0], [0], [1], [0, 0, 1, 1], [], []>} : vector<2x32xf32>, vector<32x32xf32>, vector<2x32xf32> -> vector<2x32xf32>
    %1030 = arith.addf %1028, %1029 : vector<2x32xf32>
    %1031 = math.tanh %1030 : vector<2x32xf32>
    %c3_636 = arith.constant 3 : index
    %1032 = arith.index_cast %c2_i32_621 : i32 to index
    %c0_637 = arith.constant 0 : index
    %c0_638 = arith.constant 0 : index
    %1033 = vector.load %arg12[%c3_636, %1032, %c0_637, %c0_638] : memref<4x8x2x32xf32, #tpu.memory_space<vmem>>, vector<1x1x2x32xf32>
    %1034 = vector.shape_cast %1033 : vector<1x1x2x32xf32> to vector<2x32xf32>
    %cst_639 = arith.constant dense<0.000000e+00> : vector<2x32xf32>
    %1035 = tpu.matmul %1001, %913, %cst_639 {dimension_numbers = #tpu.dot_dimension_numbers<[1], [0], [0], [1], [0, 0, 1, 1], [], []>} : vector<2x32xf32>, vector<32x32xf32>, vector<2x32xf32> -> vector<2x32xf32>
    %1036 = arith.addf %1034, %1035 : vector<2x32xf32>
    %1037 = arith.negf %1036 : vector<2x32xf32>
    %1038 = math.exp %1037 : vector<2x32xf32>
    %cst_640 = arith.constant 1.000000e+00 : f32
    %1039 = vector.broadcast %cst_640 : f32 to vector<2x32xf32>
    %1040 = arith.addf %1039, %1038 : vector<2x32xf32>
    %1041 = arith.divf %1039, %1040 : vector<2x32xf32>
    %1042 = arith.mulf %1025, %999 : vector<2x32xf32>
    %1043 = arith.mulf %1015, %1031 : vector<2x32xf32>
    %1044 = arith.addf %1042, %1043 : vector<2x32xf32>
    %1045 = math.tanh %1044 : vector<2x32xf32>
    %1046 = arith.mulf %1041, %1045 : vector<2x32xf32>
    %1047 = arith.index_cast %c2_i32_621 : i32 to index
    %c0_641 = arith.constant 0 : index
    %c0_642 = arith.constant 0 : index
    %1048 = vector.load %arg11[%1047, %c0_641, %c0_642] : memref<8x2x32xf32, #tpu.memory_space<vmem>>, vector<1x2x32xf32>
    %1049 = vector.shape_cast %1048 : vector<1x2x32xf32> to vector<2x32xf32>
    %1050 = vector.shape_cast %1046 : vector<2x32xf32> to vector<1x2x32xf32>
    tpu.vector_store %arg11[%1047, %c0_641, %c0_642], %1050 {strides = array<i32>} : memref<8x2x32xf32, #tpu.memory_space<vmem>>, vector<1x2x32xf32>,
    %c3_i32_643 = arith.constant 3 : i32
    %c0_644 = arith.constant 0 : index
    %1051 = arith.index_cast %c3_i32_643 : i32 to index
    %c0_645 = arith.constant 0 : index
    %c0_646 = arith.constant 0 : index
    %1052 = vector.load %arg12[%c0_644, %1051, %c0_645, %c0_646] : memref<4x8x2x32xf32, #tpu.memory_space<vmem>>, vector<1x1x2x32xf32>
    %1053 = vector.shape_cast %1052 : vector<1x1x2x32xf32> to vector<2x32xf32>
    %cst_647 = arith.constant dense<0.000000e+00> : vector<2x32xf32>
    %1054 = tpu.matmul %1046, %907, %cst_647 {dimension_numbers = #tpu.dot_dimension_numbers<[1], [0], [0], [1], [0, 0, 1, 1], [], []>} : vector<2x32xf32>, vector<32x32xf32>, vector<2x32xf32> -> vector<2x32xf32>
    %1055 = arith.addf %1053, %1054 : vector<2x32xf32>
    %1056 = arith.negf %1055 : vector<2x32xf32>
    %1057 = math.exp %1056 : vector<2x32xf32>
    %cst_648 = arith.constant 1.000000e+00 : f32
    %1058 = vector.broadcast %cst_648 : f32 to vector<2x32xf32>
    %1059 = arith.addf %1058, %1057 : vector<2x32xf32>
    %1060 = arith.divf %1058, %1059 : vector<2x32xf32>
    %c1_649 = arith.constant 1 : index
    %1061 = arith.index_cast %c3_i32_643 : i32 to index
    %c0_650 = arith.constant 0 : index
    %c0_651 = arith.constant 0 : index
    %1062 = vector.load %arg12[%c1_649, %1061, %c0_650, %c0_651] : memref<4x8x2x32xf32, #tpu.memory_space<vmem>>, vector<1x1x2x32xf32>
    %1063 = vector.shape_cast %1062 : vector<1x1x2x32xf32> to vector<2x32xf32>
    %cst_652 = arith.constant dense<0.000000e+00> : vector<2x32xf32>
    %1064 = tpu.matmul %1046, %909, %cst_652 {dimension_numbers = #tpu.dot_dimension_numbers<[1], [0], [0], [1], [0, 0, 1, 1], [], []>} : vector<2x32xf32>, vector<32x32xf32>, vector<2x32xf32> -> vector<2x32xf32>
    %1065 = arith.addf %1063, %1064 : vector<2x32xf32>
    %1066 = arith.negf %1065 : vector<2x32xf32>
    %1067 = math.exp %1066 : vector<2x32xf32>
    %cst_653 = arith.constant 1.000000e+00 : f32
    %1068 = vector.broadcast %cst_653 : f32 to vector<2x32xf32>
    %1069 = arith.addf %1068, %1067 : vector<2x32xf32>
    %1070 = arith.divf %1068, %1069 : vector<2x32xf32>
    %c2_654 = arith.constant 2 : index
    %1071 = arith.index_cast %c3_i32_643 : i32 to index
    %c0_655 = arith.constant 0 : index
    %c0_656 = arith.constant 0 : index
    %1072 = vector.load %arg12[%c2_654, %1071, %c0_655, %c0_656] : memref<4x8x2x32xf32, #tpu.memory_space<vmem>>, vector<1x1x2x32xf32>
    %1073 = vector.shape_cast %1072 : vector<1x1x2x32xf32> to vector<2x32xf32>
    %cst_657 = arith.constant dense<0.000000e+00> : vector<2x32xf32>
    %1074 = tpu.matmul %1046, %911, %cst_657 {dimension_numbers = #tpu.dot_dimension_numbers<[1], [0], [0], [1], [0, 0, 1, 1], [], []>} : vector<2x32xf32>, vector<32x32xf32>, vector<2x32xf32> -> vector<2x32xf32>
    %1075 = arith.addf %1073, %1074 : vector<2x32xf32>
    %1076 = math.tanh %1075 : vector<2x32xf32>
    %c3_658 = arith.constant 3 : index
    %1077 = arith.index_cast %c3_i32_643 : i32 to index
    %c0_659 = arith.constant 0 : index
    %c0_660 = arith.constant 0 : index
    %1078 = vector.load %arg12[%c3_658, %1077, %c0_659, %c0_660] : memref<4x8x2x32xf32, #tpu.memory_space<vmem>>, vector<1x1x2x32xf32>
    %1079 = vector.shape_cast %1078 : vector<1x1x2x32xf32> to vector<2x32xf32>
    %cst_661 = arith.constant dense<0.000000e+00> : vector<2x32xf32>
    %1080 = tpu.matmul %1046, %913, %cst_661 {dimension_numbers = #tpu.dot_dimension_numbers<[1], [0], [0], [1], [0, 0, 1, 1], [], []>} : vector<2x32xf32>, vector<32x32xf32>, vector<2x32xf32> -> vector<2x32xf32>
    %1081 = arith.addf %1079, %1080 : vector<2x32xf32>
    %1082 = arith.negf %1081 : vector<2x32xf32>
    %1083 = math.exp %1082 : vector<2x32xf32>
    %cst_662 = arith.constant 1.000000e+00 : f32
    %1084 = vector.broadcast %cst_662 : f32 to vector<2x32xf32>
    %1085 = arith.addf %1084, %1083 : vector<2x32xf32>
    %1086 = arith.divf %1084, %1085 : vector<2x32xf32>
    %1087 = arith.mulf %1070, %1044 : vector<2x32xf32>
    %1088 = arith.mulf %1060, %1076 : vector<2x32xf32>
    %1089 = arith.addf %1087, %1088 : vector<2x32xf32>
    %1090 = math.tanh %1089 : vector<2x32xf32>
    %1091 = arith.mulf %1086, %1090 : vector<2x32xf32>
    %1092 = arith.index_cast %c3_i32_643 : i32 to index
    %c0_663 = arith.constant 0 : index
    %c0_664 = arith.constant 0 : index
    %1093 = vector.load %arg11[%1092, %c0_663, %c0_664] : memref<8x2x32xf32, #tpu.memory_space<vmem>>, vector<1x2x32xf32>
    %1094 = vector.shape_cast %1093 : vector<1x2x32xf32> to vector<2x32xf32>
    %1095 = vector.shape_cast %1091 : vector<2x32xf32> to vector<1x2x32xf32>
    tpu.vector_store %arg11[%1092, %c0_663, %c0_664], %1095 {strides = array<i32>} : memref<8x2x32xf32, #tpu.memory_space<vmem>>, vector<1x2x32xf32>,
    %c4_i32_665 = arith.constant 4 : i32
    %c0_666 = arith.constant 0 : index
    %1096 = arith.index_cast %c4_i32_665 : i32 to index
    %c0_667 = arith.constant 0 : index
    %c0_668 = arith.constant 0 : index
    %1097 = vector.load %arg12[%c0_666, %1096, %c0_667, %c0_668] : memref<4x8x2x32xf32, #tpu.memory_space<vmem>>, vector<1x1x2x32xf32>
    %1098 = vector.shape_cast %1097 : vector<1x1x2x32xf32> to vector<2x32xf32>
    %cst_669 = arith.constant dense<0.000000e+00> : vector<2x32xf32>
    %1099 = tpu.matmul %1091, %907, %cst_669 {dimension_numbers = #tpu.dot_dimension_numbers<[1], [0], [0], [1], [0, 0, 1, 1], [], []>} : vector<2x32xf32>, vector<32x32xf32>, vector<2x32xf32> -> vector<2x32xf32>
    %1100 = arith.addf %1098, %1099 : vector<2x32xf32>
    %1101 = arith.negf %1100 : vector<2x32xf32>
    %1102 = math.exp %1101 : vector<2x32xf32>
    %cst_670 = arith.constant 1.000000e+00 : f32
    %1103 = vector.broadcast %cst_670 : f32 to vector<2x32xf32>
    %1104 = arith.addf %1103, %1102 : vector<2x32xf32>
    %1105 = arith.divf %1103, %1104 : vector<2x32xf32>
    %c1_671 = arith.constant 1 : index
    %1106 = arith.index_cast %c4_i32_665 : i32 to index
    %c0_672 = arith.constant 0 : index
    %c0_673 = arith.constant 0 : index
    %1107 = vector.load %arg12[%c1_671, %1106, %c0_672, %c0_673] : memref<4x8x2x32xf32, #tpu.memory_space<vmem>>, vector<1x1x2x32xf32>
    %1108 = vector.shape_cast %1107 : vector<1x1x2x32xf32> to vector<2x32xf32>
    %cst_674 = arith.constant dense<0.000000e+00> : vector<2x32xf32>
    %1109 = tpu.matmul %1091, %909, %cst_674 {dimension_numbers = #tpu.dot_dimension_numbers<[1], [0], [0], [1], [0, 0, 1, 1], [], []>} : vector<2x32xf32>, vector<32x32xf32>, vector<2x32xf32> -> vector<2x32xf32>
    %1110 = arith.addf %1108, %1109 : vector<2x32xf32>
    %1111 = arith.negf %1110 : vector<2x32xf32>
    %1112 = math.exp %1111 : vector<2x32xf32>
    %cst_675 = arith.constant 1.000000e+00 : f32
    %1113 = vector.broadcast %cst_675 : f32 to vector<2x32xf32>
    %1114 = arith.addf %1113, %1112 : vector<2x32xf32>
    %1115 = arith.divf %1113, %1114 : vector<2x32xf32>
    %c2_676 = arith.constant 2 : index
    %1116 = arith.index_cast %c4_i32_665 : i32 to index
    %c0_677 = arith.constant 0 : index
    %c0_678 = arith.constant 0 : index
    %1117 = vector.load %arg12[%c2_676, %1116, %c0_677, %c0_678] : memref<4x8x2x32xf32, #tpu.memory_space<vmem>>, vector<1x1x2x32xf32>
    %1118 = vector.shape_cast %1117 : vector<1x1x2x32xf32> to vector<2x32xf32>
    %cst_679 = arith.constant dense<0.000000e+00> : vector<2x32xf32>
    %1119 = tpu.matmul %1091, %911, %cst_679 {dimension_numbers = #tpu.dot_dimension_numbers<[1], [0], [0], [1], [0, 0, 1, 1], [], []>} : vector<2x32xf32>, vector<32x32xf32>, vector<2x32xf32> -> vector<2x32xf32>
    %1120 = arith.addf %1118, %1119 : vector<2x32xf32>
    %1121 = math.tanh %1120 : vector<2x32xf32>
    %c3_680 = arith.constant 3 : index
    %1122 = arith.index_cast %c4_i32_665 : i32 to index
    %c0_681 = arith.constant 0 : index
    %c0_682 = arith.constant 0 : index
    %1123 = vector.load %arg12[%c3_680, %1122, %c0_681, %c0_682] : memref<4x8x2x32xf32, #tpu.memory_space<vmem>>, vector<1x1x2x32xf32>
    %1124 = vector.shape_cast %1123 : vector<1x1x2x32xf32> to vector<2x32xf32>
    %cst_683 = arith.constant dense<0.000000e+00> : vector<2x32xf32>
    %1125 = tpu.matmul %1091, %913, %cst_683 {dimension_numbers = #tpu.dot_dimension_numbers<[1], [0], [0], [1], [0, 0, 1, 1], [], []>} : vector<2x32xf32>, vector<32x32xf32>, vector<2x32xf32> -> vector<2x32xf32>
    %1126 = arith.addf %1124, %1125 : vector<2x32xf32>
    %1127 = arith.negf %1126 : vector<2x32xf32>
    %1128 = math.exp %1127 : vector<2x32xf32>
    %cst_684 = arith.constant 1.000000e+00 : f32
    %1129 = vector.broadcast %cst_684 : f32 to vector<2x32xf32>
    %1130 = arith.addf %1129, %1128 : vector<2x32xf32>
    %1131 = arith.divf %1129, %1130 : vector<2x32xf32>
    %1132 = arith.mulf %1115, %1089 : vector<2x32xf32>
    %1133 = arith.mulf %1105, %1121 : vector<2x32xf32>
    %1134 = arith.addf %1132, %1133 : vector<2x32xf32>
    %1135 = math.tanh %1134 : vector<2x32xf32>
    %1136 = arith.mulf %1131, %1135 : vector<2x32xf32>
    %1137 = arith.index_cast %c4_i32_665 : i32 to index
    %c0_685 = arith.constant 0 : index
    %c0_686 = arith.constant 0 : index
    %1138 = vector.load %arg11[%1137, %c0_685, %c0_686] : memref<8x2x32xf32, #tpu.memory_space<vmem>>, vector<1x2x32xf32>
    %1139 = vector.shape_cast %1138 : vector<1x2x32xf32> to vector<2x32xf32>
    %1140 = vector.shape_cast %1136 : vector<2x32xf32> to vector<1x2x32xf32>
    tpu.vector_store %arg11[%1137, %c0_685, %c0_686], %1140 {strides = array<i32>} : memref<8x2x32xf32, #tpu.memory_space<vmem>>, vector<1x2x32xf32>,
    %c5_i32_687 = arith.constant 5 : i32
    %c0_688 = arith.constant 0 : index
    %1141 = arith.index_cast %c5_i32_687 : i32 to index
    %c0_689 = arith.constant 0 : index
    %c0_690 = arith.constant 0 : index
    %1142 = vector.load %arg12[%c0_688, %1141, %c0_689, %c0_690] : memref<4x8x2x32xf32, #tpu.memory_space<vmem>>, vector<1x1x2x32xf32>
    %1143 = vector.shape_cast %1142 : vector<1x1x2x32xf32> to vector<2x32xf32>
    %cst_691 = arith.constant dense<0.000000e+00> : vector<2x32xf32>
    %1144 = tpu.matmul %1136, %907, %cst_691 {dimension_numbers = #tpu.dot_dimension_numbers<[1], [0], [0], [1], [0, 0, 1, 1], [], []>} : vector<2x32xf32>, vector<32x32xf32>, vector<2x32xf32> -> vector<2x32xf32>
    %1145 = arith.addf %1143, %1144 : vector<2x32xf32>
    %1146 = arith.negf %1145 : vector<2x32xf32>
    %1147 = math.exp %1146 : vector<2x32xf32>
    %cst_692 = arith.constant 1.000000e+00 : f32
    %1148 = vector.broadcast %cst_692 : f32 to vector<2x32xf32>
    %1149 = arith.addf %1148, %1147 : vector<2x32xf32>
    %1150 = arith.divf %1148, %1149 : vector<2x32xf32>
    %c1_693 = arith.constant 1 : index
    %1151 = arith.index_cast %c5_i32_687 : i32 to index
    %c0_694 = arith.constant 0 : index
    %c0_695 = arith.constant 0 : index
    %1152 = vector.load %arg12[%c1_693, %1151, %c0_694, %c0_695] : memref<4x8x2x32xf32, #tpu.memory_space<vmem>>, vector<1x1x2x32xf32>
    %1153 = vector.shape_cast %1152 : vector<1x1x2x32xf32> to vector<2x32xf32>
    %cst_696 = arith.constant dense<0.000000e+00> : vector<2x32xf32>
    %1154 = tpu.matmul %1136, %909, %cst_696 {dimension_numbers = #tpu.dot_dimension_numbers<[1], [0], [0], [1], [0, 0, 1, 1], [], []>} : vector<2x32xf32>, vector<32x32xf32>, vector<2x32xf32> -> vector<2x32xf32>
    %1155 = arith.addf %1153, %1154 : vector<2x32xf32>
    %1156 = arith.negf %1155 : vector<2x32xf32>
    %1157 = math.exp %1156 : vector<2x32xf32>
    %cst_697 = arith.constant 1.000000e+00 : f32
    %1158 = vector.broadcast %cst_697 : f32 to vector<2x32xf32>
    %1159 = arith.addf %1158, %1157 : vector<2x32xf32>
    %1160 = arith.divf %1158, %1159 : vector<2x32xf32>
    %c2_698 = arith.constant 2 : index
    %1161 = arith.index_cast %c5_i32_687 : i32 to index
    %c0_699 = arith.constant 0 : index
    %c0_700 = arith.constant 0 : index
    %1162 = vector.load %arg12[%c2_698, %1161, %c0_699, %c0_700] : memref<4x8x2x32xf32, #tpu.memory_space<vmem>>, vector<1x1x2x32xf32>
    %1163 = vector.shape_cast %1162 : vector<1x1x2x32xf32> to vector<2x32xf32>
    %cst_701 = arith.constant dense<0.000000e+00> : vector<2x32xf32>
    %1164 = tpu.matmul %1136, %911, %cst_701 {dimension_numbers = #tpu.dot_dimension_numbers<[1], [0], [0], [1], [0, 0, 1, 1], [], []>} : vector<2x32xf32>, vector<32x32xf32>, vector<2x32xf32> -> vector<2x32xf32>
    %1165 = arith.addf %1163, %1164 : vector<2x32xf32>
    %1166 = math.tanh %1165 : vector<2x32xf32>
    %c3_702 = arith.constant 3 : index
    %1167 = arith.index_cast %c5_i32_687 : i32 to index
    %c0_703 = arith.constant 0 : index
    %c0_704 = arith.constant 0 : index
    %1168 = vector.load %arg12[%c3_702, %1167, %c0_703, %c0_704] : memref<4x8x2x32xf32, #tpu.memory_space<vmem>>, vector<1x1x2x32xf32>
    %1169 = vector.shape_cast %1168 : vector<1x1x2x32xf32> to vector<2x32xf32>
    %cst_705 = arith.constant dense<0.000000e+00> : vector<2x32xf32>
    %1170 = tpu.matmul %1136, %913, %cst_705 {dimension_numbers = #tpu.dot_dimension_numbers<[1], [0], [0], [1], [0, 0, 1, 1], [], []>} : vector<2x32xf32>, vector<32x32xf32>, vector<2x32xf32> -> vector<2x32xf32>
    %1171 = arith.addf %1169, %1170 : vector<2x32xf32>
    %1172 = arith.negf %1171 : vector<2x32xf32>
    %1173 = math.exp %1172 : vector<2x32xf32>
    %cst_706 = arith.constant 1.000000e+00 : f32
    %1174 = vector.broadcast %cst_706 : f32 to vector<2x32xf32>
    %1175 = arith.addf %1174, %1173 : vector<2x32xf32>
    %1176 = arith.divf %1174, %1175 : vector<2x32xf32>
    %1177 = arith.mulf %1160, %1134 : vector<2x32xf32>
    %1178 = arith.mulf %1150, %1166 : vector<2x32xf32>
    %1179 = arith.addf %1177, %1178 : vector<2x32xf32>
    %1180 = math.tanh %1179 : vector<2x32xf32>
    %1181 = arith.mulf %1176, %1180 : vector<2x32xf32>
    %1182 = arith.index_cast %c5_i32_687 : i32 to index
    %c0_707 = arith.constant 0 : index
    %c0_708 = arith.constant 0 : index
    %1183 = vector.load %arg11[%1182, %c0_707, %c0_708] : memref<8x2x32xf32, #tpu.memory_space<vmem>>, vector<1x2x32xf32>
    %1184 = vector.shape_cast %1183 : vector<1x2x32xf32> to vector<2x32xf32>
    %1185 = vector.shape_cast %1181 : vector<2x32xf32> to vector<1x2x32xf32>
    tpu.vector_store %arg11[%1182, %c0_707, %c0_708], %1185 {strides = array<i32>} : memref<8x2x32xf32, #tpu.memory_space<vmem>>, vector<1x2x32xf32>,
    %c6_i32_709 = arith.constant 6 : i32
    %c0_710 = arith.constant 0 : index
    %1186 = arith.index_cast %c6_i32_709 : i32 to index
    %c0_711 = arith.constant 0 : index
    %c0_712 = arith.constant 0 : index
    %1187 = vector.load %arg12[%c0_710, %1186, %c0_711, %c0_712] : memref<4x8x2x32xf32, #tpu.memory_space<vmem>>, vector<1x1x2x32xf32>
    %1188 = vector.shape_cast %1187 : vector<1x1x2x32xf32> to vector<2x32xf32>
    %cst_713 = arith.constant dense<0.000000e+00> : vector<2x32xf32>
    %1189 = tpu.matmul %1181, %907, %cst_713 {dimension_numbers = #tpu.dot_dimension_numbers<[1], [0], [0], [1], [0, 0, 1, 1], [], []>} : vector<2x32xf32>, vector<32x32xf32>, vector<2x32xf32> -> vector<2x32xf32>
    %1190 = arith.addf %1188, %1189 : vector<2x32xf32>
    %1191 = arith.negf %1190 : vector<2x32xf32>
    %1192 = math.exp %1191 : vector<2x32xf32>
    %cst_714 = arith.constant 1.000000e+00 : f32
    %1193 = vector.broadcast %cst_714 : f32 to vector<2x32xf32>
    %1194 = arith.addf %1193, %1192 : vector<2x32xf32>
    %1195 = arith.divf %1193, %1194 : vector<2x32xf32>
    %c1_715 = arith.constant 1 : index
    %1196 = arith.index_cast %c6_i32_709 : i32 to index
    %c0_716 = arith.constant 0 : index
    %c0_717 = arith.constant 0 : index
    %1197 = vector.load %arg12[%c1_715, %1196, %c0_716, %c0_717] : memref<4x8x2x32xf32, #tpu.memory_space<vmem>>, vector<1x1x2x32xf32>
    %1198 = vector.shape_cast %1197 : vector<1x1x2x32xf32> to vector<2x32xf32>
    %cst_718 = arith.constant dense<0.000000e+00> : vector<2x32xf32>
    %1199 = tpu.matmul %1181, %909, %cst_718 {dimension_numbers = #tpu.dot_dimension_numbers<[1], [0], [0], [1], [0, 0, 1, 1], [], []>} : vector<2x32xf32>, vector<32x32xf32>, vector<2x32xf32> -> vector<2x32xf32>
    %1200 = arith.addf %1198, %1199 : vector<2x32xf32>
    %1201 = arith.negf %1200 : vector<2x32xf32>
    %1202 = math.exp %1201 : vector<2x32xf32>
    %cst_719 = arith.constant 1.000000e+00 : f32
    %1203 = vector.broadcast %cst_719 : f32 to vector<2x32xf32>
    %1204 = arith.addf %1203, %1202 : vector<2x32xf32>
    %1205 = arith.divf %1203, %1204 : vector<2x32xf32>
    %c2_720 = arith.constant 2 : index
    %1206 = arith.index_cast %c6_i32_709 : i32 to index
    %c0_721 = arith.constant 0 : index
    %c0_722 = arith.constant 0 : index
    %1207 = vector.load %arg12[%c2_720, %1206, %c0_721, %c0_722] : memref<4x8x2x32xf32, #tpu.memory_space<vmem>>, vector<1x1x2x32xf32>
    %1208 = vector.shape_cast %1207 : vector<1x1x2x32xf32> to vector<2x32xf32>
    %cst_723 = arith.constant dense<0.000000e+00> : vector<2x32xf32>
    %1209 = tpu.matmul %1181, %911, %cst_723 {dimension_numbers = #tpu.dot_dimension_numbers<[1], [0], [0], [1], [0, 0, 1, 1], [], []>} : vector<2x32xf32>, vector<32x32xf32>, vector<2x32xf32> -> vector<2x32xf32>
    %1210 = arith.addf %1208, %1209 : vector<2x32xf32>
    %1211 = math.tanh %1210 : vector<2x32xf32>
    %c3_724 = arith.constant 3 : index
    %1212 = arith.index_cast %c6_i32_709 : i32 to index
    %c0_725 = arith.constant 0 : index
    %c0_726 = arith.constant 0 : index
    %1213 = vector.load %arg12[%c3_724, %1212, %c0_725, %c0_726] : memref<4x8x2x32xf32, #tpu.memory_space<vmem>>, vector<1x1x2x32xf32>
    %1214 = vector.shape_cast %1213 : vector<1x1x2x32xf32> to vector<2x32xf32>
    %cst_727 = arith.constant dense<0.000000e+00> : vector<2x32xf32>
    %1215 = tpu.matmul %1181, %913, %cst_727 {dimension_numbers = #tpu.dot_dimension_numbers<[1], [0], [0], [1], [0, 0, 1, 1], [], []>} : vector<2x32xf32>, vector<32x32xf32>, vector<2x32xf32> -> vector<2x32xf32>
    %1216 = arith.addf %1214, %1215 : vector<2x32xf32>
    %1217 = arith.negf %1216 : vector<2x32xf32>
    %1218 = math.exp %1217 : vector<2x32xf32>
    %cst_728 = arith.constant 1.000000e+00 : f32
    %1219 = vector.broadcast %cst_728 : f32 to vector<2x32xf32>
    %1220 = arith.addf %1219, %1218 : vector<2x32xf32>
    %1221 = arith.divf %1219, %1220 : vector<2x32xf32>
    %1222 = arith.mulf %1205, %1179 : vector<2x32xf32>
    %1223 = arith.mulf %1195, %1211 : vector<2x32xf32>
    %1224 = arith.addf %1222, %1223 : vector<2x32xf32>
    %1225 = math.tanh %1224 : vector<2x32xf32>
    %1226 = arith.mulf %1221, %1225 : vector<2x32xf32>
    %1227 = arith.index_cast %c6_i32_709 : i32 to index
    %c0_729 = arith.constant 0 : index
    %c0_730 = arith.constant 0 : index
    %1228 = vector.load %arg11[%1227, %c0_729, %c0_730] : memref<8x2x32xf32, #tpu.memory_space<vmem>>, vector<1x2x32xf32>
    %1229 = vector.shape_cast %1228 : vector<1x2x32xf32> to vector<2x32xf32>
    %1230 = vector.shape_cast %1226 : vector<2x32xf32> to vector<1x2x32xf32>
    tpu.vector_store %arg11[%1227, %c0_729, %c0_730], %1230 {strides = array<i32>} : memref<8x2x32xf32, #tpu.memory_space<vmem>>, vector<1x2x32xf32>,
    %c7_i32_731 = arith.constant 7 : i32
    %c0_732 = arith.constant 0 : index
    %1231 = arith.index_cast %c7_i32_731 : i32 to index
    %c0_733 = arith.constant 0 : index
    %c0_734 = arith.constant 0 : index
    %1232 = vector.load %arg12[%c0_732, %1231, %c0_733, %c0_734] : memref<4x8x2x32xf32, #tpu.memory_space<vmem>>, vector<1x1x2x32xf32>
    %1233 = vector.shape_cast %1232 : vector<1x1x2x32xf32> to vector<2x32xf32>
    %cst_735 = arith.constant dense<0.000000e+00> : vector<2x32xf32>
    %1234 = tpu.matmul %1226, %907, %cst_735 {dimension_numbers = #tpu.dot_dimension_numbers<[1], [0], [0], [1], [0, 0, 1, 1], [], []>} : vector<2x32xf32>, vector<32x32xf32>, vector<2x32xf32> -> vector<2x32xf32>
    %1235 = arith.addf %1233, %1234 : vector<2x32xf32>
    %1236 = arith.negf %1235 : vector<2x32xf32>
    %1237 = math.exp %1236 : vector<2x32xf32>
    %cst_736 = arith.constant 1.000000e+00 : f32
    %1238 = vector.broadcast %cst_736 : f32 to vector<2x32xf32>
    %1239 = arith.addf %1238, %1237 : vector<2x32xf32>
    %1240 = arith.divf %1238, %1239 : vector<2x32xf32>
    %c1_737 = arith.constant 1 : index
    %1241 = arith.index_cast %c7_i32_731 : i32 to index
    %c0_738 = arith.constant 0 : index
    %c0_739 = arith.constant 0 : index
    %1242 = vector.load %arg12[%c1_737, %1241, %c0_738, %c0_739] : memref<4x8x2x32xf32, #tpu.memory_space<vmem>>, vector<1x1x2x32xf32>
    %1243 = vector.shape_cast %1242 : vector<1x1x2x32xf32> to vector<2x32xf32>
    %cst_740 = arith.constant dense<0.000000e+00> : vector<2x32xf32>
    %1244 = tpu.matmul %1226, %909, %cst_740 {dimension_numbers = #tpu.dot_dimension_numbers<[1], [0], [0], [1], [0, 0, 1, 1], [], []>} : vector<2x32xf32>, vector<32x32xf32>, vector<2x32xf32> -> vector<2x32xf32>
    %1245 = arith.addf %1243, %1244 : vector<2x32xf32>
    %1246 = arith.negf %1245 : vector<2x32xf32>
    %1247 = math.exp %1246 : vector<2x32xf32>
    %cst_741 = arith.constant 1.000000e+00 : f32
    %1248 = vector.broadcast %cst_741 : f32 to vector<2x32xf32>
    %1249 = arith.addf %1248, %1247 : vector<2x32xf32>
    %1250 = arith.divf %1248, %1249 : vector<2x32xf32>
    %c2_742 = arith.constant 2 : index
    %1251 = arith.index_cast %c7_i32_731 : i32 to index
    %c0_743 = arith.constant 0 : index
    %c0_744 = arith.constant 0 : index
    %1252 = vector.load %arg12[%c2_742, %1251, %c0_743, %c0_744] : memref<4x8x2x32xf32, #tpu.memory_space<vmem>>, vector<1x1x2x32xf32>
    %1253 = vector.shape_cast %1252 : vector<1x1x2x32xf32> to vector<2x32xf32>
    %cst_745 = arith.constant dense<0.000000e+00> : vector<2x32xf32>
    %1254 = tpu.matmul %1226, %911, %cst_745 {dimension_numbers = #tpu.dot_dimension_numbers<[1], [0], [0], [1], [0, 0, 1, 1], [], []>} : vector<2x32xf32>, vector<32x32xf32>, vector<2x32xf32> -> vector<2x32xf32>
    %1255 = arith.addf %1253, %1254 : vector<2x32xf32>
    %1256 = math.tanh %1255 : vector<2x32xf32>
    %c3_746 = arith.constant 3 : index
    %1257 = arith.index_cast %c7_i32_731 : i32 to index
    %c0_747 = arith.constant 0 : index
    %c0_748 = arith.constant 0 : index
    %1258 = vector.load %arg12[%c3_746, %1257, %c0_747, %c0_748] : memref<4x8x2x32xf32, #tpu.memory_space<vmem>>, vector<1x1x2x32xf32>
    %1259 = vector.shape_cast %1258 : vector<1x1x2x32xf32> to vector<2x32xf32>
    %cst_749 = arith.constant dense<0.000000e+00> : vector<2x32xf32>
    %1260 = tpu.matmul %1226, %913, %cst_749 {dimension_numbers = #tpu.dot_dimension_numbers<[1], [0], [0], [1], [0, 0, 1, 1], [], []>} : vector<2x32xf32>, vector<32x32xf32>, vector<2x32xf32> -> vector<2x32xf32>
    %1261 = arith.addf %1259, %1260 : vector<2x32xf32>
    %1262 = arith.negf %1261 : vector<2x32xf32>
    %1263 = math.exp %1262 : vector<2x32xf32>
    %cst_750 = arith.constant 1.000000e+00 : f32
    %1264 = vector.broadcast %cst_750 : f32 to vector<2x32xf32>
    %1265 = arith.addf %1264, %1263 : vector<2x32xf32>
    %1266 = arith.divf %1264, %1265 : vector<2x32xf32>
    %1267 = arith.mulf %1250, %1224 : vector<2x32xf32>
    %1268 = arith.mulf %1240, %1256 : vector<2x32xf32>
    %1269 = arith.addf %1267, %1268 : vector<2x32xf32>
    %1270 = math.tanh %1269 : vector<2x32xf32>
    %1271 = arith.mulf %1266, %1270 : vector<2x32xf32>
    %1272 = arith.index_cast %c7_i32_731 : i32 to index
    %c0_751 = arith.constant 0 : index
    %c0_752 = arith.constant 0 : index
    %1273 = vector.load %arg11[%1272, %c0_751, %c0_752] : memref<8x2x32xf32, #tpu.memory_space<vmem>>, vector<1x2x32xf32>
    %1274 = vector.shape_cast %1273 : vector<1x2x32xf32> to vector<2x32xf32>
    %1275 = vector.shape_cast %1271 : vector<2x32xf32> to vector<1x2x32xf32>
    tpu.vector_store %arg11[%1272, %c0_751, %c0_752], %1275 {strides = array<i32>} : memref<8x2x32xf32, #tpu.memory_space<vmem>>, vector<1x2x32xf32>,
    %c8_i32_753 = arith.constant 8 : i32
    %c0_754 = arith.constant 0 : index
    %c0_755 = arith.constant 0 : index
    %c0_756 = arith.constant 0 : index
    %1276 = vector.load %arg11[%c0_754, %c0_755, %c0_756] : memref<8x2x32xf32, #tpu.memory_space<vmem>>, vector<8x2x32xf32>
    %1277 = vector.shape_cast %1276 : vector<8x2x32xf32> to vector<16x32xf32>
    %c3_757 = arith.constant 3 : index
    %c0_758 = arith.constant 0 : index
    %c0_759 = arith.constant 0 : index
    %c0_760 = arith.constant 0 : index
    %1278 = vector.load %arg5[%c3_757, %c0_758, %c0_759, %c0_760] : memref<4x4x32x32xf32, #tpu.memory_space<vmem>>, vector<1x1x32x32xf32>
    %1279 = vector.shape_cast %1278 : vector<1x1x32x32xf32> to vector<32x32xf32>
    %c3_761 = arith.constant 3 : index
    %c0_762 = arith.constant 0 : index
    %c0_763 = arith.constant 0 : index
    %c0_764 = arith.constant 0 : index
    %1280 = vector.load %arg7[%c3_761, %c0_762, %c0_763, %c0_764] : memref<4x4x1x32xf32, #tpu.memory_space<vmem>>, vector<1x1x1x32xf32>
    %1281 = vector.shape_cast %1280 : vector<1x1x1x32xf32> to vector<1x32xf32>
    %cst_765 = arith.constant dense<0.000000e+00> : vector<16x32xf32>
    %1282 = tpu.matmul %1277, %1279, %cst_765 {dimension_numbers = #tpu.dot_dimension_numbers<[1], [0], [0], [1], [0, 0, 1, 1], [], []>} : vector<16x32xf32>, vector<32x32xf32>, vector<16x32xf32> -> vector<16x32xf32>
    %1283 = vector.broadcast %1281 : vector<1x32xf32> to vector<16x32xf32>
    %1284 = arith.addf %1282, %1283 : vector<16x32xf32>
    %1285 = vector.shape_cast %1284 : vector<16x32xf32> to vector<8x2x32xf32>
    %c0_766 = arith.constant 0 : index
    %c0_767 = arith.constant 0 : index
    %c0_768 = arith.constant 0 : index
    %c0_769 = arith.constant 0 : index
    %1286 = vector.load %arg12[%c0_766, %c0_767, %c0_768, %c0_769] : memref<4x8x2x32xf32, #tpu.memory_space<vmem>>, vector<1x8x2x32xf32>
    %1287 = vector.shape_cast %1286 : vector<1x8x2x32xf32> to vector<8x2x32xf32>
    %1288 = vector.shape_cast %1285 : vector<8x2x32xf32> to vector<1x8x2x32xf32>
    tpu.vector_store %arg12[%c0_766, %c0_767, %c0_768, %c0_769], %1288 {strides = array<i32>} : memref<4x8x2x32xf32, #tpu.memory_space<vmem>>, vector<1x8x2x32xf32>,
    %c3_770 = arith.constant 3 : index
    %c1_771 = arith.constant 1 : index
    %c0_772 = arith.constant 0 : index
    %c0_773 = arith.constant 0 : index
    %1289 = vector.load %arg5[%c3_770, %c1_771, %c0_772, %c0_773] : memref<4x4x32x32xf32, #tpu.memory_space<vmem>>, vector<1x1x32x32xf32>
    %1290 = vector.shape_cast %1289 : vector<1x1x32x32xf32> to vector<32x32xf32>
    %c3_774 = arith.constant 3 : index
    %c1_775 = arith.constant 1 : index
    %c0_776 = arith.constant 0 : index
    %c0_777 = arith.constant 0 : index
    %1291 = vector.load %arg7[%c3_774, %c1_775, %c0_776, %c0_777] : memref<4x4x1x32xf32, #tpu.memory_space<vmem>>, vector<1x1x1x32xf32>
    %1292 = vector.shape_cast %1291 : vector<1x1x1x32xf32> to vector<1x32xf32>
    %cst_778 = arith.constant dense<0.000000e+00> : vector<16x32xf32>
    %1293 = tpu.matmul %1277, %1290, %cst_778 {dimension_numbers = #tpu.dot_dimension_numbers<[1], [0], [0], [1], [0, 0, 1, 1], [], []>} : vector<16x32xf32>, vector<32x32xf32>, vector<16x32xf32> -> vector<16x32xf32>
    %1294 = vector.broadcast %1292 : vector<1x32xf32> to vector<16x32xf32>
    %1295 = arith.addf %1293, %1294 : vector<16x32xf32>
    %1296 = vector.shape_cast %1295 : vector<16x32xf32> to vector<8x2x32xf32>
    %c1_779 = arith.constant 1 : index
    %c0_780 = arith.constant 0 : index
    %c0_781 = arith.constant 0 : index
    %c0_782 = arith.constant 0 : index
    %1297 = vector.load %arg12[%c1_779, %c0_780, %c0_781, %c0_782] : memref<4x8x2x32xf32, #tpu.memory_space<vmem>>, vector<1x8x2x32xf32>
    %1298 = vector.shape_cast %1297 : vector<1x8x2x32xf32> to vector<8x2x32xf32>
    %1299 = vector.shape_cast %1296 : vector<8x2x32xf32> to vector<1x8x2x32xf32>
    tpu.vector_store %arg12[%c1_779, %c0_780, %c0_781, %c0_782], %1299 {strides = array<i32>} : memref<4x8x2x32xf32, #tpu.memory_space<vmem>>, vector<1x8x2x32xf32>,
    %c3_783 = arith.constant 3 : index
    %c2_784 = arith.constant 2 : index
    %c0_785 = arith.constant 0 : index
    %c0_786 = arith.constant 0 : index
    %1300 = vector.load %arg5[%c3_783, %c2_784, %c0_785, %c0_786] : memref<4x4x32x32xf32, #tpu.memory_space<vmem>>, vector<1x1x32x32xf32>
    %1301 = vector.shape_cast %1300 : vector<1x1x32x32xf32> to vector<32x32xf32>
    %c3_787 = arith.constant 3 : index
    %c2_788 = arith.constant 2 : index
    %c0_789 = arith.constant 0 : index
    %c0_790 = arith.constant 0 : index
    %1302 = vector.load %arg7[%c3_787, %c2_788, %c0_789, %c0_790] : memref<4x4x1x32xf32, #tpu.memory_space<vmem>>, vector<1x1x1x32xf32>
    %1303 = vector.shape_cast %1302 : vector<1x1x1x32xf32> to vector<1x32xf32>
    %cst_791 = arith.constant dense<0.000000e+00> : vector<16x32xf32>
    %1304 = tpu.matmul %1277, %1301, %cst_791 {dimension_numbers = #tpu.dot_dimension_numbers<[1], [0], [0], [1], [0, 0, 1, 1], [], []>} : vector<16x32xf32>, vector<32x32xf32>, vector<16x32xf32> -> vector<16x32xf32>
    %1305 = vector.broadcast %1303 : vector<1x32xf32> to vector<16x32xf32>
    %1306 = arith.addf %1304, %1305 : vector<16x32xf32>
    %1307 = vector.shape_cast %1306 : vector<16x32xf32> to vector<8x2x32xf32>
    %c2_792 = arith.constant 2 : index
    %c0_793 = arith.constant 0 : index
    %c0_794 = arith.constant 0 : index
    %c0_795 = arith.constant 0 : index
    %1308 = vector.load %arg12[%c2_792, %c0_793, %c0_794, %c0_795] : memref<4x8x2x32xf32, #tpu.memory_space<vmem>>, vector<1x8x2x32xf32>
    %1309 = vector.shape_cast %1308 : vector<1x8x2x32xf32> to vector<8x2x32xf32>
    %1310 = vector.shape_cast %1307 : vector<8x2x32xf32> to vector<1x8x2x32xf32>
    tpu.vector_store %arg12[%c2_792, %c0_793, %c0_794, %c0_795], %1310 {strides = array<i32>} : memref<4x8x2x32xf32, #tpu.memory_space<vmem>>, vector<1x8x2x32xf32>,
    %c3_796 = arith.constant 3 : index
    %c3_797 = arith.constant 3 : index
    %c0_798 = arith.constant 0 : index
    %c0_799 = arith.constant 0 : index
    %1311 = vector.load %arg5[%c3_796, %c3_797, %c0_798, %c0_799] : memref<4x4x32x32xf32, #tpu.memory_space<vmem>>, vector<1x1x32x32xf32>
    %1312 = vector.shape_cast %1311 : vector<1x1x32x32xf32> to vector<32x32xf32>
    %c3_800 = arith.constant 3 : index
    %c3_801 = arith.constant 3 : index
    %c0_802 = arith.constant 0 : index
    %c0_803 = arith.constant 0 : index
    %1313 = vector.load %arg7[%c3_800, %c3_801, %c0_802, %c0_803] : memref<4x4x1x32xf32, #tpu.memory_space<vmem>>, vector<1x1x1x32xf32>
    %1314 = vector.shape_cast %1313 : vector<1x1x1x32xf32> to vector<1x32xf32>
    %cst_804 = arith.constant dense<0.000000e+00> : vector<16x32xf32>
    %1315 = tpu.matmul %1277, %1312, %cst_804 {dimension_numbers = #tpu.dot_dimension_numbers<[1], [0], [0], [1], [0, 0, 1, 1], [], []>} : vector<16x32xf32>, vector<32x32xf32>, vector<16x32xf32> -> vector<16x32xf32>
    %1316 = vector.broadcast %1314 : vector<1x32xf32> to vector<16x32xf32>
    %1317 = arith.addf %1315, %1316 : vector<16x32xf32>
    %1318 = vector.shape_cast %1317 : vector<16x32xf32> to vector<8x2x32xf32>
    %c3_805 = arith.constant 3 : index
    %c0_806 = arith.constant 0 : index
    %c0_807 = arith.constant 0 : index
    %c0_808 = arith.constant 0 : index
    %1319 = vector.load %arg12[%c3_805, %c0_806, %c0_807, %c0_808] : memref<4x8x2x32xf32, #tpu.memory_space<vmem>>, vector<1x8x2x32xf32>
    %1320 = vector.shape_cast %1319 : vector<1x8x2x32xf32> to vector<8x2x32xf32>
    %1321 = vector.shape_cast %1318 : vector<8x2x32xf32> to vector<1x8x2x32xf32>
    tpu.vector_store %arg12[%c3_805, %c0_806, %c0_807, %c0_808], %1321 {strides = array<i32>} : memref<4x8x2x32xf32, #tpu.memory_space<vmem>>, vector<1x8x2x32xf32>,
    %c3_809 = arith.constant 3 : index
    %c0_810 = arith.constant 0 : index
    %c0_811 = arith.constant 0 : index
    %c0_812 = arith.constant 0 : index
    %1322 = vector.load %arg6[%c3_809, %c0_810, %c0_811, %c0_812] : memref<4x4x32x32xf32, #tpu.memory_space<vmem>>, vector<1x1x32x32xf32>
    %1323 = vector.shape_cast %1322 : vector<1x1x32x32xf32> to vector<32x32xf32>
    %c3_813 = arith.constant 3 : index
    %c1_814 = arith.constant 1 : index
    %c0_815 = arith.constant 0 : index
    %c0_816 = arith.constant 0 : index
    %1324 = vector.load %arg6[%c3_813, %c1_814, %c0_815, %c0_816] : memref<4x4x32x32xf32, #tpu.memory_space<vmem>>, vector<1x1x32x32xf32>
    %1325 = vector.shape_cast %1324 : vector<1x1x32x32xf32> to vector<32x32xf32>
    %c3_817 = arith.constant 3 : index
    %c2_818 = arith.constant 2 : index
    %c0_819 = arith.constant 0 : index
    %c0_820 = arith.constant 0 : index
    %1326 = vector.load %arg6[%c3_817, %c2_818, %c0_819, %c0_820] : memref<4x4x32x32xf32, #tpu.memory_space<vmem>>, vector<1x1x32x32xf32>
    %1327 = vector.shape_cast %1326 : vector<1x1x32x32xf32> to vector<32x32xf32>
    %c3_821 = arith.constant 3 : index
    %c3_822 = arith.constant 3 : index
    %c0_823 = arith.constant 0 : index
    %c0_824 = arith.constant 0 : index
    %1328 = vector.load %arg6[%c3_821, %c3_822, %c0_823, %c0_824] : memref<4x4x32x32xf32, #tpu.memory_space<vmem>>, vector<1x1x32x32xf32>
    %1329 = vector.shape_cast %1328 : vector<1x1x32x32xf32> to vector<32x32xf32>
    %cst_825 = arith.constant 0.000000e+00 : f32
    %1330 = vector.broadcast %cst_825 : f32 to vector<2x32xf32>
    %cst_826 = arith.constant 0.000000e+00 : f32
    %1331 = vector.broadcast %cst_826 : f32 to vector<2x32xf32>
    %c0_i32_827 = arith.constant 0 : i32
    %c0_828 = arith.constant 0 : index
    %1332 = arith.index_cast %c0_i32_827 : i32 to index
    %c0_829 = arith.constant 0 : index
    %c0_830 = arith.constant 0 : index
    %1333 = vector.load %arg12[%c0_828, %1332, %c0_829, %c0_830] : memref<4x8x2x32xf32, #tpu.memory_space<vmem>>, vector<1x1x2x32xf32>
    %1334 = vector.shape_cast %1333 : vector<1x1x2x32xf32> to vector<2x32xf32>
    %cst_831 = arith.constant dense<0.000000e+00> : vector<2x32xf32>
    %1335 = tpu.matmul %1330, %1323, %cst_831 {dimension_numbers = #tpu.dot_dimension_numbers<[1], [0], [0], [1], [0, 0, 1, 1], [], []>} : vector<2x32xf32>, vector<32x32xf32>, vector<2x32xf32> -> vector<2x32xf32>
    %1336 = arith.addf %1334, %1335 : vector<2x32xf32>
    %1337 = arith.negf %1336 : vector<2x32xf32>
    %1338 = math.exp %1337 : vector<2x32xf32>
    %cst_832 = arith.constant 1.000000e+00 : f32
    %1339 = vector.broadcast %cst_832 : f32 to vector<2x32xf32>
    %1340 = arith.addf %1339, %1338 : vector<2x32xf32>
    %1341 = arith.divf %1339, %1340 : vector<2x32xf32>
    %c1_833 = arith.constant 1 : index
    %1342 = arith.index_cast %c0_i32_827 : i32 to index
    %c0_834 = arith.constant 0 : index
    %c0_835 = arith.constant 0 : index
    %1343 = vector.load %arg12[%c1_833, %1342, %c0_834, %c0_835] : memref<4x8x2x32xf32, #tpu.memory_space<vmem>>, vector<1x1x2x32xf32>
    %1344 = vector.shape_cast %1343 : vector<1x1x2x32xf32> to vector<2x32xf32>
    %cst_836 = arith.constant dense<0.000000e+00> : vector<2x32xf32>
    %1345 = tpu.matmul %1330, %1325, %cst_836 {dimension_numbers = #tpu.dot_dimension_numbers<[1], [0], [0], [1], [0, 0, 1, 1], [], []>} : vector<2x32xf32>, vector<32x32xf32>, vector<2x32xf32> -> vector<2x32xf32>
    %1346 = arith.addf %1344, %1345 : vector<2x32xf32>
    %1347 = arith.negf %1346 : vector<2x32xf32>
    %1348 = math.exp %1347 : vector<2x32xf32>
    %cst_837 = arith.constant 1.000000e+00 : f32
    %1349 = vector.broadcast %cst_837 : f32 to vector<2x32xf32>
    %1350 = arith.addf %1349, %1348 : vector<2x32xf32>
    %1351 = arith.divf %1349, %1350 : vector<2x32xf32>
    %c2_838 = arith.constant 2 : index
    %1352 = arith.index_cast %c0_i32_827 : i32 to index
    %c0_839 = arith.constant 0 : index
    %c0_840 = arith.constant 0 : index
    %1353 = vector.load %arg12[%c2_838, %1352, %c0_839, %c0_840] : memref<4x8x2x32xf32, #tpu.memory_space<vmem>>, vector<1x1x2x32xf32>
    %1354 = vector.shape_cast %1353 : vector<1x1x2x32xf32> to vector<2x32xf32>
    %cst_841 = arith.constant dense<0.000000e+00> : vector<2x32xf32>
    %1355 = tpu.matmul %1330, %1327, %cst_841 {dimension_numbers = #tpu.dot_dimension_numbers<[1], [0], [0], [1], [0, 0, 1, 1], [], []>} : vector<2x32xf32>, vector<32x32xf32>, vector<2x32xf32> -> vector<2x32xf32>
    %1356 = arith.addf %1354, %1355 : vector<2x32xf32>
    %1357 = math.tanh %1356 : vector<2x32xf32>
    %c3_842 = arith.constant 3 : index
    %1358 = arith.index_cast %c0_i32_827 : i32 to index
    %c0_843 = arith.constant 0 : index
    %c0_844 = arith.constant 0 : index
    %1359 = vector.load %arg12[%c3_842, %1358, %c0_843, %c0_844] : memref<4x8x2x32xf32, #tpu.memory_space<vmem>>, vector<1x1x2x32xf32>
    %1360 = vector.shape_cast %1359 : vector<1x1x2x32xf32> to vector<2x32xf32>
    %cst_845 = arith.constant dense<0.000000e+00> : vector<2x32xf32>
    %1361 = tpu.matmul %1330, %1329, %cst_845 {dimension_numbers = #tpu.dot_dimension_numbers<[1], [0], [0], [1], [0, 0, 1, 1], [], []>} : vector<2x32xf32>, vector<32x32xf32>, vector<2x32xf32> -> vector<2x32xf32>
    %1362 = arith.addf %1360, %1361 : vector<2x32xf32>
    %1363 = arith.negf %1362 : vector<2x32xf32>
    %1364 = math.exp %1363 : vector<2x32xf32>
    %cst_846 = arith.constant 1.000000e+00 : f32
    %1365 = vector.broadcast %cst_846 : f32 to vector<2x32xf32>
    %1366 = arith.addf %1365, %1364 : vector<2x32xf32>
    %1367 = arith.divf %1365, %1366 : vector<2x32xf32>
    %1368 = arith.mulf %1351, %1331 : vector<2x32xf32>
    %1369 = arith.mulf %1341, %1357 : vector<2x32xf32>
    %1370 = arith.addf %1368, %1369 : vector<2x32xf32>
    %1371 = math.tanh %1370 : vector<2x32xf32>
    %1372 = arith.mulf %1367, %1371 : vector<2x32xf32>
    %c1_i32_847 = arith.constant 1 : i32
    %c0_848 = arith.constant 0 : index
    %1373 = arith.index_cast %c1_i32_847 : i32 to index
    %c0_849 = arith.constant 0 : index
    %c0_850 = arith.constant 0 : index
    %1374 = vector.load %arg12[%c0_848, %1373, %c0_849, %c0_850] : memref<4x8x2x32xf32, #tpu.memory_space<vmem>>, vector<1x1x2x32xf32>
    %1375 = vector.shape_cast %1374 : vector<1x1x2x32xf32> to vector<2x32xf32>
    %cst_851 = arith.constant dense<0.000000e+00> : vector<2x32xf32>
    %1376 = tpu.matmul %1372, %1323, %cst_851 {dimension_numbers = #tpu.dot_dimension_numbers<[1], [0], [0], [1], [0, 0, 1, 1], [], []>} : vector<2x32xf32>, vector<32x32xf32>, vector<2x32xf32> -> vector<2x32xf32>
    %1377 = arith.addf %1375, %1376 : vector<2x32xf32>
    %1378 = arith.negf %1377 : vector<2x32xf32>
    %1379 = math.exp %1378 : vector<2x32xf32>
    %cst_852 = arith.constant 1.000000e+00 : f32
    %1380 = vector.broadcast %cst_852 : f32 to vector<2x32xf32>
    %1381 = arith.addf %1380, %1379 : vector<2x32xf32>
    %1382 = arith.divf %1380, %1381 : vector<2x32xf32>
    %c1_853 = arith.constant 1 : index
    %1383 = arith.index_cast %c1_i32_847 : i32 to index
    %c0_854 = arith.constant 0 : index
    %c0_855 = arith.constant 0 : index
    %1384 = vector.load %arg12[%c1_853, %1383, %c0_854, %c0_855] : memref<4x8x2x32xf32, #tpu.memory_space<vmem>>, vector<1x1x2x32xf32>
    %1385 = vector.shape_cast %1384 : vector<1x1x2x32xf32> to vector<2x32xf32>
    %cst_856 = arith.constant dense<0.000000e+00> : vector<2x32xf32>
    %1386 = tpu.matmul %1372, %1325, %cst_856 {dimension_numbers = #tpu.dot_dimension_numbers<[1], [0], [0], [1], [0, 0, 1, 1], [], []>} : vector<2x32xf32>, vector<32x32xf32>, vector<2x32xf32> -> vector<2x32xf32>
    %1387 = arith.addf %1385, %1386 : vector<2x32xf32>
    %1388 = arith.negf %1387 : vector<2x32xf32>
    %1389 = math.exp %1388 : vector<2x32xf32>
    %cst_857 = arith.constant 1.000000e+00 : f32
    %1390 = vector.broadcast %cst_857 : f32 to vector<2x32xf32>
    %1391 = arith.addf %1390, %1389 : vector<2x32xf32>
    %1392 = arith.divf %1390, %1391 : vector<2x32xf32>
    %c2_858 = arith.constant 2 : index
    %1393 = arith.index_cast %c1_i32_847 : i32 to index
    %c0_859 = arith.constant 0 : index
    %c0_860 = arith.constant 0 : index
    %1394 = vector.load %arg12[%c2_858, %1393, %c0_859, %c0_860] : memref<4x8x2x32xf32, #tpu.memory_space<vmem>>, vector<1x1x2x32xf32>
    %1395 = vector.shape_cast %1394 : vector<1x1x2x32xf32> to vector<2x32xf32>
    %cst_861 = arith.constant dense<0.000000e+00> : vector<2x32xf32>
    %1396 = tpu.matmul %1372, %1327, %cst_861 {dimension_numbers = #tpu.dot_dimension_numbers<[1], [0], [0], [1], [0, 0, 1, 1], [], []>} : vector<2x32xf32>, vector<32x32xf32>, vector<2x32xf32> -> vector<2x32xf32>
    %1397 = arith.addf %1395, %1396 : vector<2x32xf32>
    %1398 = math.tanh %1397 : vector<2x32xf32>
    %c3_862 = arith.constant 3 : index
    %1399 = arith.index_cast %c1_i32_847 : i32 to index
    %c0_863 = arith.constant 0 : index
    %c0_864 = arith.constant 0 : index
    %1400 = vector.load %arg12[%c3_862, %1399, %c0_863, %c0_864] : memref<4x8x2x32xf32, #tpu.memory_space<vmem>>, vector<1x1x2x32xf32>
    %1401 = vector.shape_cast %1400 : vector<1x1x2x32xf32> to vector<2x32xf32>
    %cst_865 = arith.constant dense<0.000000e+00> : vector<2x32xf32>
    %1402 = tpu.matmul %1372, %1329, %cst_865 {dimension_numbers = #tpu.dot_dimension_numbers<[1], [0], [0], [1], [0, 0, 1, 1], [], []>} : vector<2x32xf32>, vector<32x32xf32>, vector<2x32xf32> -> vector<2x32xf32>
    %1403 = arith.addf %1401, %1402 : vector<2x32xf32>
    %1404 = arith.negf %1403 : vector<2x32xf32>
    %1405 = math.exp %1404 : vector<2x32xf32>
    %cst_866 = arith.constant 1.000000e+00 : f32
    %1406 = vector.broadcast %cst_866 : f32 to vector<2x32xf32>
    %1407 = arith.addf %1406, %1405 : vector<2x32xf32>
    %1408 = arith.divf %1406, %1407 : vector<2x32xf32>
    %1409 = arith.mulf %1392, %1370 : vector<2x32xf32>
    %1410 = arith.mulf %1382, %1398 : vector<2x32xf32>
    %1411 = arith.addf %1409, %1410 : vector<2x32xf32>
    %1412 = math.tanh %1411 : vector<2x32xf32>
    %1413 = arith.mulf %1408, %1412 : vector<2x32xf32>
    %c2_i32_867 = arith.constant 2 : i32
    %c0_868 = arith.constant 0 : index
    %1414 = arith.index_cast %c2_i32_867 : i32 to index
    %c0_869 = arith.constant 0 : index
    %c0_870 = arith.constant 0 : index
    %1415 = vector.load %arg12[%c0_868, %1414, %c0_869, %c0_870] : memref<4x8x2x32xf32, #tpu.memory_space<vmem>>, vector<1x1x2x32xf32>
    %1416 = vector.shape_cast %1415 : vector<1x1x2x32xf32> to vector<2x32xf32>
    %cst_871 = arith.constant dense<0.000000e+00> : vector<2x32xf32>
    %1417 = tpu.matmul %1413, %1323, %cst_871 {dimension_numbers = #tpu.dot_dimension_numbers<[1], [0], [0], [1], [0, 0, 1, 1], [], []>} : vector<2x32xf32>, vector<32x32xf32>, vector<2x32xf32> -> vector<2x32xf32>
    %1418 = arith.addf %1416, %1417 : vector<2x32xf32>
    %1419 = arith.negf %1418 : vector<2x32xf32>
    %1420 = math.exp %1419 : vector<2x32xf32>
    %cst_872 = arith.constant 1.000000e+00 : f32
    %1421 = vector.broadcast %cst_872 : f32 to vector<2x32xf32>
    %1422 = arith.addf %1421, %1420 : vector<2x32xf32>
    %1423 = arith.divf %1421, %1422 : vector<2x32xf32>
    %c1_873 = arith.constant 1 : index
    %1424 = arith.index_cast %c2_i32_867 : i32 to index
    %c0_874 = arith.constant 0 : index
    %c0_875 = arith.constant 0 : index
    %1425 = vector.load %arg12[%c1_873, %1424, %c0_874, %c0_875] : memref<4x8x2x32xf32, #tpu.memory_space<vmem>>, vector<1x1x2x32xf32>
    %1426 = vector.shape_cast %1425 : vector<1x1x2x32xf32> to vector<2x32xf32>
    %cst_876 = arith.constant dense<0.000000e+00> : vector<2x32xf32>
    %1427 = tpu.matmul %1413, %1325, %cst_876 {dimension_numbers = #tpu.dot_dimension_numbers<[1], [0], [0], [1], [0, 0, 1, 1], [], []>} : vector<2x32xf32>, vector<32x32xf32>, vector<2x32xf32> -> vector<2x32xf32>
    %1428 = arith.addf %1426, %1427 : vector<2x32xf32>
    %1429 = arith.negf %1428 : vector<2x32xf32>
    %1430 = math.exp %1429 : vector<2x32xf32>
    %cst_877 = arith.constant 1.000000e+00 : f32
    %1431 = vector.broadcast %cst_877 : f32 to vector<2x32xf32>
    %1432 = arith.addf %1431, %1430 : vector<2x32xf32>
    %1433 = arith.divf %1431, %1432 : vector<2x32xf32>
    %c2_878 = arith.constant 2 : index
    %1434 = arith.index_cast %c2_i32_867 : i32 to index
    %c0_879 = arith.constant 0 : index
    %c0_880 = arith.constant 0 : index
    %1435 = vector.load %arg12[%c2_878, %1434, %c0_879, %c0_880] : memref<4x8x2x32xf32, #tpu.memory_space<vmem>>, vector<1x1x2x32xf32>
    %1436 = vector.shape_cast %1435 : vector<1x1x2x32xf32> to vector<2x32xf32>
    %cst_881 = arith.constant dense<0.000000e+00> : vector<2x32xf32>
    %1437 = tpu.matmul %1413, %1327, %cst_881 {dimension_numbers = #tpu.dot_dimension_numbers<[1], [0], [0], [1], [0, 0, 1, 1], [], []>} : vector<2x32xf32>, vector<32x32xf32>, vector<2x32xf32> -> vector<2x32xf32>
    %1438 = arith.addf %1436, %1437 : vector<2x32xf32>
    %1439 = math.tanh %1438 : vector<2x32xf32>
    %c3_882 = arith.constant 3 : index
    %1440 = arith.index_cast %c2_i32_867 : i32 to index
    %c0_883 = arith.constant 0 : index
    %c0_884 = arith.constant 0 : index
    %1441 = vector.load %arg12[%c3_882, %1440, %c0_883, %c0_884] : memref<4x8x2x32xf32, #tpu.memory_space<vmem>>, vector<1x1x2x32xf32>
    %1442 = vector.shape_cast %1441 : vector<1x1x2x32xf32> to vector<2x32xf32>
    %cst_885 = arith.constant dense<0.000000e+00> : vector<2x32xf32>
    %1443 = tpu.matmul %1413, %1329, %cst_885 {dimension_numbers = #tpu.dot_dimension_numbers<[1], [0], [0], [1], [0, 0, 1, 1], [], []>} : vector<2x32xf32>, vector<32x32xf32>, vector<2x32xf32> -> vector<2x32xf32>
    %1444 = arith.addf %1442, %1443 : vector<2x32xf32>
    %1445 = arith.negf %1444 : vector<2x32xf32>
    %1446 = math.exp %1445 : vector<2x32xf32>
    %cst_886 = arith.constant 1.000000e+00 : f32
    %1447 = vector.broadcast %cst_886 : f32 to vector<2x32xf32>
    %1448 = arith.addf %1447, %1446 : vector<2x32xf32>
    %1449 = arith.divf %1447, %1448 : vector<2x32xf32>
    %1450 = arith.mulf %1433, %1411 : vector<2x32xf32>
    %1451 = arith.mulf %1423, %1439 : vector<2x32xf32>
    %1452 = arith.addf %1450, %1451 : vector<2x32xf32>
    %1453 = math.tanh %1452 : vector<2x32xf32>
    %1454 = arith.mulf %1449, %1453 : vector<2x32xf32>
    %c3_i32_887 = arith.constant 3 : i32
    %c0_888 = arith.constant 0 : index
    %1455 = arith.index_cast %c3_i32_887 : i32 to index
    %c0_889 = arith.constant 0 : index
    %c0_890 = arith.constant 0 : index
    %1456 = vector.load %arg12[%c0_888, %1455, %c0_889, %c0_890] : memref<4x8x2x32xf32, #tpu.memory_space<vmem>>, vector<1x1x2x32xf32>
    %1457 = vector.shape_cast %1456 : vector<1x1x2x32xf32> to vector<2x32xf32>
    %cst_891 = arith.constant dense<0.000000e+00> : vector<2x32xf32>
    %1458 = tpu.matmul %1454, %1323, %cst_891 {dimension_numbers = #tpu.dot_dimension_numbers<[1], [0], [0], [1], [0, 0, 1, 1], [], []>} : vector<2x32xf32>, vector<32x32xf32>, vector<2x32xf32> -> vector<2x32xf32>
    %1459 = arith.addf %1457, %1458 : vector<2x32xf32>
    %1460 = arith.negf %1459 : vector<2x32xf32>
    %1461 = math.exp %1460 : vector<2x32xf32>
    %cst_892 = arith.constant 1.000000e+00 : f32
    %1462 = vector.broadcast %cst_892 : f32 to vector<2x32xf32>
    %1463 = arith.addf %1462, %1461 : vector<2x32xf32>
    %1464 = arith.divf %1462, %1463 : vector<2x32xf32>
    %c1_893 = arith.constant 1 : index
    %1465 = arith.index_cast %c3_i32_887 : i32 to index
    %c0_894 = arith.constant 0 : index
    %c0_895 = arith.constant 0 : index
    %1466 = vector.load %arg12[%c1_893, %1465, %c0_894, %c0_895] : memref<4x8x2x32xf32, #tpu.memory_space<vmem>>, vector<1x1x2x32xf32>
    %1467 = vector.shape_cast %1466 : vector<1x1x2x32xf32> to vector<2x32xf32>
    %cst_896 = arith.constant dense<0.000000e+00> : vector<2x32xf32>
    %1468 = tpu.matmul %1454, %1325, %cst_896 {dimension_numbers = #tpu.dot_dimension_numbers<[1], [0], [0], [1], [0, 0, 1, 1], [], []>} : vector<2x32xf32>, vector<32x32xf32>, vector<2x32xf32> -> vector<2x32xf32>
    %1469 = arith.addf %1467, %1468 : vector<2x32xf32>
    %1470 = arith.negf %1469 : vector<2x32xf32>
    %1471 = math.exp %1470 : vector<2x32xf32>
    %cst_897 = arith.constant 1.000000e+00 : f32
    %1472 = vector.broadcast %cst_897 : f32 to vector<2x32xf32>
    %1473 = arith.addf %1472, %1471 : vector<2x32xf32>
    %1474 = arith.divf %1472, %1473 : vector<2x32xf32>
    %c2_898 = arith.constant 2 : index
    %1475 = arith.index_cast %c3_i32_887 : i32 to index
    %c0_899 = arith.constant 0 : index
    %c0_900 = arith.constant 0 : index
    %1476 = vector.load %arg12[%c2_898, %1475, %c0_899, %c0_900] : memref<4x8x2x32xf32, #tpu.memory_space<vmem>>, vector<1x1x2x32xf32>
    %1477 = vector.shape_cast %1476 : vector<1x1x2x32xf32> to vector<2x32xf32>
    %cst_901 = arith.constant dense<0.000000e+00> : vector<2x32xf32>
    %1478 = tpu.matmul %1454, %1327, %cst_901 {dimension_numbers = #tpu.dot_dimension_numbers<[1], [0], [0], [1], [0, 0, 1, 1], [], []>} : vector<2x32xf32>, vector<32x32xf32>, vector<2x32xf32> -> vector<2x32xf32>
    %1479 = arith.addf %1477, %1478 : vector<2x32xf32>
    %1480 = math.tanh %1479 : vector<2x32xf32>
    %c3_902 = arith.constant 3 : index
    %1481 = arith.index_cast %c3_i32_887 : i32 to index
    %c0_903 = arith.constant 0 : index
    %c0_904 = arith.constant 0 : index
    %1482 = vector.load %arg12[%c3_902, %1481, %c0_903, %c0_904] : memref<4x8x2x32xf32, #tpu.memory_space<vmem>>, vector<1x1x2x32xf32>
    %1483 = vector.shape_cast %1482 : vector<1x1x2x32xf32> to vector<2x32xf32>
    %cst_905 = arith.constant dense<0.000000e+00> : vector<2x32xf32>
    %1484 = tpu.matmul %1454, %1329, %cst_905 {dimension_numbers = #tpu.dot_dimension_numbers<[1], [0], [0], [1], [0, 0, 1, 1], [], []>} : vector<2x32xf32>, vector<32x32xf32>, vector<2x32xf32> -> vector<2x32xf32>
    %1485 = arith.addf %1483, %1484 : vector<2x32xf32>
    %1486 = arith.negf %1485 : vector<2x32xf32>
    %1487 = math.exp %1486 : vector<2x32xf32>
    %cst_906 = arith.constant 1.000000e+00 : f32
    %1488 = vector.broadcast %cst_906 : f32 to vector<2x32xf32>
    %1489 = arith.addf %1488, %1487 : vector<2x32xf32>
    %1490 = arith.divf %1488, %1489 : vector<2x32xf32>
    %1491 = arith.mulf %1474, %1452 : vector<2x32xf32>
    %1492 = arith.mulf %1464, %1480 : vector<2x32xf32>
    %1493 = arith.addf %1491, %1492 : vector<2x32xf32>
    %1494 = math.tanh %1493 : vector<2x32xf32>
    %1495 = arith.mulf %1490, %1494 : vector<2x32xf32>
    %c4_i32_907 = arith.constant 4 : i32
    %c0_908 = arith.constant 0 : index
    %1496 = arith.index_cast %c4_i32_907 : i32 to index
    %c0_909 = arith.constant 0 : index
    %c0_910 = arith.constant 0 : index
    %1497 = vector.load %arg12[%c0_908, %1496, %c0_909, %c0_910] : memref<4x8x2x32xf32, #tpu.memory_space<vmem>>, vector<1x1x2x32xf32>
    %1498 = vector.shape_cast %1497 : vector<1x1x2x32xf32> to vector<2x32xf32>
    %cst_911 = arith.constant dense<0.000000e+00> : vector<2x32xf32>
    %1499 = tpu.matmul %1495, %1323, %cst_911 {dimension_numbers = #tpu.dot_dimension_numbers<[1], [0], [0], [1], [0, 0, 1, 1], [], []>} : vector<2x32xf32>, vector<32x32xf32>, vector<2x32xf32> -> vector<2x32xf32>
    %1500 = arith.addf %1498, %1499 : vector<2x32xf32>
    %1501 = arith.negf %1500 : vector<2x32xf32>
    %1502 = math.exp %1501 : vector<2x32xf32>
    %cst_912 = arith.constant 1.000000e+00 : f32
    %1503 = vector.broadcast %cst_912 : f32 to vector<2x32xf32>
    %1504 = arith.addf %1503, %1502 : vector<2x32xf32>
    %1505 = arith.divf %1503, %1504 : vector<2x32xf32>
    %c1_913 = arith.constant 1 : index
    %1506 = arith.index_cast %c4_i32_907 : i32 to index
    %c0_914 = arith.constant 0 : index
    %c0_915 = arith.constant 0 : index
    %1507 = vector.load %arg12[%c1_913, %1506, %c0_914, %c0_915] : memref<4x8x2x32xf32, #tpu.memory_space<vmem>>, vector<1x1x2x32xf32>
    %1508 = vector.shape_cast %1507 : vector<1x1x2x32xf32> to vector<2x32xf32>
    %cst_916 = arith.constant dense<0.000000e+00> : vector<2x32xf32>
    %1509 = tpu.matmul %1495, %1325, %cst_916 {dimension_numbers = #tpu.dot_dimension_numbers<[1], [0], [0], [1], [0, 0, 1, 1], [], []>} : vector<2x32xf32>, vector<32x32xf32>, vector<2x32xf32> -> vector<2x32xf32>
    %1510 = arith.addf %1508, %1509 : vector<2x32xf32>
    %1511 = arith.negf %1510 : vector<2x32xf32>
    %1512 = math.exp %1511 : vector<2x32xf32>
    %cst_917 = arith.constant 1.000000e+00 : f32
    %1513 = vector.broadcast %cst_917 : f32 to vector<2x32xf32>
    %1514 = arith.addf %1513, %1512 : vector<2x32xf32>
    %1515 = arith.divf %1513, %1514 : vector<2x32xf32>
    %c2_918 = arith.constant 2 : index
    %1516 = arith.index_cast %c4_i32_907 : i32 to index
    %c0_919 = arith.constant 0 : index
    %c0_920 = arith.constant 0 : index
    %1517 = vector.load %arg12[%c2_918, %1516, %c0_919, %c0_920] : memref<4x8x2x32xf32, #tpu.memory_space<vmem>>, vector<1x1x2x32xf32>
    %1518 = vector.shape_cast %1517 : vector<1x1x2x32xf32> to vector<2x32xf32>
    %cst_921 = arith.constant dense<0.000000e+00> : vector<2x32xf32>
    %1519 = tpu.matmul %1495, %1327, %cst_921 {dimension_numbers = #tpu.dot_dimension_numbers<[1], [0], [0], [1], [0, 0, 1, 1], [], []>} : vector<2x32xf32>, vector<32x32xf32>, vector<2x32xf32> -> vector<2x32xf32>
    %1520 = arith.addf %1518, %1519 : vector<2x32xf32>
    %1521 = math.tanh %1520 : vector<2x32xf32>
    %c3_922 = arith.constant 3 : index
    %1522 = arith.index_cast %c4_i32_907 : i32 to index
    %c0_923 = arith.constant 0 : index
    %c0_924 = arith.constant 0 : index
    %1523 = vector.load %arg12[%c3_922, %1522, %c0_923, %c0_924] : memref<4x8x2x32xf32, #tpu.memory_space<vmem>>, vector<1x1x2x32xf32>
    %1524 = vector.shape_cast %1523 : vector<1x1x2x32xf32> to vector<2x32xf32>
    %cst_925 = arith.constant dense<0.000000e+00> : vector<2x32xf32>
    %1525 = tpu.matmul %1495, %1329, %cst_925 {dimension_numbers = #tpu.dot_dimension_numbers<[1], [0], [0], [1], [0, 0, 1, 1], [], []>} : vector<2x32xf32>, vector<32x32xf32>, vector<2x32xf32> -> vector<2x32xf32>
    %1526 = arith.addf %1524, %1525 : vector<2x32xf32>
    %1527 = arith.negf %1526 : vector<2x32xf32>
    %1528 = math.exp %1527 : vector<2x32xf32>
    %cst_926 = arith.constant 1.000000e+00 : f32
    %1529 = vector.broadcast %cst_926 : f32 to vector<2x32xf32>
    %1530 = arith.addf %1529, %1528 : vector<2x32xf32>
    %1531 = arith.divf %1529, %1530 : vector<2x32xf32>
    %1532 = arith.mulf %1515, %1493 : vector<2x32xf32>
    %1533 = arith.mulf %1505, %1521 : vector<2x32xf32>
    %1534 = arith.addf %1532, %1533 : vector<2x32xf32>
    %1535 = math.tanh %1534 : vector<2x32xf32>
    %1536 = arith.mulf %1531, %1535 : vector<2x32xf32>
    %c5_i32_927 = arith.constant 5 : i32
    %c0_928 = arith.constant 0 : index
    %1537 = arith.index_cast %c5_i32_927 : i32 to index
    %c0_929 = arith.constant 0 : index
    %c0_930 = arith.constant 0 : index
    %1538 = vector.load %arg12[%c0_928, %1537, %c0_929, %c0_930] : memref<4x8x2x32xf32, #tpu.memory_space<vmem>>, vector<1x1x2x32xf32>
    %1539 = vector.shape_cast %1538 : vector<1x1x2x32xf32> to vector<2x32xf32>
    %cst_931 = arith.constant dense<0.000000e+00> : vector<2x32xf32>
    %1540 = tpu.matmul %1536, %1323, %cst_931 {dimension_numbers = #tpu.dot_dimension_numbers<[1], [0], [0], [1], [0, 0, 1, 1], [], []>} : vector<2x32xf32>, vector<32x32xf32>, vector<2x32xf32> -> vector<2x32xf32>
    %1541 = arith.addf %1539, %1540 : vector<2x32xf32>
    %1542 = arith.negf %1541 : vector<2x32xf32>
    %1543 = math.exp %1542 : vector<2x32xf32>
    %cst_932 = arith.constant 1.000000e+00 : f32
    %1544 = vector.broadcast %cst_932 : f32 to vector<2x32xf32>
    %1545 = arith.addf %1544, %1543 : vector<2x32xf32>
    %1546 = arith.divf %1544, %1545 : vector<2x32xf32>
    %c1_933 = arith.constant 1 : index
    %1547 = arith.index_cast %c5_i32_927 : i32 to index
    %c0_934 = arith.constant 0 : index
    %c0_935 = arith.constant 0 : index
    %1548 = vector.load %arg12[%c1_933, %1547, %c0_934, %c0_935] : memref<4x8x2x32xf32, #tpu.memory_space<vmem>>, vector<1x1x2x32xf32>
    %1549 = vector.shape_cast %1548 : vector<1x1x2x32xf32> to vector<2x32xf32>
    %cst_936 = arith.constant dense<0.000000e+00> : vector<2x32xf32>
    %1550 = tpu.matmul %1536, %1325, %cst_936 {dimension_numbers = #tpu.dot_dimension_numbers<[1], [0], [0], [1], [0, 0, 1, 1], [], []>} : vector<2x32xf32>, vector<32x32xf32>, vector<2x32xf32> -> vector<2x32xf32>
    %1551 = arith.addf %1549, %1550 : vector<2x32xf32>
    %1552 = arith.negf %1551 : vector<2x32xf32>
    %1553 = math.exp %1552 : vector<2x32xf32>
    %cst_937 = arith.constant 1.000000e+00 : f32
    %1554 = vector.broadcast %cst_937 : f32 to vector<2x32xf32>
    %1555 = arith.addf %1554, %1553 : vector<2x32xf32>
    %1556 = arith.divf %1554, %1555 : vector<2x32xf32>
    %c2_938 = arith.constant 2 : index
    %1557 = arith.index_cast %c5_i32_927 : i32 to index
    %c0_939 = arith.constant 0 : index
    %c0_940 = arith.constant 0 : index
    %1558 = vector.load %arg12[%c2_938, %1557, %c0_939, %c0_940] : memref<4x8x2x32xf32, #tpu.memory_space<vmem>>, vector<1x1x2x32xf32>
    %1559 = vector.shape_cast %1558 : vector<1x1x2x32xf32> to vector<2x32xf32>
    %cst_941 = arith.constant dense<0.000000e+00> : vector<2x32xf32>
    %1560 = tpu.matmul %1536, %1327, %cst_941 {dimension_numbers = #tpu.dot_dimension_numbers<[1], [0], [0], [1], [0, 0, 1, 1], [], []>} : vector<2x32xf32>, vector<32x32xf32>, vector<2x32xf32> -> vector<2x32xf32>
    %1561 = arith.addf %1559, %1560 : vector<2x32xf32>
    %1562 = math.tanh %1561 : vector<2x32xf32>
    %c3_942 = arith.constant 3 : index
    %1563 = arith.index_cast %c5_i32_927 : i32 to index
    %c0_943 = arith.constant 0 : index
    %c0_944 = arith.constant 0 : index
    %1564 = vector.load %arg12[%c3_942, %1563, %c0_943, %c0_944] : memref<4x8x2x32xf32, #tpu.memory_space<vmem>>, vector<1x1x2x32xf32>
    %1565 = vector.shape_cast %1564 : vector<1x1x2x32xf32> to vector<2x32xf32>
    %cst_945 = arith.constant dense<0.000000e+00> : vector<2x32xf32>
    %1566 = tpu.matmul %1536, %1329, %cst_945 {dimension_numbers = #tpu.dot_dimension_numbers<[1], [0], [0], [1], [0, 0, 1, 1], [], []>} : vector<2x32xf32>, vector<32x32xf32>, vector<2x32xf32> -> vector<2x32xf32>
    %1567 = arith.addf %1565, %1566 : vector<2x32xf32>
    %1568 = arith.negf %1567 : vector<2x32xf32>
    %1569 = math.exp %1568 : vector<2x32xf32>
    %cst_946 = arith.constant 1.000000e+00 : f32
    %1570 = vector.broadcast %cst_946 : f32 to vector<2x32xf32>
    %1571 = arith.addf %1570, %1569 : vector<2x32xf32>
    %1572 = arith.divf %1570, %1571 : vector<2x32xf32>
    %1573 = arith.mulf %1556, %1534 : vector<2x32xf32>
    %1574 = arith.mulf %1546, %1562 : vector<2x32xf32>
    %1575 = arith.addf %1573, %1574 : vector<2x32xf32>
    %1576 = math.tanh %1575 : vector<2x32xf32>
    %1577 = arith.mulf %1572, %1576 : vector<2x32xf32>
    %c6_i32_947 = arith.constant 6 : i32
    %c0_948 = arith.constant 0 : index
    %1578 = arith.index_cast %c6_i32_947 : i32 to index
    %c0_949 = arith.constant 0 : index
    %c0_950 = arith.constant 0 : index
    %1579 = vector.load %arg12[%c0_948, %1578, %c0_949, %c0_950] : memref<4x8x2x32xf32, #tpu.memory_space<vmem>>, vector<1x1x2x32xf32>
    %1580 = vector.shape_cast %1579 : vector<1x1x2x32xf32> to vector<2x32xf32>
    %cst_951 = arith.constant dense<0.000000e+00> : vector<2x32xf32>
    %1581 = tpu.matmul %1577, %1323, %cst_951 {dimension_numbers = #tpu.dot_dimension_numbers<[1], [0], [0], [1], [0, 0, 1, 1], [], []>} : vector<2x32xf32>, vector<32x32xf32>, vector<2x32xf32> -> vector<2x32xf32>
    %1582 = arith.addf %1580, %1581 : vector<2x32xf32>
    %1583 = arith.negf %1582 : vector<2x32xf32>
    %1584 = math.exp %1583 : vector<2x32xf32>
    %cst_952 = arith.constant 1.000000e+00 : f32
    %1585 = vector.broadcast %cst_952 : f32 to vector<2x32xf32>
    %1586 = arith.addf %1585, %1584 : vector<2x32xf32>
    %1587 = arith.divf %1585, %1586 : vector<2x32xf32>
    %c1_953 = arith.constant 1 : index
    %1588 = arith.index_cast %c6_i32_947 : i32 to index
    %c0_954 = arith.constant 0 : index
    %c0_955 = arith.constant 0 : index
    %1589 = vector.load %arg12[%c1_953, %1588, %c0_954, %c0_955] : memref<4x8x2x32xf32, #tpu.memory_space<vmem>>, vector<1x1x2x32xf32>
    %1590 = vector.shape_cast %1589 : vector<1x1x2x32xf32> to vector<2x32xf32>
    %cst_956 = arith.constant dense<0.000000e+00> : vector<2x32xf32>
    %1591 = tpu.matmul %1577, %1325, %cst_956 {dimension_numbers = #tpu.dot_dimension_numbers<[1], [0], [0], [1], [0, 0, 1, 1], [], []>} : vector<2x32xf32>, vector<32x32xf32>, vector<2x32xf32> -> vector<2x32xf32>
    %1592 = arith.addf %1590, %1591 : vector<2x32xf32>
    %1593 = arith.negf %1592 : vector<2x32xf32>
    %1594 = math.exp %1593 : vector<2x32xf32>
    %cst_957 = arith.constant 1.000000e+00 : f32
    %1595 = vector.broadcast %cst_957 : f32 to vector<2x32xf32>
    %1596 = arith.addf %1595, %1594 : vector<2x32xf32>
    %1597 = arith.divf %1595, %1596 : vector<2x32xf32>
    %c2_958 = arith.constant 2 : index
    %1598 = arith.index_cast %c6_i32_947 : i32 to index
    %c0_959 = arith.constant 0 : index
    %c0_960 = arith.constant 0 : index
    %1599 = vector.load %arg12[%c2_958, %1598, %c0_959, %c0_960] : memref<4x8x2x32xf32, #tpu.memory_space<vmem>>, vector<1x1x2x32xf32>
    %1600 = vector.shape_cast %1599 : vector<1x1x2x32xf32> to vector<2x32xf32>
    %cst_961 = arith.constant dense<0.000000e+00> : vector<2x32xf32>
    %1601 = tpu.matmul %1577, %1327, %cst_961 {dimension_numbers = #tpu.dot_dimension_numbers<[1], [0], [0], [1], [0, 0, 1, 1], [], []>} : vector<2x32xf32>, vector<32x32xf32>, vector<2x32xf32> -> vector<2x32xf32>
    %1602 = arith.addf %1600, %1601 : vector<2x32xf32>
    %1603 = math.tanh %1602 : vector<2x32xf32>
    %c3_962 = arith.constant 3 : index
    %1604 = arith.index_cast %c6_i32_947 : i32 to index
    %c0_963 = arith.constant 0 : index
    %c0_964 = arith.constant 0 : index
    %1605 = vector.load %arg12[%c3_962, %1604, %c0_963, %c0_964] : memref<4x8x2x32xf32, #tpu.memory_space<vmem>>, vector<1x1x2x32xf32>
    %1606 = vector.shape_cast %1605 : vector<1x1x2x32xf32> to vector<2x32xf32>
    %cst_965 = arith.constant dense<0.000000e+00> : vector<2x32xf32>
    %1607 = tpu.matmul %1577, %1329, %cst_965 {dimension_numbers = #tpu.dot_dimension_numbers<[1], [0], [0], [1], [0, 0, 1, 1], [], []>} : vector<2x32xf32>, vector<32x32xf32>, vector<2x32xf32> -> vector<2x32xf32>
    %1608 = arith.addf %1606, %1607 : vector<2x32xf32>
    %1609 = arith.negf %1608 : vector<2x32xf32>
    %1610 = math.exp %1609 : vector<2x32xf32>
    %cst_966 = arith.constant 1.000000e+00 : f32
    %1611 = vector.broadcast %cst_966 : f32 to vector<2x32xf32>
    %1612 = arith.addf %1611, %1610 : vector<2x32xf32>
    %1613 = arith.divf %1611, %1612 : vector<2x32xf32>
    %1614 = arith.mulf %1597, %1575 : vector<2x32xf32>
    %1615 = arith.mulf %1587, %1603 : vector<2x32xf32>
    %1616 = arith.addf %1614, %1615 : vector<2x32xf32>
    %1617 = math.tanh %1616 : vector<2x32xf32>
    %1618 = arith.mulf %1613, %1617 : vector<2x32xf32>
    %c7_i32_967 = arith.constant 7 : i32
    %c0_968 = arith.constant 0 : index
    %1619 = arith.index_cast %c7_i32_967 : i32 to index
    %c0_969 = arith.constant 0 : index
    %c0_970 = arith.constant 0 : index
    %1620 = vector.load %arg12[%c0_968, %1619, %c0_969, %c0_970] : memref<4x8x2x32xf32, #tpu.memory_space<vmem>>, vector<1x1x2x32xf32>
    %1621 = vector.shape_cast %1620 : vector<1x1x2x32xf32> to vector<2x32xf32>
    %cst_971 = arith.constant dense<0.000000e+00> : vector<2x32xf32>
    %1622 = tpu.matmul %1618, %1323, %cst_971 {dimension_numbers = #tpu.dot_dimension_numbers<[1], [0], [0], [1], [0, 0, 1, 1], [], []>} : vector<2x32xf32>, vector<32x32xf32>, vector<2x32xf32> -> vector<2x32xf32>
    %1623 = arith.addf %1621, %1622 : vector<2x32xf32>
    %1624 = arith.negf %1623 : vector<2x32xf32>
    %1625 = math.exp %1624 : vector<2x32xf32>
    %cst_972 = arith.constant 1.000000e+00 : f32
    %1626 = vector.broadcast %cst_972 : f32 to vector<2x32xf32>
    %1627 = arith.addf %1626, %1625 : vector<2x32xf32>
    %1628 = arith.divf %1626, %1627 : vector<2x32xf32>
    %c1_973 = arith.constant 1 : index
    %1629 = arith.index_cast %c7_i32_967 : i32 to index
    %c0_974 = arith.constant 0 : index
    %c0_975 = arith.constant 0 : index
    %1630 = vector.load %arg12[%c1_973, %1629, %c0_974, %c0_975] : memref<4x8x2x32xf32, #tpu.memory_space<vmem>>, vector<1x1x2x32xf32>
    %1631 = vector.shape_cast %1630 : vector<1x1x2x32xf32> to vector<2x32xf32>
    %cst_976 = arith.constant dense<0.000000e+00> : vector<2x32xf32>
    %1632 = tpu.matmul %1618, %1325, %cst_976 {dimension_numbers = #tpu.dot_dimension_numbers<[1], [0], [0], [1], [0, 0, 1, 1], [], []>} : vector<2x32xf32>, vector<32x32xf32>, vector<2x32xf32> -> vector<2x32xf32>
    %1633 = arith.addf %1631, %1632 : vector<2x32xf32>
    %1634 = arith.negf %1633 : vector<2x32xf32>
    %1635 = math.exp %1634 : vector<2x32xf32>
    %cst_977 = arith.constant 1.000000e+00 : f32
    %1636 = vector.broadcast %cst_977 : f32 to vector<2x32xf32>
    %1637 = arith.addf %1636, %1635 : vector<2x32xf32>
    %1638 = arith.divf %1636, %1637 : vector<2x32xf32>
    %c2_978 = arith.constant 2 : index
    %1639 = arith.index_cast %c7_i32_967 : i32 to index
    %c0_979 = arith.constant 0 : index
    %c0_980 = arith.constant 0 : index
    %1640 = vector.load %arg12[%c2_978, %1639, %c0_979, %c0_980] : memref<4x8x2x32xf32, #tpu.memory_space<vmem>>, vector<1x1x2x32xf32>
    %1641 = vector.shape_cast %1640 : vector<1x1x2x32xf32> to vector<2x32xf32>
    %cst_981 = arith.constant dense<0.000000e+00> : vector<2x32xf32>
    %1642 = tpu.matmul %1618, %1327, %cst_981 {dimension_numbers = #tpu.dot_dimension_numbers<[1], [0], [0], [1], [0, 0, 1, 1], [], []>} : vector<2x32xf32>, vector<32x32xf32>, vector<2x32xf32> -> vector<2x32xf32>
    %1643 = arith.addf %1641, %1642 : vector<2x32xf32>
    %1644 = math.tanh %1643 : vector<2x32xf32>
    %c3_982 = arith.constant 3 : index
    %1645 = arith.index_cast %c7_i32_967 : i32 to index
    %c0_983 = arith.constant 0 : index
    %c0_984 = arith.constant 0 : index
    %1646 = vector.load %arg12[%c3_982, %1645, %c0_983, %c0_984] : memref<4x8x2x32xf32, #tpu.memory_space<vmem>>, vector<1x1x2x32xf32>
    %1647 = vector.shape_cast %1646 : vector<1x1x2x32xf32> to vector<2x32xf32>
    %cst_985 = arith.constant dense<0.000000e+00> : vector<2x32xf32>
    %1648 = tpu.matmul %1618, %1329, %cst_985 {dimension_numbers = #tpu.dot_dimension_numbers<[1], [0], [0], [1], [0, 0, 1, 1], [], []>} : vector<2x32xf32>, vector<32x32xf32>, vector<2x32xf32> -> vector<2x32xf32>
    %1649 = arith.addf %1647, %1648 : vector<2x32xf32>
    %1650 = arith.negf %1649 : vector<2x32xf32>
    %1651 = math.exp %1650 : vector<2x32xf32>
    %cst_986 = arith.constant 1.000000e+00 : f32
    %1652 = vector.broadcast %cst_986 : f32 to vector<2x32xf32>
    %1653 = arith.addf %1652, %1651 : vector<2x32xf32>
    %1654 = arith.divf %1652, %1653 : vector<2x32xf32>
    %1655 = arith.mulf %1638, %1616 : vector<2x32xf32>
    %1656 = arith.mulf %1628, %1644 : vector<2x32xf32>
    %1657 = arith.addf %1655, %1656 : vector<2x32xf32>
    %1658 = math.tanh %1657 : vector<2x32xf32>
    %1659 = arith.mulf %1654, %1658 : vector<2x32xf32>
    %c8_i32_987 = arith.constant 8 : i32
    %c0_988 = arith.constant 0 : index
    %c0_989 = arith.constant 0 : index
    %1660 = vector.load %arg8[%c0_988, %c0_989] : memref<32x3xf32, #tpu.memory_space<vmem>>, vector<32x3xf32>
    %cst_990 = arith.constant dense<0.000000e+00> : vector<2x3xf32>
    %1661 = tpu.matmul %1659, %1660, %cst_990 {dimension_numbers = #tpu.dot_dimension_numbers<[1], [0], [0], [1], [0, 0, 1, 1], [], []>} : vector<2x32xf32>, vector<32x3xf32>, vector<2x3xf32> -> vector<2x3xf32>
    %c0_991 = arith.constant 0 : index
    %c0_992 = arith.constant 0 : index
    %1662 = vector.load %arg9[%c0_991, %c0_992] : memref<1x3xf32, #tpu.memory_space<vmem>>, vector<1x3xf32>
    %1663 = vector.broadcast %1662 : vector<1x3xf32> to vector<2x3xf32>
    %1664 = arith.addf %1661, %1663 : vector<2x3xf32>
    %c0_993 = arith.constant 0 : index
    %c0_994 = arith.constant 0 : index
    %1665 = vector.load %arg10[%c0_993, %c0_994] : memref<2x3xf32, #tpu.memory_space<vmem>>, vector<2x3xf32>
    tpu.vector_store %arg10[%c0_993, %c0_994], %1664 {strides = array<i32>} : memref<2x3xf32, #tpu.memory_space<vmem>>, vector<2x3xf32>,
    return
  }
}

</mosaic_0001>

<bundles_post_ra>
// kernel: lstm_encoder_decoder_forward.1
= control target key start
LH: loop header
LB: loop body
LE: loop exit
PB: predicated region body
PF: predicated region fallthrough
CT: control target
= control target key end

     0   :  { %15 = vsyncpa [#allocation5], 0  ;;  %s19356_s0 = inlined_call_operand.vmem [shape: f32[8,2,4], index: 0, kind: input, shape index: {}]   ;;  %s19357_s1 = inlined_call_operand.vmem [shape: f32[12,32], index: 1, kind: input, shape index: {}]   ;;  %s19358_s2 = inlined_call_operand.vmem [shape: f32[1,32], index: 2, kind: input, shape index: {}]   ;;  %s19359_s3 = inlined_call_operand.vmem [shape: f32[96,32], index: 3, kind: input, shape index: {}]   ;;  %s19360_s4 = inlined_call_operand.vmem [shape: f32[1,32], index: 4, kind: input, shape index: {}]   ;;  %s19361_s5 = inlined_call_operand.hbm [shape: f32[4,4,32,32], index: 5, kind: input, shape index: {}]   ;;  %s19362_s6 = inlined_call_operand.hbm [shape: f32[4,4,32,32], index: 6, kind: input, shape index: {}]   ;;  %s19363_s7 = inlined_call_operand.vmem [shape: f32[4,4,1,32], index: 7, kind: input, shape index: {}]   ;;  %s19364_s8 = inlined_call_operand.vmem [shape: f32[32,3], index: 8, kind: input, shape index: {}]   ;;  %s19365_s9 = inlined_call_operand.vmem [shape: f32[1,3], index: 9, kind: input, shape index: {}]   ;;  %s19366_s10 = inlined_call_operand.hbm [shape: f32[2,3], index: 10, kind: output, shape index: {}]  }
   0x1   :  { %16 = vsyncpa [#allocation8], 0 }
   0x2   :  { %17 = vsyncpa [#allocation6], 0  ;;  %s17612_s13 = smov [#allocation4]   ;;  %s17540_s17 = scalar_lea.hbm %s19361_s5, 8192 }
   0x3   :  { %s33_s14 = sshll.u32 %s17612_s13, 4  ;;  %p17541_p0 = scmp.ne.s32.totalorder %s19361_s5, %s17540_s17  ;;  %s34_s14 = int_to_ptr.vmem [resolvable:$true] %s33_s14 }
   0x4   :  { %p17544_p1 = scmp.lt.u32.totalorder %s17540_s17, %s19361_s5 }
   0x6   :  { %p17546_p2 = pnand %p17544_p1, %p17541_p0 }
   0x8   :  { %17549 = shalt.err (!%p17546_p2)
}
   0x9   :  { %s17550_s22 = scalar_lea.vmem %s34_s14, 8192  ;;  %p17555_p4 = scmp.lt.s32.totalorder %s34_s14, %s34_s14 }
   0xa   :  { %p17551_p3 = scmp.ne.s32.totalorder %s34_s14, %s17550_s22  ;;  %p17556_p5 = scmp.lt.s32.totalorder %s17550_s22, %s17550_s22 }
   0xc   :  { %p17557_p6 = por %p17556_p5, %p17555_p4 }
   0xe   :  { %p17558_p7 = pnand %p17557_p6, %p17551_p3 }
  0x10   :  { %17561 = shalt.err (!%p17558_p7)
}
  0x11   :  { %s17613_s23 = smov 128   ;;  %s17614_s24 = smov 8  }
  0x12   :  { %39 = dma.hbm_to_vmem [thread:$0]  %s19361_s5, 8192, %s34_s14, [#allocation5], %s17613_s23, %s17613_s23, %s17614_s24  }
  0x13   :  { %s17615_s27 = smov [#allocation7]   ;;  %s17562_s11 = scalar_lea.hbm %s19362_s6, 8192 }
  0x14   :  { %s45_s28 = sshll.u32 %s17615_s27, 4  ;;  %p17563_p8 = scmp.ne.s32.totalorder %s19362_s6, %s17562_s11  ;;  %s46_s28 = int_to_ptr.vmem [resolvable:$true] %s45_s28 }
  0x15   :  { %p17566_p9 = scmp.lt.u32.totalorder %s17562_s11, %s19362_s6 }
  0x17   :  { %p17568_p10 = pnand %p17566_p9, %p17563_p8 }
  0x19   :  { %17571 = shalt.err (!%p17568_p10)
}
  0x1a   :  { %s17572_s17 = scalar_lea.vmem %s46_s28, 8192  ;;  %p17577_p12 = scmp.lt.s32.totalorder %s46_s28, %s46_s28 }
  0x1b   :  { %p17573_p11 = scmp.ne.s32.totalorder %s46_s28, %s17572_s17  ;;  %p17578_p13 = scmp.lt.s32.totalorder %s17572_s17, %s17572_s17 }
  0x1d   :  { %p17579_p0 = por %p17578_p13, %p17577_p12 }
  0x1f   :  { %p17580_p1 = pnand %p17579_p0, %p17573_p11 }
  0x21   :  { %17583 = shalt.err (!%p17580_p1)
}
  0x22   :  { %51 = dma.hbm_to_vmem [thread:$0]  %s19362_s6, 8192, %s46_s28, [#allocation8], %s17613_s23, %s17613_s23, %s17614_s24  }
  0x23   :  { %17606 = dma.done.wait [#allocation5], 8192  }
  0x24   :  { %17607 = vsyncadd [#allocation5], 4294959104 }
  0x25   :  { %17608 = dma.done.wait [#allocation8], 8192  }
  0x26   :  { %17609 = vsyncadd [#allocation8], 4294959104  ;;  %v66_v0 = vld [vmem:[%s19356_s0 + $0x4] sm:$0x3]  ;;  %v64_v1 = vld [vmem:[%s19356_s0] sm:$0x3]  ;;  %v169_v22 = vlaneseq }
  0x27   :  { %s17616_s22 = smov 4   ;;  %v67_v2 = vld [vmem:[%s19356_s0 + $0x6] sm:$0x3]  ;;  %v65_v3 = vld [vmem:[%s19356_s0 + $0x2] sm:$0x3]  ;;  %vm203_vm0 = vcmask 1043456  }
  0x28   :  { %84 = vrot.lane.b32.xlu1 %v66_v0, %s17616_s22  ;;  %80 = vrot.lane.b32.xlu0 %v64_v1, %s17616_s22  ;;  %v17721_v4 = vld [vmem:[%s19356_s0 + $0xa] sm:$0x3]  ;;  %v68_v5 = vld [vmem:[%s19356_s0 + $0x8] sm:$0x3]  ;;  %vm17617_vm1 = vmmov 1   ;;  %v17618_v11 = vmov 0.0  }
  0x29   :  { %v71_v6 = vld [vmem:[%s19356_s0 + $0xe] sm:$0x3]  ;;  %v70_v7 = vld [vmem:[%s19356_s0 + $0xc] sm:$0x3]  ;;  %v147_v8 = vld [vmem:[%s19357_s1] sm:$0xff]  ;;  %vm129_vm3 = vcmask 31744  }
  0x2a   :  { %v148_v9 = vld [vmem:[%s19357_s1 + $0x8] sm:$0xf]  ;;  %vm16084_vm2 = vmpackc.low %vm203_vm0, %vm17617_vm1  ;;  %v17619_v20 = vmov 1983009808   ;;  %vm138_vm4 = vcmask 64512   ;;  %v170_v28 = vshrl.u32 %v169_v22, 7 }
  0x2b   :  { %v16083_v10 = vpack.c.bf16 %v148_v9, %v147_v8  ;;  %v167_v21 = vunpack.c.l.s4 %v17619_v20  ;;  %vm198_vm5 = vcmask 97280   ;;  %v13415_v60 = vld [vmem:[%s19358_s2] ss:$0 sm:$0xff]  ;;  %v456_v9 = vld [vmem:[%s19359_s3 + $0x10] sm:$0xff]  ;;  %s17620_s26 = smov 64   ;;  %s17621_s6 = smov 32  }
  0x2c   :  { %86 = vrot.lane.b32.xlu1 %v67_v2, %s17616_s22  ;;  %82 = vrot.lane.b32.xlu0 %v65_v3, %s17616_s22  ;;  %v460_v22 = vld [vmem:[%s19359_s3 + $0x30] sm:$0xff]  ;;  %vm436_vm6 = vcmask 261120   ;;  %vm445_vm7 = vcmask 523264   ;;  %vm515_vm8 = vcmask 785408   ;;  %vm639_vm9 = vcmask 254976   ;;  %s17624_s30 = smov [#allocation9]  }
  0x2d   :  { %16085 = vmatprep.subr.msk.bf16.mxu0 %vm16084_vm2, %v16083_v10  ;;  %v168_v27 = vunpack.c.0.s8 %v167_v21  ;;  %vm17623_vm10 = vmmov 0   ;;  %s13405_s11 = sshll.u32 %s17624_s30, 4  ;;  %vm13397_vm11 = vcmask 17408   ;;  %s13406_s11 = int_to_ptr.vmem [resolvable:$true] %s13405_s11 }
  0x2e   :  { %16088 = vmatpush3.bf16.msk.msra.mxu0 %vm16084_vm2, %v16083_v10  ;;  %v457_v10 = vld [vmem:[%s19359_s3 + $0x18] sm:$0xff]  ;;  %s17584_s12 = scalar_lea.vmem %s13406_s11, 32  ;;  %p17589_p3 = scmp.lt.s32.totalorder %s13406_s11, %s13406_s11 }
  0x2f   :  { %v17755_v36 = vsub.s32 %v168_v27, %v170_v28  ;;  %v462_v27 = vld [vmem:[%s19359_s3 + $0x40] sm:$0xff]  ;;  %v463_v28 = vld [vmem:[%s19359_s3 + $0x48] sm:$0xff]  ;;  %p17585_p2 = scmp.ne.s32.totalorder %s13406_s11, %s17584_s12  ;;  %p17590_p4 = scmp.lt.s32.totalorder %s17584_s12, %s17584_s12 }
  0x30   :  { %90 = vrot.lane.b32.xlu1 %v17721_v4, %s17616_s22  ;;  %88 = vrot.lane.b32.xlu0 %v68_v5, %s17616_s22 }
  0x31   :  { %p17591_p5 = por %p17590_p4, %p17589_p3 }
  0x33   :  { %p17592_p6 = pnand %p17591_p5, %p17585_p2 }
  0x34   :  { %94 = vrot.lane.b32.xlu1 %v71_v6, %s17616_s22  ;;  %92 = vrot.lane.b32.xlu0 %v70_v7, %s17616_s22 }
  0x38   :  { %107 = vrot.lane.b32.xlu1 %v66_v0, %s17614_s24  ;;  %105 = vrot.lane.b32.xlu0 %v65_v3, %s17614_s24 }
  0x3c   :  { %111 = vrot.lane.b32.xlu1 %v68_v5, %s17614_s24  ;;  %109 = vrot.lane.b32.xlu0 %v67_v2, %s17614_s24 }
  0x40   :  { %115 = vrot.lane.b32.xlu1 %v70_v7, %s17614_s24  ;;  %113 = vrot.lane.b32.xlu0 %v17721_v4, %s17614_s24 }
  0x44   :  { %119 = vrot.lane.b32.xlu1 %v17618_v11, %s17614_s24  ;;  %117 = vrot.lane.b32.xlu0 %v71_v6, %s17614_s24 }
  0x9a   :  { %v85_v12 = vpop.permute.xlu1 %84  ;;  %v81_v13 = vpop.permute.xlu0 %80 }
  0x9b   :  { %v130_v23 = vsel %vm129_vm3, 0.0, %v81_v13  ;;  %v132_v31 = vsel %vm129_vm3, %v65_v3, %v85_v12  ;;  %v16093_v12 = vpack.c.bf16 %v457_v10, %v456_v9 }
  0x9e   :  { %v87_v14 = vpop.permute.xlu1 %86  ;;  %v83_v15 = vpop.permute.xlu0 %82 }
  0x9f   :  { %v131_v24 = vsel %vm129_vm3, %v64_v1, %v83_v15  ;;  %v133_v32 = vsel %vm129_vm3, %v66_v0, %v87_v14  ;;  %v454_v1 = vld [vmem:[%s19359_s3] sm:$0xff] }
  0xa2   :  { %v91_v16 = vpop.permute.xlu1 %90  ;;  %v89_v17 = vpop.permute.xlu0 %88 }
  0xa3   :  { %v135_v40 = vsel %vm129_vm3, %v68_v5, %v91_v16  ;;  %v134_v41 = vsel %vm129_vm3, %v67_v2, %v89_v17  ;;  %v455_v2 = vld [vmem:[%s19359_s3 + $0x8] sm:$0xff]  ;;  %v458_v16 = vld [vmem:[%s19359_s3 + $0x20] sm:$0xff] }
  0xa4   :  { %v459_v17 = vld [vmem:[%s19359_s3 + $0x28] sm:$0xff] }
  0xa6   :  { %v95_v18 = vpop.permute.xlu1 %94  ;;  %v93_v19 = vpop.permute.xlu0 %92 }
  0xa7   :  { %v137_v49 = vsel %vm129_vm3, %v70_v7, %v95_v18  ;;  %v136_v50 = vsel %vm129_vm3, %v17721_v4, %v93_v19  ;;  %v16089_v4 = vpack.c.bf16 %v455_v2, %v454_v1  ;;  %v16097_v18 = vpack.c.bf16 %v459_v17, %v458_v16 }
  0xa9   :  { %16090 = vmatprep.subr.bf16.mxu1 %v16089_v4 }
  0xaa   :  { %v108_v25 = vpop.permute.xlu1 %107  ;;  %v106_v26 = vpop.permute.xlu0 %105  ;;  %16092 = vmatpush3.bf16.msra.mxu1 %v16089_v4 }
  0xab   :  { %v140_v29 = vsel %vm138_vm4, %v131_v24, %v108_v25  ;;  %v139_v30 = vsel %vm138_vm4, %v130_v23, %v106_v26  ;;  %16094 = vmatprep.subr.bf16.mxu1 %v16093_v12  ;;  %v461_v23 = vld [vmem:[%s19359_s3 + $0x38] sm:$0xff] }
  0xac   :  { %v164_v33 = vcombine.low %v139_v30, %v140_v29  ;;  %v16101_v24 = vpack.c.bf16 %v461_v23, %v460_v22  ;;  %v16105_v29 = vpack.c.bf16 %v463_v28, %v462_v27  ;;  %v1124_v23 = vld [vmem:[#allocation4 + $0x68] sm:$0xff]  ;;  %v1125_v28 = vld [vmem:[#allocation4 + $0x70] sm:$0xff] }
  0xae   :  { %v112_v34 = vpop.permute.xlu1 %111  ;;  %v110_v35 = vpop.permute.xlu0 %109  ;;  %v172_v44 = vrot.slane %v164_v33, %v17755_v36  ;;  %16096 = vmatpush3.bf16.msra.mxu1 %v16093_v12  ;;  %v465_v33 = vld [vmem:[%s19359_s3 + $0x58] sm:$0xff] }
  0xaf   :  { %v142_v37 = vsel %vm138_vm4, %v133_v32, %v112_v34  ;;  %v141_v38 = vsel %vm138_vm4, %v132_v31, %v110_v35  ;;  %16098 = vmatprep.subr.bf16.mxu1 %v16097_v18  ;;  %v464_v32 = vld [vmem:[%s19359_s3 + $0x50] sm:$0xff] }
  0xb0   :  { %v165_v39 = vcombine.low %v141_v38, %v142_v37  ;;  %v16109_v34 = vpack.c.bf16 %v465_v33, %v464_v32  ;;  %v842_v32 = vld [vmem:[#allocation4 + $0x28] sm:$0xff] }
  0xb2   :  { %v116_v42 = vpop.permute.xlu1 %115  ;;  %v114_v43 = vpop.permute.xlu0 %113  ;;  %v179_v45 = vrot.slane %v165_v39, %v17755_v36  ;;  %16100 = vmatpush3.bf16.msra.mxu1 %v16097_v18  ;;  %v411_v39 = vrot.slane %v17618_v11, %v17755_v36 }
  0xb3   :  { %v144_v46 = vsel %vm138_vm4, %v135_v40, %v116_v42  ;;  %v143_v47 = vsel %vm138_vm4, %v134_v41, %v114_v43  ;;  %16102 = vmatprep.subr.bf16.mxu1 %v16101_v24 }
  0xb4   :  { %v180_v48 = vcombine.low %v172_v44, %v179_v45  ;;  %v181_v51 = vcombine.low %v143_v47, %v144_v46 }
  0xb6   :  { %v120_v52 = vpop.permute.xlu1 %119  ;;  %14458 = vmatprep.mubr.msk.f32.mxu0 %vm198_vm5, %v180_v48  ;;  %v118_v53 = vpop.permute.xlu0 %117  ;;  %v189_v57 = vrot.slane %v181_v51, %v17755_v36  ;;  %16104 = vmatpush3.bf16.msra.mxu1 %v16101_v24  ;;  %v658_v24 = vld [vmem:[#allocation4 + $0x10] sm:$0xff] }
  0xb7   :  { %v146_v54 = vsel %vm138_vm4, %v137_v49, %v120_v52  ;;  %v145_v55 = vsel %vm138_vm4, %v136_v50, %v118_v53  ;;  %16106 = vmatprep.subr.bf16.mxu1 %v16105_v29 }
  0xb8   :  { %v182_v56 = vcombine.low %v145_v55, %v146_v54 }
  0xba   :  { %v196_v58 = vrot.slane %v182_v56, %v17755_v36  ;;  %16108 = vmatpush3.bf16.msra.mxu1 %v16105_v29  ;;  %v1126_v29 = vld [vmem:[#allocation4 + $0x78] sm:$0xff] }
  0xbb   :  { %16110 = vmatprep.subr.bf16.mxu1 %v16109_v34 }
  0xbc   :  { %v197_v59 = vcombine.low %v189_v57, %v196_v58 }
  0xbe   :  { %14459 = vmatmul.mubr.msk.f32.vlgmr.msra.gmra.mrb[0].mxu0 %vm198_vm5, %v197_v59  ;;  %16112 = vmatpush3.bf16.msra.mxu1 %v16109_v34  ;;  %v17622_v34 = vmov 0.0|0.0  }
 0x191   :  { %v14460_v61 = vpop.f32.mrb[0].mxu0 }
 0x192   :  { %v279_v62 = vadd.f32 %v14460_v61, %v13415_v60  ;;  %v273_v63 = vpop.f32.mrb[1].mxu0 }
 0x193   :  { %v274_v0 = vadd.f32 %v13415_v60, %v273_v63 }
 0x194   :  { %v17782_v3 = vrot.slane %v279_v62, %v17755_v36  ;;  %v301_v5 = vcombine.high %v279_v62, %v279_v62 }
 0x195   :  { %v17785_v6 = vrot.slane %v274_v0, %v17755_v36  ;;  %v284_v19 = vcombine.high %v274_v0, %v274_v0 }
 0x196   :  { %v359_v7 = vrot.slane %v17782_v3, %v17755_v36  ;;  %v17791_v8 = vcombine.high %v17782_v3, %v17782_v3  ;;  %v17802_v13 = vrot.slane %v301_v5, %v17755_v36 }
 0x197   :  { %v331_v15 = vrot.slane %v17785_v6, %v17755_v36  ;;  %v299_v21 = vcombine.high %v17785_v6, %v17785_v6  ;;  %v298_v25 = vrot.slane %v284_v19, %v17755_v36 }
 0x198   :  { %418 = vrot.lane.b32.xlu1 %v359_v7, %s17620_s26  ;;  %389 = vrot.lane.b32.xlu0 %v359_v7, %s17621_s6  ;;  %v366_v14 = vrot.slane %v17791_v8, %v17755_v36  ;;  %v373_v20 = vrot.slane %v17802_v13, %v17755_v36  ;;  %v317_v31 = vcombine.high %v17802_v13, %v17802_v13 }
 0x199   :  { %v338_v26 = vrot.slane %v299_v21, %v17755_v36  ;;  %v345_v30 = vrot.slane %v298_v25, %v17755_v36  ;;  %v300_v37 = vcombine.high %v298_v25, %v298_v25 }
 0x19a   :  { %v380_v35 = vrot.slane %v317_v31, %v17755_v36  ;;  %v841_v31 = vld [vmem:[#allocation4 + $0x20] sm:$0xff] }
 0x19b   :  { %v352_v38 = vrot.slane %v300_v37, %v17755_v36  ;;  %v16121_v33 = vpack.c.bf16 %v842_v32, %v841_v31  ;;  %v1266_v31 = vld [vmem:[#allocation7 + $0x18] sm:$0xff] }
 0x19c   :  { %391 = vrot.lane.b32.xlu1 %v366_v14, %s17621_s6  ;;  %381 = vrot.lane.b32.xlu0 %v331_v15, %s17621_s6 }
 0x1a0   :  { %422 = vrot.lane.b32.xlu1 %v373_v20, %s17620_s26  ;;  %393 = vrot.lane.b32.xlu0 %v373_v20, %s17621_s6  ;;  %v657_v20 = vld [vmem:[#allocation4 + $0x8] sm:$0xff] }
 0x1a4   :  { %420 = vrot.lane.b32.xlu0 %v366_v14, %s17620_s26  ;;  %383 = vrot.lane.b32.xlu1 %v338_v26, %s17621_s6 }
 0x1a8   :  { %414 = vrot.lane.b32.xlu1 %v345_v30, %s17620_s26  ;;  %385 = vrot.lane.b32.xlu0 %v345_v30, %s17621_s6  ;;  %v16141_v30 = vpack.c.bf16 %v1126_v29, %v1125_v28  ;;  %v1264_v28 = vld [vmem:[#allocation7 + $0x8] sm:$0xff] }
 0x1ac   :  { %395 = vrot.lane.b32.xlu1 %v380_v35, %s17621_s6  ;;  %412 = vrot.lane.b32.xlu0 %v338_v26, %s17620_s26 }
 0x1b0   :  { %416 = vrot.lane.b32.xlu0 %v352_v38, %s17620_s26  ;;  %387 = vrot.lane.b32.xlu1 %v352_v38, %s17621_s6 }
 0x1b4   :  { %424 = vrot.lane.b32.xlu0 %v380_v35, %s17620_s26  ;;  %426 = vrot.lane.b32.xlu1 %v411_v39, %s17620_s26  ;;  %v13419_v35 = vld [vmem:[%s19360_s4] ss:$0 sm:$0xff] }
 0x20a   :  { %v419_v40 = vpop.permute.xlu1 %418  ;;  %v390_v41 = vpop.permute.xlu0 %389 }
 0x20b   :  { %v441_v55 = vsel %vm436_vm6, %v300_v37, %v390_v41 }
 0x20e   :  { %v392_v42 = vpop.permute.xlu1 %391  ;;  %v382_v43 = vpop.permute.xlu0 %381 }
 0x20f   :  { %v437_v52 = vsel %vm436_vm6, 0.0, %v382_v43  ;;  %v442_v0 = vsel %vm436_vm6, %v17782_v3, %v392_v42 }
 0x212   :  { %v423_v44 = vpop.permute.xlu1 %422  ;;  %v394_v45 = vpop.permute.xlu0 %393 }
 0x213   :  { %v451_v2 = vsel %vm445_vm7, %v442_v0, %v423_v44  ;;  %v443_v5 = vsel %vm436_vm6, %v17791_v8, %v394_v45  ;;  %v1268_v0 = vld [vmem:[#allocation7 + $0x20] sm:$0xff] }
 0x216   :  { %v421_v46 = vpop.permute.xlu0 %420  ;;  %v384_v47 = vpop.permute.xlu1 %383 }
 0x217   :  { %v438_v54 = vsel %vm436_vm6, %v17785_v6, %v384_v47  ;;  %v450_v60 = vsel %vm445_vm7, %v441_v55, %v421_v46 }
 0x218   :  { %v498_v6 = vcombine.low %v450_v60, %v451_v2 }
 0x21a   :  { %v415_v48 = vpop.permute.xlu1 %414  ;;  %v386_v49 = vpop.permute.xlu0 %385  ;;  %v506_v18 = vrot.slane %v498_v6, %v17755_v36  ;;  %v844_v6 = vld [vmem:[#allocation4 + $0x38] sm:$0xff] }
 0x21b   :  { %v447_v56 = vsel %vm445_vm7, %v438_v54, %v415_v48  ;;  %v439_v57 = vsel %vm436_vm6, %v299_v21, %v386_v49  ;;  %v1123_v21 = vld [vmem:[#allocation4 + $0x60] sm:$0xff] }
 0x21c   :  { %v16137_v26 = vpack.c.bf16 %v1124_v23, %v1123_v21  ;;  %v985_v21 = vld [vmem:[#allocation4 + $0x58] sm:$0xff] }
 0x21e   :  { %v396_v50 = vpop.permute.xlu1 %395  ;;  %v413_v51 = vpop.permute.xlu0 %412  ;;  %16138 = vmatprep.subr.bf16.mxu1 %v16137_v26 }
 0x21f   :  { %v446_v53 = vsel %vm445_vm7, %v437_v52, %v413_v51  ;;  %v444_v7 = vsel %vm436_vm6, %v17802_v13, %v396_v50  ;;  %v656_v13 = vld [vmem:[#allocation4] sm:$0xff] }
 0x220   :  { %v481_v61 = vcombine.low %v446_v53, %v447_v56  ;;  %v16113_v22 = vpack.c.bf16 %v657_v20, %v656_v13  ;;  %v1279_v13 = vld [vmem:[#allocation7 + $0x68] sm:$0xff]  ;;  %v984_v20 = vld [vmem:[#allocation4 + $0x50] sm:$0xff] }
 0x221   :  { %v16133_v23 = vpack.c.bf16 %v985_v21, %v984_v20 }
 0x222   :  { %v417_v58 = vpop.permute.xlu0 %416  ;;  %v388_v59 = vpop.permute.xlu1 %387  ;;  %v489_v3 = vrot.slane %v481_v61, %v17755_v36  ;;  %16114 = vmatprep.subr.bf16.mxu0 %v16113_v22 }
 0x223   :  { %v448_v62 = vsel %vm445_vm7, %v439_v57, %v417_v58  ;;  %v440_v63 = vsel %vm436_vm6, %v298_v25, %v388_v59  ;;  %v659_v25 = vld [vmem:[#allocation4 + $0x18] sm:$0xff]  ;;  %16116 = vmatpush3.bf16.msra.mxu0 %v16113_v22 }
 0x224   :  { %v449_v1 = vsel %vm445_vm7, %v440_v63, %v419_v40  ;;  %v16117_v27 = vpack.c.bf16 %v659_v25, %v658_v24  ;;  %v1280_v24 = vld [vmem:[#allocation7 + $0x70] sm:$0xff]  ;;  %v1281_v25 = vld [vmem:[#allocation7 + $0x78] sm:$0xff] }
 0x225   :  { %v482_v4 = vcombine.low %v448_v62, %v449_v1  ;;  %v1269_v1 = vld [vmem:[#allocation7 + $0x28] sm:$0xff] }
 0x226   :  { %v425_v9 = vpop.permute.xlu0 %424  ;;  %v427_v10 = vpop.permute.xlu1 %426  ;;  %16118 = vmatprep.subr.bf16.mxu0 %v16117_v27 }
 0x227   :  { %v452_v12 = vsel %vm445_vm7, %v443_v5, %v425_v9  ;;  %v453_v14 = vsel %vm445_vm7, %v444_v7, %v427_v10  ;;  %v496_v15 = vrot.slane %v482_v4, %v17755_v36  ;;  %16120 = vmatpush3.bf16.msra.mxu0 %v16117_v27  ;;  %v843_v5 = vld [vmem:[#allocation4 + $0x30] sm:$0xff]  ;;  %v17903_v10 = vpack.c.bf16 %v1269_v1, %v1268_v0  ;;  %v1263_v27 = vld [vmem:[#allocation7] sm:$0xff] }
 0x228   :  { %v499_v16 = vcombine.low %v452_v12, %v453_v14  ;;  %16122 = vmatprep.subr.bf16.mxu0 %v16121_v33  ;;  %v16125_v14 = vpack.c.bf16 %v844_v6, %v843_v5  ;;  %v17929_v29 = vpack.c.bf16 %v1264_v28, %v1263_v27  ;;  %v13430_v27 = vld [vmem:[%s19363_s7 + $0x2] ss:$0 sm:$0xff] }
 0x229   :  { %v497_v17 = vcombine.low %v489_v3, %v496_v15  ;;  %v1270_v3 = vld [vmem:[#allocation7 + $0x30] sm:$0xff]  ;;  %v1271_v15 = vld [vmem:[#allocation7 + $0x38] sm:$0xff] }
 0x22a   :  { %v513_v8 = vrot.slane %v499_v16, %v17755_v36  ;;  %v982_v16 = vld [vmem:[#allocation4 + $0x40] sm:$0xff] }
 0x22b   :  { %14485 = vmatprep.mubr.msk.f32.mxu1 %vm515_vm8, %v497_v17  ;;  %v983_v17 = vld [vmem:[#allocation4 + $0x48] sm:$0xff] }
 0x22c   :  { %v514_v19 = vcombine.low %v506_v18, %v513_v8  ;;  %v17910_v18 = vpack.c.bf16 %v1271_v15, %v1270_v3  ;;  %v16129_v8 = vpack.c.bf16 %v983_v17, %v982_v16 }
 0x22e   :  { %14486 = vmatmul.mubr.msk.f32.vlgmr.msra.gmra.mrb[0].mxu1 %vm515_vm8, %v514_v19  ;;  %v1278_v19 = vld [vmem:[#allocation7 + $0x60] sm:$0xff] }
 0x22f   :  { %16140 = vmatpush3.bf16.msra.mxu1 %v16137_v26  ;;  %v17918_v22 = vpack.c.bf16 %v1279_v13, %v1278_v19  ;;  %v17924_v26 = vpack.c.bf16 %v1281_v25, %v1280_v24 }
 0x230   :  { %16142 = vmatprep.subr.bf16.mxu1 %v16141_v30 }
 0x233   :  { %16144 = vmatpush3.bf16.msra.mxu1 %v16141_v30  ;;  %v1265_v30 = vld [vmem:[#allocation7 + $0x10] sm:$0xff] }
 0x234   :  { %16151 = vmatprep.subr.bf16.mxu1 %v17622_v34  ;;  %v17937_v32 = vpack.c.bf16 %v1266_v31, %v1265_v30 }
 0x301   :  { %v14487_v37 = vpop.f32.mrb[0].mxu1 }
 0x302   :  { %v592_v38 = vadd.f32 %v14487_v37, %v13419_v35  ;;  %v586_v39 = vpop.f32.mrb[1].mxu1 }
 0x303   :  { %v587_v40 = vadd.f32 %v13419_v35, %v586_v39  ;;  %v1274_v35 = vld [vmem:[#allocation7 + $0x48] sm:$0xff]  ;;  %v1276_v39 = vld [vmem:[#allocation7 + $0x58] sm:$0xff] }
 0x304   :  { %v614_v41 = vcombine.high %v592_v38, %v592_v38  ;;  %v621_v42 = vrot.slane %v592_v38, %v17755_v36  ;;  %v1275_v38 = vld [vmem:[#allocation7 + $0x50] sm:$0xff] }
 0x305   :  { %v597_v43 = vcombine.high %v587_v40, %v587_v40  ;;  %v604_v44 = vrot.slane %v587_v40, %v17755_v36  ;;  %v17954_v40 = vpack.c.bf16 %v1276_v39, %v1275_v38 }
 0x306   :  { %v628_v45 = vrot.slane %v614_v41, %v17755_v36  ;;  %v629_v46 = vcombine.high %v621_v42, %v621_v42  ;;  %644 = vst.msk [vmem:[#allocation2 + $0x8] sm:$0x3] %vm639_vm9, %v621_v42  ;;  %v13422_v41 = vld [vmem:[%s19363_s7] ss:$0 sm:$0xff]  ;;  %v13434_v42 = vld [vmem:[%s19363_s7 + $0x3] ss:$0 sm:$0xff] }
 0x307   :  { %v611_v47 = vrot.slane %v597_v43, %v17755_v36  ;;  %v612_v48 = vcombine.high %v604_v44, %v604_v44  ;;  %640 = vst.msk [vmem:[#allocation2] sm:$0x3] %vm639_vm9, %v604_v44 }
 0x308   :  { %v630_v49 = vcombine.high %v628_v45, %v628_v45  ;;  %645 = vst.msk [vmem:[#allocation2 + $0xa] sm:$0x3] %vm639_vm9, %v629_v46  ;;  %646 = vst.msk [vmem:[#allocation2 + $0xc] sm:$0x3] %vm639_vm9, %v628_v45 }
 0x309   :  { %v613_v50 = vcombine.high %v611_v47, %v611_v47  ;;  %641 = vst.msk [vmem:[#allocation2 + $0x2] sm:$0x3] %vm639_vm9, %v612_v48  ;;  %642 = vst.msk [vmem:[#allocation2 + $0x4] sm:$0x3] %vm639_vm9, %v611_v47 }
 0x30a   :  { %647 = vst.msk [vmem:[#allocation2 + $0xe] sm:$0x3] %vm639_vm9, %v630_v49 }
 0x30b   :  { %643 = vst.msk [vmem:[#allocation2 + $0x6] sm:$0x3] %vm639_vm9, %v613_v50 }
 0x30d   :  { %v652_v55 = vld [vmem:[#allocation2 + $0x8] sm:$0x3] }
 0x30e   :  { %v648_v52 = vld [vmem:[#allocation2] sm:$0x3] }
 0x30f   :  { %v653_v51 = vld [vmem:[#allocation2 + $0xa] sm:$0x3]  ;;  %v654_v56 = vld [vmem:[#allocation2 + $0xc] sm:$0x3] }
 0x310   :  { %v649_v53 = vld [vmem:[#allocation2 + $0x2] sm:$0x3]  ;;  %v650_v58 = vld [vmem:[#allocation2 + $0x4] sm:$0x3]  ;;  %v692_v60 = vcombine.low %v652_v55, %v653_v51 }
 0x311   :  { %v675_v54 = vcombine.low %v648_v52, %v649_v53  ;;  %v655_v57 = vld [vmem:[#allocation2 + $0xe] sm:$0x3] }
 0x312   :  { %v651_v59 = vld [vmem:[#allocation2 + $0x6] sm:$0x3]  ;;  %v693_v61 = vcombine.low %v654_v56, %v655_v57  ;;  %v700_v7 = vrot.slane %v692_v60, %v17755_v36 }
 0x313   :  { %v676_v62 = vcombine.low %v650_v58, %v651_v59  ;;  %v683_v2 = vrot.slane %v675_v54, %v17755_v36 }
 0x314   :  { %v707_v63 = vrot.slane %v693_v61, %v17755_v36 }
 0x315   :  { %v690_v4 = vrot.slane %v676_v62, %v17755_v36 }
 0x316   :  { %v708_v12 = vcombine.low %v700_v7, %v707_v63 }
 0x317   :  { %v691_v9 = vcombine.low %v683_v2, %v690_v4  ;;  %v13426_v4 = vld [vmem:[%s19363_s7 + $0x1] ss:$0 sm:$0xff] }
 0x319   :  { %14496 = vmatprep.mubr.msk.f32.mxu0 %vm436_vm6, %v691_v9  ;;  %14529 = vmatprep.mubr.msk.f32.mxu1 %vm436_vm6, %v691_v9 }
 0x31a   :  { %14497 = vmatmul.mubr.msk.f32.vlgmr.msra.gmra.mrb[2].mxu0 %vm436_vm6, %v708_v12  ;;  %14530 = vmatmul.mubr.msk.f32.vlgmr.msra.gmra.mrb[2].mxu1 %vm436_vm6, %v708_v12 }
 0x31b   :  { %16124 = vmatpush3.bf16.msra.mxu0 %v16121_v33  ;;  %16153 = vmatpush3.bf16.msra.mxu1 %v17903_v10  ;;  %v1273_v33 = vld [vmem:[#allocation7 + $0x40] sm:$0xff] }
 0x31c   :  { %14507 = vmatprep.mubr.msk.f32.mxu0 %vm436_vm6, %v691_v9  ;;  %16126 = vmatprep.subr.bf16.mxu0 %v16125_v14  ;;  %v17947_v37 = vpack.c.bf16 %v1274_v35, %v1273_v33 }
 0x31d   :  { %16154 = vmatprep.subr.bf16.mxu1 %v17622_v34  ;;  %14551 = vmatprep.mubr.msk.f32.mxu1 %vm17623_vm10, %v17618_v11 }
 0x31f   :  { %16128 = vmatpush3.bf16.msra.mxu0 %v16125_v14  ;;  %16156 = vmatpush3.bf16.msra.mxu1 %v17910_v18 }
 0x320   :  { %16130 = vmatprep.subr.bf16.mxu0 %v16129_v8  ;;  %16163 = vmatprep.subr.bf16.mxu1 %v17622_v34 }
 0x322   :  { %14508 = vmatmul.mubr.msk.f32.vlgmr.msra.gmra.mrb[4].mxu0 %vm436_vm6, %v708_v12  ;;  %14552 = vmatmul.mubr.f32.vlgmr.msra.gmra.mrb[4].mxu1 %v17618_v11 }
 0x323   :  { %16132 = vmatpush3.bf16.msra.mxu0 %v16129_v8  ;;  %14518 = vmatprep.mubr.msk.f32.mxu0 %vm436_vm6, %v691_v9 }
 0x324   :  { %16165 = vmatpush3.bf16.msra.mxu1 %v17918_v22  ;;  %16134 = vmatprep.subr.bf16.mxu0 %v16133_v23 }
 0x325   :  { %16166 = vmatprep.subr.bf16.mxu1 %v17622_v34  ;;  %14573 = vmatprep.mubr.msk.f32.mxu1 %vm17623_vm10, %v17618_v11 }
 0x327   :  { %16136 = vmatpush3.bf16.msra.mxu0 %v16133_v23 }
 0x328   :  { %16168 = vmatpush3.bf16.msra.mxu1 %v17924_v26  ;;  %16145 = vmatprep.subr.bf16.mxu0 %v17622_v34 }
 0x329   :  { %16175 = vmatprep.subr.bf16.mxu1 %v17622_v34 }
 0x32a   :  { %14519 = vmatmul.mubr.msk.f32.vlgmr.msra.gmra.mrb[6].mxu0 %vm436_vm6, %v708_v12 }
 0x32b   :  { %14574 = vmatmul.mubr.f32.vlgmr.msra.gmra.mrb[6].mxu1 %v17618_v11  ;;  %16147 = vmatpush3.bf16.msra.mxu0 %v17929_v29 }
 0x32c   :  { %16148 = vmatprep.subr.bf16.mxu0 %v17622_v34  ;;  %14540 = vmatprep.mubr.msk.f32.mxu0 %vm17623_vm10, %v17618_v11 }
 0x32d   :  { %16177 = vmatpush3.bf16.msra.mxu1 %v17903_v10  ;;  %14595 = vmatprep.mubr.msk.f32.mxu1 %vm17623_vm10, %v17618_v11 }
 0x32e   :  { %16178 = vmatprep.subr.bf16.mxu1 %v17622_v34 }
 0x32f   :  { %16150 = vmatpush3.bf16.msra.mxu0 %v17937_v32 }
 0x330   :  { %16157 = vmatprep.subr.bf16.mxu0 %v17622_v34 }
 0x331   :  { %16180 = vmatpush3.bf16.msra.mxu1 %v17910_v18 }
 0x332   :  { %14541 = vmatmul.mubr.f32.vlgmr.msra.gmra.mrb[8].mxu0 %v17618_v11  ;;  %16187 = vmatprep.subr.bf16.mxu1 %v17622_v34 }
 0x333   :  { %16159 = vmatpush3.bf16.msra.mxu0 %v17947_v37  ;;  %14562 = vmatprep.mubr.msk.f32.mxu0 %vm17623_vm10, %v17618_v11 }
 0x334   :  { %16160 = vmatprep.subr.bf16.mxu0 %v17622_v34 }
 0x337   :  { %16162 = vmatpush3.bf16.msra.mxu0 %v17954_v40 }
 0x338   :  { %16169 = vmatprep.subr.bf16.mxu0 %v17622_v34 }
 0x33a   :  { %14563 = vmatmul.mubr.f32.vlgmr.msra.gmra.mrb[10].mxu0 %v17618_v11 }
 0x33b   :  { %16171 = vmatpush3.bf16.msra.mxu0 %v17929_v29  ;;  %14584 = vmatprep.mubr.msk.f32.mxu0 %vm17623_vm10, %v17618_v11 }
 0x33c   :  { %16172 = vmatprep.subr.bf16.mxu0 %v17622_v34 }
 0x33f   :  { %16174 = vmatpush3.bf16.msra.mxu0 %v17937_v32 }
 0x340   :  { %16181 = vmatprep.subr.bf16.mxu0 %v17622_v34 }
 0x3ed   :  { %v14498_v43 = vpop.f32.mrb[2].mxu0  ;;  %v14531_v44 = vpop.f32.mrb[2].mxu1 }
 0x3ee   :  { %v785_v45 = vadd.f32 %v14498_v43, %v13422_v41  ;;  %v1207_v46 = vadd.f32 %v14531_v44, %v13434_v42  ;;  %v779_v47 = vpop.f32.mrb[3].mxu0  ;;  %v1201_v48 = vpop.f32.mrb[3].mxu1 }
 0x3ef   :  { %v780_v49 = vadd.f32 %v13422_v41, %v779_v47  ;;  %v1202_v50 = vadd.f32 %v13434_v42, %v1201_v48 }
 0x3f0   :  { %v807_v51 = vcombine.high %v785_v45, %v785_v45  ;;  %v814_v52 = vrot.slane %v785_v45, %v17755_v36  ;;  %v1229_v53 = vcombine.high %v1207_v46, %v1207_v46  ;;  %v1236_v54 = vrot.slane %v1207_v46, %v17755_v36 }
 0x3f1   :  { %v790_v55 = vcombine.high %v780_v49, %v780_v49  ;;  %v797_v56 = vrot.slane %v780_v49, %v17755_v36  ;;  %v1212_v57 = vcombine.high %v1202_v50, %v1202_v50  ;;  %v1219_v58 = vrot.slane %v1202_v50, %v17755_v36 }
 0x3f2   :  { %v821_v59 = vrot.slane %v807_v51, %v17755_v36  ;;  %v822_v60 = vcombine.high %v814_v52, %v814_v52  ;;  %836 = vst.msk [vmem:[#allocation3 + $0x8] sm:$0x3] %vm639_vm9, %v814_v52  ;;  %v1243_v61 = vrot.slane %v1229_v53, %v17755_v36  ;;  %v1244_v62 = vcombine.high %v1236_v54, %v1236_v54 }
 0x3f3   :  { %1259 = vst.msk [vmem:[#allocation3 + $0x38] sm:$0x3] %vm639_vm9, %v1236_v54  ;;  %v804_v63 = vrot.slane %v790_v55, %v17755_v36  ;;  %v805_v0 = vcombine.high %v797_v56, %v797_v56  ;;  %832 = vst.msk [vmem:[#allocation3] sm:$0x3] %vm639_vm9, %v797_v56  ;;  %v1226_v1 = vrot.slane %v1212_v57, %v17755_v36 }
 0x3f4   :  { %v1227_v2 = vcombine.high %v1219_v58, %v1219_v58  ;;  %1255 = vst.msk [vmem:[#allocation3 + $0x30] sm:$0x3] %vm639_vm9, %v1219_v58  ;;  %v823_v5 = vcombine.high %v821_v59, %v821_v59  ;;  %837 = vst.msk [vmem:[#allocation3 + $0xa] sm:$0x3] %vm639_vm9, %v822_v60  ;;  %v1245_v6 = vcombine.high %v1243_v61, %v1243_v61 }
 0x3f5   :  { %838 = vst.msk [vmem:[#allocation3 + $0xc] sm:$0x3] %vm639_vm9, %v821_v59  ;;  %1260 = vst.msk [vmem:[#allocation3 + $0x3a] sm:$0x3] %vm639_vm9, %v1244_v62  ;;  %v806_v7 = vcombine.high %v804_v63, %v804_v63  ;;  %v1228_v9 = vcombine.high %v1226_v1, %v1226_v1  ;;  %v14509_v12 = vpop.f32.mrb[4].mxu0  ;;  %v1429_v14 = vpop.f32.mrb[4].mxu1 }
 0x3f6   :  { %1261 = vst.msk [vmem:[#allocation3 + $0x3c] sm:$0x3] %vm639_vm9, %v1243_v61  ;;  %833 = vst.msk [vmem:[#allocation3 + $0x2] sm:$0x3] %vm639_vm9, %v805_v0  ;;  %v925_v3 = vadd.f32 %v14509_v12, %v13426_v4  ;;  %v919_v15 = vpop.f32.mrb[5].mxu0  ;;  %v14553_v16 = vpop.f32.mrb[5].mxu1 }
 0x3f7   :  { %834 = vst.msk [vmem:[#allocation3 + $0x4] sm:$0x3] %vm639_vm9, %v804_v63  ;;  %1256 = vst.msk [vmem:[#allocation3 + $0x32] sm:$0x3] %vm639_vm9, %v1227_v2  ;;  %v920_v17 = vadd.f32 %v13426_v4, %v919_v15 }
 0x3f8   :  { %1257 = vst.msk [vmem:[#allocation3 + $0x34] sm:$0x3] %vm639_vm9, %v1226_v1  ;;  %839 = vst.msk [vmem:[#allocation3 + $0xe] sm:$0x3] %vm639_vm9, %v823_v5  ;;  %v947_v8 = vcombine.high %v925_v3, %v925_v3  ;;  %v954_v19 = vrot.slane %v925_v3, %v17755_v36 }
 0x3f9   :  { %1262 = vst.msk [vmem:[#allocation3 + $0x3e] sm:$0x3] %vm639_vm9, %v1245_v6  ;;  %835 = vst.msk [vmem:[#allocation3 + $0x6] sm:$0x3] %vm639_vm9, %v806_v7  ;;  %v930_v13 = vcombine.high %v920_v17, %v920_v17  ;;  %v937_v20 = vrot.slane %v920_v17, %v17755_v36 }
 0x3fa   :  { %1258 = vst.msk [vmem:[#allocation3 + $0x36] sm:$0x3] %vm639_vm9, %v1228_v9  ;;  %v961_v21 = vrot.slane %v947_v8, %v17755_v36  ;;  %v962_v23 = vcombine.high %v954_v19, %v954_v19  ;;  %977 = vst.msk [vmem:[#allocation3 + $0x18] sm:$0x3] %vm639_vm9, %v954_v19  ;;  %v1282_v55 = vld [vmem:[#allocation3] sm:$0x3] }
 0x3fb   :  { %v944_v24 = vrot.slane %v930_v13, %v17755_v36  ;;  %v945_v25 = vcombine.high %v937_v20, %v937_v20  ;;  %973 = vst.msk [vmem:[#allocation3 + $0x10] sm:$0x3] %vm639_vm9, %v937_v20  ;;  %v1513_v60 = vld [vmem:[#allocation3 + $0x30] sm:$0x3] }
 0x3fc   :  { %v963_v28 = vcombine.high %v961_v21, %v961_v21  ;;  %978 = vst.msk [vmem:[#allocation3 + $0x1a] sm:$0x3] %vm639_vm9, %v962_v23  ;;  %979 = vst.msk [vmem:[#allocation3 + $0x1c] sm:$0x3] %vm639_vm9, %v961_v21 }
 0x3fd   :  { %v946_v30 = vcombine.high %v944_v24, %v944_v24  ;;  %974 = vst.msk [vmem:[#allocation3 + $0x12] sm:$0x3] %vm639_vm9, %v945_v25  ;;  %975 = vst.msk [vmem:[#allocation3 + $0x14] sm:$0x3] %vm639_vm9, %v944_v24  ;;  %v14520_v31 = vpop.f32.mrb[6].mxu0 }
 0x3fe   :  { %980 = vst.msk [vmem:[#allocation3 + $0x1e] sm:$0x3] %vm639_vm9, %v963_v28  ;;  %v1066_v33 = vadd.f32 %v14520_v31, %v13430_v27  ;;  %v1580_v35 = vpop.f32.mrb[6].mxu1  ;;  %v1060_v38 = vpop.f32.mrb[7].mxu0  ;;  %v1598_v21 = vld [vmem:[#allocation3 + $0x2] sm:$0x3] }
 0x3ff   :  { %976 = vst.msk [vmem:[#allocation3 + $0x16] sm:$0x3] %vm639_vm9, %v946_v30  ;;  %v1061_v39 = vadd.f32 %v13430_v27, %v1060_v38  ;;  %v14575_v41 = vpop.f32.mrb[7].mxu1  ;;  %v1584_v61 = vadd.f32 %v1580_v35, %v1513_v60 }
 0x400   :  { %v1088_v42 = vcombine.high %v1066_v33, %v1066_v33  ;;  %v1095_v43 = vrot.slane %v1066_v33, %v17755_v36 }
 0x401   :  { %v1071_v44 = vcombine.high %v1061_v39, %v1061_v39  ;;  %v1078_v45 = vrot.slane %v1061_v39, %v17755_v36  ;;  %v13439_v0 = vmul.f32 -1.442695, %v1584_v61  ;;  %v1833_v39 = vld [vmem:[#allocation3 + $0x32] sm:$0x3] }
 0x402   :  { %v1362_v46 = vld [vmem:[#allocation3 + $0x10] sm:$0x3]  ;;  %v1102_v47 = vrot.slane %v1088_v42, %v17755_v36  ;;  %v1103_v48 = vcombine.high %v1095_v43, %v1095_v43  ;;  %1118 = vst.msk [vmem:[#allocation3 + $0x28] sm:$0x3] %vm639_vm9, %v1095_v43 }
 0x403   :  { %v1433_v49 = vadd.f32 %v1429_v14, %v1362_v46  ;;  %v1085_v50 = vrot.slane %v1071_v44, %v17755_v36  ;;  %v1086_v51 = vcombine.high %v1078_v45, %v1078_v45  ;;  %1114 = vst.msk [vmem:[#allocation3 + $0x20] sm:$0x3] %vm639_vm9, %v1078_v45 }
 0x404   :  { %v1104_v52 = vcombine.high %v1102_v47, %v1102_v47  ;;  %1119 = vst.msk [vmem:[#allocation3 + $0x2a] sm:$0x3] %vm639_vm9, %v1103_v48  ;;  %1120 = vst.msk [vmem:[#allocation3 + $0x2c] sm:$0x3] %vm639_vm9, %v1102_v47  ;;  %v1680_v24 = vld [vmem:[#allocation3 + $0x12] sm:$0x3] }
 0x405   :  { %v13438_v53 = vmul.f32 -1.442695, %v1433_v49  ;;  %v1087_v54 = vcombine.high %v1085_v50, %v1085_v50  ;;  %1115 = vst.msk [vmem:[#allocation3 + $0x22] sm:$0x3] %vm639_vm9, %v1086_v51  ;;  %1116 = vst.msk [vmem:[#allocation3 + $0x24] sm:$0x3] %vm639_vm9, %v1085_v50 }
 0x406   :  { %v1351_v56 = vpop.f32.mrb[8].mxu0  ;;  %1121 = vst.msk [vmem:[#allocation3 + $0x2e] sm:$0x3] %vm639_vm9, %v1104_v52 }
 0x407   :  { %v1355_v57 = vadd.f32 %v1351_v56, %v1282_v55  ;;  %v14542_v58 = vpop.f32.mrb[9].mxu0  ;;  %17028 = vpow2.f32 %v13438_v53  ;;  %1117 = vst.msk [vmem:[#allocation3 + $0x26] sm:$0x3] %vm639_vm9, %v1087_v54 }
 0x409   :  { %v13437_v59 = vmul.f32 -1.442695, %v1355_v57 }
 0x40a   :  { %v1440_v2 = vld [vmem:[#allocation3 + $0x20] sm:$0x3] }
 0x40b   :  { %17030 = vpow2.f32 %v13437_v59 }
 0x40c   :  { %17032 = vpow2.f32 %v13439_v0  ;;  %v1759_v45 = vld [vmem:[#allocation3 + $0x22] sm:$0x3] }
 0x40d   :  { %v1507_v62 = vpop.f32.mrb[10].mxu0 }
 0x40e   :  { %v14564_v63 = vpop.f32.mrb[11].mxu0  ;;  %v1511_v5 = vadd.f32 %v1507_v62, %v1440_v2 }
 0x40f   :  { %v1919_v63 = vld [vmem:[#allocation3 + $0x4] sm:$0x3] }
 0x411   :  { %v17029_v1 = vpop.eup %17028 }
 0x412   :  { %v1437_v4 = vadd.f32 1.0, %v17029_v1  ;;  %v2001_v1 = vld [vmem:[#allocation3 + $0x14] sm:$0x3] }
 0x414   :  { %17034 = vrcp.f32 %v1437_v4 }
 0x415   :  { %v17031_v6 = vpop.eup %17030  ;;  %17036 = vtanh.f32 %v1511_v5 }
 0x416   :  { %v1359_v7 = vadd.f32 1.0, %v17031_v6  ;;  %v17033_v9 = vpop.eup %17032 }
 0x417   :  { %v1588_v15 = vadd.f32 1.0, %v17033_v9 }
 0x418   :  { %17038 = vrcp.f32 %v1359_v7 }
 0x419   :  { %17040 = vrcp.f32 %v1588_v15 }
 0x41e   :  { %v17035_v12 = vpop.eup %17034 }
 0x41f   :  { %v17037_v14 = vpop.eup %17036  ;;  %v1591_v16 = vmul.f32 0.0, %v17035_v12 }
 0x422   :  { %v17039_v3 = vpop.eup %17038 }
 0x423   :  { %v1592_v17 = vmul.f32 %v17039_v3, %v17037_v14  ;;  %v17041_v19 = vpop.eup %17040  ;;  %v2154_v3 = vld [vmem:[#allocation3 + $0x34] sm:$0x3] }
 0x425   :  { %v18028_v8 = vadd.f32 %v1592_v17, %v1591_v16 }
 0x427   :  { %17042 = vtanh.f32 %v18028_v8 }
 0x431   :  { %v17043_v13 = vpop.eup %17042 }
 0x432   :  { %v1595_v20 = vmul.f32 %v17043_v13, %v17041_v19  ;;  %v2080_v19 = vld [vmem:[#allocation3 + $0x24] sm:$0x3] }
 0x434   :  { %1596 = vst.msk [vmem:[#allocation2] sm:$0x3] %vm639_vm9, %v1595_v20  ;;  %14585 = vmatmul.mubr.msk.f32.vlgmr.msra.gmra.mrb[12].mxu0 %vm436_vm6, %v1595_v20  ;;  %14596 = vmatmul.mubr.msk.f32.vlgmr.msra.gmra.mrb[8].mxu1 %vm436_vm6, %v1595_v20 }
 0x435   :  { %16183 = vmatpush3.bf16.msra.mxu0 %v17947_v37  ;;  %16189 = vmatpush3.bf16.msra.mxu1 %v17918_v22 }
 0x436   :  { %16184 = vmatprep.subr.bf16.mxu0 %v17622_v34  ;;  %16190 = vmatprep.subr.bf16.mxu1 %v17622_v34 }
 0x437   :  { %14606 = vmatprep.mubr.msk.f32.mxu0 %vm17623_vm10, %v17618_v11  ;;  %14617 = vmatprep.mubr.msk.f32.mxu1 %vm17623_vm10, %v17618_v11 }
 0x439   :  { %16186 = vmatpush3.bf16.msra.mxu0 %v17954_v40  ;;  %16192 = vmatpush3.bf16.msra.mxu1 %v17924_v26 }
 0x43a   :  { %16193 = vmatprep.subr.bf16.mxu0 %v17622_v34  ;;  %16199 = vmatprep.subr.bf16.mxu1 %v17622_v34 }
 0x43c   :  { %14607 = vmatmul.mubr.msk.f32.vlgmr.msra.gmra.mrb[14].mxu0 %vm436_vm6, %v1595_v20  ;;  %14618 = vmatmul.mubr.msk.f32.vlgmr.msra.gmra.mrb[10].mxu1 %vm436_vm6, %v1595_v20 }
 0x43d   :  { %16195 = vmatpush3.bf16.msra.mxu0 %v17929_v29  ;;  %16201 = vmatpush3.bf16.msra.mxu1 %v17903_v10 }
 0x43e   :  { %16196 = vmatprep.subr.bf16.mxu0 %v17622_v34  ;;  %16202 = vmatprep.subr.bf16.mxu1 %v17622_v34 }
 0x43f   :  { %14628 = vmatprep.mubr.msk.f32.mxu0 %vm17623_vm10, %v17618_v11  ;;  %14639 = vmatprep.mubr.msk.f32.mxu1 %vm17623_vm10, %v17618_v11 }
 0x441   :  { %16198 = vmatpush3.bf16.msra.mxu0 %v17937_v32  ;;  %16204 = vmatpush3.bf16.msra.mxu1 %v17910_v18 }
 0x442   :  { %16205 = vmatprep.subr.bf16.mxu0 %v17622_v34  ;;  %16211 = vmatprep.subr.bf16.mxu1 %v17622_v34 }
 0x507   :  { %v1668_v23 = vpop.f32.mrb[12].mxu0  ;;  %v1747_v25 = vpop.f32.mrb[8].mxu1 }
 0x508   :  { %v1672_v27 = vadd.f32 %v1668_v23, %v1598_v21  ;;  %v1751_v28 = vadd.f32 %v1747_v25, %v1680_v24  ;;  %v14586_v30 = vpop.f32.mrb[13].mxu0  ;;  %v14597_v31 = vpop.f32.mrb[9].mxu1 }
 0x50a   :  { %v13441_v33 = vmul.f32 -1.442695, %v1672_v27  ;;  %v13443_v35 = vmul.f32 -1.442695, %v1751_v28 }
 0x50c   :  { %17044 = vpow2.f32 %v13441_v33 }
 0x50d   :  { %17046 = vpow2.f32 %v13443_v35 }
 0x50f   :  { %v1826_v38 = vpop.f32.mrb[14].mxu0  ;;  %v1900_v41 = vpop.f32.mrb[10].mxu1 }
 0x510   :  { %v1904_v42 = vadd.f32 %v1900_v41, %v1833_v39  ;;  %v14608_v43 = vpop.f32.mrb[15].mxu0  ;;  %v14619_v44 = vpop.f32.mrb[11].mxu1  ;;  %v1830_v47 = vadd.f32 %v1826_v38, %v1759_v45 }
 0x511   :  { %v2240_v44 = vld [vmem:[#allocation3 + $0x6] sm:$0x3] }
 0x512   :  { %v13446_v46 = vmul.f32 -1.442695, %v1904_v42 }
 0x514   :  { %17048 = vpow2.f32 %v13446_v46  ;;  %v2322_v46 = vld [vmem:[#allocation3 + $0x16] sm:$0x3] }
 0x515   :  { %17050 = vtanh.f32 %v1830_v47 }
 0x516   :  { %v17045_v48 = vpop.eup %17044 }
 0x517   :  { %v17047_v49 = vpop.eup %17046  ;;  %v1676_v50 = vadd.f32 1.0, %v17045_v48 }
 0x518   :  { %v1755_v51 = vadd.f32 1.0, %v17047_v49 }
 0x519   :  { %17052 = vrcp.f32 %v1676_v50 }
 0x51a   :  { %17054 = vrcp.f32 %v1755_v51 }
 0x51e   :  { %v17049_v52 = vpop.eup %17048 }
 0x51f   :  { %v17051_v53 = vpop.eup %17050  ;;  %v1908_v57 = vadd.f32 1.0, %v17049_v52 }
 0x521   :  { %17056 = vrcp.f32 %v1908_v57 }
 0x523   :  { %v17053_v54 = vpop.eup %17052 }
 0x524   :  { %v17055_v55 = vpop.eup %17054  ;;  %v1912_v56 = vmul.f32 %v17053_v54, %v17051_v53 }
 0x525   :  { %v1911_v58 = vmul.f32 %v17055_v55, %v18028_v8  ;;  %v2475_v55 = vld [vmem:[#allocation3 + $0x36] sm:$0x3] }
 0x527   :  { %v18061_v59 = vadd.f32 %v1912_v56, %v1911_v58 }
 0x529   :  { %17058 = vtanh.f32 %v18061_v59 }
 0x52b   :  { %v17057_v60 = vpop.eup %17056 }
 0x533   :  { %v17059_v61 = vpop.eup %17058 }
 0x534   :  { %v1915_v62 = vmul.f32 %v17059_v61, %v17057_v60  ;;  %v2401_v60 = vld [vmem:[#allocation3 + $0x26] sm:$0x3] }
 0x536   :  { %1917 = vst.msk [vmem:[#allocation2 + $0x2] sm:$0x3] %vm639_vm9, %v1915_v62  ;;  %14629 = vmatmul.mubr.msk.f32.vlgmr.msra.gmra.mrb[16].mxu0 %vm436_vm6, %v1915_v62  ;;  %14640 = vmatmul.mubr.msk.f32.vlgmr.msra.gmra.mrb[12].mxu1 %vm436_vm6, %v1915_v62 }
 0x537   :  { %16207 = vmatpush3.bf16.msra.mxu0 %v17947_v37  ;;  %16213 = vmatpush3.bf16.msra.mxu1 %v17918_v22 }
 0x538   :  { %16208 = vmatprep.subr.bf16.mxu0 %v17622_v34  ;;  %16214 = vmatprep.subr.bf16.mxu1 %v17622_v34 }
 0x539   :  { %14650 = vmatprep.mubr.msk.f32.mxu0 %vm17623_vm10, %v17618_v11  ;;  %14661 = vmatprep.mubr.msk.f32.mxu1 %vm17623_vm10, %v17618_v11 }
 0x53b   :  { %16210 = vmatpush3.bf16.msra.mxu0 %v17954_v40  ;;  %16216 = vmatpush3.bf16.msra.mxu1 %v17924_v26 }
 0x53c   :  { %16217 = vmatprep.subr.bf16.mxu0 %v17622_v34  ;;  %16223 = vmatprep.subr.bf16.mxu1 %v17622_v34 }
 0x53e   :  { %14651 = vmatmul.mubr.msk.f32.vlgmr.msra.gmra.mrb[18].mxu0 %vm436_vm6, %v1915_v62  ;;  %14662 = vmatmul.mubr.msk.f32.vlgmr.msra.gmra.mrb[14].mxu1 %vm436_vm6, %v1915_v62 }
 0x53f   :  { %16219 = vmatpush3.bf16.msra.mxu0 %v17929_v29  ;;  %16225 = vmatpush3.bf16.msra.mxu1 %v17903_v10 }
 0x540   :  { %16220 = vmatprep.subr.bf16.mxu0 %v17622_v34  ;;  %16226 = vmatprep.subr.bf16.mxu1 %v17622_v34 }
 0x541   :  { %14672 = vmatprep.mubr.msk.f32.mxu0 %vm17623_vm10, %v17618_v11  ;;  %14683 = vmatprep.mubr.msk.f32.mxu1 %vm17623_vm10, %v17618_v11 }
 0x543   :  { %16222 = vmatpush3.bf16.msra.mxu0 %v17937_v32  ;;  %16228 = vmatpush3.bf16.msra.mxu1 %v17910_v18 }
 0x544   :  { %16229 = vmatprep.subr.bf16.mxu0 %v17622_v34  ;;  %16235 = vmatprep.subr.bf16.mxu1 %v17622_v34 }
 0x609   :  { %v1989_v0 = vpop.f32.mrb[16].mxu0  ;;  %v2068_v2 = vpop.f32.mrb[12].mxu1 }
 0x60a   :  { %v1993_v4 = vadd.f32 %v1989_v0, %v1919_v63  ;;  %v2072_v5 = vadd.f32 %v2068_v2, %v2001_v1  ;;  %v14630_v6 = vpop.f32.mrb[17].mxu0  ;;  %v14641_v7 = vpop.f32.mrb[13].mxu1 }
 0x60c   :  { %v13448_v9 = vmul.f32 -1.442695, %v1993_v4  ;;  %v13450_v12 = vmul.f32 -1.442695, %v2072_v5 }
 0x60e   :  { %17060 = vpow2.f32 %v13448_v9 }
 0x60f   :  { %17062 = vpow2.f32 %v13450_v12 }
 0x611   :  { %v2147_v14 = vpop.f32.mrb[18].mxu0  ;;  %v2221_v15 = vpop.f32.mrb[14].mxu1 }
 0x612   :  { %v2225_v16 = vadd.f32 %v2221_v15, %v2154_v3  ;;  %v14652_v17 = vpop.f32.mrb[19].mxu0  ;;  %v14663_v8 = vpop.f32.mrb[15].mxu1  ;;  %v2151_v20 = vadd.f32 %v2147_v14, %v2080_v19 }
 0x613   :  { %v2561_v8 = vld [vmem:[#allocation3 + $0x8] sm:$0x3] }
 0x614   :  { %v13453_v13 = vmul.f32 -1.442695, %v2225_v16 }
 0x616   :  { %17064 = vpow2.f32 %v13453_v13  ;;  %v2643_v13 = vld [vmem:[#allocation3 + $0x18] sm:$0x3] }
 0x617   :  { %17066 = vtanh.f32 %v2151_v20 }
 0x618   :  { %v17061_v21 = vpop.eup %17060 }
 0x619   :  { %v17063_v23 = vpop.eup %17062  ;;  %v1997_v24 = vadd.f32 1.0, %v17061_v21 }
 0x61a   :  { %v2076_v25 = vadd.f32 1.0, %v17063_v23 }
 0x61b   :  { %17068 = vrcp.f32 %v1997_v24 }
 0x61c   :  { %17070 = vrcp.f32 %v2076_v25 }
 0x620   :  { %v17065_v27 = vpop.eup %17064 }
 0x621   :  { %v17067_v28 = vpop.eup %17066  ;;  %v2229_v35 = vadd.f32 1.0, %v17065_v27 }
 0x623   :  { %17072 = vrcp.f32 %v2229_v35 }
 0x625   :  { %v17069_v30 = vpop.eup %17068 }
 0x626   :  { %v17071_v31 = vpop.eup %17070  ;;  %v2233_v33 = vmul.f32 %v17069_v30, %v17067_v28 }
 0x627   :  { %v2232_v38 = vmul.f32 %v17071_v31, %v18061_v59  ;;  %v2796_v31 = vld [vmem:[#allocation3 + $0x38] sm:$0x3] }
 0x629   :  { %v18094_v39 = vadd.f32 %v2233_v33, %v2232_v38 }
 0x62b   :  { %17074 = vtanh.f32 %v18094_v39 }
 0x62d   :  { %v17073_v41 = vpop.eup %17072 }
 0x635   :  { %v17075_v42 = vpop.eup %17074 }
 0x636   :  { %v2236_v43 = vmul.f32 %v17075_v42, %v17073_v41  ;;  %v2722_v41 = vld [vmem:[#allocation3 + $0x28] sm:$0x3] }
 0x638   :  { %2238 = vst.msk [vmem:[#allocation2 + $0x4] sm:$0x3] %vm639_vm9, %v2236_v43  ;;  %14673 = vmatmul.mubr.msk.f32.vlgmr.msra.gmra.mrb[20].mxu0 %vm436_vm6, %v2236_v43  ;;  %14684 = vmatmul.mubr.msk.f32.vlgmr.msra.gmra.mrb[16].mxu1 %vm436_vm6, %v2236_v43 }
 0x639   :  { %16231 = vmatpush3.bf16.msra.mxu0 %v17947_v37  ;;  %16237 = vmatpush3.bf16.msra.mxu1 %v17918_v22 }
 0x63a   :  { %16232 = vmatprep.subr.bf16.mxu0 %v17622_v34  ;;  %16238 = vmatprep.subr.bf16.mxu1 %v17622_v34 }
 0x63b   :  { %14694 = vmatprep.mubr.msk.f32.mxu0 %vm17623_vm10, %v17618_v11  ;;  %14705 = vmatprep.mubr.msk.f32.mxu1 %vm17623_vm10, %v17618_v11 }
 0x63d   :  { %16234 = vmatpush3.bf16.msra.mxu0 %v17954_v40  ;;  %16240 = vmatpush3.bf16.msra.mxu1 %v17924_v26 }
 0x63e   :  { %16241 = vmatprep.subr.bf16.mxu0 %v17622_v34  ;;  %16247 = vmatprep.subr.bf16.mxu1 %v17622_v34 }
 0x640   :  { %14695 = vmatmul.mubr.msk.f32.vlgmr.msra.gmra.mrb[22].mxu0 %vm436_vm6, %v2236_v43  ;;  %14706 = vmatmul.mubr.msk.f32.vlgmr.msra.gmra.mrb[18].mxu1 %vm436_vm6, %v2236_v43 }
 0x641   :  { %16243 = vmatpush3.bf16.msra.mxu0 %v17929_v29  ;;  %16249 = vmatpush3.bf16.msra.mxu1 %v17903_v10 }
 0x642   :  { %16244 = vmatprep.subr.bf16.mxu0 %v17622_v34  ;;  %16250 = vmatprep.subr.bf16.mxu1 %v17622_v34 }
 0x643   :  { %14716 = vmatprep.mubr.msk.f32.mxu0 %vm17623_vm10, %v17618_v11  ;;  %14727 = vmatprep.mubr.msk.f32.mxu1 %vm17623_vm10, %v17618_v11 }
 0x645   :  { %16246 = vmatpush3.bf16.msra.mxu0 %v17937_v32  ;;  %16252 = vmatpush3.bf16.msra.mxu1 %v17910_v18 }
 0x646   :  { %16253 = vmatprep.subr.bf16.mxu0 %v17622_v34  ;;  %16259 = vmatprep.subr.bf16.mxu1 %v17622_v34 }
 0x70b   :  { %v2310_v45 = vpop.f32.mrb[20].mxu0  ;;  %v2389_v47 = vpop.f32.mrb[16].mxu1 }
 0x70c   :  { %v2314_v48 = vadd.f32 %v2310_v45, %v2240_v44  ;;  %v2393_v49 = vadd.f32 %v2389_v47, %v2322_v46  ;;  %v14674_v50 = vpop.f32.mrb[21].mxu0  ;;  %v14685_v51 = vpop.f32.mrb[17].mxu1 }
 0x70e   :  { %v13455_v52 = vmul.f32 -1.442695, %v2314_v48  ;;  %v13457_v53 = vmul.f32 -1.442695, %v2393_v49 }
 0x710   :  { %17076 = vpow2.f32 %v13455_v52 }
 0x711   :  { %17078 = vpow2.f32 %v13457_v53 }
 0x713   :  { %v2468_v54 = vpop.f32.mrb[22].mxu0  ;;  %v2542_v56 = vpop.f32.mrb[18].mxu1 }
 0x714   :  { %v2546_v57 = vadd.f32 %v2542_v56, %v2475_v55  ;;  %v14696_v58 = vpop.f32.mrb[23].mxu0  ;;  %v14707_v59 = vpop.f32.mrb[19].mxu1  ;;  %v2472_v62 = vadd.f32 %v2468_v54, %v2401_v60 }
 0x715   :  { %v2882_v59 = vld [vmem:[#allocation3 + $0xa] sm:$0x3] }
 0x716   :  { %v13460_v61 = vmul.f32 -1.442695, %v2546_v57 }
 0x718   :  { %17080 = vpow2.f32 %v13460_v61  ;;  %v2964_v61 = vld [vmem:[#allocation3 + $0x1a] sm:$0x3] }
 0x719   :  { %17082 = vtanh.f32 %v2472_v62 }
 0x71a   :  { %v17077_v63 = vpop.eup %17076 }
 0x71b   :  { %v17079_v0 = vpop.eup %17078  ;;  %v2318_v1 = vadd.f32 1.0, %v17077_v63 }
 0x71c   :  { %v2397_v2 = vadd.f32 1.0, %v17079_v0 }
 0x71d   :  { %17084 = vrcp.f32 %v2318_v1 }
 0x71e   :  { %17086 = vrcp.f32 %v2397_v2 }
 0x722   :  { %v17081_v4 = vpop.eup %17080 }
 0x723   :  { %v17083_v5 = vpop.eup %17082  ;;  %v2550_v12 = vadd.f32 1.0, %v17081_v4 }
 0x725   :  { %17088 = vrcp.f32 %v2550_v12 }
 0x727   :  { %v17085_v6 = vpop.eup %17084 }
 0x728   :  { %v17087_v7 = vpop.eup %17086  ;;  %v2554_v9 = vmul.f32 %v17085_v6, %v17083_v5 }
 0x729   :  { %v2553_v14 = vmul.f32 %v17087_v7, %v18094_v39  ;;  %v3117_v7 = vld [vmem:[#allocation3 + $0x3a] sm:$0x3] }
 0x72b   :  { %v18127_v3 = vadd.f32 %v2554_v9, %v2553_v14 }
 0x72d   :  { %17090 = vtanh.f32 %v18127_v3 }
 0x72f   :  { %v17089_v15 = vpop.eup %17088 }
 0x737   :  { %v17091_v16 = vpop.eup %17090 }
 0x738   :  { %v2557_v17 = vmul.f32 %v17091_v16, %v17089_v15  ;;  %v3043_v15 = vld [vmem:[#allocation3 + $0x2a] sm:$0x3] }
 0x73a   :  { %2559 = vst.msk [vmem:[#allocation2 + $0x6] sm:$0x3] %vm639_vm9, %v2557_v17  ;;  %14717 = vmatmul.mubr.msk.f32.vlgmr.msra.gmra.mrb[24].mxu0 %vm436_vm6, %v2557_v17  ;;  %14728 = vmatmul.mubr.msk.f32.vlgmr.msra.gmra.mrb[20].mxu1 %vm436_vm6, %v2557_v17 }
 0x73b   :  { %16255 = vmatpush3.bf16.msra.mxu0 %v17947_v37  ;;  %16261 = vmatpush3.bf16.msra.mxu1 %v17918_v22 }
 0x73c   :  { %16256 = vmatprep.subr.bf16.mxu0 %v17622_v34  ;;  %16262 = vmatprep.subr.bf16.mxu1 %v17622_v34 }
 0x73d   :  { %14738 = vmatprep.mubr.msk.f32.mxu0 %vm17623_vm10, %v17618_v11  ;;  %14749 = vmatprep.mubr.msk.f32.mxu1 %vm17623_vm10, %v17618_v11 }
 0x73f   :  { %16258 = vmatpush3.bf16.msra.mxu0 %v17954_v40  ;;  %16264 = vmatpush3.bf16.msra.mxu1 %v17924_v26 }
 0x740   :  { %16265 = vmatprep.subr.bf16.mxu0 %v17622_v34  ;;  %16271 = vmatprep.subr.bf16.mxu1 %v17622_v34 }
 0x742   :  { %14739 = vmatmul.mubr.msk.f32.vlgmr.msra.gmra.mrb[26].mxu0 %vm436_vm6, %v2557_v17  ;;  %14750 = vmatmul.mubr.msk.f32.vlgmr.msra.gmra.mrb[22].mxu1 %vm436_vm6, %v2557_v17 }
 0x743   :  { %16267 = vmatpush3.bf16.msra.mxu0 %v17929_v29  ;;  %16273 = vmatpush3.bf16.msra.mxu1 %v17903_v10 }
 0x744   :  { %16268 = vmatprep.subr.bf16.mxu0 %v17622_v34  ;;  %16274 = vmatprep.subr.bf16.mxu1 %v17622_v34 }
 0x745   :  { %14760 = vmatprep.mubr.msk.f32.mxu0 %vm17623_vm10, %v17618_v11  ;;  %14771 = vmatprep.mubr.msk.f32.mxu1 %vm17623_vm10, %v17618_v11 }
 0x747   :  { %16270 = vmatpush3.bf16.msra.mxu0 %v17937_v32  ;;  %16276 = vmatpush3.bf16.msra.mxu1 %v17910_v18 }
 0x748   :  { %16277 = vmatprep.subr.bf16.mxu0 %v17622_v34  ;;  %16283 = vmatprep.subr.bf16.mxu1 %v17622_v34 }
 0x80d   :  { %v2631_v19 = vpop.f32.mrb[24].mxu0  ;;  %v2710_v20 = vpop.f32.mrb[20].mxu1 }
 0x80e   :  { %v2635_v21 = vadd.f32 %v2631_v19, %v2561_v8  ;;  %v2714_v23 = vadd.f32 %v2710_v20, %v2643_v13  ;;  %v14718_v24 = vpop.f32.mrb[25].mxu0  ;;  %v14729_v25 = vpop.f32.mrb[21].mxu1 }
 0x810   :  { %v13462_v27 = vmul.f32 -1.442695, %v2635_v21  ;;  %v13464_v28 = vmul.f32 -1.442695, %v2714_v23 }
 0x812   :  { %17092 = vpow2.f32 %v13462_v27 }
 0x813   :  { %17094 = vpow2.f32 %v13464_v28 }
 0x815   :  { %v2789_v30 = vpop.f32.mrb[26].mxu0  ;;  %v2863_v33 = vpop.f32.mrb[22].mxu1 }
 0x816   :  { %v2867_v35 = vadd.f32 %v2863_v33, %v2796_v31  ;;  %v14740_v38 = vpop.f32.mrb[27].mxu0  ;;  %v14751_v39 = vpop.f32.mrb[23].mxu1  ;;  %v2793_v43 = vadd.f32 %v2789_v30, %v2722_v41 }
 0x817   :  { %v3285_v39 = vld [vmem:[#allocation3 + $0x1c] sm:$0x3] }
 0x818   :  { %v13467_v42 = vmul.f32 -1.442695, %v2867_v35 }
 0x81a   :  { %17096 = vpow2.f32 %v13467_v42 }
 0x81b   :  { %17098 = vtanh.f32 %v2793_v43 }
 0x81c   :  { %v17093_v44 = vpop.eup %17092 }
 0x81d   :  { %v17095_v45 = vpop.eup %17094  ;;  %v2639_v46 = vadd.f32 1.0, %v17093_v44 }
 0x81e   :  { %v2718_v47 = vadd.f32 1.0, %v17095_v45 }
 0x81f   :  { %17100 = vrcp.f32 %v2639_v46 }
 0x820   :  { %17102 = vrcp.f32 %v2718_v47 }
 0x824   :  { %v17097_v48 = vpop.eup %17096 }
 0x825   :  { %v17099_v49 = vpop.eup %17098  ;;  %v2871_v53 = vadd.f32 1.0, %v17097_v48 }
 0x827   :  { %17104 = vrcp.f32 %v2871_v53 }
 0x829   :  { %v17101_v50 = vpop.eup %17100 }
 0x82a   :  { %v17103_v51 = vpop.eup %17102  ;;  %v2875_v52 = vmul.f32 %v17101_v50, %v17099_v49 }
 0x82b   :  { %v2874_v54 = vmul.f32 %v17103_v51, %v18127_v3 }
 0x82d   :  { %v18160_v55 = vadd.f32 %v2875_v52, %v2874_v54  ;;  %v3364_v52 = vld [vmem:[#allocation3 + $0x2c] sm:$0x3] }
 0x82f   :  { %17106 = vtanh.f32 %v18160_v55 }
 0x831   :  { %v17105_v56 = vpop.eup %17104 }
 0x839   :  { %v17107_v57 = vpop.eup %17106 }
 0x83a   :  { %v2878_v58 = vmul.f32 %v17107_v57, %v17105_v56 }
 0x83c   :  { %2880 = vst.msk [vmem:[#allocation2 + $0x8] sm:$0x3] %vm639_vm9, %v2878_v58  ;;  %14761 = vmatmul.mubr.msk.f32.vlgmr.msra.gmra.mrb[28].mxu0 %vm436_vm6, %v2878_v58  ;;  %14772 = vmatmul.mubr.msk.f32.vlgmr.msra.gmra.mrb[24].mxu1 %vm436_vm6, %v2878_v58 }
 0x83d   :  { %16279 = vmatpush3.bf16.msra.mxu0 %v17947_v37  ;;  %16285 = vmatpush3.bf16.msra.mxu1 %v17918_v22 }
 0x83e   :  { %16280 = vmatprep.subr.bf16.mxu0 %v17622_v34  ;;  %16286 = vmatprep.subr.bf16.mxu1 %v17622_v34 }
 0x83f   :  { %14782 = vmatprep.mubr.msk.f32.mxu0 %vm17623_vm10, %v17618_v11  ;;  %14793 = vmatprep.mubr.msk.f32.mxu1 %vm17623_vm10, %v17618_v11 }
 0x841   :  { %16282 = vmatpush3.bf16.msra.mxu0 %v17954_v40  ;;  %16288 = vmatpush3.bf16.msra.mxu1 %v17924_v26 }
 0x842   :  { %16289 = vmatprep.subr.bf16.mxu0 %v17622_v34  ;;  %16295 = vmatprep.subr.bf16.mxu1 %v17622_v34 }
 0x844   :  { %14783 = vmatmul.mubr.msk.f32.vlgmr.msra.gmra.mrb[30].mxu0 %vm436_vm6, %v2878_v58  ;;  %14794 = vmatmul.mubr.msk.f32.vlgmr.msra.gmra.mrb[26].mxu1 %vm436_vm6, %v2878_v58 }
 0x845   :  { %16291 = vmatpush3.bf16.msra.mxu0 %v17929_v29  ;;  %16297 = vmatpush3.bf16.msra.mxu1 %v17903_v10 }
 0x846   :  { %16292 = vmatprep.subr.bf16.mxu0 %v17622_v34  ;;  %16298 = vmatprep.subr.bf16.mxu1 %v17622_v34 }
 0x847   :  { %14804 = vmatprep.mubr.msk.f32.mxu0 %vm17623_vm10, %v17618_v11  ;;  %14815 = vmatprep.mubr.msk.f32.mxu1 %vm17623_vm10, %v17618_v11 }
 0x849   :  { %16294 = vmatpush3.bf16.msra.mxu0 %v17937_v32  ;;  %16300 = vmatpush3.bf16.msra.mxu1 %v17910_v18 }
 0x84a   :  { %16301 = vmatprep.subr.bf16.mxu0 %v17622_v34  ;;  %16307 = vmatprep.subr.bf16.mxu1 %v17622_v34 }
 0x90f   :  { %v2952_v60 = vpop.f32.mrb[28].mxu0  ;;  %v3031_v62 = vpop.f32.mrb[24].mxu1 }
 0x910   :  { %v2956_v63 = vadd.f32 %v2952_v60, %v2882_v59  ;;  %v3035_v0 = vadd.f32 %v3031_v62, %v2964_v61  ;;  %v14762_v1 = vpop.f32.mrb[29].mxu0  ;;  %v14773_v2 = vpop.f32.mrb[25].mxu1 }
 0x912   :  { %v13469_v4 = vmul.f32 -1.442695, %v2956_v63  ;;  %v13471_v5 = vmul.f32 -1.442695, %v3035_v0 }
 0x914   :  { %17108 = vpow2.f32 %v13469_v4 }
 0x915   :  { %17110 = vpow2.f32 %v13471_v5  ;;  %v3847_v5 = vld [vmem:[#allocation2 + $0x6] sm:$0x3] }
 0x917   :  { %v3110_v6 = vpop.f32.mrb[30].mxu0  ;;  %v3184_v9 = vpop.f32.mrb[26].mxu1 }
 0x918   :  { %v3188_v12 = vadd.f32 %v3184_v9, %v3117_v7  ;;  %v14784_v14 = vpop.f32.mrb[31].mxu0  ;;  %v14795_v3 = vpop.f32.mrb[27].mxu1  ;;  %v3114_v17 = vadd.f32 %v3110_v6, %v3043_v15  ;;  %v3845_v9 = vld [vmem:[#allocation2 + $0x2] sm:$0x3] }
 0x919   :  { %v3844_v3 = vld [vmem:[#allocation2] sm:$0x3] }
 0x91a   :  { %v13474_v16 = vmul.f32 -1.442695, %v3188_v12  ;;  %v3846_v12 = vld [vmem:[#allocation2 + $0x4] sm:$0x3]  ;;  %v3873_v15 = vcombine.low %v3844_v3, %v3845_v9 }
 0x91b   :  { %v3874_v14 = vcombine.low %v3846_v12, %v3847_v5  ;;  %v3848_v12 = vld [vmem:[#allocation2 + $0x8] sm:$0x3] }
 0x91c   :  { %17112 = vpow2.f32 %v13474_v16 }
 0x91d   :  { %17114 = vtanh.f32 %v3114_v17  ;;  %v3888_v16 = vrot.slane %v3874_v14, %v17755_v36  ;;  %v3853_v17 = vld [vmem:[#allocation4 + $0x80] sm:$0xff] }
 0x91e   :  { %v17109_v8 = vpop.eup %17108 }
 0x91f   :  { %v17111_v19 = vpop.eup %17110  ;;  %v2960_v13 = vadd.f32 1.0, %v17109_v8  ;;  %v3854_v8 = vld [vmem:[#allocation4 + $0x88] sm:$0xff] }
 0x920   :  { %v3039_v20 = vadd.f32 1.0, %v17111_v19  ;;  %v4039_v19 = vld [vmem:[#allocation4 + $0xa0] sm:$0xff] }
 0x921   :  { %17116 = vrcp.f32 %v2960_v13  ;;  %v4040_v13 = vld [vmem:[#allocation4 + $0xa8] sm:$0xff] }
 0x922   :  { %17118 = vrcp.f32 %v3039_v20  ;;  %v3856_v20 = vld [vmem:[#allocation4 + $0x98] sm:$0xff] }
 0x926   :  { %v17113_v21 = vpop.eup %17112 }
 0x927   :  { %v17115_v23 = vpop.eup %17114  ;;  %v3192_v28 = vadd.f32 1.0, %v17113_v21  ;;  %v16345_v21 = vpack.c.bf16 %v4040_v13, %v4039_v19  ;;  %v4321_v19 = vld [vmem:[#allocation4 + $0xf0] sm:$0xff] }
 0x929   :  { %17120 = vrcp.f32 %v3192_v28 }
 0x92b   :  { %v17117_v24 = vpop.eup %17116 }
 0x92c   :  { %v17119_v25 = vpop.eup %17118  ;;  %v3196_v27 = vmul.f32 %v17117_v24, %v17115_v23  ;;  %v4041_v24 = vld [vmem:[#allocation4 + $0xb0] sm:$0xff] }
 0x92d   :  { %v3195_v30 = vmul.f32 %v17119_v25, %v18160_v55  ;;  %v4042_v25 = vld [vmem:[#allocation4 + $0xb8] sm:$0xff] }
 0x92e   :  { %v16349_v28 = vpack.c.bf16 %v4042_v25, %v4041_v24  ;;  %v4464_v24 = vld [vmem:[#allocation7 + $0xa0] sm:$0xff]  ;;  %v4465_v25 = vld [vmem:[#allocation7 + $0xa8] sm:$0xff] }
 0x92f   :  { %v18193_v31 = vadd.f32 %v3196_v27, %v3195_v30  ;;  %v4179_v27 = vld [vmem:[#allocation4 + $0xc0] sm:$0xff]  ;;  %v4180_v30 = vld [vmem:[#allocation4 + $0xc8] sm:$0xff] }
 0x931   :  { %17122 = vtanh.f32 %v18193_v31 }
 0x933   :  { %v17121_v33 = vpop.eup %17120 }
 0x93b   :  { %v17123_v35 = vpop.eup %17122 }
 0x93c   :  { %v3199_v38 = vmul.f32 %v17123_v35, %v17121_v33  ;;  %v4320_v33 = vld [vmem:[#allocation4 + $0xe8] sm:$0xff]  ;;  %v18252_v35 = vpack.c.bf16 %v4180_v30, %v4179_v27  ;;  %v4461_v30 = vld [vmem:[#allocation7 + $0x90] sm:$0xff] }
 0x93e   :  { %3201 = vst.msk [vmem:[#allocation2 + $0xa] sm:$0x3] %vm639_vm9, %v3199_v38  ;;  %14805 = vmatmul.mubr.msk.f32.vlgmr.msra.gmra.mrb[32].mxu0 %vm436_vm6, %v3199_v38  ;;  %14816 = vmatmul.mubr.msk.f32.vlgmr.msra.gmra.mrb[28].mxu1 %vm436_vm6, %v3199_v38 }
 0x93f   :  { %16303 = vmatpush3.bf16.msra.mxu0 %v17947_v37  ;;  %16309 = vmatpush3.bf16.msra.mxu1 %v17918_v22 }
 0x940   :  { %16304 = vmatprep.subr.bf16.mxu0 %v17622_v34  ;;  %16310 = vmatprep.subr.bf16.mxu1 %v17622_v34 }
 0x941   :  { %14826 = vmatprep.mubr.msk.f32.mxu0 %vm17623_vm10, %v17618_v11  ;;  %14837 = vmatprep.mubr.msk.f32.mxu1 %vm17623_vm10, %v17618_v11 }
 0x943   :  { %16306 = vmatpush3.bf16.msra.mxu0 %v17954_v40  ;;  %16312 = vmatpush3.bf16.msra.mxu1 %v17924_v26 }
 0x944   :  { %16313 = vmatprep.subr.bf16.mxu0 %v17622_v34  ;;  %16319 = vmatprep.subr.bf16.mxu1 %v17622_v34 }
 0x945   :  { %v3849_v9 = vld [vmem:[#allocation2 + $0xa] sm:$0x3] }
 0x946   :  { %14827 = vmatmul.mubr.msk.f32.vlgmr.msra.gmra.mrb[34].mxu0 %vm436_vm6, %v3199_v38  ;;  %14838 = vmatmul.mubr.msk.f32.vlgmr.msra.gmra.mrb[30].mxu1 %vm436_vm6, %v3199_v38  ;;  %v3890_v14 = vcombine.low %v3848_v12, %v3849_v9 }
 0x947   :  { %16315 = vmatpush3.bf16.msra.mxu0 %v17929_v29  ;;  %16321 = vmatpush3.bf16.msra.mxu1 %v17903_v10  ;;  %v3203_v29 = vld [vmem:[#allocation3 + $0xc] sm:$0x3] }
 0x948   :  { %16316 = vmatprep.subr.bf16.mxu0 %v17622_v34  ;;  %16322 = vmatprep.subr.bf16.mxu1 %v17622_v34 }
 0x949   :  { %14848 = vmatprep.mubr.msk.f32.mxu0 %vm17623_vm10, %v17618_v11  ;;  %14859 = vmatprep.mubr.msk.f32.mxu1 %vm17623_vm10, %v17618_v11 }
 0x94b   :  { %16318 = vmatpush3.bf16.msra.mxu0 %v17937_v32  ;;  %16324 = vmatpush3.bf16.msra.mxu1 %v17910_v18  ;;  %v3438_v32 = vld [vmem:[#allocation3 + $0x3c] sm:$0x3] }
 0x94c   :  { %16325 = vmatprep.subr.bf16.mxu0 %v17622_v34  ;;  %16331 = vmatprep.subr.bf16.mxu1 %v17622_v34 }
 0xa11   :  { %v3273_v10 = vpop.f32.mrb[32].mxu0  ;;  %v3352_v41 = vpop.f32.mrb[28].mxu1 }
 0xa12   :  { %v3277_v42 = vadd.f32 %v3273_v10, %v3203_v29  ;;  %v3356_v43 = vadd.f32 %v3352_v41, %v3285_v39  ;;  %v14806_v44 = vpop.f32.mrb[33].mxu0  ;;  %v14817_v45 = vpop.f32.mrb[29].mxu1  ;;  %v3524_v29 = vld [vmem:[#allocation3 + $0xe] sm:$0x3]  ;;  %v3606_v39 = vld [vmem:[#allocation3 + $0x1e] sm:$0x3] }
 0xa14   :  { %v13476_v46 = vmul.f32 -1.442695, %v3277_v42  ;;  %v13478_v47 = vmul.f32 -1.442695, %v3356_v43 }
 0xa16   :  { %17124 = vpow2.f32 %v13476_v46 }
 0xa17   :  { %17126 = vpow2.f32 %v13478_v47 }
 0xa19   :  { %v3431_v48 = vpop.f32.mrb[34].mxu0  ;;  %v3505_v49 = vpop.f32.mrb[30].mxu1 }
 0xa1a   :  { %v3509_v18 = vadd.f32 %v3505_v49, %v3438_v32  ;;  %v14828_v50 = vpop.f32.mrb[35].mxu0  ;;  %v14839_v51 = vpop.f32.mrb[31].mxu1  ;;  %v3435_v54 = vadd.f32 %v3431_v48, %v3364_v52  ;;  %v3759_v32 = vld [vmem:[#allocation3 + $0x3e] sm:$0x3]  ;;  %v3685_v52 = vld [vmem:[#allocation3 + $0x2e] sm:$0x3] }
 0xa1c   :  { %v13481_v53 = vmul.f32 -1.442695, %v3509_v18 }
 0xa1e   :  { %17128 = vpow2.f32 %v13481_v53 }
 0xa1f   :  { %17130 = vtanh.f32 %v3435_v54 }
 0xa20   :  { %v17125_v55 = vpop.eup %17124 }
 0xa21   :  { %v17127_v56 = vpop.eup %17126  ;;  %v3281_v57 = vadd.f32 1.0, %v17125_v55 }
 0xa22   :  { %v3360_v58 = vadd.f32 1.0, %v17127_v56 }
 0xa23   :  { %17132 = vrcp.f32 %v3281_v57 }
 0xa24   :  { %17134 = vrcp.f32 %v3360_v58 }
 0xa28   :  { %v17129_v59 = vpop.eup %17128 }
 0xa29   :  { %v17131_v60 = vpop.eup %17130  ;;  %v3513_v0 = vadd.f32 1.0, %v17129_v59 }
 0xa2b   :  { %17136 = vrcp.f32 %v3513_v0 }
 0xa2d   :  { %v17133_v61 = vpop.eup %17132 }
 0xa2e   :  { %v17135_v62 = vpop.eup %17134  ;;  %v3517_v63 = vmul.f32 %v17133_v61, %v17131_v60 }
 0xa2f   :  { %v3516_v1 = vmul.f32 %v17135_v62, %v18193_v31  ;;  %v4319_v31 = vld [vmem:[#allocation4 + $0xe0] sm:$0xff] }
 0xa30   :  { %v18254_v38 = vpack.c.bf16 %v4320_v33, %v4319_v31  ;;  %v4462_v31 = vld [vmem:[#allocation7 + $0x98] sm:$0xff]  ;;  %v4466_v33 = vld [vmem:[#allocation7 + $0xb0] sm:$0xff] }
 0xa31   :  { %v18226_v2 = vadd.f32 %v3517_v63, %v3516_v1 }
 0xa33   :  { %17138 = vtanh.f32 %v18226_v2 }
 0xa35   :  { %v17137_v4 = vpop.eup %17136 }
 0xa3d   :  { %v17139_v6 = vpop.eup %17138 }
 0xa3e   :  { %v3520_v7 = vmul.f32 %v17139_v6, %v17137_v4 }
 0xa40   :  { %3522 = vst.msk [vmem:[#allocation2 + $0xc] sm:$0x3] %vm639_vm9, %v3520_v7  ;;  %14849 = vmatmul.mubr.msk.f32.vlgmr.msra.gmra.mrb[36].mxu0 %vm436_vm6, %v3520_v7  ;;  %14860 = vmatmul.mubr.msk.f32.vlgmr.msra.gmra.mrb[32].mxu1 %vm436_vm6, %v3520_v7 }
 0xa41   :  { %16327 = vmatpush3.bf16.msra.mxu0 %v17947_v37  ;;  %16333 = vmatpush3.bf16.msra.mxu1 %v17918_v22  ;;  %v3881_v37 = vrot.slane %v3873_v15, %v17755_v36 }
 0xa42   :  { %16328 = vmatprep.subr.bf16.mxu0 %v17622_v34  ;;  %16334 = vmatprep.subr.bf16.mxu1 %v17622_v34 }
 0xa43   :  { %14870 = vmatprep.mubr.msk.f32.mxu0 %vm17623_vm10, %v17618_v11  ;;  %14881 = vmatprep.mubr.msk.f32.mxu1 %vm17623_vm10, %v17618_v11  ;;  %v18244_v22 = vcombine.low %v3881_v37, %v3888_v16  ;;  %v4181_v37 = vld [vmem:[#allocation4 + $0xd0] sm:$0xff] }
 0xa45   :  { %16330 = vmatpush3.bf16.msra.mxu0 %v17954_v40  ;;  %16336 = vmatpush3.bf16.msra.mxu1 %v17924_v26  ;;  %v16337_v40 = vpack.c.bf16 %v3854_v8, %v3853_v17  ;;  %v3855_v26 = vld [vmem:[#allocation4 + $0x90] sm:$0xff]  ;;  %v3898_v17 = vrot.slane %v3890_v14, %v17755_v36 }
 0xa46   :  { %v16341_v23 = vpack.c.bf16 %v3856_v20, %v3855_v26  ;;  %16346 = vmatprep.subr.bf16.mxu1 %v16345_v21 }
 0xa47   :  { %16338 = vmatprep.subr.bf16.mxu0 %v16337_v40  ;;  %v3850_v3 = vld [vmem:[#allocation2 + $0xc] sm:$0x3] }
 0xa48   :  { %14871 = vmatmul.mubr.msk.f32.vlgmr.msra.gmra.mrb[38].mxu0 %vm436_vm6, %v3520_v7  ;;  %14882 = vmatmul.mubr.msk.f32.vlgmr.msra.gmra.mrb[34].mxu1 %vm436_vm6, %v3520_v7 }
 0xa49   :  { %14892 = vmatprep.mubr.msk.f32.mxu0 %vm436_vm6, %v18244_v22  ;;  %14903 = vmatprep.mubr.msk.f32.mxu1 %vm436_vm6, %v18244_v22 }
 0xa4a   :  { %16340 = vmatpush3.bf16.msra.mxu0 %v16337_v40  ;;  %16348 = vmatpush3.bf16.msra.mxu1 %v16345_v21  ;;  %v4322_v40 = vld [vmem:[#allocation4 + $0xf8] sm:$0xff]  ;;  %v4459_v21 = vld [vmem:[#allocation7 + $0x80] sm:$0xff] }
 0xa4b   :  { %16342 = vmatprep.subr.bf16.mxu0 %v16341_v23  ;;  %16350 = vmatprep.subr.bf16.mxu1 %v16349_v28  ;;  %v16365_v20 = vpack.c.bf16 %v4322_v40, %v4321_v19 }
 0xa4e   :  { %16344 = vmatpush3.bf16.msra.mxu0 %v16341_v23  ;;  %16352 = vmatpush3.bf16.msra.mxu1 %v16349_v28  ;;  %v4460_v23 = vld [vmem:[#allocation7 + $0x88] sm:$0xff]  ;;  %v18272_v28 = vpack.c.bf16 %v4465_v25, %v4464_v24 }
 0xa4f   :  { %16354 = vmatprep.subr.bf16.mxu0 %v18252_v35  ;;  %16362 = vmatprep.subr.bf16.mxu1 %v18254_v38  ;;  %v18270_v27 = vpack.c.bf16 %v4460_v23, %v4459_v21 }
 0xb13   :  { %v3594_v10 = vpop.f32.mrb[36].mxu0  ;;  %v3673_v41 = vpop.f32.mrb[32].mxu1 }
 0xb14   :  { %v3598_v42 = vadd.f32 %v3594_v10, %v3524_v29  ;;  %v3677_v43 = vadd.f32 %v3673_v41, %v3606_v39  ;;  %v14850_v44 = vpop.f32.mrb[37].mxu0  ;;  %v14861_v45 = vpop.f32.mrb[33].mxu1  ;;  %v4469_v29 = vld [vmem:[#allocation7 + $0xc0] sm:$0xff]  ;;  %v4470_v10 = vld [vmem:[#allocation7 + $0xc8] sm:$0xff] }
 0xb15   :  { %v4474_v39 = vld [vmem:[#allocation7 + $0xe0] sm:$0xff]  ;;  %v4475_v41 = vld [vmem:[#allocation7 + $0xe8] sm:$0xff]  ;;  %v4471_v44 = vld [vmem:[#allocation7 + $0xd0] sm:$0xff] }
 0xb16   :  { %v13483_v46 = vmul.f32 -1.442695, %v3598_v42  ;;  %v13485_v47 = vmul.f32 -1.442695, %v3677_v43  ;;  %v18292_v42 = vpack.c.bf16 %v4470_v10, %v4469_v29  ;;  %v18294_v43 = vpack.c.bf16 %v4475_v41, %v4474_v39  ;;  %v4472_v45 = vld [vmem:[#allocation7 + $0xd8] sm:$0xff] }
 0xb18   :  { %17140 = vpow2.f32 %v13483_v46  ;;  %v4476_v46 = vld [vmem:[#allocation7 + $0xf0] sm:$0xff] }
 0xb19   :  { %17142 = vpow2.f32 %v13485_v47  ;;  %v4477_v47 = vld [vmem:[#allocation7 + $0xf8] sm:$0xff] }
 0xb1b   :  { %v3752_v48 = vpop.f32.mrb[38].mxu0  ;;  %v3826_v49 = vpop.f32.mrb[34].mxu1 }
 0xb1c   :  { %v3830_v18 = vadd.f32 %v3826_v49, %v3759_v32  ;;  %v14872_v50 = vpop.f32.mrb[39].mxu0  ;;  %v14883_v51 = vpop.f32.mrb[35].mxu1  ;;  %v3756_v54 = vadd.f32 %v3752_v48, %v3685_v52  ;;  %v18302_v48 = vpack.c.bf16 %v4472_v45, %v4471_v44  ;;  %v18304_v32 = vpack.c.bf16 %v4477_v47, %v4476_v46  ;;  %v13490_v49 = vld [vmem:[%s19363_s7 + $0x4] ss:$0 sm:$0xff] }
 0xb1e   :  { %v13488_v53 = vmul.f32 -1.442695, %v3830_v18  ;;  %v13494_v18 = vld [vmem:[%s19363_s7 + $0x5] ss:$0 sm:$0xff] }
 0xb20   :  { %17144 = vpow2.f32 %v13488_v53 }
 0xb21   :  { %17146 = vtanh.f32 %v3756_v54 }
 0xb22   :  { %v17141_v55 = vpop.eup %17140 }
 0xb23   :  { %v17143_v56 = vpop.eup %17142  ;;  %v3602_v57 = vadd.f32 1.0, %v17141_v55 }
 0xb24   :  { %v3681_v58 = vadd.f32 1.0, %v17143_v56 }
 0xb25   :  { %17148 = vrcp.f32 %v3602_v57 }
 0xb26   :  { %17150 = vrcp.f32 %v3681_v58 }
 0xb2a   :  { %v17145_v59 = vpop.eup %17144 }
 0xb2b   :  { %v17147_v60 = vpop.eup %17146  ;;  %v3834_v0 = vadd.f32 1.0, %v17145_v59 }
 0xb2d   :  { %17152 = vrcp.f32 %v3834_v0 }
 0xb2f   :  { %v17149_v61 = vpop.eup %17148 }
 0xb30   :  { %v17151_v62 = vpop.eup %17150  ;;  %v3838_v63 = vmul.f32 %v17149_v61, %v17147_v60 }
 0xb31   :  { %v3837_v1 = vmul.f32 %v17151_v62, %v18226_v2  ;;  %v4182_v2 = vld [vmem:[#allocation4 + $0xd8] sm:$0xff] }
 0xb32   :  { %v16357_v26 = vpack.c.bf16 %v4182_v2, %v4181_v37 }
 0xb33   :  { %v3839_v4 = vadd.f32 %v3838_v63, %v3837_v1 }
 0xb35   :  { %17154 = vtanh.f32 %v3839_v4 }
 0xb37   :  { %v17153_v5 = vpop.eup %17152 }
 0xb3f   :  { %v17155_v6 = vpop.eup %17154 }
 0xb40   :  { %v3841_v7 = vmul.f32 %v17155_v6, %v17153_v5 }
 0xb42   :  { %3843 = vst.msk [vmem:[#allocation2 + $0xe] sm:$0x3] %vm639_vm9, %v3841_v7 }
 0xb49   :  { %v3851_v15 = vld [vmem:[#allocation2 + $0xe] sm:$0x3] }
 0xb4a   :  { %v3891_v16 = vcombine.low %v3850_v3, %v3851_v15  ;;  %v13498_v15 = vld [vmem:[%s19363_s7 + $0x6] ss:$0 sm:$0xff] }
 0xb4c   :  { %v3905_v8 = vrot.slane %v3891_v16, %v17755_v36  ;;  %v13502_v16 = vld [vmem:[%s19363_s7 + $0x7] ss:$0 sm:$0xff] }
 0xb4e   :  { %v3906_v13 = vcombine.low %v3898_v17, %v3905_v8 }
 0xb50   :  { %14893 = vmatmul.mubr.msk.f32.vlgmr.msra.gmra.mrb[40].mxu0 %vm436_vm6, %v3906_v13  ;;  %14904 = vmatmul.mubr.msk.f32.vlgmr.msra.gmra.mrb[36].mxu1 %vm436_vm6, %v3906_v13 }
 0xb51   :  { %16356 = vmatpush3.bf16.msra.mxu0 %v18252_v35  ;;  %16364 = vmatpush3.bf16.msra.mxu1 %v18254_v38  ;;  %v4467_v35 = vld [vmem:[#allocation7 + $0xb8] sm:$0xff] }
 0xb52   :  { %14914 = vmatprep.mubr.msk.f32.mxu0 %vm436_vm6, %v18244_v22  ;;  %14925 = vmatprep.mubr.msk.f32.mxu1 %vm436_vm6, %v18244_v22  ;;  %v18280_v22 = vpack.c.bf16 %v4462_v31, %v4461_v30  ;;  %v18282_v38 = vpack.c.bf16 %v4467_v35, %v4466_v33 }
 0xb53   :  { %16358 = vmatprep.subr.bf16.mxu0 %v16357_v26  ;;  %16366 = vmatprep.subr.bf16.mxu1 %v16365_v20 }
 0xb55   :  { %16360 = vmatpush3.bf16.msra.mxu0 %v16357_v26  ;;  %16368 = vmatpush3.bf16.msra.mxu1 %v16365_v20 }
 0xb56   :  { %16369 = vmatprep.subr.bf16.mxu0 %v17622_v34  ;;  %16375 = vmatprep.subr.bf16.mxu1 %v17622_v34 }
 0xb58   :  { %14915 = vmatmul.mubr.msk.f32.vlgmr.msra.gmra.mrb[42].mxu0 %vm436_vm6, %v3906_v13  ;;  %14926 = vmatmul.mubr.msk.f32.vlgmr.msra.gmra.mrb[38].mxu1 %vm436_vm6, %v3906_v13 }
 0xb59   :  { %16371 = vmatpush3.bf16.msra.mxu0 %v18270_v27  ;;  %16377 = vmatpush3.bf16.msra.mxu1 %v18272_v28 }
 0xb5a   :  { %16372 = vmatprep.subr.bf16.mxu0 %v17622_v34  ;;  %16378 = vmatprep.subr.bf16.mxu1 %v17622_v34 }
 0xb5b   :  { %14936 = vmatprep.mubr.msk.f32.mxu0 %vm17623_vm10, %v17618_v11  ;;  %14947 = vmatprep.mubr.msk.f32.mxu1 %vm17623_vm10, %v17618_v11 }
 0xb5d   :  { %16374 = vmatpush3.bf16.msra.mxu0 %v18280_v22  ;;  %16380 = vmatpush3.bf16.msra.mxu1 %v18282_v38 }
 0xb5e   :  { %16381 = vmatprep.subr.bf16.mxu0 %v17622_v34  ;;  %16387 = vmatprep.subr.bf16.mxu1 %v17622_v34 }
 0xb60   :  { %14937 = vmatmul.mubr.f32.vlgmr.msra.gmra.mrb[44].mxu0 %v17618_v11  ;;  %14948 = vmatmul.mubr.f32.vlgmr.msra.gmra.mrb[40].mxu1 %v17618_v11 }
 0xb61   :  { %16383 = vmatpush3.bf16.msra.mxu0 %v18292_v42  ;;  %16389 = vmatpush3.bf16.msra.mxu1 %v18294_v43 }
 0xb62   :  { %16384 = vmatprep.subr.bf16.mxu0 %v17622_v34  ;;  %16390 = vmatprep.subr.bf16.mxu1 %v17622_v34 }
 0xb63   :  { %14958 = vmatprep.mubr.msk.f32.mxu0 %vm17623_vm10, %v17618_v11  ;;  %14969 = vmatprep.mubr.msk.f32.mxu1 %vm17623_vm10, %v17618_v11 }
 0xb65   :  { %16386 = vmatpush3.bf16.msra.mxu0 %v18302_v48  ;;  %16392 = vmatpush3.bf16.msra.mxu1 %v18304_v32 }
 0xb66   :  { %16393 = vmatprep.subr.bf16.mxu0 %v17622_v34  ;;  %16399 = vmatprep.subr.bf16.mxu1 %v17622_v34 }
 0xb68   :  { %14959 = vmatmul.mubr.f32.vlgmr.msra.gmra.mrb[46].mxu0 %v17618_v11  ;;  %14970 = vmatmul.mubr.f32.vlgmr.msra.gmra.mrb[42].mxu1 %v17618_v11 }
 0xb69   :  { %16395 = vmatpush3.bf16.msra.mxu0 %v18270_v27  ;;  %16401 = vmatpush3.bf16.msra.mxu1 %v18272_v28 }
 0xb6a   :  { %16396 = vmatprep.subr.bf16.mxu0 %v17622_v34  ;;  %16402 = vmatprep.subr.bf16.mxu1 %v17622_v34 }
 0xb6b   :  { %14980 = vmatprep.mubr.msk.f32.mxu0 %vm17623_vm10, %v17618_v11  ;;  %14991 = vmatprep.mubr.msk.f32.mxu1 %vm17623_vm10, %v17618_v11 }
 0xb6d   :  { %16398 = vmatpush3.bf16.msra.mxu0 %v18280_v22  ;;  %16404 = vmatpush3.bf16.msra.mxu1 %v18282_v38 }
 0xb6e   :  { %16405 = vmatprep.subr.bf16.mxu0 %v17622_v34  ;;  %16411 = vmatprep.subr.bf16.mxu1 %v17622_v34 }
 0xc23   :  { %v14894_v50 = vpop.f32.mrb[40].mxu0  ;;  %v14905_v51 = vpop.f32.mrb[36].mxu1 }
 0xc24   :  { %v3983_v52 = vadd.f32 %v14894_v50, %v13490_v49  ;;  %v4123_v53 = vadd.f32 %v14905_v51, %v13494_v18  ;;  %v3977_v54 = vpop.f32.mrb[41].mxu0  ;;  %v4117_v55 = vpop.f32.mrb[37].mxu1 }
 0xc25   :  { %v3978_v56 = vadd.f32 %v13490_v49, %v3977_v54  ;;  %v4118_v57 = vadd.f32 %v13494_v18, %v4117_v55 }
 0xc26   :  { %v4005_v58 = vcombine.high %v3983_v52, %v3983_v52  ;;  %v4012_v59 = vrot.slane %v3983_v52, %v17755_v36  ;;  %v4145_v60 = vcombine.high %v4123_v53, %v4123_v53  ;;  %v4152_v61 = vrot.slane %v4123_v53, %v17755_v36 }
 0xc27   :  { %v3988_v62 = vcombine.high %v3978_v56, %v3978_v56  ;;  %v3995_v63 = vrot.slane %v3978_v56, %v17755_v36  ;;  %v4128_v0 = vcombine.high %v4118_v57, %v4118_v57  ;;  %v4135_v1 = vrot.slane %v4118_v57, %v17755_v36 }
 0xc28   :  { %v4019_v4 = vrot.slane %v4005_v58, %v17755_v36  ;;  %v4020_v5 = vcombine.high %v4012_v59, %v4012_v59  ;;  %4034 = vst.msk [vmem:[#allocation3 + $0x8] sm:$0x3] %vm639_vm9, %v4012_v59  ;;  %v4159_v6 = vrot.slane %v4145_v60, %v17755_v36  ;;  %v4160_v7 = vcombine.high %v4152_v61, %v4152_v61 }
 0xc29   :  { %4174 = vst.msk [vmem:[#allocation3 + $0x18] sm:$0x3] %vm639_vm9, %v4152_v61  ;;  %v4002_v9 = vrot.slane %v3988_v62, %v17755_v36  ;;  %v4003_v12 = vcombine.high %v3995_v63, %v3995_v63  ;;  %4030 = vst.msk [vmem:[#allocation3] sm:$0x3] %vm639_vm9, %v3995_v63  ;;  %v4142_v14 = vrot.slane %v4128_v0, %v17755_v36 }
 0xc2a   :  { %v4143_v3 = vcombine.high %v4135_v1, %v4135_v1  ;;  %4170 = vst.msk [vmem:[#allocation3 + $0x10] sm:$0x3] %vm639_vm9, %v4135_v1  ;;  %v4021_v37 = vcombine.high %v4019_v4, %v4019_v4  ;;  %4035 = vst.msk [vmem:[#allocation3 + $0xa] sm:$0x3] %vm639_vm9, %v4020_v5  ;;  %v4161_v17 = vcombine.high %v4159_v6, %v4159_v6 }
 0xc2b   :  { %4036 = vst.msk [vmem:[#allocation3 + $0xc] sm:$0x3] %vm639_vm9, %v4019_v4  ;;  %4175 = vst.msk [vmem:[#allocation3 + $0x1a] sm:$0x3] %vm639_vm9, %v4160_v7  ;;  %v4004_v8 = vcombine.high %v4002_v9, %v4002_v9  ;;  %v4144_v2 = vcombine.high %v4142_v14, %v4142_v14  ;;  %v14916_v19 = vpop.f32.mrb[42].mxu0  ;;  %v14927_v40 = vpop.f32.mrb[38].mxu1 }
 0xc2c   :  { %4176 = vst.msk [vmem:[#allocation3 + $0x1c] sm:$0x3] %vm639_vm9, %v4159_v6  ;;  %4031 = vst.msk [vmem:[#allocation3 + $0x2] sm:$0x3] %vm639_vm9, %v4003_v12  ;;  %v4263_v13 = vadd.f32 %v14916_v19, %v13498_v15  ;;  %v4403_v26 = vadd.f32 %v14927_v40, %v13502_v16  ;;  %v4257_v20 = vpop.f32.mrb[43].mxu0  ;;  %v4397_v21 = vpop.f32.mrb[39].mxu1 }
 0xc2d   :  { %4032 = vst.msk [vmem:[#allocation3 + $0x4] sm:$0x3] %vm639_vm9, %v4002_v9  ;;  %4171 = vst.msk [vmem:[#allocation3 + $0x12] sm:$0x3] %vm639_vm9, %v4143_v3  ;;  %v4258_v23 = vadd.f32 %v13498_v15, %v4257_v20  ;;  %v4398_v24 = vadd.f32 %v13502_v16, %v4397_v21 }
 0xc2e   :  { %4172 = vst.msk [vmem:[#allocation3 + $0x14] sm:$0x3] %vm639_vm9, %v4142_v14  ;;  %4037 = vst.msk [vmem:[#allocation3 + $0xe] sm:$0x3] %vm639_vm9, %v4021_v37  ;;  %v4285_v25 = vcombine.high %v4263_v13, %v4263_v13  ;;  %v4292_v30 = vrot.slane %v4263_v13, %v17755_v36  ;;  %v4425_v31 = vcombine.high %v4403_v26, %v4403_v26 }
 0xc2f   :  { %4177 = vst.msk [vmem:[#allocation3 + $0x1e] sm:$0x3] %vm639_vm9, %v4161_v17  ;;  %4033 = vst.msk [vmem:[#allocation3 + $0x6] sm:$0x3] %vm639_vm9, %v4004_v8  ;;  %v4432_v33 = vrot.slane %v4403_v26, %v17755_v36  ;;  %v4268_v35 = vcombine.high %v4258_v23, %v4258_v23  ;;  %v4275_v29 = vrot.slane %v4258_v23, %v17755_v36 }
 0xc30   :  { %4173 = vst.msk [vmem:[#allocation3 + $0x16] sm:$0x3] %vm639_vm9, %v4144_v2  ;;  %v4408_v10 = vcombine.high %v4398_v24, %v4398_v24  ;;  %v4415_v39 = vrot.slane %v4398_v24, %v17755_v36  ;;  %v4299_v41 = vrot.slane %v4285_v25, %v17755_v36  ;;  %v4300_v44 = vcombine.high %v4292_v30, %v4292_v30  ;;  %v4478_v55 = vld [vmem:[#allocation3] sm:$0x3] }
 0xc31   :  { %4314 = vst.msk [vmem:[#allocation3 + $0x28] sm:$0x3] %vm639_vm9, %v4292_v30  ;;  %v4439_v45 = vrot.slane %v4425_v31, %v17755_v36  ;;  %v4440_v46 = vcombine.high %v4432_v33, %v4432_v33  ;;  %4454 = vst.msk [vmem:[#allocation3 + $0x38] sm:$0x3] %vm639_vm9, %v4432_v33  ;;  %v4282_v47 = vrot.slane %v4268_v35, %v17755_v36  ;;  %v4556_v57 = vld [vmem:[#allocation3 + $0x10] sm:$0x3] }
 0xc32   :  { %v4283_v49 = vcombine.high %v4275_v29, %v4275_v29  ;;  %4310 = vst.msk [vmem:[#allocation3 + $0x20] sm:$0x3] %vm639_vm9, %v4275_v29  ;;  %v4422_v18 = vrot.slane %v4408_v10, %v17755_v36  ;;  %v4423_v50 = vcombine.high %v4415_v39, %v4415_v39  ;;  %4450 = vst.msk [vmem:[#allocation3 + $0x30] sm:$0x3] %vm639_vm9, %v4415_v39 }
 0xc33   :  { %v4301_v51 = vcombine.high %v4299_v41, %v4299_v41  ;;  %4315 = vst.msk [vmem:[#allocation3 + $0x2a] sm:$0x3] %vm639_vm9, %v4300_v44  ;;  %4316 = vst.msk [vmem:[#allocation3 + $0x2c] sm:$0x3] %vm639_vm9, %v4299_v41  ;;  %v4441_v52 = vcombine.high %v4439_v45, %v4439_v45  ;;  %v4284_v53 = vcombine.high %v4282_v47, %v4282_v47  ;;  %v4545_v56 = vpop.f32.mrb[44].mxu0  ;;  %v4623_v58 = vpop.f32.mrb[40].mxu1 }
 0xc34   :  { %4455 = vst.msk [vmem:[#allocation3 + $0x3a] sm:$0x3] %vm639_vm9, %v4440_v46  ;;  %4456 = vst.msk [vmem:[#allocation3 + $0x3c] sm:$0x3] %vm639_vm9, %v4439_v45  ;;  %v4424_v54 = vcombine.high %v4422_v18, %v4422_v18  ;;  %v4549_v59 = vadd.f32 %v4545_v56, %v4478_v55  ;;  %v4627_v60 = vadd.f32 %v4623_v58, %v4556_v57  ;;  %v14938_v61 = vpop.f32.mrb[45].mxu0  ;;  %v14949_v62 = vpop.f32.mrb[41].mxu1 }
 0xc35   :  { %4311 = vst.msk [vmem:[#allocation3 + $0x22] sm:$0x3] %vm639_vm9, %v4283_v49  ;;  %4312 = vst.msk [vmem:[#allocation3 + $0x24] sm:$0x3] %vm639_vm9, %v4282_v47  ;;  %v4791_v30 = vld [vmem:[#allocation3 + $0x2] sm:$0x3] }
 0xc36   :  { %4451 = vst.msk [vmem:[#allocation3 + $0x32] sm:$0x3] %vm639_vm9, %v4423_v50  ;;  %4452 = vst.msk [vmem:[#allocation3 + $0x34] sm:$0x3] %vm639_vm9, %v4422_v18  ;;  %v13505_v63 = vmul.f32 -1.442695, %v4549_v59 }
 0xc37   :  { %4317 = vst.msk [vmem:[#allocation3 + $0x2e] sm:$0x3] %vm639_vm9, %v4301_v51  ;;  %4457 = vst.msk [vmem:[#allocation3 + $0x3e] sm:$0x3] %vm639_vm9, %v4441_v52  ;;  %v13506_v0 = vmul.f32 -1.442695, %v4627_v60 }
 0xc38   :  { %4313 = vst.msk [vmem:[#allocation3 + $0x26] sm:$0x3] %vm639_vm9, %v4284_v53  ;;  %4453 = vst.msk [vmem:[#allocation3 + $0x36] sm:$0x3] %vm639_vm9, %v4424_v54  ;;  %17156 = vpow2.f32 %v13505_v63  ;;  %v4872_v33 = vld [vmem:[#allocation3 + $0x12] sm:$0x3] }
 0xc39   :  { %17158 = vpow2.f32 %v13506_v0  ;;  %v4707_v4 = vld [vmem:[#allocation3 + $0x30] sm:$0x3]  ;;  %v4634_v12 = vld [vmem:[#allocation3 + $0x20] sm:$0x3] }
 0xc3b   :  { %v4701_v1 = vpop.f32.mrb[46].mxu0  ;;  %v4774_v5 = vpop.f32.mrb[42].mxu1 }
 0xc3c   :  { %v4778_v6 = vadd.f32 %v4774_v5, %v4707_v4  ;;  %v14960_v7 = vpop.f32.mrb[47].mxu0  ;;  %v14971_v9 = vpop.f32.mrb[43].mxu1  ;;  %v4705_v3 = vadd.f32 %v4701_v1, %v4634_v12  ;;  %v4950_v52 = vld [vmem:[#allocation3 + $0x22] sm:$0x3] }
 0xc3d   :  { %v5023_v47 = vld [vmem:[#allocation3 + $0x32] sm:$0x3]  ;;  %v5107_v9 = vld [vmem:[#allocation3 + $0x4] sm:$0x3] }
 0xc3e   :  { %v13507_v14 = vmul.f32 -1.442695, %v4778_v6 }
 0xc40   :  { %17160 = vpow2.f32 %v13507_v14  ;;  %v5188_v14 = vld [vmem:[#allocation3 + $0x14] sm:$0x3] }
 0xc41   :  { %17162 = vtanh.f32 %v4705_v3 }
 0xc42   :  { %v17157_v15 = vpop.eup %17156 }
 0xc43   :  { %v17159_v16 = vpop.eup %17158  ;;  %v4553_v37 = vadd.f32 1.0, %v17157_v15 }
 0xc44   :  { %v4631_v17 = vadd.f32 1.0, %v17159_v16 }
 0xc45   :  { %17164 = vrcp.f32 %v4553_v37 }
 0xc46   :  { %17166 = vrcp.f32 %v4631_v17 }
 0xc4a   :  { %v17161_v8 = vpop.eup %17160 }
 0xc4b   :  { %v17163_v2 = vpop.eup %17162  ;;  %v4782_v26 = vadd.f32 1.0, %v17161_v8 }
 0xc4d   :  { %17168 = vrcp.f32 %v4782_v26 }
 0xc4f   :  { %v17165_v19 = vpop.eup %17164 }
 0xc50   :  { %v17167_v40 = vpop.eup %17166  ;;  %v4786_v13 = vmul.f32 %v17165_v19, %v17163_v2 }
 0xc51   :  { %v4785_v20 = vmul.f32 0.0, %v17167_v40  ;;  %v5339_v40 = vld [vmem:[#allocation3 + $0x34] sm:$0x3] }
 0xc53   :  { %v18390_v21 = vadd.f32 %v4786_v13, %v4785_v20 }
 0xc55   :  { %17170 = vtanh.f32 %v18390_v21 }
 0xc57   :  { %v17169_v23 = vpop.eup %17168 }
 0xc5f   :  { %v17171_v24 = vpop.eup %17170 }
 0xc60   :  { %v4789_v25 = vmul.f32 %v17171_v24, %v17169_v23  ;;  %v5266_v23 = vld [vmem:[#allocation3 + $0x24] sm:$0x3] }
 0xc62   :  { %4790 = vst.msk [vmem:[#allocation2] sm:$0x3] %vm639_vm9, %v4789_v25  ;;  %14981 = vmatmul.mubr.msk.f32.vlgmr.msra.gmra.mrb[48].mxu0 %vm436_vm6, %v4789_v25  ;;  %14992 = vmatmul.mubr.msk.f32.vlgmr.msra.gmra.mrb[44].mxu1 %vm436_vm6, %v4789_v25 }
 0xc63   :  { %16407 = vmatpush3.bf16.msra.mxu0 %v18292_v42  ;;  %16413 = vmatpush3.bf16.msra.mxu1 %v18294_v43 }
 0xc64   :  { %16408 = vmatprep.subr.bf16.mxu0 %v17622_v34  ;;  %16414 = vmatprep.subr.bf16.mxu1 %v17622_v34 }
 0xc65   :  { %15002 = vmatprep.mubr.msk.f32.mxu0 %vm17623_vm10, %v17618_v11  ;;  %15013 = vmatprep.mubr.msk.f32.mxu1 %vm17623_vm10, %v17618_v11 }
 0xc67   :  { %16410 = vmatpush3.bf16.msra.mxu0 %v18302_v48  ;;  %16416 = vmatpush3.bf16.msra.mxu1 %v18304_v32 }
 0xc68   :  { %16417 = vmatprep.subr.bf16.mxu0 %v17622_v34  ;;  %16423 = vmatprep.subr.bf16.mxu1 %v17622_v34 }
 0xc6a   :  { %15003 = vmatmul.mubr.msk.f32.vlgmr.msra.gmra.mrb[50].mxu0 %vm436_vm6, %v4789_v25  ;;  %15014 = vmatmul.mubr.msk.f32.vlgmr.msra.gmra.mrb[46].mxu1 %vm436_vm6, %v4789_v25 }
 0xc6b   :  { %16419 = vmatpush3.bf16.msra.mxu0 %v18270_v27  ;;  %16425 = vmatpush3.bf16.msra.mxu1 %v18272_v28 }
 0xc6c   :  { %16420 = vmatprep.subr.bf16.mxu0 %v17622_v34  ;;  %16426 = vmatprep.subr.bf16.mxu1 %v17622_v34 }
 0xc6d   :  { %15024 = vmatprep.mubr.msk.f32.mxu0 %vm17623_vm10, %v17618_v11  ;;  %15035 = vmatprep.mubr.msk.f32.mxu1 %vm17623_vm10, %v17618_v11 }
 0xc6f   :  { %16422 = vmatpush3.bf16.msra.mxu0 %v18280_v22  ;;  %16428 = vmatpush3.bf16.msra.mxu1 %v18282_v38 }
 0xc70   :  { %16429 = vmatprep.subr.bf16.mxu0 %v17622_v34  ;;  %16435 = vmatprep.subr.bf16.mxu1 %v17622_v34 }
 0xd35   :  { %v4861_v31 = vpop.f32.mrb[48].mxu0  ;;  %v4939_v35 = vpop.f32.mrb[44].mxu1 }
 0xd36   :  { %v4865_v29 = vadd.f32 %v4861_v31, %v4791_v30  ;;  %v4943_v10 = vadd.f32 %v4939_v35, %v4872_v33  ;;  %v14982_v39 = vpop.f32.mrb[49].mxu0  ;;  %v14993_v41 = vpop.f32.mrb[45].mxu1 }
 0xd38   :  { %v13509_v44 = vmul.f32 -1.442695, %v4865_v29  ;;  %v13511_v45 = vmul.f32 -1.442695, %v4943_v10 }
 0xd3a   :  { %17172 = vpow2.f32 %v13509_v44 }
 0xd3b   :  { %17174 = vpow2.f32 %v13511_v45 }
 0xd3d   :  { %v5017_v46 = vpop.f32.mrb[50].mxu0  ;;  %v5090_v49 = vpop.f32.mrb[46].mxu1 }
 0xd3e   :  { %v5094_v18 = vadd.f32 %v5090_v49, %v5023_v47  ;;  %v15004_v50 = vpop.f32.mrb[51].mxu0  ;;  %v15015_v51 = vpop.f32.mrb[47].mxu1  ;;  %v5021_v54 = vadd.f32 %v5017_v46, %v4950_v52 }
 0xd3f   :  { %v5423_v51 = vld [vmem:[#allocation3 + $0x6] sm:$0x3] }
 0xd40   :  { %v13514_v53 = vmul.f32 -1.442695, %v5094_v18 }
 0xd42   :  { %17176 = vpow2.f32 %v13514_v53  ;;  %v5504_v53 = vld [vmem:[#allocation3 + $0x16] sm:$0x3] }
 0xd43   :  { %17178 = vtanh.f32 %v5021_v54 }
 0xd44   :  { %v17173_v55 = vpop.eup %17172 }
 0xd45   :  { %v17175_v56 = vpop.eup %17174  ;;  %v4869_v57 = vadd.f32 1.0, %v17173_v55 }
 0xd46   :  { %v4947_v58 = vadd.f32 1.0, %v17175_v56 }
 0xd47   :  { %17180 = vrcp.f32 %v4869_v57 }
 0xd48   :  { %17182 = vrcp.f32 %v4947_v58 }
 0xd4c   :  { %v17177_v59 = vpop.eup %17176 }
 0xd4d   :  { %v17179_v60 = vpop.eup %17178  ;;  %v5098_v0 = vadd.f32 1.0, %v17177_v59 }
 0xd4f   :  { %17184 = vrcp.f32 %v5098_v0 }
 0xd51   :  { %v17181_v61 = vpop.eup %17180 }
 0xd52   :  { %v17183_v62 = vpop.eup %17182  ;;  %v5102_v63 = vmul.f32 %v17181_v61, %v17179_v60 }
 0xd53   :  { %v5101_v1 = vmul.f32 %v17183_v62, %v18390_v21  ;;  %v5655_v62 = vld [vmem:[#allocation3 + $0x36] sm:$0x3] }
 0xd55   :  { %v18423_v4 = vadd.f32 %v5102_v63, %v5101_v1 }
 0xd57   :  { %17186 = vtanh.f32 %v18423_v4 }
 0xd59   :  { %v17185_v5 = vpop.eup %17184 }
 0xd61   :  { %v17187_v6 = vpop.eup %17186 }
 0xd62   :  { %v5105_v7 = vmul.f32 %v17187_v6, %v17185_v5  ;;  %v5582_v5 = vld [vmem:[#allocation3 + $0x26] sm:$0x3] }
 0xd64   :  { %5106 = vst.msk [vmem:[#allocation2 + $0x2] sm:$0x3] %vm639_vm9, %v5105_v7  ;;  %15025 = vmatmul.mubr.msk.f32.vlgmr.msra.gmra.mrb[52].mxu0 %vm436_vm6, %v5105_v7  ;;  %15036 = vmatmul.mubr.msk.f32.vlgmr.msra.gmra.mrb[48].mxu1 %vm436_vm6, %v5105_v7 }
 0xd65   :  { %16431 = vmatpush3.bf16.msra.mxu0 %v18292_v42  ;;  %16437 = vmatpush3.bf16.msra.mxu1 %v18294_v43 }
 0xd66   :  { %16432 = vmatprep.subr.bf16.mxu0 %v17622_v34  ;;  %16438 = vmatprep.subr.bf16.mxu1 %v17622_v34 }
 0xd67   :  { %15046 = vmatprep.mubr.msk.f32.mxu0 %vm17623_vm10, %v17618_v11  ;;  %15057 = vmatprep.mubr.msk.f32.mxu1 %vm17623_vm10, %v17618_v11 }
 0xd69   :  { %16434 = vmatpush3.bf16.msra.mxu0 %v18302_v48  ;;  %16440 = vmatpush3.bf16.msra.mxu1 %v18304_v32 }
 0xd6a   :  { %16441 = vmatprep.subr.bf16.mxu0 %v17622_v34  ;;  %16447 = vmatprep.subr.bf16.mxu1 %v17622_v34 }
 0xd6c   :  { %15047 = vmatmul.mubr.msk.f32.vlgmr.msra.gmra.mrb[54].mxu0 %vm436_vm6, %v5105_v7  ;;  %15058 = vmatmul.mubr.msk.f32.vlgmr.msra.gmra.mrb[50].mxu1 %vm436_vm6, %v5105_v7 }
 0xd6d   :  { %16443 = vmatpush3.bf16.msra.mxu0 %v18270_v27  ;;  %16449 = vmatpush3.bf16.msra.mxu1 %v18272_v28 }
 0xd6e   :  { %16444 = vmatprep.subr.bf16.mxu0 %v17622_v34  ;;  %16450 = vmatprep.subr.bf16.mxu1 %v17622_v34 }
 0xd6f   :  { %15068 = vmatprep.mubr.msk.f32.mxu0 %vm17623_vm10, %v17618_v11  ;;  %15079 = vmatprep.mubr.msk.f32.mxu1 %vm17623_vm10, %v17618_v11 }
 0xd71   :  { %16446 = vmatpush3.bf16.msra.mxu0 %v18280_v22  ;;  %16452 = vmatpush3.bf16.msra.mxu1 %v18282_v38 }
 0xd72   :  { %16453 = vmatprep.subr.bf16.mxu0 %v17622_v34  ;;  %16459 = vmatprep.subr.bf16.mxu1 %v17622_v34 }
 0xe37   :  { %v5177_v12 = vpop.f32.mrb[52].mxu0  ;;  %v5255_v3 = vpop.f32.mrb[48].mxu1 }
 0xe38   :  { %v5181_v15 = vadd.f32 %v5177_v12, %v5107_v9  ;;  %v5259_v16 = vadd.f32 %v5255_v3, %v5188_v14  ;;  %v15026_v37 = vpop.f32.mrb[53].mxu0  ;;  %v15037_v17 = vpop.f32.mrb[49].mxu1 }
 0xe3a   :  { %v13516_v8 = vmul.f32 -1.442695, %v5181_v15  ;;  %v13518_v2 = vmul.f32 -1.442695, %v5259_v16 }
 0xe3c   :  { %17188 = vpow2.f32 %v13516_v8 }
 0xe3d   :  { %17190 = vpow2.f32 %v13518_v2 }
 0xe3f   :  { %v5333_v19 = vpop.f32.mrb[54].mxu0  ;;  %v5406_v13 = vpop.f32.mrb[50].mxu1 }
 0xe40   :  { %v5410_v26 = vadd.f32 %v5406_v13, %v5339_v40  ;;  %v15048_v20 = vpop.f32.mrb[55].mxu0  ;;  %v15059_v21 = vpop.f32.mrb[51].mxu1  ;;  %v5337_v25 = vadd.f32 %v5333_v19, %v5266_v23 }
 0xe41   :  { %v5739_v21 = vld [vmem:[#allocation3 + $0x8] sm:$0x3] }
 0xe42   :  { %v13521_v24 = vmul.f32 -1.442695, %v5410_v26 }
 0xe44   :  { %17192 = vpow2.f32 %v13521_v24  ;;  %v5820_v24 = vld [vmem:[#allocation3 + $0x18] sm:$0x3] }
 0xe45   :  { %17194 = vtanh.f32 %v5337_v25 }
 0xe46   :  { %v17189_v30 = vpop.eup %17188 }
 0xe47   :  { %v17191_v31 = vpop.eup %17190  ;;  %v5185_v33 = vadd.f32 1.0, %v17189_v30 }
 0xe48   :  { %v5263_v35 = vadd.f32 1.0, %v17191_v31 }
 0xe49   :  { %17196 = vrcp.f32 %v5185_v33 }
 0xe4a   :  { %17198 = vrcp.f32 %v5263_v35 }
 0xe4e   :  { %v17193_v29 = vpop.eup %17192 }
 0xe4f   :  { %v17195_v10 = vpop.eup %17194  ;;  %v5414_v45 = vadd.f32 1.0, %v17193_v29 }
 0xe51   :  { %17200 = vrcp.f32 %v5414_v45 }
 0xe53   :  { %v17197_v39 = vpop.eup %17196 }
 0xe54   :  { %v17199_v41 = vpop.eup %17198  ;;  %v5418_v44 = vmul.f32 %v17197_v39, %v17195_v10 }
 0xe55   :  { %v5417_v46 = vmul.f32 %v17199_v41, %v18423_v4  ;;  %v5971_v41 = vld [vmem:[#allocation3 + $0x38] sm:$0x3] }
 0xe57   :  { %v18456_v47 = vadd.f32 %v5418_v44, %v5417_v46 }
 0xe59   :  { %17202 = vtanh.f32 %v18456_v47 }
 0xe5b   :  { %v17201_v49 = vpop.eup %17200 }
 0xe63   :  { %v17203_v18 = vpop.eup %17202 }
 0xe64   :  { %v5421_v50 = vmul.f32 %v17203_v18, %v17201_v49  ;;  %v5898_v49 = vld [vmem:[#allocation3 + $0x28] sm:$0x3] }
 0xe66   :  { %5422 = vst.msk [vmem:[#allocation2 + $0x4] sm:$0x3] %vm639_vm9, %v5421_v50  ;;  %15069 = vmatmul.mubr.msk.f32.vlgmr.msra.gmra.mrb[56].mxu0 %vm436_vm6, %v5421_v50  ;;  %15080 = vmatmul.mubr.msk.f32.vlgmr.msra.gmra.mrb[52].mxu1 %vm436_vm6, %v5421_v50 }
 0xe67   :  { %16455 = vmatpush3.bf16.msra.mxu0 %v18292_v42  ;;  %16461 = vmatpush3.bf16.msra.mxu1 %v18294_v43 }
 0xe68   :  { %16456 = vmatprep.subr.bf16.mxu0 %v17622_v34  ;;  %16462 = vmatprep.subr.bf16.mxu1 %v17622_v34 }
 0xe69   :  { %15090 = vmatprep.mubr.msk.f32.mxu0 %vm17623_vm10, %v17618_v11  ;;  %15101 = vmatprep.mubr.msk.f32.mxu1 %vm17623_vm10, %v17618_v11 }
 0xe6b   :  { %16458 = vmatpush3.bf16.msra.mxu0 %v18302_v48  ;;  %16464 = vmatpush3.bf16.msra.mxu1 %v18304_v32 }
 0xe6c   :  { %16465 = vmatprep.subr.bf16.mxu0 %v17622_v34  ;;  %16471 = vmatprep.subr.bf16.mxu1 %v17622_v34 }
 0xe6e   :  { %15091 = vmatmul.mubr.msk.f32.vlgmr.msra.gmra.mrb[58].mxu0 %vm436_vm6, %v5421_v50  ;;  %15102 = vmatmul.mubr.msk.f32.vlgmr.msra.gmra.mrb[54].mxu1 %vm436_vm6, %v5421_v50 }
 0xe6f   :  { %16467 = vmatpush3.bf16.msra.mxu0 %v18270_v27  ;;  %16473 = vmatpush3.bf16.msra.mxu1 %v18272_v28 }
 0xe70   :  { %16468 = vmatprep.subr.bf16.mxu0 %v17622_v34  ;;  %16474 = vmatprep.subr.bf16.mxu1 %v17622_v34 }
 0xe71   :  { %15112 = vmatprep.mubr.msk.f32.mxu0 %vm17623_vm10, %v17618_v11  ;;  %15123 = vmatprep.mubr.msk.f32.mxu1 %vm17623_vm10, %v17618_v11 }
 0xe73   :  { %16470 = vmatpush3.bf16.msra.mxu0 %v18280_v22  ;;  %16476 = vmatpush3.bf16.msra.mxu1 %v18282_v38 }
 0xe74   :  { %16477 = vmatprep.subr.bf16.mxu0 %v17622_v34  ;;  %16483 = vmatprep.subr.bf16.mxu1 %v17622_v34 }
 0xf39   :  { %v5493_v52 = vpop.f32.mrb[56].mxu0  ;;  %v5571_v54 = vpop.f32.mrb[52].mxu1 }
 0xf3a   :  { %v5497_v55 = vadd.f32 %v5493_v52, %v5423_v51  ;;  %v5575_v56 = vadd.f32 %v5571_v54, %v5504_v53  ;;  %v15070_v57 = vpop.f32.mrb[57].mxu0  ;;  %v15081_v58 = vpop.f32.mrb[53].mxu1 }
 0xf3c   :  { %v13523_v59 = vmul.f32 -1.442695, %v5497_v55  ;;  %v13525_v60 = vmul.f32 -1.442695, %v5575_v56 }
 0xf3e   :  { %17204 = vpow2.f32 %v13523_v59 }
 0xf3f   :  { %17206 = vpow2.f32 %v13525_v60 }
 0xf41   :  { %v5649_v61 = vpop.f32.mrb[58].mxu0  ;;  %v5722_v63 = vpop.f32.mrb[54].mxu1 }
 0xf42   :  { %v5726_v0 = vadd.f32 %v5722_v63, %v5655_v62  ;;  %v15092_v1 = vpop.f32.mrb[59].mxu0  ;;  %v15103_v4 = vpop.f32.mrb[55].mxu1  ;;  %v5653_v7 = vadd.f32 %v5649_v61, %v5582_v5 }
 0xf43   :  { %v6055_v4 = vld [vmem:[#allocation3 + $0xa] sm:$0x3] }
 0xf44   :  { %v13528_v6 = vmul.f32 -1.442695, %v5726_v0 }
 0xf46   :  { %17208 = vpow2.f32 %v13528_v6  ;;  %v6136_v6 = vld [vmem:[#allocation3 + $0x1a] sm:$0x3] }
 0xf47   :  { %17210 = vtanh.f32 %v5653_v7 }
 0xf48   :  { %v17205_v9 = vpop.eup %17204 }
 0xf49   :  { %v17207_v12 = vpop.eup %17206  ;;  %v5501_v14 = vadd.f32 1.0, %v17205_v9 }
 0xf4a   :  { %v5579_v3 = vadd.f32 1.0, %v17207_v12 }
 0xf4b   :  { %17212 = vrcp.f32 %v5501_v14 }
 0xf4c   :  { %17214 = vrcp.f32 %v5579_v3 }
 0xf50   :  { %v17209_v15 = vpop.eup %17208 }
 0xf51   :  { %v17211_v16 = vpop.eup %17210  ;;  %v5730_v2 = vadd.f32 1.0, %v17209_v15 }
 0xf53   :  { %17216 = vrcp.f32 %v5730_v2 }
 0xf55   :  { %v17213_v37 = vpop.eup %17212 }
 0xf56   :  { %v17215_v17 = vpop.eup %17214  ;;  %v5734_v8 = vmul.f32 %v17213_v37, %v17211_v16 }
 0xf57   :  { %v5733_v19 = vmul.f32 %v17215_v17, %v18456_v47  ;;  %v6287_v17 = vld [vmem:[#allocation3 + $0x3a] sm:$0x3] }
 0xf59   :  { %v18489_v40 = vadd.f32 %v5734_v8, %v5733_v19 }
 0xf5b   :  { %17218 = vtanh.f32 %v18489_v40 }
 0xf5d   :  { %v17217_v13 = vpop.eup %17216 }
 0xf65   :  { %v17219_v26 = vpop.eup %17218 }
 0xf66   :  { %v5737_v20 = vmul.f32 %v17219_v26, %v17217_v13  ;;  %v6214_v13 = vld [vmem:[#allocation3 + $0x2a] sm:$0x3] }
 0xf68   :  { %5738 = vst.msk [vmem:[#allocation2 + $0x6] sm:$0x3] %vm639_vm9, %v5737_v20  ;;  %15113 = vmatmul.mubr.msk.f32.vlgmr.msra.gmra.mrb[60].mxu0 %vm436_vm6, %v5737_v20  ;;  %15124 = vmatmul.mubr.msk.f32.vlgmr.msra.gmra.mrb[56].mxu1 %vm436_vm6, %v5737_v20 }
 0xf69   :  { %16479 = vmatpush3.bf16.msra.mxu0 %v18292_v42  ;;  %16485 = vmatpush3.bf16.msra.mxu1 %v18294_v43 }
 0xf6a   :  { %16480 = vmatprep.subr.bf16.mxu0 %v17622_v34  ;;  %16486 = vmatprep.subr.bf16.mxu1 %v17622_v34 }
 0xf6b   :  { %15134 = vmatprep.mubr.msk.f32.mxu0 %vm17623_vm10, %v17618_v11  ;;  %15145 = vmatprep.mubr.msk.f32.mxu1 %vm17623_vm10, %v17618_v11 }
 0xf6d   :  { %16482 = vmatpush3.bf16.msra.mxu0 %v18302_v48  ;;  %16488 = vmatpush3.bf16.msra.mxu1 %v18304_v32 }
 0xf6e   :  { %16489 = vmatprep.subr.bf16.mxu0 %v17622_v34  ;;  %16495 = vmatprep.subr.bf16.mxu1 %v17622_v34 }
 0xf70   :  { %15135 = vmatmul.mubr.msk.f32.vlgmr.msra.gmra.mrb[62].mxu0 %vm436_vm6, %v5737_v20  ;;  %15146 = vmatmul.mubr.msk.f32.vlgmr.msra.gmra.mrb[58].mxu1 %vm436_vm6, %v5737_v20 }
 0xf71   :  { %16491 = vmatpush3.bf16.msra.mxu0 %v18270_v27  ;;  %16497 = vmatpush3.bf16.msra.mxu1 %v18272_v28 }
 0xf72   :  { %16492 = vmatprep.subr.bf16.mxu0 %v17622_v34  ;;  %16498 = vmatprep.subr.bf16.mxu1 %v17622_v34 }
 0xf73   :  { %15156 = vmatprep.mubr.msk.f32.mxu0 %vm17623_vm10, %v17618_v11  ;;  %15167 = vmatprep.mubr.msk.f32.mxu1 %vm17623_vm10, %v17618_v11 }
 0xf75   :  { %16494 = vmatpush3.bf16.msra.mxu0 %v18280_v22  ;;  %16500 = vmatpush3.bf16.msra.mxu1 %v18282_v38 }
 0xf76   :  { %16501 = vmatprep.subr.bf16.mxu0 %v17622_v34  ;;  %16507 = vmatprep.subr.bf16.mxu1 %v17622_v34 }
0x103b   :  { %v5809_v23 = vpop.f32.mrb[60].mxu0  ;;  %v5887_v25 = vpop.f32.mrb[56].mxu1 }
0x103c   :  { %v5813_v30 = vadd.f32 %v5809_v23, %v5739_v21  ;;  %v5891_v31 = vadd.f32 %v5887_v25, %v5820_v24  ;;  %v15114_v33 = vpop.f32.mrb[61].mxu0  ;;  %v15125_v35 = vpop.f32.mrb[57].mxu1 }
0x103e   :  { %v13530_v29 = vmul.f32 -1.442695, %v5813_v30  ;;  %v13532_v10 = vmul.f32 -1.442695, %v5891_v31 }
0x1040   :  { %17220 = vpow2.f32 %v13530_v29 }
0x1041   :  { %17222 = vpow2.f32 %v13532_v10 }
0x1043   :  { %v5965_v39 = vpop.f32.mrb[62].mxu0  ;;  %v6038_v44 = vpop.f32.mrb[58].mxu1 }
0x1044   :  { %v6042_v45 = vadd.f32 %v6038_v44, %v5971_v41  ;;  %v15136_v46 = vpop.f32.mrb[63].mxu0  ;;  %v15147_v47 = vpop.f32.mrb[59].mxu1  ;;  %v5969_v50 = vadd.f32 %v5965_v39, %v5898_v49 }
0x1045   :  { %v6452_v47 = vld [vmem:[#allocation3 + $0x1c] sm:$0x3] }
0x1046   :  { %v13535_v18 = vmul.f32 -1.442695, %v6042_v45 }
0x1048   :  { %17224 = vpow2.f32 %v13535_v18 }
0x1049   :  { %17226 = vtanh.f32 %v5969_v50 }
0x104a   :  { %v17221_v51 = vpop.eup %17220 }
0x104b   :  { %v17223_v52 = vpop.eup %17222  ;;  %v5817_v53 = vadd.f32 1.0, %v17221_v51 }
0x104c   :  { %v5895_v54 = vadd.f32 1.0, %v17223_v52 }
0x104d   :  { %17228 = vrcp.f32 %v5817_v53 }
0x104e   :  { %17230 = vrcp.f32 %v5895_v54 }
0x1052   :  { %v17225_v55 = vpop.eup %17224 }
0x1053   :  { %v17227_v56 = vpop.eup %17226  ;;  %v6046_v60 = vadd.f32 1.0, %v17225_v55 }
0x1055   :  { %17232 = vrcp.f32 %v6046_v60 }
0x1057   :  { %v17229_v57 = vpop.eup %17228 }
0x1058   :  { %v17231_v58 = vpop.eup %17230  ;;  %v6050_v59 = vmul.f32 %v17229_v57, %v17227_v56 }
0x1059   :  { %v6049_v61 = vmul.f32 %v17231_v58, %v18489_v40 }
0x105b   :  { %v18522_v62 = vadd.f32 %v6050_v59, %v6049_v61  ;;  %v6530_v59 = vld [vmem:[#allocation3 + $0x2c] sm:$0x3] }
0x105d   :  { %17234 = vtanh.f32 %v18522_v62 }
0x105f   :  { %v17233_v63 = vpop.eup %17232 }
0x1067   :  { %v17235_v0 = vpop.eup %17234 }
0x1068   :  { %v6053_v1 = vmul.f32 %v17235_v0, %v17233_v63 }
0x106a   :  { %6054 = vst.msk [vmem:[#allocation2 + $0x8] sm:$0x3] %vm639_vm9, %v6053_v1  ;;  %15157 = vmatmul.mubr.msk.f32.vlgmr.msra.gmra.mrb[64].mxu0 %vm436_vm6, %v6053_v1  ;;  %15168 = vmatmul.mubr.msk.f32.vlgmr.msra.gmra.mrb[60].mxu1 %vm436_vm6, %v6053_v1 }
0x106b   :  { %16503 = vmatpush3.bf16.msra.mxu0 %v18292_v42  ;;  %16509 = vmatpush3.bf16.msra.mxu1 %v18294_v43 }
0x106c   :  { %16504 = vmatprep.subr.bf16.mxu0 %v17622_v34  ;;  %16510 = vmatprep.subr.bf16.mxu1 %v17622_v34 }
0x106d   :  { %15178 = vmatprep.mubr.msk.f32.mxu0 %vm17623_vm10, %v17618_v11  ;;  %15189 = vmatprep.mubr.msk.f32.mxu1 %vm17623_vm10, %v17618_v11 }
0x106f   :  { %16506 = vmatpush3.bf16.msra.mxu0 %v18302_v48  ;;  %16512 = vmatpush3.bf16.msra.mxu1 %v18304_v32 }
0x1070   :  { %16513 = vmatprep.subr.bf16.mxu0 %v17622_v34  ;;  %16519 = vmatprep.subr.bf16.mxu1 %v17622_v34 }
0x1072   :  { %15179 = vmatmul.mubr.msk.f32.vlgmr.msra.gmra.mrb[66].mxu0 %vm436_vm6, %v6053_v1  ;;  %15190 = vmatmul.mubr.msk.f32.vlgmr.msra.gmra.mrb[62].mxu1 %vm436_vm6, %v6053_v1 }
0x1073   :  { %16515 = vmatpush3.bf16.msra.mxu0 %v18270_v27  ;;  %16521 = vmatpush3.bf16.msra.mxu1 %v18272_v28 }
0x1074   :  { %16516 = vmatprep.subr.bf16.mxu0 %v17622_v34  ;;  %16522 = vmatprep.subr.bf16.mxu1 %v17622_v34 }
0x1075   :  { %15200 = vmatprep.mubr.msk.f32.mxu0 %vm17623_vm10, %v17618_v11  ;;  %15211 = vmatprep.mubr.msk.f32.mxu1 %vm17623_vm10, %v17618_v11 }
0x1077   :  { %16518 = vmatpush3.bf16.msra.mxu0 %v18280_v22  ;;  %16524 = vmatpush3.bf16.msra.mxu1 %v18282_v38 }
0x1078   :  { %16525 = vmatprep.subr.bf16.mxu0 %v17622_v34  ;;  %16531 = vmatprep.subr.bf16.mxu1 %v17622_v34 }
0x113d   :  { %v6125_v5 = vpop.f32.mrb[64].mxu0  ;;  %v6203_v7 = vpop.f32.mrb[60].mxu1 }
0x113e   :  { %v6129_v9 = vadd.f32 %v6125_v5, %v6055_v4  ;;  %v6207_v12 = vadd.f32 %v6203_v7, %v6136_v6  ;;  %v15158_v14 = vpop.f32.mrb[65].mxu0  ;;  %v15169_v3 = vpop.f32.mrb[61].mxu1 }
0x1140   :  { %v13537_v15 = vmul.f32 -1.442695, %v6129_v9  ;;  %v13539_v16 = vmul.f32 -1.442695, %v6207_v12 }
0x1142   :  { %17236 = vpow2.f32 %v13537_v15 }
0x1143   :  { %17238 = vpow2.f32 %v13539_v16  ;;  %v7006_v16 = vld [vmem:[#allocation2 + $0x6] sm:$0x3] }
0x1145   :  { %v6281_v37 = vpop.f32.mrb[66].mxu0  ;;  %v6354_v8 = vpop.f32.mrb[62].mxu1 }
0x1146   :  { %v6358_v2 = vadd.f32 %v6354_v8, %v6287_v17  ;;  %v15180_v19 = vpop.f32.mrb[67].mxu0  ;;  %v15191_v40 = vpop.f32.mrb[63].mxu1  ;;  %v6285_v20 = vadd.f32 %v6281_v37, %v6214_v13  ;;  %v7004_v8 = vld [vmem:[#allocation2 + $0x2] sm:$0x3] }
0x1147   :  { %v7003_v40 = vld [vmem:[#allocation2] sm:$0x3] }
0x1148   :  { %v13542_v26 = vmul.f32 -1.442695, %v6358_v2  ;;  %v7005_v2 = vld [vmem:[#allocation2 + $0x4] sm:$0x3]  ;;  %v7032_v13 = vcombine.low %v7003_v40, %v7004_v8 }
0x1149   :  { %v7033_v19 = vcombine.low %v7005_v2, %v7006_v16  ;;  %v7007_v2 = vld [vmem:[#allocation2 + $0x8] sm:$0x3] }
0x114a   :  { %17240 = vpow2.f32 %v13542_v26 }
0x114b   :  { %17242 = vtanh.f32 %v6285_v20  ;;  %v7047_v26 = vrot.slane %v7033_v19, %v17755_v36  ;;  %v7012_v20 = vld [vmem:[#allocation4 + $0x100] sm:$0xff] }
0x114c   :  { %v17237_v21 = vpop.eup %17236 }
0x114d   :  { %v17239_v23 = vpop.eup %17238  ;;  %v6133_v24 = vadd.f32 1.0, %v17237_v21  ;;  %v7013_v21 = vld [vmem:[#allocation4 + $0x108] sm:$0xff] }
0x114e   :  { %v6211_v25 = vadd.f32 1.0, %v17239_v23  ;;  %v7198_v23 = vld [vmem:[#allocation4 + $0x120] sm:$0xff] }
0x114f   :  { %17244 = vrcp.f32 %v6133_v24  ;;  %v7199_v24 = vld [vmem:[#allocation4 + $0x128] sm:$0xff] }
0x1150   :  { %17246 = vrcp.f32 %v6211_v25  ;;  %v7015_v25 = vld [vmem:[#allocation4 + $0x118] sm:$0xff] }
0x1154   :  { %v17241_v30 = vpop.eup %17240 }
0x1155   :  { %v17243_v31 = vpop.eup %17242  ;;  %v6362_v10 = vadd.f32 1.0, %v17241_v30  ;;  %v16569_v30 = vpack.c.bf16 %v7199_v24, %v7198_v23  ;;  %v7480_v23 = vld [vmem:[#allocation4 + $0x170] sm:$0xff] }
0x1157   :  { %17248 = vrcp.f32 %v6362_v10 }
0x1159   :  { %v17245_v33 = vpop.eup %17244 }
0x115a   :  { %v17247_v35 = vpop.eup %17246  ;;  %v6366_v29 = vmul.f32 %v17245_v33, %v17243_v31  ;;  %v7200_v33 = vld [vmem:[#allocation4 + $0x130] sm:$0xff] }
0x115b   :  { %v6365_v39 = vmul.f32 %v17247_v35, %v18522_v62  ;;  %v7201_v35 = vld [vmem:[#allocation4 + $0x138] sm:$0xff] }
0x115c   :  { %v16573_v10 = vpack.c.bf16 %v7201_v35, %v7200_v33  ;;  %v7623_v33 = vld [vmem:[#allocation7 + $0x120] sm:$0xff]  ;;  %v7624_v35 = vld [vmem:[#allocation7 + $0x128] sm:$0xff] }
0x115d   :  { %v18555_v41 = vadd.f32 %v6366_v29, %v6365_v39  ;;  %v7338_v29 = vld [vmem:[#allocation4 + $0x140] sm:$0xff]  ;;  %v7339_v39 = vld [vmem:[#allocation4 + $0x148] sm:$0xff] }
0x115f   :  { %17250 = vtanh.f32 %v18555_v41 }
0x1161   :  { %v17249_v44 = vpop.eup %17248 }
0x1169   :  { %v17251_v45 = vpop.eup %17250 }
0x116a   :  { %v6369_v46 = vmul.f32 %v17251_v45, %v17249_v44  ;;  %v7479_v44 = vld [vmem:[#allocation4 + $0x168] sm:$0xff]  ;;  %v18614_v45 = vpack.c.bf16 %v7339_v39, %v7338_v29  ;;  %v7620_v39 = vld [vmem:[#allocation7 + $0x110] sm:$0xff] }
0x116c   :  { %6370 = vst.msk [vmem:[#allocation2 + $0xa] sm:$0x3] %vm639_vm9, %v6369_v46  ;;  %15201 = vmatmul.mubr.msk.f32.vlgmr.msra.gmra.mrb[68].mxu0 %vm436_vm6, %v6369_v46  ;;  %15212 = vmatmul.mubr.msk.f32.vlgmr.msra.gmra.mrb[64].mxu1 %vm436_vm6, %v6369_v46 }
0x116d   :  { %16527 = vmatpush3.bf16.msra.mxu0 %v18292_v42  ;;  %16533 = vmatpush3.bf16.msra.mxu1 %v18294_v43 }
0x116e   :  { %16528 = vmatprep.subr.bf16.mxu0 %v17622_v34  ;;  %16534 = vmatprep.subr.bf16.mxu1 %v17622_v34 }
0x116f   :  { %15222 = vmatprep.mubr.msk.f32.mxu0 %vm17623_vm10, %v17618_v11  ;;  %15233 = vmatprep.mubr.msk.f32.mxu1 %vm17623_vm10, %v17618_v11 }
0x1171   :  { %16530 = vmatpush3.bf16.msra.mxu0 %v18302_v48  ;;  %16536 = vmatpush3.bf16.msra.mxu1 %v18304_v32 }
0x1172   :  { %16537 = vmatprep.subr.bf16.mxu0 %v17622_v34  ;;  %16543 = vmatprep.subr.bf16.mxu1 %v17622_v34 }
0x1173   :  { %v7008_v8 = vld [vmem:[#allocation2 + $0xa] sm:$0x3] }
0x1174   :  { %15223 = vmatmul.mubr.msk.f32.vlgmr.msra.gmra.mrb[70].mxu0 %vm436_vm6, %v6369_v46  ;;  %15234 = vmatmul.mubr.msk.f32.vlgmr.msra.gmra.mrb[66].mxu1 %vm436_vm6, %v6369_v46  ;;  %v7049_v19 = vcombine.low %v7007_v2, %v7008_v8 }
0x1175   :  { %16539 = vmatpush3.bf16.msra.mxu0 %v18270_v27  ;;  %16545 = vmatpush3.bf16.msra.mxu1 %v18272_v28  ;;  %v6371_v27 = vld [vmem:[#allocation3 + $0xc] sm:$0x3] }
0x1176   :  { %16540 = vmatprep.subr.bf16.mxu0 %v17622_v34  ;;  %16546 = vmatprep.subr.bf16.mxu1 %v17622_v34 }
0x1177   :  { %15244 = vmatprep.mubr.msk.f32.mxu0 %vm17623_vm10, %v17618_v11  ;;  %15255 = vmatprep.mubr.msk.f32.mxu1 %vm17623_vm10, %v17618_v11 }
0x1179   :  { %16542 = vmatpush3.bf16.msra.mxu0 %v18280_v22  ;;  %16548 = vmatpush3.bf16.msra.mxu1 %v18282_v38  ;;  %v6603_v22 = vld [vmem:[#allocation3 + $0x3c] sm:$0x3] }
0x117a   :  { %16549 = vmatprep.subr.bf16.mxu0 %v17622_v34  ;;  %16555 = vmatprep.subr.bf16.mxu1 %v17622_v34 }
0x123f   :  { %v6441_v28 = vpop.f32.mrb[68].mxu0  ;;  %v6519_v49 = vpop.f32.mrb[64].mxu1 }
0x1240   :  { %v6445_v18 = vadd.f32 %v6441_v28, %v6371_v27  ;;  %v6523_v50 = vadd.f32 %v6519_v49, %v6452_v47  ;;  %v15202_v51 = vpop.f32.mrb[69].mxu0  ;;  %v15213_v52 = vpop.f32.mrb[65].mxu1  ;;  %v6687_v27 = vld [vmem:[#allocation3 + $0xe] sm:$0x3]  ;;  %v6768_v47 = vld [vmem:[#allocation3 + $0x1e] sm:$0x3] }
0x1242   :  { %v13544_v53 = vmul.f32 -1.442695, %v6445_v18  ;;  %v13546_v54 = vmul.f32 -1.442695, %v6523_v50 }
0x1244   :  { %17252 = vpow2.f32 %v13544_v53 }
0x1245   :  { %17254 = vpow2.f32 %v13546_v54 }
0x1247   :  { %v6597_v55 = vpop.f32.mrb[70].mxu0  ;;  %v6670_v56 = vpop.f32.mrb[66].mxu1 }
0x1248   :  { %v6674_v38 = vadd.f32 %v6670_v56, %v6603_v22  ;;  %v15224_v57 = vpop.f32.mrb[71].mxu0  ;;  %v15235_v58 = vpop.f32.mrb[67].mxu1  ;;  %v6601_v61 = vadd.f32 %v6597_v55, %v6530_v59  ;;  %v6919_v22 = vld [vmem:[#allocation3 + $0x3e] sm:$0x3]  ;;  %v6846_v59 = vld [vmem:[#allocation3 + $0x2e] sm:$0x3] }
0x124a   :  { %v13549_v60 = vmul.f32 -1.442695, %v6674_v38 }
0x124c   :  { %17256 = vpow2.f32 %v13549_v60 }
0x124d   :  { %17258 = vtanh.f32 %v6601_v61 }
0x124e   :  { %v17253_v62 = vpop.eup %17252 }
0x124f   :  { %v17255_v63 = vpop.eup %17254  ;;  %v6449_v0 = vadd.f32 1.0, %v17253_v62 }
0x1250   :  { %v6527_v1 = vadd.f32 1.0, %v17255_v63 }
0x1251   :  { %17260 = vrcp.f32 %v6449_v0 }
0x1252   :  { %17262 = vrcp.f32 %v6527_v1 }
0x1256   :  { %v17257_v4 = vpop.eup %17256 }
0x1257   :  { %v17259_v5 = vpop.eup %17258  ;;  %v6678_v12 = vadd.f32 1.0, %v17257_v4 }
0x1259   :  { %17264 = vrcp.f32 %v6678_v12 }
0x125b   :  { %v17261_v6 = vpop.eup %17260 }
0x125c   :  { %v17263_v7 = vpop.eup %17262  ;;  %v6682_v9 = vmul.f32 %v17261_v6, %v17259_v5 }
0x125d   :  { %v6681_v14 = vmul.f32 %v17263_v7, %v18555_v41  ;;  %v7478_v41 = vld [vmem:[#allocation4 + $0x160] sm:$0xff] }
0x125e   :  { %v18616_v46 = vpack.c.bf16 %v7479_v44, %v7478_v41  ;;  %v7621_v41 = vld [vmem:[#allocation7 + $0x118] sm:$0xff]  ;;  %v7625_v44 = vld [vmem:[#allocation7 + $0x130] sm:$0xff] }
0x125f   :  { %v18588_v3 = vadd.f32 %v6682_v9, %v6681_v14 }
0x1261   :  { %17266 = vtanh.f32 %v18588_v3 }
0x1263   :  { %v17265_v15 = vpop.eup %17264 }
0x126b   :  { %v17267_v37 = vpop.eup %17266 }
0x126c   :  { %v6685_v17 = vmul.f32 %v17267_v37, %v17265_v15 }
0x126e   :  { %6686 = vst.msk [vmem:[#allocation2 + $0xc] sm:$0x3] %vm639_vm9, %v6685_v17  ;;  %15245 = vmatmul.mubr.msk.f32.vlgmr.msra.gmra.mrb[72].mxu0 %vm436_vm6, %v6685_v17  ;;  %15256 = vmatmul.mubr.msk.f32.vlgmr.msra.gmra.mrb[68].mxu1 %vm436_vm6, %v6685_v17 }
0x126f   :  { %16551 = vmatpush3.bf16.msra.mxu0 %v18292_v42  ;;  %16557 = vmatpush3.bf16.msra.mxu1 %v18294_v43  ;;  %v7040_v42 = vrot.slane %v7032_v13, %v17755_v36 }
0x1270   :  { %16552 = vmatprep.subr.bf16.mxu0 %v17622_v34  ;;  %16558 = vmatprep.subr.bf16.mxu1 %v17622_v34 }
0x1271   :  { %15266 = vmatprep.mubr.msk.f32.mxu0 %vm17623_vm10, %v17618_v11  ;;  %15277 = vmatprep.mubr.msk.f32.mxu1 %vm17623_vm10, %v17618_v11  ;;  %v18606_v43 = vcombine.low %v7040_v42, %v7047_v26  ;;  %v7340_v42 = vld [vmem:[#allocation4 + $0x150] sm:$0xff] }
0x1273   :  { %16554 = vmatpush3.bf16.msra.mxu0 %v18302_v48  ;;  %16560 = vmatpush3.bf16.msra.mxu1 %v18304_v32  ;;  %v16561_v48 = vpack.c.bf16 %v7013_v21, %v7012_v20  ;;  %v7014_v32 = vld [vmem:[#allocation4 + $0x110] sm:$0xff]  ;;  %v7057_v20 = vrot.slane %v7049_v19, %v17755_v36 }
0x1274   :  { %v16565_v31 = vpack.c.bf16 %v7015_v25, %v7014_v32  ;;  %16570 = vmatprep.subr.bf16.mxu1 %v16569_v30 }
0x1275   :  { %16562 = vmatprep.subr.bf16.mxu0 %v16561_v48  ;;  %v7009_v40 = vld [vmem:[#allocation2 + $0xc] sm:$0x3] }
0x1276   :  { %15267 = vmatmul.mubr.msk.f32.vlgmr.msra.gmra.mrb[74].mxu0 %vm436_vm6, %v6685_v17  ;;  %15278 = vmatmul.mubr.msk.f32.vlgmr.msra.gmra.mrb[70].mxu1 %vm436_vm6, %v6685_v17 }
0x1277   :  { %15288 = vmatprep.mubr.msk.f32.mxu0 %vm436_vm6, %v18606_v43  ;;  %15299 = vmatprep.mubr.msk.f32.mxu1 %vm436_vm6, %v18606_v43 }
0x1278   :  { %16564 = vmatpush3.bf16.msra.mxu0 %v16561_v48  ;;  %16572 = vmatpush3.bf16.msra.mxu1 %v16569_v30  ;;  %v7481_v48 = vld [vmem:[#allocation4 + $0x178] sm:$0xff]  ;;  %v7618_v30 = vld [vmem:[#allocation7 + $0x100] sm:$0xff] }
0x1279   :  { %16566 = vmatprep.subr.bf16.mxu0 %v16565_v31  ;;  %16574 = vmatprep.subr.bf16.mxu1 %v16573_v10  ;;  %v16589_v25 = vpack.c.bf16 %v7481_v48, %v7480_v23 }
0x127c   :  { %16568 = vmatpush3.bf16.msra.mxu0 %v16565_v31  ;;  %16576 = vmatpush3.bf16.msra.mxu1 %v16573_v10  ;;  %v7619_v31 = vld [vmem:[#allocation7 + $0x108] sm:$0xff]  ;;  %v18634_v10 = vpack.c.bf16 %v7624_v35, %v7623_v33 }
0x127d   :  { %16578 = vmatprep.subr.bf16.mxu0 %v18614_v45  ;;  %16586 = vmatprep.subr.bf16.mxu1 %v18616_v46  ;;  %v18632_v29 = vpack.c.bf16 %v7619_v31, %v7618_v30 }
0x1341   :  { %v6757_v28 = vpop.f32.mrb[72].mxu0  ;;  %v6835_v49 = vpop.f32.mrb[68].mxu1 }
0x1342   :  { %v6761_v18 = vadd.f32 %v6757_v28, %v6687_v27  ;;  %v6839_v50 = vadd.f32 %v6835_v49, %v6768_v47  ;;  %v15246_v51 = vpop.f32.mrb[73].mxu0  ;;  %v15257_v52 = vpop.f32.mrb[69].mxu1  ;;  %v7628_v27 = vld [vmem:[#allocation7 + $0x140] sm:$0xff]  ;;  %v7629_v28 = vld [vmem:[#allocation7 + $0x148] sm:$0xff] }
0x1343   :  { %v7633_v47 = vld [vmem:[#allocation7 + $0x160] sm:$0xff]  ;;  %v7634_v49 = vld [vmem:[#allocation7 + $0x168] sm:$0xff]  ;;  %v7630_v51 = vld [vmem:[#allocation7 + $0x150] sm:$0xff] }
0x1344   :  { %v13551_v53 = vmul.f32 -1.442695, %v6761_v18  ;;  %v13553_v54 = vmul.f32 -1.442695, %v6839_v50  ;;  %v18654_v18 = vpack.c.bf16 %v7629_v28, %v7628_v27  ;;  %v18656_v50 = vpack.c.bf16 %v7634_v49, %v7633_v47  ;;  %v7631_v52 = vld [vmem:[#allocation7 + $0x158] sm:$0xff] }
0x1346   :  { %17268 = vpow2.f32 %v13551_v53  ;;  %v7635_v53 = vld [vmem:[#allocation7 + $0x170] sm:$0xff] }
0x1347   :  { %17270 = vpow2.f32 %v13553_v54  ;;  %v7636_v54 = vld [vmem:[#allocation7 + $0x178] sm:$0xff] }
0x1349   :  { %v6913_v55 = vpop.f32.mrb[74].mxu0  ;;  %v6986_v56 = vpop.f32.mrb[70].mxu1 }
0x134a   :  { %v6990_v38 = vadd.f32 %v6986_v56, %v6919_v22  ;;  %v15268_v57 = vpop.f32.mrb[75].mxu0  ;;  %v15279_v58 = vpop.f32.mrb[71].mxu1  ;;  %v6917_v61 = vadd.f32 %v6913_v55, %v6846_v59  ;;  %v18664_v55 = vpack.c.bf16 %v7631_v52, %v7630_v51  ;;  %v18666_v22 = vpack.c.bf16 %v7636_v54, %v7635_v53  ;;  %v13558_v56 = vld [vmem:[%s19363_s7 + $0x8] ss:$0 sm:$0xff] }
0x134c   :  { %v13556_v60 = vmul.f32 -1.442695, %v6990_v38  ;;  %v13562_v38 = vld [vmem:[%s19363_s7 + $0x9] ss:$0 sm:$0xff] }
0x134e   :  { %17272 = vpow2.f32 %v13556_v60 }
0x134f   :  { %17274 = vtanh.f32 %v6917_v61 }
0x1350   :  { %v17269_v62 = vpop.eup %17268 }
0x1351   :  { %v17271_v63 = vpop.eup %17270  ;;  %v6765_v0 = vadd.f32 1.0, %v17269_v62 }
0x1352   :  { %v6843_v1 = vadd.f32 1.0, %v17271_v63 }
0x1353   :  { %17276 = vrcp.f32 %v6765_v0 }
0x1354   :  { %17278 = vrcp.f32 %v6843_v1 }
0x1358   :  { %v17273_v4 = vpop.eup %17272 }
0x1359   :  { %v17275_v5 = vpop.eup %17274  ;;  %v6994_v12 = vadd.f32 1.0, %v17273_v4 }
0x135b   :  { %17280 = vrcp.f32 %v6994_v12 }
0x135d   :  { %v17277_v6 = vpop.eup %17276 }
0x135e   :  { %v17279_v7 = vpop.eup %17278  ;;  %v6998_v9 = vmul.f32 %v17277_v6, %v17275_v5 }
0x135f   :  { %v6997_v14 = vmul.f32 %v17279_v7, %v18588_v3  ;;  %v7341_v3 = vld [vmem:[#allocation4 + $0x158] sm:$0xff] }
0x1360   :  { %v16581_v32 = vpack.c.bf16 %v7341_v3, %v7340_v42 }
0x1361   :  { %v6999_v15 = vadd.f32 %v6998_v9, %v6997_v14 }
0x1363   :  { %17282 = vtanh.f32 %v6999_v15 }
0x1365   :  { %v17281_v16 = vpop.eup %17280 }
0x136d   :  { %v17283_v37 = vpop.eup %17282 }
0x136e   :  { %v7001_v17 = vmul.f32 %v17283_v37, %v17281_v16 }
0x1370   :  { %7002 = vst.msk [vmem:[#allocation2 + $0xe] sm:$0x3] %vm639_vm9, %v7001_v17 }
0x1377   :  { %v7010_v13 = vld [vmem:[#allocation2 + $0xe] sm:$0x3] }
0x1378   :  { %v7050_v26 = vcombine.low %v7009_v40, %v7010_v13  ;;  %v13566_v13 = vld [vmem:[%s19363_s7 + $0xa] ss:$0 sm:$0xff] }
0x137a   :  { %v7064_v21 = vrot.slane %v7050_v26, %v17755_v36  ;;  %v13570_v26 = vld [vmem:[%s19363_s7 + $0xb] ss:$0 sm:$0xff] }
0x137c   :  { %v7065_v24 = vcombine.low %v7057_v20, %v7064_v21 }
0x137e   :  { %15289 = vmatmul.mubr.msk.f32.vlgmr.msra.gmra.mrb[76].mxu0 %vm436_vm6, %v7065_v24  ;;  %15300 = vmatmul.mubr.msk.f32.vlgmr.msra.gmra.mrb[72].mxu1 %vm436_vm6, %v7065_v24 }
0x137f   :  { %16580 = vmatpush3.bf16.msra.mxu0 %v18614_v45  ;;  %16588 = vmatpush3.bf16.msra.mxu1 %v18616_v46  ;;  %v7626_v45 = vld [vmem:[#allocation7 + $0x138] sm:$0xff] }
0x1380   :  { %15310 = vmatprep.mubr.msk.f32.mxu0 %vm436_vm6, %v18606_v43  ;;  %15321 = vmatprep.mubr.msk.f32.mxu1 %vm436_vm6, %v18606_v43  ;;  %v18642_v43 = vpack.c.bf16 %v7621_v41, %v7620_v39  ;;  %v18644_v46 = vpack.c.bf16 %v7626_v45, %v7625_v44 }
0x1381   :  { %16582 = vmatprep.subr.bf16.mxu0 %v16581_v32  ;;  %16590 = vmatprep.subr.bf16.mxu1 %v16589_v25 }
0x1383   :  { %16584 = vmatpush3.bf16.msra.mxu0 %v16581_v32  ;;  %16592 = vmatpush3.bf16.msra.mxu1 %v16589_v25 }
0x1384   :  { %16593 = vmatprep.subr.bf16.mxu0 %v17622_v34  ;;  %16599 = vmatprep.subr.bf16.mxu1 %v17622_v34 }
0x1386   :  { %15311 = vmatmul.mubr.msk.f32.vlgmr.msra.gmra.mrb[78].mxu0 %vm436_vm6, %v7065_v24  ;;  %15322 = vmatmul.mubr.msk.f32.vlgmr.msra.gmra.mrb[74].mxu1 %vm436_vm6, %v7065_v24 }
0x1387   :  { %16595 = vmatpush3.bf16.msra.mxu0 %v18632_v29  ;;  %16601 = vmatpush3.bf16.msra.mxu1 %v18634_v10 }
0x1388   :  { %16596 = vmatprep.subr.bf16.mxu0 %v17622_v34  ;;  %16602 = vmatprep.subr.bf16.mxu1 %v17622_v34 }
0x1389   :  { %15332 = vmatprep.mubr.msk.f32.mxu0 %vm17623_vm10, %v17618_v11  ;;  %15343 = vmatprep.mubr.msk.f32.mxu1 %vm17623_vm10, %v17618_v11 }
0x138b   :  { %16598 = vmatpush3.bf16.msra.mxu0 %v18642_v43  ;;  %16604 = vmatpush3.bf16.msra.mxu1 %v18644_v46 }
0x138c   :  { %16605 = vmatprep.subr.bf16.mxu0 %v17622_v34  ;;  %16611 = vmatprep.subr.bf16.mxu1 %v17622_v34 }
0x138e   :  { %15333 = vmatmul.mubr.f32.vlgmr.msra.gmra.mrb[80].mxu0 %v17618_v11  ;;  %15344 = vmatmul.mubr.f32.vlgmr.msra.gmra.mrb[76].mxu1 %v17618_v11 }
0x138f   :  { %16607 = vmatpush3.bf16.msra.mxu0 %v18654_v18  ;;  %16613 = vmatpush3.bf16.msra.mxu1 %v18656_v50 }
0x1390   :  { %16608 = vmatprep.subr.bf16.mxu0 %v17622_v34  ;;  %16614 = vmatprep.subr.bf16.mxu1 %v17622_v34 }
0x1391   :  { %15354 = vmatprep.mubr.msk.f32.mxu0 %vm17623_vm10, %v17618_v11  ;;  %15365 = vmatprep.mubr.msk.f32.mxu1 %vm17623_vm10, %v17618_v11 }
0x1393   :  { %16610 = vmatpush3.bf16.msra.mxu0 %v18664_v55  ;;  %16616 = vmatpush3.bf16.msra.mxu1 %v18666_v22 }
0x1394   :  { %16617 = vmatprep.subr.bf16.mxu0 %v17622_v34  ;;  %16623 = vmatprep.subr.bf16.mxu1 %v17622_v34 }
0x1396   :  { %15355 = vmatmul.mubr.f32.vlgmr.msra.gmra.mrb[82].mxu0 %v17618_v11  ;;  %15366 = vmatmul.mubr.f32.vlgmr.msra.gmra.mrb[78].mxu1 %v17618_v11 }
0x1397   :  { %16619 = vmatpush3.bf16.msra.mxu0 %v18632_v29  ;;  %16625 = vmatpush3.bf16.msra.mxu1 %v18634_v10 }
0x1398   :  { %16620 = vmatprep.subr.bf16.mxu0 %v17622_v34  ;;  %16626 = vmatprep.subr.bf16.mxu1 %v17622_v34 }
0x1399   :  { %15376 = vmatprep.mubr.msk.f32.mxu0 %vm17623_vm10, %v17618_v11  ;;  %15387 = vmatprep.mubr.msk.f32.mxu1 %vm17623_vm10, %v17618_v11 }
0x139b   :  { %16622 = vmatpush3.bf16.msra.mxu0 %v18642_v43  ;;  %16628 = vmatpush3.bf16.msra.mxu1 %v18644_v46 }
0x139c   :  { %16629 = vmatprep.subr.bf16.mxu0 %v17622_v34  ;;  %16635 = vmatprep.subr.bf16.mxu1 %v17622_v34 }
0x1451   :  { %v15290_v57 = vpop.f32.mrb[76].mxu0  ;;  %v15301_v58 = vpop.f32.mrb[72].mxu1 }
0x1452   :  { %v7142_v59 = vadd.f32 %v15290_v57, %v13558_v56  ;;  %v7282_v60 = vadd.f32 %v15301_v58, %v13562_v38  ;;  %v7136_v61 = vpop.f32.mrb[77].mxu0  ;;  %v7276_v62 = vpop.f32.mrb[73].mxu1 }
0x1453   :  { %v7137_v63 = vadd.f32 %v13558_v56, %v7136_v61  ;;  %v7277_v0 = vadd.f32 %v13562_v38, %v7276_v62 }
0x1454   :  { %v7164_v1 = vcombine.high %v7142_v59, %v7142_v59  ;;  %v7171_v4 = vrot.slane %v7142_v59, %v17755_v36  ;;  %v7304_v5 = vcombine.high %v7282_v60, %v7282_v60  ;;  %v7311_v6 = vrot.slane %v7282_v60, %v17755_v36 }
0x1455   :  { %v7147_v7 = vcombine.high %v7137_v63, %v7137_v63  ;;  %v7154_v9 = vrot.slane %v7137_v63, %v17755_v36  ;;  %v7287_v12 = vcombine.high %v7277_v0, %v7277_v0  ;;  %v7294_v14 = vrot.slane %v7277_v0, %v17755_v36 }
0x1456   :  { %v7178_v15 = vrot.slane %v7164_v1, %v17755_v36  ;;  %v7179_v16 = vcombine.high %v7171_v4, %v7171_v4  ;;  %7193 = vst.msk [vmem:[#allocation3 + $0x8] sm:$0x3] %vm639_vm9, %v7171_v4  ;;  %v7318_v37 = vrot.slane %v7304_v5, %v17755_v36  ;;  %v7319_v17 = vcombine.high %v7311_v6, %v7311_v6 }
0x1457   :  { %7333 = vst.msk [vmem:[#allocation3 + $0x18] sm:$0x3] %vm639_vm9, %v7311_v6  ;;  %v7161_v8 = vrot.slane %v7147_v7, %v17755_v36  ;;  %v7162_v2 = vcombine.high %v7154_v9, %v7154_v9  ;;  %7189 = vst.msk [vmem:[#allocation3] sm:$0x3] %vm639_vm9, %v7154_v9  ;;  %v7301_v19 = vrot.slane %v7287_v12, %v17755_v36 }
0x1458   :  { %v7302_v40 = vcombine.high %v7294_v14, %v7294_v14  ;;  %7329 = vst.msk [vmem:[#allocation3 + $0x10] sm:$0x3] %vm639_vm9, %v7294_v14  ;;  %v7180_v42 = vcombine.high %v7178_v15, %v7178_v15  ;;  %7194 = vst.msk [vmem:[#allocation3 + $0xa] sm:$0x3] %vm639_vm9, %v7179_v16  ;;  %v7320_v20 = vcombine.high %v7318_v37, %v7318_v37 }
0x1459   :  { %7195 = vst.msk [vmem:[#allocation3 + $0xc] sm:$0x3] %vm639_vm9, %v7178_v15  ;;  %7334 = vst.msk [vmem:[#allocation3 + $0x1a] sm:$0x3] %vm639_vm9, %v7319_v17  ;;  %v7163_v21 = vcombine.high %v7161_v8, %v7161_v8  ;;  %v7303_v3 = vcombine.high %v7301_v19, %v7301_v19  ;;  %v15312_v23 = vpop.f32.mrb[78].mxu0  ;;  %v15323_v48 = vpop.f32.mrb[74].mxu1 }
0x145a   :  { %7335 = vst.msk [vmem:[#allocation3 + $0x1c] sm:$0x3] %vm639_vm9, %v7318_v37  ;;  %7190 = vst.msk [vmem:[#allocation3 + $0x2] sm:$0x3] %vm639_vm9, %v7162_v2  ;;  %v7422_v24 = vadd.f32 %v15312_v23, %v13566_v13  ;;  %v7562_v32 = vadd.f32 %v15323_v48, %v13570_v26  ;;  %v7416_v25 = vpop.f32.mrb[79].mxu0  ;;  %v7556_v30 = vpop.f32.mrb[75].mxu1 }
0x145b   :  { %7191 = vst.msk [vmem:[#allocation3 + $0x4] sm:$0x3] %vm639_vm9, %v7161_v8  ;;  %7330 = vst.msk [vmem:[#allocation3 + $0x12] sm:$0x3] %vm639_vm9, %v7302_v40  ;;  %v7417_v31 = vadd.f32 %v13566_v13, %v7416_v25  ;;  %v7557_v33 = vadd.f32 %v13570_v26, %v7556_v30 }
0x145c   :  { %7331 = vst.msk [vmem:[#allocation3 + $0x14] sm:$0x3] %vm639_vm9, %v7301_v19  ;;  %7196 = vst.msk [vmem:[#allocation3 + $0xe] sm:$0x3] %vm639_vm9, %v7180_v42  ;;  %v7444_v35 = vcombine.high %v7422_v24, %v7422_v24  ;;  %v7451_v39 = vrot.slane %v7422_v24, %v17755_v36  ;;  %v7584_v41 = vcombine.high %v7562_v32, %v7562_v32 }
0x145d   :  { %7336 = vst.msk [vmem:[#allocation3 + $0x1e] sm:$0x3] %vm639_vm9, %v7320_v20  ;;  %7192 = vst.msk [vmem:[#allocation3 + $0x6] sm:$0x3] %vm639_vm9, %v7163_v21  ;;  %v7591_v44 = vrot.slane %v7562_v32, %v17755_v36  ;;  %v7427_v45 = vcombine.high %v7417_v31, %v7417_v31  ;;  %v7434_v27 = vrot.slane %v7417_v31, %v17755_v36 }
0x145e   :  { %7332 = vst.msk [vmem:[#allocation3 + $0x16] sm:$0x3] %vm639_vm9, %v7303_v3  ;;  %v7567_v28 = vcombine.high %v7557_v33, %v7557_v33  ;;  %v7574_v47 = vrot.slane %v7557_v33, %v17755_v36  ;;  %v7458_v49 = vrot.slane %v7444_v35, %v17755_v36  ;;  %v7459_v51 = vcombine.high %v7451_v39, %v7451_v39  ;;  %v7637_v62 = vld [vmem:[#allocation3] sm:$0x3] }
0x145f   :  { %7473 = vst.msk [vmem:[#allocation3 + $0x28] sm:$0x3] %vm639_vm9, %v7451_v39  ;;  %v7598_v52 = vrot.slane %v7584_v41, %v17755_v36  ;;  %v7599_v53 = vcombine.high %v7591_v44, %v7591_v44  ;;  %7613 = vst.msk [vmem:[#allocation3 + $0x38] sm:$0x3] %vm639_vm9, %v7591_v44  ;;  %v7441_v54 = vrot.slane %v7427_v45, %v17755_v36  ;;  %v7715_v0 = vld [vmem:[#allocation3 + $0x10] sm:$0x3] }
0x1460   :  { %v7442_v56 = vcombine.high %v7434_v27, %v7434_v27  ;;  %7469 = vst.msk [vmem:[#allocation3 + $0x20] sm:$0x3] %vm639_vm9, %v7434_v27  ;;  %v7581_v38 = vrot.slane %v7567_v28, %v17755_v36  ;;  %v7582_v57 = vcombine.high %v7574_v47, %v7574_v47  ;;  %7609 = vst.msk [vmem:[#allocation3 + $0x30] sm:$0x3] %vm639_vm9, %v7574_v47 }
0x1461   :  { %v7460_v58 = vcombine.high %v7458_v49, %v7458_v49  ;;  %7474 = vst.msk [vmem:[#allocation3 + $0x2a] sm:$0x3] %vm639_vm9, %v7459_v51  ;;  %7475 = vst.msk [vmem:[#allocation3 + $0x2c] sm:$0x3] %vm639_vm9, %v7458_v49  ;;  %v7600_v59 = vcombine.high %v7598_v52, %v7598_v52  ;;  %v7443_v60 = vcombine.high %v7441_v54, %v7441_v54  ;;  %v7704_v63 = vpop.f32.mrb[80].mxu0  ;;  %v7782_v1 = vpop.f32.mrb[76].mxu1 }
0x1462   :  { %7614 = vst.msk [vmem:[#allocation3 + $0x3a] sm:$0x3] %vm639_vm9, %v7599_v53  ;;  %7615 = vst.msk [vmem:[#allocation3 + $0x3c] sm:$0x3] %vm639_vm9, %v7598_v52  ;;  %v7583_v61 = vcombine.high %v7581_v38, %v7581_v38  ;;  %v7708_v4 = vadd.f32 %v7704_v63, %v7637_v62  ;;  %v7786_v5 = vadd.f32 %v7782_v1, %v7715_v0  ;;  %v15334_v6 = vpop.f32.mrb[81].mxu0  ;;  %v15345_v7 = vpop.f32.mrb[77].mxu1 }
0x1463   :  { %7470 = vst.msk [vmem:[#allocation3 + $0x22] sm:$0x3] %vm639_vm9, %v7442_v56  ;;  %7471 = vst.msk [vmem:[#allocation3 + $0x24] sm:$0x3] %vm639_vm9, %v7441_v54  ;;  %v7950_v39 = vld [vmem:[#allocation3 + $0x2] sm:$0x3] }
0x1464   :  { %7610 = vst.msk [vmem:[#allocation3 + $0x32] sm:$0x3] %vm639_vm9, %v7582_v57  ;;  %7611 = vst.msk [vmem:[#allocation3 + $0x34] sm:$0x3] %vm639_vm9, %v7581_v38  ;;  %v13573_v9 = vmul.f32 -1.442695, %v7708_v4 }
0x1465   :  { %7476 = vst.msk [vmem:[#allocation3 + $0x2e] sm:$0x3] %vm639_vm9, %v7460_v58  ;;  %7616 = vst.msk [vmem:[#allocation3 + $0x3e] sm:$0x3] %vm639_vm9, %v7600_v59  ;;  %v13574_v12 = vmul.f32 -1.442695, %v7786_v5 }
0x1466   :  { %7472 = vst.msk [vmem:[#allocation3 + $0x26] sm:$0x3] %vm639_vm9, %v7443_v60  ;;  %7612 = vst.msk [vmem:[#allocation3 + $0x36] sm:$0x3] %vm639_vm9, %v7583_v61  ;;  %17284 = vpow2.f32 %v13573_v9  ;;  %v8031_v44 = vld [vmem:[#allocation3 + $0x12] sm:$0x3] }
0x1467   :  { %17286 = vpow2.f32 %v13574_v12  ;;  %v7866_v15 = vld [vmem:[#allocation3 + $0x30] sm:$0x3]  ;;  %v7793_v2 = vld [vmem:[#allocation3 + $0x20] sm:$0x3] }
0x1469   :  { %v7860_v14 = vpop.f32.mrb[82].mxu0  ;;  %v7933_v16 = vpop.f32.mrb[78].mxu1 }
0x146a   :  { %v7937_v37 = vadd.f32 %v7933_v16, %v7866_v15  ;;  %v15356_v17 = vpop.f32.mrb[83].mxu0  ;;  %v15367_v8 = vpop.f32.mrb[79].mxu1  ;;  %v7864_v40 = vadd.f32 %v7860_v14, %v7793_v2  ;;  %v8109_v59 = vld [vmem:[#allocation3 + $0x22] sm:$0x3] }
0x146b   :  { %v8182_v54 = vld [vmem:[#allocation3 + $0x32] sm:$0x3]  ;;  %v8266_v8 = vld [vmem:[#allocation3 + $0x4] sm:$0x3] }
0x146c   :  { %v13575_v19 = vmul.f32 -1.442695, %v7937_v37 }
0x146e   :  { %17288 = vpow2.f32 %v13575_v19  ;;  %v8347_v19 = vld [vmem:[#allocation3 + $0x14] sm:$0x3] }
0x146f   :  { %17290 = vtanh.f32 %v7864_v40 }
0x1470   :  { %v17285_v13 = vpop.eup %17284 }
0x1471   :  { %v17287_v26 = vpop.eup %17286  ;;  %v7712_v42 = vadd.f32 1.0, %v17285_v13 }
0x1472   :  { %v7790_v20 = vadd.f32 1.0, %v17287_v26 }
0x1473   :  { %17292 = vrcp.f32 %v7712_v42 }
0x1474   :  { %17294 = vrcp.f32 %v7790_v20 }
0x1478   :  { %v17289_v21 = vpop.eup %17288 }
0x1479   :  { %v17291_v3 = vpop.eup %17290  ;;  %v7941_v32 = vadd.f32 1.0, %v17289_v21 }
0x147b   :  { %17296 = vrcp.f32 %v7941_v32 }
0x147d   :  { %v17293_v23 = vpop.eup %17292 }
0x147e   :  { %v17295_v48 = vpop.eup %17294  ;;  %v7945_v24 = vmul.f32 %v17293_v23, %v17291_v3 }
0x147f   :  { %v7944_v25 = vmul.f32 0.0, %v17295_v48  ;;  %v8498_v48 = vld [vmem:[#allocation3 + $0x34] sm:$0x3] }
0x1481   :  { %v18752_v30 = vadd.f32 %v7945_v24, %v7944_v25 }
0x1483   :  { %17298 = vtanh.f32 %v18752_v30 }
0x1485   :  { %v17297_v31 = vpop.eup %17296 }
0x148d   :  { %v17299_v33 = vpop.eup %17298 }
0x148e   :  { %v7948_v35 = vmul.f32 %v17299_v33, %v17297_v31  ;;  %v8425_v31 = vld [vmem:[#allocation3 + $0x24] sm:$0x3] }
0x1490   :  { %7949 = vst.msk [vmem:[#allocation2] sm:$0x3] %vm639_vm9, %v7948_v35  ;;  %15377 = vmatmul.mubr.msk.f32.vlgmr.msra.gmra.mrb[84].mxu0 %vm436_vm6, %v7948_v35  ;;  %15388 = vmatmul.mubr.msk.f32.vlgmr.msra.gmra.mrb[80].mxu1 %vm436_vm6, %v7948_v35 }
0x1491   :  { %16631 = vmatpush3.bf16.msra.mxu0 %v18654_v18  ;;  %16637 = vmatpush3.bf16.msra.mxu1 %v18656_v50 }
0x1492   :  { %16632 = vmatprep.subr.bf16.mxu0 %v17622_v34  ;;  %16638 = vmatprep.subr.bf16.mxu1 %v17622_v34 }
0x1493   :  { %15398 = vmatprep.mubr.msk.f32.mxu0 %vm17623_vm10, %v17618_v11  ;;  %15409 = vmatprep.mubr.msk.f32.mxu1 %vm17623_vm10, %v17618_v11 }
0x1495   :  { %16634 = vmatpush3.bf16.msra.mxu0 %v18664_v55  ;;  %16640 = vmatpush3.bf16.msra.mxu1 %v18666_v22 }
0x1496   :  { %16641 = vmatprep.subr.bf16.mxu0 %v17622_v34  ;;  %16647 = vmatprep.subr.bf16.mxu1 %v17622_v34 }
0x1498   :  { %15399 = vmatmul.mubr.msk.f32.vlgmr.msra.gmra.mrb[86].mxu0 %vm436_vm6, %v7948_v35  ;;  %15410 = vmatmul.mubr.msk.f32.vlgmr.msra.gmra.mrb[82].mxu1 %vm436_vm6, %v7948_v35 }
0x1499   :  { %16643 = vmatpush3.bf16.msra.mxu0 %v18632_v29  ;;  %16649 = vmatpush3.bf16.msra.mxu1 %v18634_v10 }
0x149a   :  { %16644 = vmatprep.subr.bf16.mxu0 %v17622_v34  ;;  %16650 = vmatprep.subr.bf16.mxu1 %v17622_v34 }
0x149b   :  { %15420 = vmatprep.mubr.msk.f32.mxu0 %vm17623_vm10, %v17618_v11  ;;  %15431 = vmatprep.mubr.msk.f32.mxu1 %vm17623_vm10, %v17618_v11 }
0x149d   :  { %16646 = vmatpush3.bf16.msra.mxu0 %v18642_v43  ;;  %16652 = vmatpush3.bf16.msra.mxu1 %v18644_v46 }
0x149e   :  { %16653 = vmatprep.subr.bf16.mxu0 %v17622_v34  ;;  %16659 = vmatprep.subr.bf16.mxu1 %v17622_v34 }
0x1563   :  { %v8020_v41 = vpop.f32.mrb[84].mxu0  ;;  %v8098_v45 = vpop.f32.mrb[80].mxu1 }
0x1564   :  { %v8024_v27 = vadd.f32 %v8020_v41, %v7950_v39  ;;  %v8102_v28 = vadd.f32 %v8098_v45, %v8031_v44  ;;  %v15378_v47 = vpop.f32.mrb[85].mxu0  ;;  %v15389_v49 = vpop.f32.mrb[81].mxu1 }
0x1566   :  { %v13577_v51 = vmul.f32 -1.442695, %v8024_v27  ;;  %v13579_v52 = vmul.f32 -1.442695, %v8102_v28 }
0x1568   :  { %17300 = vpow2.f32 %v13577_v51 }
0x1569   :  { %17302 = vpow2.f32 %v13579_v52 }
0x156b   :  { %v8176_v53 = vpop.f32.mrb[86].mxu0  ;;  %v8249_v56 = vpop.f32.mrb[82].mxu1 }
0x156c   :  { %v8253_v38 = vadd.f32 %v8249_v56, %v8182_v54  ;;  %v15400_v57 = vpop.f32.mrb[87].mxu0  ;;  %v15411_v58 = vpop.f32.mrb[83].mxu1  ;;  %v8180_v61 = vadd.f32 %v8176_v53, %v8109_v59 }
0x156d   :  { %v8582_v58 = vld [vmem:[#allocation3 + $0x6] sm:$0x3] }
0x156e   :  { %v13582_v60 = vmul.f32 -1.442695, %v8253_v38 }
0x1570   :  { %17304 = vpow2.f32 %v13582_v60  ;;  %v8663_v60 = vld [vmem:[#allocation3 + $0x16] sm:$0x3] }
0x1571   :  { %17306 = vtanh.f32 %v8180_v61 }
0x1572   :  { %v17301_v62 = vpop.eup %17300 }
0x1573   :  { %v17303_v63 = vpop.eup %17302  ;;  %v8028_v0 = vadd.f32 1.0, %v17301_v62 }
0x1574   :  { %v8106_v1 = vadd.f32 1.0, %v17303_v63 }
0x1575   :  { %17308 = vrcp.f32 %v8028_v0 }
0x1576   :  { %17310 = vrcp.f32 %v8106_v1 }
0x157a   :  { %v17305_v4 = vpop.eup %17304 }
0x157b   :  { %v17307_v5 = vpop.eup %17306  ;;  %v8257_v12 = vadd.f32 1.0, %v17305_v4 }
0x157d   :  { %17312 = vrcp.f32 %v8257_v12 }
0x157f   :  { %v17309_v6 = vpop.eup %17308 }
0x1580   :  { %v17311_v7 = vpop.eup %17310  ;;  %v8261_v9 = vmul.f32 %v17309_v6, %v17307_v5 }
0x1581   :  { %v8260_v14 = vmul.f32 %v17311_v7, %v18752_v30  ;;  %v8814_v7 = vld [vmem:[#allocation3 + $0x36] sm:$0x3] }
0x1583   :  { %v18785_v15 = vadd.f32 %v8261_v9, %v8260_v14 }
0x1585   :  { %17314 = vtanh.f32 %v18785_v15 }
0x1587   :  { %v17313_v16 = vpop.eup %17312 }
0x158f   :  { %v17315_v37 = vpop.eup %17314 }
0x1590   :  { %v8264_v17 = vmul.f32 %v17315_v37, %v17313_v16  ;;  %v8741_v16 = vld [vmem:[#allocation3 + $0x26] sm:$0x3] }
0x1592   :  { %8265 = vst.msk [vmem:[#allocation2 + $0x2] sm:$0x3] %vm639_vm9, %v8264_v17  ;;  %15421 = vmatmul.mubr.msk.f32.vlgmr.msra.gmra.mrb[88].mxu0 %vm436_vm6, %v8264_v17  ;;  %15432 = vmatmul.mubr.msk.f32.vlgmr.msra.gmra.mrb[84].mxu1 %vm436_vm6, %v8264_v17 }
0x1593   :  { %16655 = vmatpush3.bf16.msra.mxu0 %v18654_v18  ;;  %16661 = vmatpush3.bf16.msra.mxu1 %v18656_v50 }
0x1594   :  { %16656 = vmatprep.subr.bf16.mxu0 %v17622_v34  ;;  %16662 = vmatprep.subr.bf16.mxu1 %v17622_v34 }
0x1595   :  { %15442 = vmatprep.mubr.msk.f32.mxu0 %vm17623_vm10, %v17618_v11  ;;  %15453 = vmatprep.mubr.msk.f32.mxu1 %vm17623_vm10, %v17618_v11 }
0x1597   :  { %16658 = vmatpush3.bf16.msra.mxu0 %v18664_v55  ;;  %16664 = vmatpush3.bf16.msra.mxu1 %v18666_v22 }
0x1598   :  { %16665 = vmatprep.subr.bf16.mxu0 %v17622_v34  ;;  %16671 = vmatprep.subr.bf16.mxu1 %v17622_v34 }
0x159a   :  { %15443 = vmatmul.mubr.msk.f32.vlgmr.msra.gmra.mrb[90].mxu0 %vm436_vm6, %v8264_v17  ;;  %15454 = vmatmul.mubr.msk.f32.vlgmr.msra.gmra.mrb[86].mxu1 %vm436_vm6, %v8264_v17 }
0x159b   :  { %16667 = vmatpush3.bf16.msra.mxu0 %v18632_v29  ;;  %16673 = vmatpush3.bf16.msra.mxu1 %v18634_v10 }
0x159c   :  { %16668 = vmatprep.subr.bf16.mxu0 %v17622_v34  ;;  %16674 = vmatprep.subr.bf16.mxu1 %v17622_v34 }
0x159d   :  { %15464 = vmatprep.mubr.msk.f32.mxu0 %vm17623_vm10, %v17618_v11  ;;  %15475 = vmatprep.mubr.msk.f32.mxu1 %vm17623_vm10, %v17618_v11 }
0x159f   :  { %16670 = vmatpush3.bf16.msra.mxu0 %v18642_v43  ;;  %16676 = vmatpush3.bf16.msra.mxu1 %v18644_v46 }
0x15a0   :  { %16677 = vmatprep.subr.bf16.mxu0 %v17622_v34  ;;  %16683 = vmatprep.subr.bf16.mxu1 %v17622_v34 }
0x1665   :  { %v8336_v2 = vpop.f32.mrb[88].mxu0  ;;  %v8414_v40 = vpop.f32.mrb[84].mxu1 }
0x1666   :  { %v8340_v13 = vadd.f32 %v8336_v2, %v8266_v8  ;;  %v8418_v26 = vadd.f32 %v8414_v40, %v8347_v19  ;;  %v15422_v42 = vpop.f32.mrb[89].mxu0  ;;  %v15433_v20 = vpop.f32.mrb[85].mxu1 }
0x1668   :  { %v13584_v21 = vmul.f32 -1.442695, %v8340_v13  ;;  %v13586_v3 = vmul.f32 -1.442695, %v8418_v26 }
0x166a   :  { %17316 = vpow2.f32 %v13584_v21 }
0x166b   :  { %17318 = vpow2.f32 %v13586_v3 }
0x166d   :  { %v8492_v23 = vpop.f32.mrb[90].mxu0  ;;  %v8565_v24 = vpop.f32.mrb[86].mxu1 }
0x166e   :  { %v8569_v32 = vadd.f32 %v8565_v24, %v8498_v48  ;;  %v15444_v25 = vpop.f32.mrb[91].mxu0  ;;  %v15455_v30 = vpop.f32.mrb[87].mxu1  ;;  %v8496_v35 = vadd.f32 %v8492_v23, %v8425_v31 }
0x166f   :  { %v8898_v30 = vld [vmem:[#allocation3 + $0x8] sm:$0x3] }
0x1670   :  { %v13589_v33 = vmul.f32 -1.442695, %v8569_v32 }
0x1672   :  { %17320 = vpow2.f32 %v13589_v33  ;;  %v8979_v33 = vld [vmem:[#allocation3 + $0x18] sm:$0x3] }
0x1673   :  { %17322 = vtanh.f32 %v8496_v35 }
0x1674   :  { %v17317_v39 = vpop.eup %17316 }
0x1675   :  { %v17319_v41 = vpop.eup %17318  ;;  %v8344_v44 = vadd.f32 1.0, %v17317_v39 }
0x1676   :  { %v8422_v45 = vadd.f32 1.0, %v17319_v41 }
0x1677   :  { %17324 = vrcp.f32 %v8344_v44 }
0x1678   :  { %17326 = vrcp.f32 %v8422_v45 }
0x167c   :  { %v17321_v27 = vpop.eup %17320 }
0x167d   :  { %v17323_v28 = vpop.eup %17322  ;;  %v8573_v52 = vadd.f32 1.0, %v17321_v27 }
0x167f   :  { %17328 = vrcp.f32 %v8573_v52 }
0x1681   :  { %v17325_v47 = vpop.eup %17324 }
0x1682   :  { %v17327_v49 = vpop.eup %17326  ;;  %v8577_v51 = vmul.f32 %v17325_v47, %v17323_v28 }
0x1683   :  { %v8576_v53 = vmul.f32 %v17327_v49, %v18785_v15  ;;  %v9130_v49 = vld [vmem:[#allocation3 + $0x38] sm:$0x3] }
0x1685   :  { %v18818_v54 = vadd.f32 %v8577_v51, %v8576_v53 }
0x1687   :  { %17330 = vtanh.f32 %v18818_v54 }
0x1689   :  { %v17329_v56 = vpop.eup %17328 }
0x1691   :  { %v17331_v38 = vpop.eup %17330 }
0x1692   :  { %v8580_v57 = vmul.f32 %v17331_v38, %v17329_v56  ;;  %v9057_v56 = vld [vmem:[#allocation3 + $0x28] sm:$0x3] }
0x1694   :  { %8581 = vst.msk [vmem:[#allocation2 + $0x4] sm:$0x3] %vm639_vm9, %v8580_v57  ;;  %15465 = vmatmul.mubr.msk.f32.vlgmr.msra.gmra.mrb[92].mxu0 %vm436_vm6, %v8580_v57  ;;  %15476 = vmatmul.mubr.msk.f32.vlgmr.msra.gmra.mrb[88].mxu1 %vm436_vm6, %v8580_v57 }
0x1695   :  { %16679 = vmatpush3.bf16.msra.mxu0 %v18654_v18  ;;  %16685 = vmatpush3.bf16.msra.mxu1 %v18656_v50 }
0x1696   :  { %16680 = vmatprep.subr.bf16.mxu0 %v17622_v34  ;;  %16686 = vmatprep.subr.bf16.mxu1 %v17622_v34 }
0x1697   :  { %15486 = vmatprep.mubr.msk.f32.mxu0 %vm17623_vm10, %v17618_v11  ;;  %15497 = vmatprep.mubr.msk.f32.mxu1 %vm17623_vm10, %v17618_v11 }
0x1699   :  { %16682 = vmatpush3.bf16.msra.mxu0 %v18664_v55  ;;  %16688 = vmatpush3.bf16.msra.mxu1 %v18666_v22 }
0x169a   :  { %16689 = vmatprep.subr.bf16.mxu0 %v17622_v34  ;;  %16695 = vmatprep.subr.bf16.mxu1 %v17622_v34 }
0x169c   :  { %15487 = vmatmul.mubr.msk.f32.vlgmr.msra.gmra.mrb[94].mxu0 %vm436_vm6, %v8580_v57  ;;  %15498 = vmatmul.mubr.msk.f32.vlgmr.msra.gmra.mrb[90].mxu1 %vm436_vm6, %v8580_v57 }
0x169d   :  { %16691 = vmatpush3.bf16.msra.mxu0 %v18632_v29  ;;  %16697 = vmatpush3.bf16.msra.mxu1 %v18634_v10 }
0x169e   :  { %16692 = vmatprep.subr.bf16.mxu0 %v17622_v34  ;;  %16698 = vmatprep.subr.bf16.mxu1 %v17622_v34 }
0x169f   :  { %15508 = vmatprep.mubr.msk.f32.mxu0 %vm17623_vm10, %v17618_v11  ;;  %15519 = vmatprep.mubr.msk.f32.mxu1 %vm17623_vm10, %v17618_v11 }
0x16a1   :  { %16694 = vmatpush3.bf16.msra.mxu0 %v18642_v43  ;;  %16700 = vmatpush3.bf16.msra.mxu1 %v18644_v46 }
0x16a2   :  { %16701 = vmatprep.subr.bf16.mxu0 %v17622_v34  ;;  %16707 = vmatprep.subr.bf16.mxu1 %v17622_v34 }
0x1767   :  { %v8652_v59 = vpop.f32.mrb[92].mxu0  ;;  %v8730_v61 = vpop.f32.mrb[88].mxu1 }
0x1768   :  { %v8656_v62 = vadd.f32 %v8652_v59, %v8582_v58  ;;  %v8734_v63 = vadd.f32 %v8730_v61, %v8663_v60  ;;  %v15466_v0 = vpop.f32.mrb[93].mxu0  ;;  %v15477_v1 = vpop.f32.mrb[89].mxu1 }
0x176a   :  { %v13591_v4 = vmul.f32 -1.442695, %v8656_v62  ;;  %v13593_v5 = vmul.f32 -1.442695, %v8734_v63 }
0x176c   :  { %17332 = vpow2.f32 %v13591_v4 }
0x176d   :  { %17334 = vpow2.f32 %v13593_v5 }
0x176f   :  { %v8808_v6 = vpop.f32.mrb[94].mxu0  ;;  %v8881_v9 = vpop.f32.mrb[90].mxu1 }
0x1770   :  { %v8885_v12 = vadd.f32 %v8881_v9, %v8814_v7  ;;  %v15488_v14 = vpop.f32.mrb[95].mxu0  ;;  %v15499_v15 = vpop.f32.mrb[91].mxu1  ;;  %v8812_v17 = vadd.f32 %v8808_v6, %v8741_v16 }
0x1771   :  { %v9214_v15 = vld [vmem:[#allocation3 + $0xa] sm:$0x3] }
0x1772   :  { %v13596_v37 = vmul.f32 -1.442695, %v8885_v12 }
0x1774   :  { %17336 = vpow2.f32 %v13596_v37  ;;  %v9295_v37 = vld [vmem:[#allocation3 + $0x1a] sm:$0x3] }
0x1775   :  { %17338 = vtanh.f32 %v8812_v17 }
0x1776   :  { %v17333_v8 = vpop.eup %17332 }
0x1777   :  { %v17335_v2 = vpop.eup %17334  ;;  %v8660_v19 = vadd.f32 1.0, %v17333_v8 }
0x1778   :  { %v8738_v40 = vadd.f32 1.0, %v17335_v2 }
0x1779   :  { %17340 = vrcp.f32 %v8660_v19 }
0x177a   :  { %17342 = vrcp.f32 %v8738_v40 }
0x177e   :  { %v17337_v13 = vpop.eup %17336 }
0x177f   :  { %v17339_v26 = vpop.eup %17338  ;;  %v8889_v3 = vadd.f32 1.0, %v17337_v13 }
0x1781   :  { %17344 = vrcp.f32 %v8889_v3 }
0x1783   :  { %v17341_v42 = vpop.eup %17340 }
0x1784   :  { %v17343_v20 = vpop.eup %17342  ;;  %v8893_v21 = vmul.f32 %v17341_v42, %v17339_v26 }
0x1785   :  { %v8892_v23 = vmul.f32 %v17343_v20, %v18818_v54  ;;  %v9446_v20 = vld [vmem:[#allocation3 + $0x3a] sm:$0x3] }
0x1787   :  { %v18851_v48 = vadd.f32 %v8893_v21, %v8892_v23 }
0x1789   :  { %17346 = vtanh.f32 %v18851_v48 }
0x178b   :  { %v17345_v24 = vpop.eup %17344 }
0x1793   :  { %v17347_v32 = vpop.eup %17346 }
0x1794   :  { %v8896_v25 = vmul.f32 %v17347_v32, %v17345_v24  ;;  %v9373_v24 = vld [vmem:[#allocation3 + $0x2a] sm:$0x3] }
0x1796   :  { %8897 = vst.msk [vmem:[#allocation2 + $0x6] sm:$0x3] %vm639_vm9, %v8896_v25  ;;  %15509 = vmatmul.mubr.msk.f32.vlgmr.msra.gmra.mrb[96].mxu0 %vm436_vm6, %v8896_v25  ;;  %15520 = vmatmul.mubr.msk.f32.vlgmr.msra.gmra.mrb[92].mxu1 %vm436_vm6, %v8896_v25 }
0x1797   :  { %16703 = vmatpush3.bf16.msra.mxu0 %v18654_v18  ;;  %16709 = vmatpush3.bf16.msra.mxu1 %v18656_v50 }
0x1798   :  { %16704 = vmatprep.subr.bf16.mxu0 %v17622_v34  ;;  %16710 = vmatprep.subr.bf16.mxu1 %v17622_v34 }
0x1799   :  { %15530 = vmatprep.mubr.msk.f32.mxu0 %vm17623_vm10, %v17618_v11  ;;  %15541 = vmatprep.mubr.msk.f32.mxu1 %vm17623_vm10, %v17618_v11 }
0x179b   :  { %16706 = vmatpush3.bf16.msra.mxu0 %v18664_v55  ;;  %16712 = vmatpush3.bf16.msra.mxu1 %v18666_v22 }
0x179c   :  { %16713 = vmatprep.subr.bf16.mxu0 %v17622_v34  ;;  %16719 = vmatprep.subr.bf16.mxu1 %v17622_v34 }
0x179e   :  { %15531 = vmatmul.mubr.msk.f32.vlgmr.msra.gmra.mrb[98].mxu0 %vm436_vm6, %v8896_v25  ;;  %15542 = vmatmul.mubr.msk.f32.vlgmr.msra.gmra.mrb[94].mxu1 %vm436_vm6, %v8896_v25 }
0x179f   :  { %16715 = vmatpush3.bf16.msra.mxu0 %v18632_v29  ;;  %16721 = vmatpush3.bf16.msra.mxu1 %v18634_v10 }
0x17a0   :  { %16716 = vmatprep.subr.bf16.mxu0 %v17622_v34  ;;  %16722 = vmatprep.subr.bf16.mxu1 %v17622_v34 }
0x17a1   :  { %15552 = vmatprep.mubr.msk.f32.mxu0 %vm17623_vm10, %v17618_v11  ;;  %15563 = vmatprep.mubr.msk.f32.mxu1 %vm17623_vm10, %v17618_v11 }
0x17a3   :  { %16718 = vmatpush3.bf16.msra.mxu0 %v18642_v43  ;;  %16724 = vmatpush3.bf16.msra.mxu1 %v18644_v46 }
0x17a4   :  { %16725 = vmatprep.subr.bf16.mxu0 %v17622_v34  ;;  %16731 = vmatprep.subr.bf16.mxu1 %v17622_v34 }
0x1869   :  { %v8968_v31 = vpop.f32.mrb[96].mxu0  ;;  %v9046_v35 = vpop.f32.mrb[92].mxu1 }
0x186a   :  { %v8972_v39 = vadd.f32 %v8968_v31, %v8898_v30  ;;  %v9050_v41 = vadd.f32 %v9046_v35, %v8979_v33  ;;  %v15510_v44 = vpop.f32.mrb[97].mxu0  ;;  %v15521_v45 = vpop.f32.mrb[93].mxu1 }
0x186c   :  { %v13598_v27 = vmul.f32 -1.442695, %v8972_v39  ;;  %v13600_v28 = vmul.f32 -1.442695, %v9050_v41 }
0x186e   :  { %17348 = vpow2.f32 %v13598_v27 }
0x186f   :  { %17350 = vpow2.f32 %v13600_v28 }
0x1871   :  { %v9124_v47 = vpop.f32.mrb[98].mxu0  ;;  %v9197_v51 = vpop.f32.mrb[94].mxu1 }
0x1872   :  { %v9201_v52 = vadd.f32 %v9197_v51, %v9130_v49  ;;  %v15532_v53 = vpop.f32.mrb[99].mxu0  ;;  %v15543_v54 = vpop.f32.mrb[95].mxu1  ;;  %v9128_v57 = vadd.f32 %v9124_v47, %v9057_v56 }
0x1873   :  { %v9611_v54 = vld [vmem:[#allocation3 + $0x1c] sm:$0x3] }
0x1874   :  { %v13603_v38 = vmul.f32 -1.442695, %v9201_v52 }
0x1876   :  { %17352 = vpow2.f32 %v13603_v38 }
0x1877   :  { %17354 = vtanh.f32 %v9128_v57 }
0x1878   :  { %v17349_v58 = vpop.eup %17348 }
0x1879   :  { %v17351_v59 = vpop.eup %17350  ;;  %v8976_v60 = vadd.f32 1.0, %v17349_v58 }
0x187a   :  { %v9054_v61 = vadd.f32 1.0, %v17351_v59 }
0x187b   :  { %17356 = vrcp.f32 %v8976_v60 }
0x187c   :  { %17358 = vrcp.f32 %v9054_v61 }
0x1880   :  { %v17353_v62 = vpop.eup %17352 }
0x1881   :  { %v17355_v63 = vpop.eup %17354  ;;  %v9205_v5 = vadd.f32 1.0, %v17353_v62 }
0x1883   :  { %17360 = vrcp.f32 %v9205_v5 }
0x1885   :  { %v17357_v0 = vpop.eup %17356 }
0x1886   :  { %v17359_v1 = vpop.eup %17358  ;;  %v9209_v4 = vmul.f32 %v17357_v0, %v17355_v63 }
0x1887   :  { %v9208_v6 = vmul.f32 %v17359_v1, %v18851_v48 }
0x1889   :  { %v18884_v7 = vadd.f32 %v9209_v4, %v9208_v6  ;;  %v9689_v4 = vld [vmem:[#allocation3 + $0x2c] sm:$0x3] }
0x188b   :  { %17362 = vtanh.f32 %v18884_v7 }
0x188d   :  { %v17361_v9 = vpop.eup %17360 }
0x1895   :  { %v17363_v12 = vpop.eup %17362 }
0x1896   :  { %v9212_v14 = vmul.f32 %v17363_v12, %v17361_v9 }
0x1898   :  { %9213 = vst.msk [vmem:[#allocation2 + $0x8] sm:$0x3] %vm639_vm9, %v9212_v14  ;;  %15553 = vmatmul.mubr.msk.f32.vlgmr.msra.gmra.mrb[100].mxu0 %vm436_vm6, %v9212_v14  ;;  %15564 = vmatmul.mubr.msk.f32.vlgmr.msra.gmra.mrb[96].mxu1 %vm436_vm6, %v9212_v14 }
0x1899   :  { %16727 = vmatpush3.bf16.msra.mxu0 %v18654_v18  ;;  %16733 = vmatpush3.bf16.msra.mxu1 %v18656_v50 }
0x189a   :  { %16728 = vmatprep.subr.bf16.mxu0 %v17622_v34  ;;  %16734 = vmatprep.subr.bf16.mxu1 %v17622_v34 }
0x189b   :  { %15574 = vmatprep.mubr.msk.f32.mxu0 %vm17623_vm10, %v17618_v11  ;;  %15585 = vmatprep.mubr.msk.f32.mxu1 %vm17623_vm10, %v17618_v11 }
0x189d   :  { %16730 = vmatpush3.bf16.msra.mxu0 %v18664_v55  ;;  %16736 = vmatpush3.bf16.msra.mxu1 %v18666_v22 }
0x189e   :  { %16737 = vmatprep.subr.bf16.mxu0 %v17622_v34  ;;  %16743 = vmatprep.subr.bf16.mxu1 %v17622_v34 }
0x18a0   :  { %15575 = vmatmul.mubr.msk.f32.vlgmr.msra.gmra.mrb[102].mxu0 %vm436_vm6, %v9212_v14  ;;  %15586 = vmatmul.mubr.msk.f32.vlgmr.msra.gmra.mrb[98].mxu1 %vm436_vm6, %v9212_v14 }
0x18a1   :  { %16739 = vmatpush3.bf16.msra.mxu0 %v18632_v29  ;;  %16745 = vmatpush3.bf16.msra.mxu1 %v18634_v10 }
0x18a2   :  { %16740 = vmatprep.subr.bf16.mxu0 %v17622_v34  ;;  %16746 = vmatprep.subr.bf16.mxu1 %v17622_v34 }
0x18a3   :  { %15596 = vmatprep.mubr.msk.f32.mxu0 %vm17623_vm10, %v17618_v11  ;;  %15607 = vmatprep.mubr.msk.f32.mxu1 %vm17623_vm10, %v17618_v11 }
0x18a5   :  { %16742 = vmatpush3.bf16.msra.mxu0 %v18642_v43  ;;  %16748 = vmatpush3.bf16.msra.mxu1 %v18644_v46 }
0x18a6   :  { %16749 = vmatprep.subr.bf16.mxu0 %v17622_v34  ;;  %16755 = vmatprep.subr.bf16.mxu1 %v17622_v34 }
0x196b   :  { %v9284_v16 = vpop.f32.mrb[100].mxu0  ;;  %v9362_v17 = vpop.f32.mrb[96].mxu1 }
0x196c   :  { %v9288_v8 = vadd.f32 %v9284_v16, %v9214_v15  ;;  %v9366_v2 = vadd.f32 %v9362_v17, %v9295_v37  ;;  %v15554_v19 = vpop.f32.mrb[101].mxu0  ;;  %v15565_v40 = vpop.f32.mrb[97].mxu1 }
0x196e   :  { %v13605_v13 = vmul.f32 -1.442695, %v9288_v8  ;;  %v13607_v26 = vmul.f32 -1.442695, %v9366_v2 }
0x1970   :  { %17364 = vpow2.f32 %v13605_v13 }
0x1971   :  { %17366 = vpow2.f32 %v13607_v26  ;;  %v10165_v26 = vld [vmem:[#allocation2 + $0x6] sm:$0x3] }
0x1973   :  { %v9440_v42 = vpop.f32.mrb[102].mxu0  ;;  %v9513_v21 = vpop.f32.mrb[98].mxu1 }
0x1974   :  { %v9517_v3 = vadd.f32 %v9513_v21, %v9446_v20  ;;  %v15576_v23 = vpop.f32.mrb[103].mxu0  ;;  %v15587_v48 = vpop.f32.mrb[99].mxu1  ;;  %v9444_v25 = vadd.f32 %v9440_v42, %v9373_v24  ;;  %v10163_v21 = vld [vmem:[#allocation2 + $0x2] sm:$0x3] }
0x1975   :  { %v10162_v48 = vld [vmem:[#allocation2] sm:$0x3] }
0x1976   :  { %v13610_v32 = vmul.f32 -1.442695, %v9517_v3  ;;  %v10164_v3 = vld [vmem:[#allocation2 + $0x4] sm:$0x3]  ;;  %v10191_v24 = vcombine.low %v10162_v48, %v10163_v21 }
0x1977   :  { %v10192_v23 = vcombine.low %v10164_v3, %v10165_v26  ;;  %v10166_v3 = vld [vmem:[#allocation2 + $0x8] sm:$0x3] }
0x1978   :  { %17368 = vpow2.f32 %v13610_v32 }
0x1979   :  { %17370 = vtanh.f32 %v9444_v25  ;;  %v10206_v32 = vrot.slane %v10192_v23, %v17755_v36  ;;  %v10171_v25 = vld [vmem:[#allocation4 + $0x180] sm:$0xff] }
0x197a   :  { %v17365_v30 = vpop.eup %17364 }
0x197b   :  { %v17367_v31 = vpop.eup %17366  ;;  %v9292_v33 = vadd.f32 1.0, %v17365_v30  ;;  %v10172_v30 = vld [vmem:[#allocation4 + $0x188] sm:$0xff] }
0x197c   :  { %v9370_v35 = vadd.f32 1.0, %v17367_v31  ;;  %v10357_v31 = vld [vmem:[#allocation4 + $0x1a0] sm:$0xff] }
0x197d   :  { %17372 = vrcp.f32 %v9292_v33  ;;  %v10358_v33 = vld [vmem:[#allocation4 + $0x1a8] sm:$0xff] }
0x197e   :  { %17374 = vrcp.f32 %v9370_v35  ;;  %v10174_v35 = vld [vmem:[#allocation4 + $0x198] sm:$0xff] }
0x1982   :  { %v17369_v39 = vpop.eup %17368 }
0x1983   :  { %v17371_v41 = vpop.eup %17370  ;;  %v9521_v28 = vadd.f32 1.0, %v17369_v39  ;;  %v16793_v39 = vpack.c.bf16 %v10358_v33, %v10357_v31  ;;  %v10639_v31 = vld [vmem:[#allocation4 + $0x1f0] sm:$0xff] }
0x1985   :  { %17376 = vrcp.f32 %v9521_v28 }
0x1987   :  { %v17373_v44 = vpop.eup %17372 }
0x1988   :  { %v17375_v45 = vpop.eup %17374  ;;  %v9525_v27 = vmul.f32 %v17373_v44, %v17371_v41  ;;  %v10359_v44 = vld [vmem:[#allocation4 + $0x1b0] sm:$0xff] }
0x1989   :  { %v9524_v47 = vmul.f32 %v17375_v45, %v18884_v7  ;;  %v10360_v45 = vld [vmem:[#allocation4 + $0x1b8] sm:$0xff] }
0x198a   :  { %v16797_v28 = vpack.c.bf16 %v10360_v45, %v10359_v44  ;;  %v10782_v44 = vld [vmem:[#allocation7 + $0x1a0] sm:$0xff]  ;;  %v10783_v45 = vld [vmem:[#allocation7 + $0x1a8] sm:$0xff] }
0x198b   :  { %v18917_v49 = vadd.f32 %v9525_v27, %v9524_v47  ;;  %v10497_v27 = vld [vmem:[#allocation4 + $0x1c0] sm:$0xff]  ;;  %v10498_v47 = vld [vmem:[#allocation4 + $0x1c8] sm:$0xff] }
0x198d   :  { %17378 = vtanh.f32 %v18917_v49 }
0x198f   :  { %v17377_v51 = vpop.eup %17376 }
0x1997   :  { %v17379_v52 = vpop.eup %17378 }
0x1998   :  { %v9528_v53 = vmul.f32 %v17379_v52, %v17377_v51  ;;  %v10638_v51 = vld [vmem:[#allocation4 + $0x1e8] sm:$0xff]  ;;  %v18976_v52 = vpack.c.bf16 %v10498_v47, %v10497_v27  ;;  %v10779_v47 = vld [vmem:[#allocation7 + $0x190] sm:$0xff] }
0x199a   :  { %9529 = vst.msk [vmem:[#allocation2 + $0xa] sm:$0x3] %vm639_vm9, %v9528_v53  ;;  %15597 = vmatmul.mubr.msk.f32.vlgmr.msra.gmra.mrb[104].mxu0 %vm436_vm6, %v9528_v53  ;;  %15608 = vmatmul.mubr.msk.f32.vlgmr.msra.gmra.mrb[100].mxu1 %vm436_vm6, %v9528_v53 }
0x199b   :  { %16751 = vmatpush3.bf16.msra.mxu0 %v18654_v18  ;;  %16757 = vmatpush3.bf16.msra.mxu1 %v18656_v50 }
0x199c   :  { %16752 = vmatprep.subr.bf16.mxu0 %v17622_v34  ;;  %16758 = vmatprep.subr.bf16.mxu1 %v17622_v34 }
0x199d   :  { %15618 = vmatprep.mubr.msk.f32.mxu0 %vm17623_vm10, %v17618_v11  ;;  %15629 = vmatprep.mubr.msk.f32.mxu1 %vm17623_vm10, %v17618_v11 }
0x199f   :  { %16754 = vmatpush3.bf16.msra.mxu0 %v18664_v55  ;;  %16760 = vmatpush3.bf16.msra.mxu1 %v18666_v22 }
0x19a0   :  { %16761 = vmatprep.subr.bf16.mxu0 %v17622_v34  ;;  %16767 = vmatprep.subr.bf16.mxu1 %v17622_v34 }
0x19a1   :  { %v10167_v21 = vld [vmem:[#allocation2 + $0xa] sm:$0x3] }
0x19a2   :  { %15619 = vmatmul.mubr.msk.f32.vlgmr.msra.gmra.mrb[106].mxu0 %vm436_vm6, %v9528_v53  ;;  %15630 = vmatmul.mubr.msk.f32.vlgmr.msra.gmra.mrb[102].mxu1 %vm436_vm6, %v9528_v53  ;;  %v10208_v23 = vcombine.low %v10166_v3, %v10167_v21 }
0x19a3   :  { %16763 = vmatpush3.bf16.msra.mxu0 %v18632_v29  ;;  %16769 = vmatpush3.bf16.msra.mxu1 %v18634_v10  ;;  %v9530_v29 = vld [vmem:[#allocation3 + $0xc] sm:$0x3] }
0x19a4   :  { %16764 = vmatprep.subr.bf16.mxu0 %v17622_v34  ;;  %16770 = vmatprep.subr.bf16.mxu1 %v17622_v34 }
0x19a5   :  { %15640 = vmatprep.mubr.msk.f32.mxu0 %vm17623_vm10, %v17618_v11  ;;  %15651 = vmatprep.mubr.msk.f32.mxu1 %vm17623_vm10, %v17618_v11 }
0x19a7   :  { %16766 = vmatpush3.bf16.msra.mxu0 %v18642_v43  ;;  %16772 = vmatpush3.bf16.msra.mxu1 %v18644_v46  ;;  %v9762_v43 = vld [vmem:[#allocation3 + $0x3c] sm:$0x3] }
0x19a8   :  { %16773 = vmatprep.subr.bf16.mxu0 %v17622_v34  ;;  %16779 = vmatprep.subr.bf16.mxu1 %v17622_v34 }
0x1a6d   :  { %v9600_v10 = vpop.f32.mrb[104].mxu0  ;;  %v9678_v56 = vpop.f32.mrb[100].mxu1 }
0x1a6e   :  { %v9604_v38 = vadd.f32 %v9600_v10, %v9530_v29  ;;  %v9682_v57 = vadd.f32 %v9678_v56, %v9611_v54  ;;  %v15598_v58 = vpop.f32.mrb[105].mxu0  ;;  %v15609_v59 = vpop.f32.mrb[101].mxu1  ;;  %v9846_v29 = vld [vmem:[#allocation3 + $0xe] sm:$0x3]  ;;  %v9927_v54 = vld [vmem:[#allocation3 + $0x1e] sm:$0x3] }
0x1a70   :  { %v13612_v60 = vmul.f32 -1.442695, %v9604_v38  ;;  %v13614_v61 = vmul.f32 -1.442695, %v9682_v57 }
0x1a72   :  { %17380 = vpow2.f32 %v13612_v60 }
0x1a73   :  { %17382 = vpow2.f32 %v13614_v61 }
0x1a75   :  { %v9756_v62 = vpop.f32.mrb[106].mxu0  ;;  %v9829_v63 = vpop.f32.mrb[102].mxu1 }
0x1a76   :  { %v9833_v46 = vadd.f32 %v9829_v63, %v9762_v43  ;;  %v15620_v0 = vpop.f32.mrb[107].mxu0  ;;  %v15631_v1 = vpop.f32.mrb[103].mxu1  ;;  %v9760_v6 = vadd.f32 %v9756_v62, %v9689_v4  ;;  %v10078_v43 = vld [vmem:[#allocation3 + $0x3e] sm:$0x3]  ;;  %v10005_v4 = vld [vmem:[#allocation3 + $0x2e] sm:$0x3] }
0x1a78   :  { %v13617_v5 = vmul.f32 -1.442695, %v9833_v46 }
0x1a7a   :  { %17384 = vpow2.f32 %v13617_v5 }
0x1a7b   :  { %17386 = vtanh.f32 %v9760_v6 }
0x1a7c   :  { %v17381_v7 = vpop.eup %17380 }
0x1a7d   :  { %v17383_v9 = vpop.eup %17382  ;;  %v9608_v12 = vadd.f32 1.0, %v17381_v7 }
0x1a7e   :  { %v9686_v14 = vadd.f32 1.0, %v17383_v9 }
0x1a7f   :  { %17388 = vrcp.f32 %v9608_v12 }
0x1a80   :  { %17390 = vrcp.f32 %v9686_v14 }
0x1a84   :  { %v17385_v15 = vpop.eup %17384 }
0x1a85   :  { %v17387_v16 = vpop.eup %17386  ;;  %v9837_v2 = vadd.f32 1.0, %v17385_v15 }
0x1a87   :  { %17392 = vrcp.f32 %v9837_v2 }
0x1a89   :  { %v17389_v37 = vpop.eup %17388 }
0x1a8a   :  { %v17391_v17 = vpop.eup %17390  ;;  %v9841_v8 = vmul.f32 %v17389_v37, %v17387_v16 }
0x1a8b   :  { %v9840_v19 = vmul.f32 %v17391_v17, %v18917_v49  ;;  %v10637_v49 = vld [vmem:[#allocation4 + $0x1e0] sm:$0xff] }
0x1a8c   :  { %v18978_v53 = vpack.c.bf16 %v10638_v51, %v10637_v49  ;;  %v10780_v49 = vld [vmem:[#allocation7 + $0x198] sm:$0xff]  ;;  %v10784_v51 = vld [vmem:[#allocation7 + $0x1b0] sm:$0xff] }
0x1a8d   :  { %v18950_v40 = vadd.f32 %v9841_v8, %v9840_v19 }
0x1a8f   :  { %17394 = vtanh.f32 %v18950_v40 }
0x1a91   :  { %v17393_v13 = vpop.eup %17392 }
0x1a99   :  { %v17395_v42 = vpop.eup %17394 }
0x1a9a   :  { %v9844_v20 = vmul.f32 %v17395_v42, %v17393_v13 }
0x1a9c   :  { %9845 = vst.msk [vmem:[#allocation2 + $0xc] sm:$0x3] %vm639_vm9, %v9844_v20  ;;  %15641 = vmatmul.mubr.msk.f32.vlgmr.msra.gmra.mrb[108].mxu0 %vm436_vm6, %v9844_v20  ;;  %15652 = vmatmul.mubr.msk.f32.vlgmr.msra.gmra.mrb[104].mxu1 %vm436_vm6, %v9844_v20 }
0x1a9d   :  { %16775 = vmatpush3.bf16.msra.mxu0 %v18654_v18  ;;  %16781 = vmatpush3.bf16.msra.mxu1 %v18656_v50  ;;  %v10199_v18 = vrot.slane %v10191_v24, %v17755_v36 }
0x1a9e   :  { %16776 = vmatprep.subr.bf16.mxu0 %v17622_v34  ;;  %16782 = vmatprep.subr.bf16.mxu1 %v17622_v34 }
0x1a9f   :  { %15662 = vmatprep.mubr.msk.f32.mxu0 %vm17623_vm10, %v17618_v11  ;;  %15673 = vmatprep.mubr.msk.f32.mxu1 %vm17623_vm10, %v17618_v11  ;;  %v18968_v50 = vcombine.low %v10199_v18, %v10206_v32  ;;  %v10499_v18 = vld [vmem:[#allocation4 + $0x1d0] sm:$0xff] }
0x1aa1   :  { %16778 = vmatpush3.bf16.msra.mxu0 %v18664_v55  ;;  %16784 = vmatpush3.bf16.msra.mxu1 %v18666_v22  ;;  %v16785_v55 = vpack.c.bf16 %v10172_v30, %v10171_v25  ;;  %v10173_v22 = vld [vmem:[#allocation4 + $0x190] sm:$0xff]  ;;  %v10216_v25 = vrot.slane %v10208_v23, %v17755_v36 }
0x1aa2   :  { %v16789_v41 = vpack.c.bf16 %v10174_v35, %v10173_v22  ;;  %16794 = vmatprep.subr.bf16.mxu1 %v16793_v39 }
0x1aa3   :  { %16786 = vmatprep.subr.bf16.mxu0 %v16785_v55  ;;  %v10168_v48 = vld [vmem:[#allocation2 + $0xc] sm:$0x3] }
0x1aa4   :  { %15663 = vmatmul.mubr.msk.f32.vlgmr.msra.gmra.mrb[110].mxu0 %vm436_vm6, %v9844_v20  ;;  %15674 = vmatmul.mubr.msk.f32.vlgmr.msra.gmra.mrb[106].mxu1 %vm436_vm6, %v9844_v20 }
0x1aa5   :  { %15684 = vmatprep.mubr.msk.f32.mxu0 %vm436_vm6, %v18968_v50  ;;  %15695 = vmatprep.mubr.msk.f32.mxu1 %vm436_vm6, %v18968_v50 }
0x1aa6   :  { %16788 = vmatpush3.bf16.msra.mxu0 %v16785_v55  ;;  %16796 = vmatpush3.bf16.msra.mxu1 %v16793_v39  ;;  %v10640_v55 = vld [vmem:[#allocation4 + $0x1f8] sm:$0xff]  ;;  %v10777_v39 = vld [vmem:[#allocation7 + $0x180] sm:$0xff] }
0x1aa7   :  { %16790 = vmatprep.subr.bf16.mxu0 %v16789_v41  ;;  %16798 = vmatprep.subr.bf16.mxu1 %v16797_v28  ;;  %v16813_v35 = vpack.c.bf16 %v10640_v55, %v10639_v31 }
0x1aaa   :  { %16792 = vmatpush3.bf16.msra.mxu0 %v16789_v41  ;;  %16800 = vmatpush3.bf16.msra.mxu1 %v16797_v28  ;;  %v10778_v41 = vld [vmem:[#allocation7 + $0x188] sm:$0xff]  ;;  %v18996_v28 = vpack.c.bf16 %v10783_v45, %v10782_v44 }
0x1aab   :  { %16802 = vmatprep.subr.bf16.mxu0 %v18976_v52  ;;  %16810 = vmatprep.subr.bf16.mxu1 %v18978_v53  ;;  %v18994_v27 = vpack.c.bf16 %v10778_v41, %v10777_v39 }
0x1b6f   :  { %v9916_v10 = vpop.f32.mrb[108].mxu0  ;;  %v9994_v56 = vpop.f32.mrb[104].mxu1 }
0x1b70   :  { %v9920_v38 = vadd.f32 %v9916_v10, %v9846_v29  ;;  %v9998_v57 = vadd.f32 %v9994_v56, %v9927_v54  ;;  %v15642_v58 = vpop.f32.mrb[109].mxu0  ;;  %v15653_v59 = vpop.f32.mrb[105].mxu1  ;;  %v10787_v29 = vld [vmem:[#allocation7 + $0x1c0] sm:$0xff]  ;;  %v10788_v10 = vld [vmem:[#allocation7 + $0x1c8] sm:$0xff] }
0x1b71   :  { %v10792_v54 = vld [vmem:[#allocation7 + $0x1e0] sm:$0xff]  ;;  %v10793_v56 = vld [vmem:[#allocation7 + $0x1e8] sm:$0xff]  ;;  %v10789_v58 = vld [vmem:[#allocation7 + $0x1d0] sm:$0xff] }
0x1b72   :  { %v13619_v60 = vmul.f32 -1.442695, %v9920_v38  ;;  %v13621_v61 = vmul.f32 -1.442695, %v9998_v57  ;;  %v19016_v38 = vpack.c.bf16 %v10788_v10, %v10787_v29  ;;  %v19018_v57 = vpack.c.bf16 %v10793_v56, %v10792_v54  ;;  %v10790_v59 = vld [vmem:[#allocation7 + $0x1d8] sm:$0xff] }
0x1b74   :  { %17396 = vpow2.f32 %v13619_v60  ;;  %v10794_v60 = vld [vmem:[#allocation7 + $0x1f0] sm:$0xff] }
0x1b75   :  { %17398 = vpow2.f32 %v13621_v61  ;;  %v10795_v61 = vld [vmem:[#allocation7 + $0x1f8] sm:$0xff] }
0x1b77   :  { %v10072_v62 = vpop.f32.mrb[110].mxu0  ;;  %v10145_v63 = vpop.f32.mrb[106].mxu1 }
0x1b78   :  { %v10149_v46 = vadd.f32 %v10145_v63, %v10078_v43  ;;  %v15664_v0 = vpop.f32.mrb[111].mxu0  ;;  %v15675_v1 = vpop.f32.mrb[107].mxu1  ;;  %v10076_v6 = vadd.f32 %v10072_v62, %v10005_v4  ;;  %v19026_v62 = vpack.c.bf16 %v10790_v59, %v10789_v58  ;;  %v19028_v43 = vpack.c.bf16 %v10795_v61, %v10794_v60  ;;  %v13626_v63 = vld [vmem:[%s19363_s7 + $0xc] ss:$0 sm:$0xff] }
0x1b7a   :  { %v13624_v5 = vmul.f32 -1.442695, %v10149_v46  ;;  %v13630_v46 = vld [vmem:[%s19363_s7 + $0xd] ss:$0 sm:$0xff] }
0x1b7c   :  { %17400 = vpow2.f32 %v13624_v5 }
0x1b7d   :  { %17402 = vtanh.f32 %v10076_v6 }
0x1b7e   :  { %v17397_v7 = vpop.eup %17396 }
0x1b7f   :  { %v17399_v9 = vpop.eup %17398  ;;  %v9924_v12 = vadd.f32 1.0, %v17397_v7 }
0x1b80   :  { %v10002_v14 = vadd.f32 1.0, %v17399_v9 }
0x1b81   :  { %17404 = vrcp.f32 %v9924_v12 }
0x1b82   :  { %17406 = vrcp.f32 %v10002_v14 }
0x1b86   :  { %v17401_v15 = vpop.eup %17400 }
0x1b87   :  { %v17403_v16 = vpop.eup %17402  ;;  %v10153_v2 = vadd.f32 1.0, %v17401_v15 }
0x1b89   :  { %17408 = vrcp.f32 %v10153_v2 }
0x1b8b   :  { %v17405_v37 = vpop.eup %17404 }
0x1b8c   :  { %v17407_v17 = vpop.eup %17406  ;;  %v10157_v8 = vmul.f32 %v17405_v37, %v17403_v16 }
0x1b8d   :  { %v10156_v19 = vmul.f32 %v17407_v17, %v18950_v40  ;;  %v10500_v40 = vld [vmem:[#allocation4 + $0x1d8] sm:$0xff] }
0x1b8e   :  { %v16805_v22 = vpack.c.bf16 %v10500_v40, %v10499_v18 }
0x1b8f   :  { %v10158_v13 = vadd.f32 %v10157_v8, %v10156_v19 }
0x1b91   :  { %17410 = vtanh.f32 %v10158_v13 }
0x1b93   :  { %v17409_v26 = vpop.eup %17408 }
0x1b9b   :  { %v17411_v42 = vpop.eup %17410 }
0x1b9c   :  { %v10160_v20 = vmul.f32 %v17411_v42, %v17409_v26 }
0x1b9e   :  { %10161 = vst.msk [vmem:[#allocation2 + $0xe] sm:$0x3] %vm639_vm9, %v10160_v20 }
0x1ba5   :  { %v10169_v24 = vld [vmem:[#allocation2 + $0xe] sm:$0x3] }
0x1ba6   :  { %v10209_v32 = vcombine.low %v10168_v48, %v10169_v24  ;;  %v13634_v24 = vld [vmem:[%s19363_s7 + $0xe] ss:$0 sm:$0xff] }
0x1ba8   :  { %v10223_v30 = vrot.slane %v10209_v32, %v17755_v36  ;;  %v13638_v32 = vld [vmem:[%s19363_s7 + $0xf] ss:$0 sm:$0xff] }
0x1baa   :  { %v10224_v33 = vcombine.low %v10216_v25, %v10223_v30 }
0x1bac   :  { %15685 = vmatmul.mubr.msk.f32.vlgmr.msra.gmra.mrb[112].mxu0 %vm436_vm6, %v10224_v33  ;;  %15696 = vmatmul.mubr.msk.f32.vlgmr.msra.gmra.mrb[108].mxu1 %vm436_vm6, %v10224_v33 }
0x1bad   :  { %16804 = vmatpush3.bf16.msra.mxu0 %v18976_v52  ;;  %16812 = vmatpush3.bf16.msra.mxu1 %v18978_v53  ;;  %v10785_v52 = vld [vmem:[#allocation7 + $0x1b8] sm:$0xff] }
0x1bae   :  { %15706 = vmatprep.mubr.msk.f32.mxu0 %vm436_vm6, %v18968_v50  ;;  %15717 = vmatprep.mubr.msk.f32.mxu1 %vm436_vm6, %v18968_v50  ;;  %v19004_v50 = vpack.c.bf16 %v10780_v49, %v10779_v47  ;;  %v19006_v53 = vpack.c.bf16 %v10785_v52, %v10784_v51 }
0x1baf   :  { %16806 = vmatprep.subr.bf16.mxu0 %v16805_v22  ;;  %16814 = vmatprep.subr.bf16.mxu1 %v16813_v35 }
0x1bb1   :  { %16808 = vmatpush3.bf16.msra.mxu0 %v16805_v22  ;;  %16816 = vmatpush3.bf16.msra.mxu1 %v16813_v35 }
0x1bb2   :  { %16817 = vmatprep.subr.bf16.mxu0 %v17622_v34  ;;  %16823 = vmatprep.subr.bf16.mxu1 %v17622_v34 }
0x1bb4   :  { %15707 = vmatmul.mubr.msk.f32.vlgmr.msra.gmra.mrb[114].mxu0 %vm436_vm6, %v10224_v33  ;;  %15718 = vmatmul.mubr.msk.f32.vlgmr.msra.gmra.mrb[110].mxu1 %vm436_vm6, %v10224_v33 }
0x1bb5   :  { %16819 = vmatpush3.bf16.msra.mxu0 %v18994_v27  ;;  %16825 = vmatpush3.bf16.msra.mxu1 %v18996_v28 }
0x1bb6   :  { %16820 = vmatprep.subr.bf16.mxu0 %v17622_v34  ;;  %16826 = vmatprep.subr.bf16.mxu1 %v17622_v34 }
0x1bb7   :  { %15728 = vmatprep.mubr.msk.f32.mxu0 %vm17623_vm10, %v17618_v11  ;;  %15739 = vmatprep.mubr.msk.f32.mxu1 %vm17623_vm10, %v17618_v11 }
0x1bb9   :  { %16822 = vmatpush3.bf16.msra.mxu0 %v19004_v50  ;;  %16828 = vmatpush3.bf16.msra.mxu1 %v19006_v53 }
0x1bba   :  { %16829 = vmatprep.subr.bf16.mxu0 %v17622_v34  ;;  %16835 = vmatprep.subr.bf16.mxu1 %v17622_v34 }
0x1bbc   :  { %15729 = vmatmul.mubr.f32.vlgmr.msra.gmra.mrb[116].mxu0 %v17618_v11  ;;  %15740 = vmatmul.mubr.f32.vlgmr.msra.gmra.mrb[112].mxu1 %v17618_v11 }
0x1bbd   :  { %16831 = vmatpush3.bf16.msra.mxu0 %v19016_v38  ;;  %16837 = vmatpush3.bf16.msra.mxu1 %v19018_v57 }
0x1bbe   :  { %16832 = vmatprep.subr.bf16.mxu0 %v17622_v34  ;;  %16838 = vmatprep.subr.bf16.mxu1 %v17622_v34 }
0x1bbf   :  { %15750 = vmatprep.mubr.msk.f32.mxu0 %vm17623_vm10, %v17618_v11  ;;  %15761 = vmatprep.mubr.msk.f32.mxu1 %vm17623_vm10, %v17618_v11 }
0x1bc1   :  { %16834 = vmatpush3.bf16.msra.mxu0 %v19026_v62  ;;  %16840 = vmatpush3.bf16.msra.mxu1 %v19028_v43 }
0x1bc2   :  { %16841 = vmatprep.subr.bf16.mxu0 %v17622_v34  ;;  %16847 = vmatprep.subr.bf16.mxu1 %v17622_v34 }
0x1bc4   :  { %15751 = vmatmul.mubr.f32.vlgmr.msra.gmra.mrb[118].mxu0 %v17618_v11  ;;  %15762 = vmatmul.mubr.f32.vlgmr.msra.gmra.mrb[114].mxu1 %v17618_v11 }
0x1bc5   :  { %16843 = vmatpush3.bf16.msra.mxu0 %v18994_v27  ;;  %16849 = vmatpush3.bf16.msra.mxu1 %v18996_v28 }
0x1bc6   :  { %16844 = vmatprep.subr.bf16.mxu0 %v17622_v34  ;;  %16850 = vmatprep.subr.bf16.mxu1 %v17622_v34 }
0x1bc7   :  { %15772 = vmatprep.mubr.msk.f32.mxu0 %vm17623_vm10, %v17618_v11  ;;  %15783 = vmatprep.mubr.msk.f32.mxu1 %vm17623_vm10, %v17618_v11 }
0x1bc9   :  { %16846 = vmatpush3.bf16.msra.mxu0 %v19004_v50  ;;  %16852 = vmatpush3.bf16.msra.mxu1 %v19006_v53 }
0x1bca   :  { %16853 = vmatprep.subr.bf16.mxu0 %v17622_v34  ;;  %16859 = vmatprep.subr.bf16.mxu1 %v17622_v34 }
0x1c7f   :  { %v15686_v0 = vpop.f32.mrb[112].mxu0  ;;  %v15697_v1 = vpop.f32.mrb[108].mxu1 }
0x1c80   :  { %v10301_v4 = vadd.f32 %v15686_v0, %v13626_v63  ;;  %v10441_v5 = vadd.f32 %v15697_v1, %v13630_v46  ;;  %v10295_v6 = vpop.f32.mrb[113].mxu0  ;;  %v10435_v7 = vpop.f32.mrb[109].mxu1 }
0x1c81   :  { %v10296_v9 = vadd.f32 %v13626_v63, %v10295_v6  ;;  %v10436_v12 = vadd.f32 %v13630_v46, %v10435_v7 }
0x1c82   :  { %v10323_v14 = vcombine.high %v10301_v4, %v10301_v4  ;;  %v10330_v15 = vrot.slane %v10301_v4, %v17755_v36  ;;  %v10463_v16 = vcombine.high %v10441_v5, %v10441_v5  ;;  %v10470_v37 = vrot.slane %v10441_v5, %v17755_v36 }
0x1c83   :  { %v10306_v17 = vcombine.high %v10296_v9, %v10296_v9  ;;  %v10313_v8 = vrot.slane %v10296_v9, %v17755_v36  ;;  %v10446_v2 = vcombine.high %v10436_v12, %v10436_v12  ;;  %v10453_v19 = vrot.slane %v10436_v12, %v17755_v36 }
0x1c84   :  { %v10337_v13 = vrot.slane %v10323_v14, %v17755_v36  ;;  %v10338_v26 = vcombine.high %v10330_v15, %v10330_v15  ;;  %10352 = vst.msk [vmem:[#allocation3 + $0x8] sm:$0x3] %vm639_vm9, %v10330_v15  ;;  %v10477_v42 = vrot.slane %v10463_v16, %v17755_v36  ;;  %v10478_v20 = vcombine.high %v10470_v37, %v10470_v37 }
0x1c85   :  { %10492 = vst.msk [vmem:[#allocation3 + $0x18] sm:$0x3] %vm639_vm9, %v10470_v37  ;;  %v10320_v21 = vrot.slane %v10306_v17, %v17755_v36  ;;  %v10321_v3 = vcombine.high %v10313_v8, %v10313_v8  ;;  %10348 = vst.msk [vmem:[#allocation3] sm:$0x3] %vm639_vm9, %v10313_v8  ;;  %v10460_v23 = vrot.slane %v10446_v2, %v17755_v36 }
0x1c86   :  { %v10461_v48 = vcombine.high %v10453_v19, %v10453_v19  ;;  %10488 = vst.msk [vmem:[#allocation3 + $0x10] sm:$0x3] %vm639_vm9, %v10453_v19  ;;  %v10339_v18 = vcombine.high %v10337_v13, %v10337_v13  ;;  %10353 = vst.msk [vmem:[#allocation3 + $0xa] sm:$0x3] %vm639_vm9, %v10338_v26  ;;  %v10479_v25 = vcombine.high %v10477_v42, %v10477_v42 }
0x1c87   :  { %10354 = vst.msk [vmem:[#allocation3 + $0xc] sm:$0x3] %vm639_vm9, %v10337_v13  ;;  %10493 = vst.msk [vmem:[#allocation3 + $0x1a] sm:$0x3] %vm639_vm9, %v10478_v20  ;;  %v10322_v30 = vcombine.high %v10320_v21, %v10320_v21  ;;  %v10462_v40 = vcombine.high %v10460_v23, %v10460_v23  ;;  %v15708_v31 = vpop.f32.mrb[114].mxu0  ;;  %v15719_v55 = vpop.f32.mrb[110].mxu1 }
0x1c88   :  { %10494 = vst.msk [vmem:[#allocation3 + $0x1c] sm:$0x3] %vm639_vm9, %v10477_v42  ;;  %10349 = vst.msk [vmem:[#allocation3 + $0x2] sm:$0x3] %vm639_vm9, %v10321_v3  ;;  %v10581_v33 = vadd.f32 %v15708_v31, %v13634_v24  ;;  %v10721_v22 = vadd.f32 %v15719_v55, %v13638_v32  ;;  %v10575_v35 = vpop.f32.mrb[115].mxu0  ;;  %v10715_v39 = vpop.f32.mrb[111].mxu1 }
0x1c89   :  { %10350 = vst.msk [vmem:[#allocation3 + $0x4] sm:$0x3] %vm639_vm9, %v10320_v21  ;;  %10489 = vst.msk [vmem:[#allocation3 + $0x12] sm:$0x3] %vm639_vm9, %v10461_v48  ;;  %v10576_v41 = vadd.f32 %v13634_v24, %v10575_v35  ;;  %v10716_v44 = vadd.f32 %v13638_v32, %v10715_v39 }
0x1c8a   :  { %10490 = vst.msk [vmem:[#allocation3 + $0x14] sm:$0x3] %vm639_vm9, %v10460_v23  ;;  %10355 = vst.msk [vmem:[#allocation3 + $0xe] sm:$0x3] %vm639_vm9, %v10339_v18  ;;  %v10603_v45 = vcombine.high %v10581_v33, %v10581_v33  ;;  %v10610_v47 = vrot.slane %v10581_v33, %v17755_v36  ;;  %v10743_v49 = vcombine.high %v10721_v22, %v10721_v22 }
0x1c8b   :  { %10495 = vst.msk [vmem:[#allocation3 + $0x1e] sm:$0x3] %vm639_vm9, %v10479_v25  ;;  %10351 = vst.msk [vmem:[#allocation3 + $0x6] sm:$0x3] %vm639_vm9, %v10322_v30  ;;  %v10750_v51 = vrot.slane %v10721_v22, %v17755_v36  ;;  %v10586_v52 = vcombine.high %v10576_v41, %v10576_v41  ;;  %v10593_v29 = vrot.slane %v10576_v41, %v17755_v36 }
0x1c8c   :  { %10491 = vst.msk [vmem:[#allocation3 + $0x16] sm:$0x3] %vm639_vm9, %v10462_v40  ;;  %v10726_v10 = vcombine.high %v10716_v44, %v10716_v44  ;;  %v10733_v54 = vrot.slane %v10716_v44, %v17755_v36  ;;  %v10617_v56 = vrot.slane %v10603_v45, %v17755_v36  ;;  %v10618_v58 = vcombine.high %v10610_v47, %v10610_v47 }
0x1c8d   :  { %10632 = vst.msk [vmem:[#allocation3 + $0x28] sm:$0x3] %vm639_vm9, %v10610_v47  ;;  %v10757_v59 = vrot.slane %v10743_v49, %v17755_v36  ;;  %v10758_v60 = vcombine.high %v10750_v51, %v10750_v51  ;;  %10772 = vst.msk [vmem:[#allocation3 + $0x38] sm:$0x3] %vm639_vm9, %v10750_v51  ;;  %v10600_v61 = vrot.slane %v10586_v52, %v17755_v36  ;;  %v10874_v9 = vld [vmem:[#allocation3 + $0x10] sm:$0x3] }
0x1c8e   :  { %v10601_v63 = vcombine.high %v10593_v29, %v10593_v29  ;;  %10628 = vst.msk [vmem:[#allocation3 + $0x20] sm:$0x3] %vm639_vm9, %v10593_v29  ;;  %v10740_v46 = vrot.slane %v10726_v10, %v17755_v36  ;;  %v10741_v0 = vcombine.high %v10733_v54, %v10733_v54  ;;  %10768 = vst.msk [vmem:[#allocation3 + $0x30] sm:$0x3] %vm639_vm9, %v10733_v54  ;;  %v10796_v36 = vld [vmem:[#allocation3] sm:$0x3] }
0x1c8f   :  { %v10619_v1 = vcombine.high %v10617_v56, %v10617_v56  ;;  %10633 = vst.msk [vmem:[#allocation3 + $0x2a] sm:$0x3] %vm639_vm9, %v10618_v58  ;;  %10634 = vst.msk [vmem:[#allocation3 + $0x2c] sm:$0x3] %vm639_vm9, %v10617_v56  ;;  %v10759_v4 = vcombine.high %v10757_v59, %v10757_v59  ;;  %v10602_v5 = vcombine.high %v10600_v61, %v10600_v61  ;;  %v10863_v7 = vpop.f32.mrb[116].mxu0  ;;  %v10941_v12 = vpop.f32.mrb[112].mxu1 }
0x1c90   :  { %10773 = vst.msk [vmem:[#allocation3 + $0x3a] sm:$0x3] %vm639_vm9, %v10758_v60  ;;  %10774 = vst.msk [vmem:[#allocation3 + $0x3c] sm:$0x3] %vm639_vm9, %v10757_v59  ;;  %v10742_v6 = vcombine.high %v10740_v46, %v10740_v46  ;;  %v10867_v14 = vadd.f32 %v10863_v7, %v10796_v36  ;;  %v10945_v15 = vadd.f32 %v10941_v12, %v10874_v9  ;;  %v15730_v16 = vpop.f32.mrb[117].mxu0  ;;  %v15741_v37 = vpop.f32.mrb[113].mxu1 }
0x1c91   :  { %10629 = vst.msk [vmem:[#allocation3 + $0x22] sm:$0x3] %vm639_vm9, %v10601_v63  ;;  %10630 = vst.msk [vmem:[#allocation3 + $0x24] sm:$0x3] %vm639_vm9, %v10600_v61  ;;  %v11108_v45 = vld [vmem:[#allocation3 + $0x2] sm:$0x3] }
0x1c92   :  { %10769 = vst.msk [vmem:[#allocation3 + $0x32] sm:$0x3] %vm639_vm9, %v10741_v0  ;;  %10770 = vst.msk [vmem:[#allocation3 + $0x34] sm:$0x3] %vm639_vm9, %v10740_v46  ;;  %v13641_v17 = vmul.f32 -1.442695, %v10867_v14 }
0x1c93   :  { %10635 = vst.msk [vmem:[#allocation3 + $0x2e] sm:$0x3] %vm639_vm9, %v10619_v1  ;;  %10775 = vst.msk [vmem:[#allocation3 + $0x3e] sm:$0x3] %vm639_vm9, %v10759_v4  ;;  %v13642_v8 = vmul.f32 -1.442695, %v10945_v15 }
0x1c94   :  { %10631 = vst.msk [vmem:[#allocation3 + $0x26] sm:$0x3] %vm639_vm9, %v10602_v5  ;;  %10771 = vst.msk [vmem:[#allocation3 + $0x36] sm:$0x3] %vm639_vm9, %v10742_v6  ;;  %17412 = vpow2.f32 %v13641_v17  ;;  %v11189_v49 = vld [vmem:[#allocation3 + $0x12] sm:$0x3] }
0x1c95   :  { %17414 = vpow2.f32 %v13642_v8  ;;  %v11025_v19 = vld [vmem:[#allocation3 + $0x30] sm:$0x3]  ;;  %v10952_v21 = vld [vmem:[#allocation3 + $0x20] sm:$0x3] }
0x1c97   :  { %v11019_v2 = vpop.f32.mrb[118].mxu0  ;;  %v11092_v13 = vpop.f32.mrb[114].mxu1 }
0x1c98   :  { %v11096_v26 = vadd.f32 %v11092_v13, %v11025_v19  ;;  %v15752_v42 = vpop.f32.mrb[119].mxu0  ;;  %v15763_v20 = vpop.f32.mrb[115].mxu1  ;;  %v11023_v23 = vadd.f32 %v11019_v2, %v10952_v21  ;;  %v11267_v1 = vld [vmem:[#allocation3 + $0x22] sm:$0x3]  ;;  %v11504_v21 = vld [vmem:[#allocation3 + $0x14] sm:$0x3] }
0x1c99   :  { %v11340_v60 = vld [vmem:[#allocation3 + $0x32] sm:$0x3]  ;;  %v11423_v42 = vld [vmem:[#allocation3 + $0x4] sm:$0x3] }
0x1c9a   :  { %v13643_v3 = vmul.f32 -1.442695, %v11096_v26 }
0x1c9c   :  { %17416 = vpow2.f32 %v13643_v3 }
0x1c9d   :  { %17418 = vtanh.f32 %v11023_v23 }
0x1c9e   :  { %v17413_v48 = vpop.eup %17412 }
0x1c9f   :  { %v17415_v24 = vpop.eup %17414  ;;  %v10871_v32 = vadd.f32 1.0, %v17413_v48 }
0x1ca0   :  { %v10949_v18 = vadd.f32 1.0, %v17415_v24 }
0x1ca1   :  { %17420 = vrcp.f32 %v10871_v32 }
0x1ca2   :  { %17422 = vrcp.f32 %v10949_v18 }
0x1ca6   :  { %v17417_v25 = vpop.eup %17416 }
0x1ca7   :  { %v17419_v30 = vpop.eup %17418  ;;  %v11100_v33 = vadd.f32 1.0, %v17417_v25 }
0x1ca9   :  { %17424 = vrcp.f32 %v11100_v33 }
0x1cab   :  { %v17421_v40 = vpop.eup %17420 }
0x1cac   :  { %v17423_v31 = vpop.eup %17422  ;;  %v11104_v55 = vmul.f32 %v17421_v40, %v17419_v30  ;;  %v11655_v40 = vld [vmem:[#allocation3 + $0x34] sm:$0x3] }
0x1cad   :  { %v11103_v22 = vmul.f32 0.0, %v17423_v31 }
0x1caf   :  { %v19114_v35 = vadd.f32 %v11104_v55, %v11103_v22 }
0x1cb1   :  { %17426 = vtanh.f32 %v19114_v35 }
0x1cb3   :  { %v17425_v39 = vpop.eup %17424 }
0x1cbb   :  { %v17427_v41 = vpop.eup %17426 }
0x1cbc   :  { %v11107_v44 = vmul.f32 %v17427_v41, %v17425_v39 }
0x1cbe   :  { %15773 = vmatmul.mubr.msk.f32.vlgmr.msra.gmra.mrb[120].mxu0 %vm436_vm6, %v11107_v44  ;;  %15784 = vmatmul.mubr.msk.f32.vlgmr.msra.gmra.mrb[116].mxu1 %vm436_vm6, %v11107_v44 }
0x1cbf   :  { %16855 = vmatpush3.bf16.msra.mxu0 %v19016_v38  ;;  %16861 = vmatpush3.bf16.msra.mxu1 %v19018_v57 }
0x1cc0   :  { %16856 = vmatprep.subr.bf16.mxu0 %v17622_v34  ;;  %16862 = vmatprep.subr.bf16.mxu1 %v17622_v34 }
0x1cc1   :  { %15794 = vmatprep.mubr.msk.f32.mxu0 %vm17623_vm10, %v17618_v11  ;;  %15805 = vmatprep.mubr.msk.f32.mxu1 %vm17623_vm10, %v17618_v11 }
0x1cc3   :  { %16858 = vmatpush3.bf16.msra.mxu0 %v19026_v62  ;;  %16864 = vmatpush3.bf16.msra.mxu1 %v19028_v43 }
0x1cc4   :  { %16865 = vmatprep.subr.bf16.mxu0 %v17622_v34  ;;  %16871 = vmatprep.subr.bf16.mxu1 %v17622_v34 }
0x1cc6   :  { %15795 = vmatmul.mubr.msk.f32.vlgmr.msra.gmra.mrb[122].mxu0 %vm436_vm6, %v11107_v44  ;;  %15806 = vmatmul.mubr.msk.f32.vlgmr.msra.gmra.mrb[118].mxu1 %vm436_vm6, %v11107_v44 }
0x1cc7   :  { %16867 = vmatpush3.bf16.msra.mxu0 %v18994_v27  ;;  %16873 = vmatpush3.bf16.msra.mxu1 %v18996_v28 }
0x1cc8   :  { %16868 = vmatprep.subr.bf16.mxu0 %v17622_v34  ;;  %16874 = vmatprep.subr.bf16.mxu1 %v17622_v34 }
0x1cc9   :  { %15816 = vmatprep.mubr.msk.f32.mxu0 %vm17623_vm10, %v17618_v11  ;;  %15827 = vmatprep.mubr.msk.f32.mxu1 %vm17623_vm10, %v17618_v11 }
0x1ccb   :  { %16870 = vmatpush3.bf16.msra.mxu0 %v19004_v50  ;;  %16876 = vmatpush3.bf16.msra.mxu1 %v19006_v53 }
0x1ccc   :  { %16877 = vmatprep.subr.bf16.mxu0 %v17622_v34  ;;  %16883 = vmatprep.subr.bf16.mxu1 %v17622_v34 }
0x1d91   :  { %v11178_v47 = vpop.f32.mrb[120].mxu0  ;;  %v11256_v51 = vpop.f32.mrb[116].mxu1 }
0x1d92   :  { %v11182_v52 = vadd.f32 %v11178_v47, %v11108_v45  ;;  %v11260_v29 = vadd.f32 %v11256_v51, %v11189_v49  ;;  %v15774_v10 = vpop.f32.mrb[121].mxu0  ;;  %v15785_v54 = vpop.f32.mrb[117].mxu1 }
0x1d94   :  { %v13645_v56 = vmul.f32 -1.442695, %v11182_v52  ;;  %v13647_v58 = vmul.f32 -1.442695, %v11260_v29 }
0x1d96   :  { %17428 = vpow2.f32 %v13645_v56 }
0x1d97   :  { %17430 = vpow2.f32 %v13647_v58 }
0x1d99   :  { %v11334_v59 = vpop.f32.mrb[122].mxu0  ;;  %v11407_v61 = vpop.f32.mrb[118].mxu1 }
0x1d9a   :  { %v11411_v63 = vadd.f32 %v11407_v61, %v11340_v60  ;;  %v15796_v46 = vpop.f32.mrb[123].mxu0  ;;  %v15807_v0 = vpop.f32.mrb[119].mxu1  ;;  %v11338_v5 = vadd.f32 %v11334_v59, %v11267_v1  ;;  %v11819_v1 = vld [vmem:[#allocation3 + $0x16] sm:$0x3] }
0x1d9b   :  { %v11738_v46 = vld [vmem:[#allocation3 + $0x6] sm:$0x3] }
0x1d9c   :  { %v13650_v4 = vmul.f32 -1.442695, %v11411_v63 }
0x1d9e   :  { %17432 = vpow2.f32 %v13650_v4 }
0x1d9f   :  { %17434 = vtanh.f32 %v11338_v5 }
0x1da0   :  { %v17429_v6 = vpop.eup %17428 }
0x1da1   :  { %v17431_v36 = vpop.eup %17430  ;;  %v11186_v7 = vadd.f32 1.0, %v17429_v6 }
0x1da2   :  { %v11264_v9 = vadd.f32 1.0, %v17431_v36 }
0x1da3   :  { %17436 = vrcp.f32 %v11186_v7 }
0x1da4   :  { %17438 = vrcp.f32 %v11264_v9 }
0x1da8   :  { %v17433_v12 = vpop.eup %17432 }
0x1da9   :  { %v17435_v14 = vpop.eup %17434  ;;  %v11415_v17 = vadd.f32 1.0, %v17433_v12 }
0x1dab   :  { %17440 = vrcp.f32 %v11415_v17 }
0x1dad   :  { %v17437_v15 = vpop.eup %17436 }
0x1dae   :  { %v17439_v16 = vpop.eup %17438  ;;  %v11419_v37 = vmul.f32 %v17437_v15, %v17435_v14  ;;  %v11970_v15 = vld [vmem:[#allocation3 + $0x36] sm:$0x3] }
0x1daf   :  { %v11418_v8 = vmul.f32 %v17439_v16, %v19114_v35  ;;  %v11582_v35 = vld [vmem:[#allocation3 + $0x24] sm:$0x3] }
0x1db1   :  { %v19146_v2 = vadd.f32 %v11419_v37, %v11418_v8 }
0x1db3   :  { %17442 = vtanh.f32 %v19146_v2 }
0x1db5   :  { %v17441_v19 = vpop.eup %17440 }
0x1dbd   :  { %v17443_v13 = vpop.eup %17442 }
0x1dbe   :  { %v11422_v26 = vmul.f32 %v17443_v13, %v17441_v19 }
0x1dc0   :  { %15817 = vmatmul.mubr.msk.f32.vlgmr.msra.gmra.mrb[124].mxu0 %vm436_vm6, %v11422_v26  ;;  %15828 = vmatmul.mubr.msk.f32.vlgmr.msra.gmra.mrb[120].mxu1 %vm436_vm6, %v11422_v26 }
0x1dc1   :  { %16879 = vmatpush3.bf16.msra.mxu0 %v19016_v38  ;;  %16885 = vmatpush3.bf16.msra.mxu1 %v19018_v57 }
0x1dc2   :  { %16880 = vmatprep.subr.bf16.mxu0 %v17622_v34  ;;  %16886 = vmatprep.subr.bf16.mxu1 %v17622_v34 }
0x1dc3   :  { %15838 = vmatprep.mubr.msk.f32.mxu0 %vm17623_vm10, %v17618_v11  ;;  %15849 = vmatprep.mubr.msk.f32.mxu1 %vm17623_vm10, %v17618_v11 }
0x1dc5   :  { %16882 = vmatpush3.bf16.msra.mxu0 %v19026_v62  ;;  %16888 = vmatpush3.bf16.msra.mxu1 %v19028_v43 }
0x1dc6   :  { %16889 = vmatprep.subr.bf16.mxu0 %v17622_v34  ;;  %16895 = vmatprep.subr.bf16.mxu1 %v17622_v34 }
0x1dc8   :  { %15839 = vmatmul.mubr.msk.f32.vlgmr.msra.gmra.mrb[126].mxu0 %vm436_vm6, %v11422_v26  ;;  %15850 = vmatmul.mubr.msk.f32.vlgmr.msra.gmra.mrb[122].mxu1 %vm436_vm6, %v11422_v26 }
0x1dc9   :  { %16891 = vmatpush3.bf16.msra.mxu0 %v18994_v27  ;;  %16897 = vmatpush3.bf16.msra.mxu1 %v18996_v28 }
0x1dca   :  { %16892 = vmatprep.subr.bf16.mxu0 %v17622_v34  ;;  %16898 = vmatprep.subr.bf16.mxu1 %v17622_v34 }
0x1dcb   :  { %15860 = vmatprep.mubr.msk.f32.mxu0 %vm17623_vm10, %v17618_v11  ;;  %15871 = vmatprep.mubr.msk.f32.mxu1 %vm17623_vm10, %v17618_v11 }
0x1dcd   :  { %16894 = vmatpush3.bf16.msra.mxu0 %v19004_v50  ;;  %16900 = vmatpush3.bf16.msra.mxu1 %v19006_v53 }
0x1dce   :  { %16901 = vmatprep.subr.bf16.mxu0 %v17622_v34  ;;  %16907 = vmatprep.subr.bf16.mxu1 %v17622_v34 }
0x1e93   :  { %v11493_v20 = vpop.f32.mrb[124].mxu0  ;;  %v11571_v3 = vpop.f32.mrb[120].mxu1 }
0x1e94   :  { %v11497_v23 = vadd.f32 %v11493_v20, %v11423_v42  ;;  %v11575_v48 = vadd.f32 %v11571_v3, %v11504_v21  ;;  %v15818_v24 = vpop.f32.mrb[125].mxu0  ;;  %v15829_v32 = vpop.f32.mrb[121].mxu1 }
0x1e96   :  { %v13652_v18 = vmul.f32 -1.442695, %v11497_v23  ;;  %v13654_v25 = vmul.f32 -1.442695, %v11575_v48 }
0x1e98   :  { %17444 = vpow2.f32 %v13652_v18 }
0x1e99   :  { %17446 = vpow2.f32 %v13654_v25 }
0x1e9b   :  { %v11649_v30 = vpop.f32.mrb[126].mxu0  ;;  %v11722_v31 = vpop.f32.mrb[122].mxu1 }
0x1e9c   :  { %v11726_v55 = vadd.f32 %v11722_v31, %v11655_v40  ;;  %v15840_v33 = vpop.f32.mrb[127].mxu0  ;;  %v15851_v22 = vpop.f32.mrb[123].mxu1  ;;  %v11653_v41 = vadd.f32 %v11649_v30, %v11582_v35  ;;  %v12134_v35 = vld [vmem:[#allocation3 + $0x18] sm:$0x3] }
0x1e9d   :  { %v12053_v33 = vld [vmem:[#allocation3 + $0x8] sm:$0x3] }
0x1e9e   :  { %v13657_v39 = vmul.f32 -1.442695, %v11726_v55 }
0x1ea0   :  { %17448 = vpow2.f32 %v13657_v39 }
0x1ea1   :  { %17450 = vtanh.f32 %v11653_v41 }
0x1ea2   :  { %v17445_v44 = vpop.eup %17444 }
0x1ea3   :  { %v17447_v45 = vpop.eup %17446  ;;  %v11501_v47 = vadd.f32 1.0, %v17445_v44 }
0x1ea4   :  { %v11579_v49 = vadd.f32 1.0, %v17447_v45 }
0x1ea5   :  { %17452 = vrcp.f32 %v11501_v47 }
0x1ea6   :  { %17454 = vrcp.f32 %v11579_v49 }
0x1eaa   :  { %v17449_v51 = vpop.eup %17448 }
0x1eab   :  { %v17451_v52 = vpop.eup %17450  ;;  %v11730_v56 = vadd.f32 1.0, %v17449_v51 }
0x1ead   :  { %17456 = vrcp.f32 %v11730_v56 }
0x1eaf   :  { %v17453_v29 = vpop.eup %17452 }
0x1eb0   :  { %v17455_v10 = vpop.eup %17454  ;;  %v11734_v54 = vmul.f32 %v17453_v29, %v17451_v52  ;;  %v12285_v29 = vld [vmem:[#allocation3 + $0x38] sm:$0x3] }
0x1eb1   :  { %v11733_v58 = vmul.f32 %v17455_v10, %v19146_v2  ;;  %v11897_v2 = vld [vmem:[#allocation3 + $0x26] sm:$0x3] }
0x1eb3   :  { %v19178_v59 = vadd.f32 %v11734_v54, %v11733_v58 }
0x1eb5   :  { %17458 = vtanh.f32 %v19178_v59 }
0x1eb7   :  { %v17457_v60 = vpop.eup %17456 }
0x1ebf   :  { %v17459_v61 = vpop.eup %17458 }
0x1ec0   :  { %v11737_v63 = vmul.f32 %v17459_v61, %v17457_v60 }
0x1ec2   :  { %15861 = vmatmul.mubr.msk.f32.vlgmr.msra.gmra.mrb[128].mxu0 %vm436_vm6, %v11737_v63  ;;  %15872 = vmatmul.mubr.msk.f32.vlgmr.msra.gmra.mrb[124].mxu1 %vm436_vm6, %v11737_v63 }
0x1ec3   :  { %16903 = vmatpush3.bf16.msra.mxu0 %v19016_v38  ;;  %16909 = vmatpush3.bf16.msra.mxu1 %v19018_v57 }
0x1ec4   :  { %16904 = vmatprep.subr.bf16.mxu0 %v17622_v34  ;;  %16910 = vmatprep.subr.bf16.mxu1 %v17622_v34 }
0x1ec5   :  { %15882 = vmatprep.mubr.msk.f32.mxu0 %vm17623_vm10, %v17618_v11  ;;  %15893 = vmatprep.mubr.msk.f32.mxu1 %vm17623_vm10, %v17618_v11 }
0x1ec7   :  { %16906 = vmatpush3.bf16.msra.mxu0 %v19026_v62  ;;  %16912 = vmatpush3.bf16.msra.mxu1 %v19028_v43 }
0x1ec8   :  { %16913 = vmatprep.subr.bf16.mxu0 %v17622_v34  ;;  %16919 = vmatprep.subr.bf16.mxu1 %v17622_v34 }
0x1eca   :  { %15883 = vmatmul.mubr.msk.f32.vlgmr.msra.gmra.mrb[130].mxu0 %vm436_vm6, %v11737_v63  ;;  %15894 = vmatmul.mubr.msk.f32.vlgmr.msra.gmra.mrb[126].mxu1 %vm436_vm6, %v11737_v63 }
0x1ecb   :  { %16915 = vmatpush3.bf16.msra.mxu0 %v18994_v27  ;;  %16921 = vmatpush3.bf16.msra.mxu1 %v18996_v28 }
0x1ecc   :  { %16916 = vmatprep.subr.bf16.mxu0 %v17622_v34  ;;  %16922 = vmatprep.subr.bf16.mxu1 %v17622_v34 }
0x1ecd   :  { %15904 = vmatprep.mubr.msk.f32.mxu0 %vm17623_vm10, %v17618_v11  ;;  %15915 = vmatprep.mubr.msk.f32.mxu1 %vm17623_vm10, %v17618_v11 }
0x1ecf   :  { %16918 = vmatpush3.bf16.msra.mxu0 %v19004_v50  ;;  %16924 = vmatpush3.bf16.msra.mxu1 %v19006_v53 }
0x1ed0   :  { %16925 = vmatprep.subr.bf16.mxu0 %v17622_v34  ;;  %16931 = vmatprep.subr.bf16.mxu1 %v17622_v34 }
0x1f95   :  { %v11808_v0 = vpop.f32.mrb[128].mxu0  ;;  %v11886_v4 = vpop.f32.mrb[124].mxu1 }
0x1f96   :  { %v11812_v5 = vadd.f32 %v11808_v0, %v11738_v46  ;;  %v11890_v6 = vadd.f32 %v11886_v4, %v11819_v1  ;;  %v15862_v36 = vpop.f32.mrb[129].mxu0  ;;  %v15873_v7 = vpop.f32.mrb[125].mxu1 }
0x1f98   :  { %v13659_v9 = vmul.f32 -1.442695, %v11812_v5  ;;  %v13661_v12 = vmul.f32 -1.442695, %v11890_v6 }
0x1f9a   :  { %17460 = vpow2.f32 %v13659_v9 }
0x1f9b   :  { %17462 = vpow2.f32 %v13661_v12 }
0x1f9d   :  { %v11964_v14 = vpop.f32.mrb[130].mxu0  ;;  %v12037_v16 = vpop.f32.mrb[126].mxu1 }
0x1f9e   :  { %v12041_v37 = vadd.f32 %v12037_v16, %v11970_v15  ;;  %v15884_v17 = vpop.f32.mrb[131].mxu0  ;;  %v15895_v8 = vpop.f32.mrb[127].mxu1  ;;  %v11968_v13 = vadd.f32 %v11964_v14, %v11897_v2  ;;  %v12449_v2 = vld [vmem:[#allocation3 + $0x1a] sm:$0x3] }
0x1f9f   :  { %v12368_v17 = vld [vmem:[#allocation3 + $0xa] sm:$0x3] }
0x1fa0   :  { %v13664_v19 = vmul.f32 -1.442695, %v12041_v37 }
0x1fa2   :  { %17464 = vpow2.f32 %v13664_v19 }
0x1fa3   :  { %17466 = vtanh.f32 %v11968_v13 }
0x1fa4   :  { %v17461_v26 = vpop.eup %17460 }
0x1fa5   :  { %v17463_v42 = vpop.eup %17462  ;;  %v11816_v20 = vadd.f32 1.0, %v17461_v26 }
0x1fa6   :  { %v11894_v21 = vadd.f32 1.0, %v17463_v42 }
0x1fa7   :  { %17468 = vrcp.f32 %v11816_v20 }
0x1fa8   :  { %17470 = vrcp.f32 %v11894_v21 }
0x1fac   :  { %v17465_v3 = vpop.eup %17464 }
0x1fad   :  { %v17467_v23 = vpop.eup %17466  ;;  %v12045_v18 = vadd.f32 1.0, %v17465_v3 }
0x1faf   :  { %17472 = vrcp.f32 %v12045_v18 }
0x1fb1   :  { %v17469_v48 = vpop.eup %17468 }
0x1fb2   :  { %v17471_v24 = vpop.eup %17470  ;;  %v12049_v32 = vmul.f32 %v17469_v48, %v17467_v23  ;;  %v12600_v48 = vld [vmem:[#allocation3 + $0x3a] sm:$0x3] }
0x1fb3   :  { %v12048_v25 = vmul.f32 %v17471_v24, %v19178_v59  ;;  %v12212_v59 = vld [vmem:[#allocation3 + $0x28] sm:$0x3] }
0x1fb5   :  { %v19210_v30 = vadd.f32 %v12049_v32, %v12048_v25 }
0x1fb7   :  { %17474 = vtanh.f32 %v19210_v30 }
0x1fb9   :  { %v17473_v40 = vpop.eup %17472 }
0x1fc1   :  { %v17475_v31 = vpop.eup %17474 }
0x1fc2   :  { %v12052_v55 = vmul.f32 %v17475_v31, %v17473_v40 }
0x1fc4   :  { %15905 = vmatmul.mubr.msk.f32.vlgmr.msra.gmra.mrb[132].mxu0 %vm436_vm6, %v12052_v55  ;;  %15916 = vmatmul.mubr.msk.f32.vlgmr.msra.gmra.mrb[128].mxu1 %vm436_vm6, %v12052_v55 }
0x1fc5   :  { %16927 = vmatpush3.bf16.msra.mxu0 %v19016_v38  ;;  %16933 = vmatpush3.bf16.msra.mxu1 %v19018_v57 }
0x1fc6   :  { %16928 = vmatprep.subr.bf16.mxu0 %v17622_v34  ;;  %16934 = vmatprep.subr.bf16.mxu1 %v17622_v34 }
0x1fc7   :  { %15926 = vmatprep.mubr.msk.f32.mxu0 %vm17623_vm10, %v17618_v11  ;;  %15937 = vmatprep.mubr.msk.f32.mxu1 %vm17623_vm10, %v17618_v11 }
0x1fc9   :  { %16930 = vmatpush3.bf16.msra.mxu0 %v19026_v62  ;;  %16936 = vmatpush3.bf16.msra.mxu1 %v19028_v43 }
0x1fca   :  { %16937 = vmatprep.subr.bf16.mxu0 %v17622_v34  ;;  %16943 = vmatprep.subr.bf16.mxu1 %v17622_v34 }
0x1fcc   :  { %15927 = vmatmul.mubr.msk.f32.vlgmr.msra.gmra.mrb[134].mxu0 %vm436_vm6, %v12052_v55  ;;  %15938 = vmatmul.mubr.msk.f32.vlgmr.msra.gmra.mrb[130].mxu1 %vm436_vm6, %v12052_v55 }
0x1fcd   :  { %16939 = vmatpush3.bf16.msra.mxu0 %v18994_v27  ;;  %16945 = vmatpush3.bf16.msra.mxu1 %v18996_v28 }
0x1fce   :  { %16940 = vmatprep.subr.bf16.mxu0 %v17622_v34  ;;  %16946 = vmatprep.subr.bf16.mxu1 %v17622_v34 }
0x1fcf   :  { %15948 = vmatprep.mubr.msk.f32.mxu0 %vm17623_vm10, %v17618_v11  ;;  %15959 = vmatprep.mubr.msk.f32.mxu1 %vm17623_vm10, %v17618_v11 }
0x1fd1   :  { %16942 = vmatpush3.bf16.msra.mxu0 %v19004_v50  ;;  %16948 = vmatpush3.bf16.msra.mxu1 %v19006_v53 }
0x1fd2   :  { %16949 = vmatprep.subr.bf16.mxu0 %v17622_v34  ;;  %16955 = vmatprep.subr.bf16.mxu1 %v17622_v34 }
0x2097   :  { %v12123_v22 = vpop.f32.mrb[132].mxu0  ;;  %v12201_v39 = vpop.f32.mrb[128].mxu1 }
0x2098   :  { %v12127_v41 = vadd.f32 %v12123_v22, %v12053_v33  ;;  %v12205_v44 = vadd.f32 %v12201_v39, %v12134_v35  ;;  %v15906_v45 = vpop.f32.mrb[133].mxu0  ;;  %v15917_v47 = vpop.f32.mrb[129].mxu1 }
0x209a   :  { %v13666_v49 = vmul.f32 -1.442695, %v12127_v41  ;;  %v13668_v51 = vmul.f32 -1.442695, %v12205_v44 }
0x209c   :  { %17476 = vpow2.f32 %v13666_v49 }
0x209d   :  { %17478 = vpow2.f32 %v13668_v51 }
0x209f   :  { %v12279_v52 = vpop.f32.mrb[134].mxu0  ;;  %v12352_v10 = vpop.f32.mrb[130].mxu1 }
0x20a0   :  { %v12356_v54 = vadd.f32 %v12352_v10, %v12285_v29  ;;  %v15928_v56 = vpop.f32.mrb[135].mxu0  ;;  %v15939_v58 = vpop.f32.mrb[131].mxu1  ;;  %v12283_v61 = vadd.f32 %v12279_v52, %v12212_v59 }
0x20a1   :  { %v12764_v56 = vld [vmem:[#allocation3 + $0x1c] sm:$0x3] }
0x20a2   :  { %v13671_v60 = vmul.f32 -1.442695, %v12356_v54 }
0x20a4   :  { %17480 = vpow2.f32 %v13671_v60 }
0x20a5   :  { %17482 = vtanh.f32 %v12283_v61 }
0x20a6   :  { %v17477_v63 = vpop.eup %17476 }
0x20a7   :  { %v17479_v46 = vpop.eup %17478  ;;  %v12131_v0 = vadd.f32 1.0, %v17477_v63 }
0x20a8   :  { %v12209_v1 = vadd.f32 1.0, %v17479_v46 }
0x20a9   :  { %17484 = vrcp.f32 %v12131_v0 }
0x20aa   :  { %17486 = vrcp.f32 %v12209_v1 }
0x20ae   :  { %v17481_v4 = vpop.eup %17480 }
0x20af   :  { %v17483_v5 = vpop.eup %17482  ;;  %v12360_v9 = vadd.f32 1.0, %v17481_v4 }
0x20b1   :  { %17488 = vrcp.f32 %v12360_v9 }
0x20b3   :  { %v17485_v6 = vpop.eup %17484 }
0x20b4   :  { %v17487_v36 = vpop.eup %17486  ;;  %v12364_v7 = vmul.f32 %v17485_v6, %v17483_v5 }
0x20b5   :  { %v12363_v12 = vmul.f32 %v17487_v36, %v19210_v30  ;;  %v12527_v30 = vld [vmem:[#allocation3 + $0x2a] sm:$0x3]  ;;  %v12842_v36 = vld [vmem:[#allocation3 + $0x2c] sm:$0x3] }
0x20b7   :  { %v19242_v14 = vadd.f32 %v12364_v7, %v12363_v12 }
0x20b9   :  { %17490 = vtanh.f32 %v19242_v14 }
0x20bb   :  { %v17489_v15 = vpop.eup %17488 }
0x20c3   :  { %v17491_v16 = vpop.eup %17490 }
0x20c4   :  { %v12367_v37 = vmul.f32 %v17491_v16, %v17489_v15 }
0x20c6   :  { %15949 = vmatmul.mubr.msk.f32.vlgmr.msra.gmra.mrb[136].mxu0 %vm436_vm6, %v12367_v37  ;;  %15960 = vmatmul.mubr.msk.f32.vlgmr.msra.gmra.mrb[132].mxu1 %vm436_vm6, %v12367_v37 }
0x20c7   :  { %16951 = vmatpush3.bf16.msra.mxu0 %v19016_v38  ;;  %16957 = vmatpush3.bf16.msra.mxu1 %v19018_v57 }
0x20c8   :  { %16952 = vmatprep.subr.bf16.mxu0 %v17622_v34  ;;  %16958 = vmatprep.subr.bf16.mxu1 %v17622_v34 }
0x20c9   :  { %15970 = vmatprep.mubr.msk.f32.mxu0 %vm17623_vm10, %v17618_v11  ;;  %15981 = vmatprep.mubr.msk.f32.mxu1 %vm17623_vm10, %v17618_v11 }
0x20cb   :  { %16954 = vmatpush3.bf16.msra.mxu0 %v19026_v62  ;;  %16960 = vmatpush3.bf16.msra.mxu1 %v19028_v43 }
0x20cc   :  { %16961 = vmatprep.subr.bf16.mxu0 %v17622_v34  ;;  %16967 = vmatprep.subr.bf16.mxu1 %v17622_v34 }
0x20ce   :  { %15971 = vmatmul.mubr.msk.f32.vlgmr.msra.gmra.mrb[138].mxu0 %vm436_vm6, %v12367_v37  ;;  %15982 = vmatmul.mubr.msk.f32.vlgmr.msra.gmra.mrb[134].mxu1 %vm436_vm6, %v12367_v37 }
0x20cf   :  { %16963 = vmatpush3.bf16.msra.mxu0 %v18994_v27  ;;  %16969 = vmatpush3.bf16.msra.mxu1 %v18996_v28 }
0x20d0   :  { %16964 = vmatprep.subr.bf16.mxu0 %v17622_v34  ;;  %16970 = vmatprep.subr.bf16.mxu1 %v17622_v34 }
0x20d1   :  { %15992 = vmatprep.mubr.msk.f32.mxu0 %vm17623_vm10, %v17618_v11  ;;  %16003 = vmatprep.mubr.msk.f32.mxu1 %vm17623_vm10, %v17618_v11 }
0x20d3   :  { %16966 = vmatpush3.bf16.msra.mxu0 %v19004_v50  ;;  %16972 = vmatpush3.bf16.msra.mxu1 %v19006_v53 }
0x20d4   :  { %16973 = vmatprep.subr.bf16.mxu0 %v17622_v34  ;;  %16979 = vmatprep.subr.bf16.mxu1 %v17622_v34 }
0x2199   :  { %v12438_v8 = vpop.f32.mrb[136].mxu0  ;;  %v12516_v19 = vpop.f32.mrb[132].mxu1 }
0x219a   :  { %v12442_v13 = vadd.f32 %v12438_v8, %v12368_v17  ;;  %v12520_v26 = vadd.f32 %v12516_v19, %v12449_v2  ;;  %v15950_v42 = vpop.f32.mrb[137].mxu0  ;;  %v15961_v20 = vpop.f32.mrb[133].mxu1 }
0x219c   :  { %v13673_v21 = vmul.f32 -1.442695, %v12442_v13  ;;  %v13675_v3 = vmul.f32 -1.442695, %v12520_v26 }
0x219e   :  { %17492 = vpow2.f32 %v13673_v21 }
0x219f   :  { %17494 = vpow2.f32 %v13675_v3 }
0x21a1   :  { %v12594_v23 = vpop.f32.mrb[138].mxu0  ;;  %v12667_v24 = vpop.f32.mrb[134].mxu1 }
0x21a2   :  { %v12671_v32 = vadd.f32 %v12667_v24, %v12600_v48  ;;  %v15972_v18 = vpop.f32.mrb[139].mxu0  ;;  %v15983_v25 = vpop.f32.mrb[135].mxu1  ;;  %v12598_v31 = vadd.f32 %v12594_v23, %v12527_v30  ;;  %v13316_v23 = vld [vmem:[%s19364_s8 + $0x18] sm:$0xff] }
0x21a4   :  { %v13678_v40 = vmul.f32 -1.442695, %v12671_v32  ;;  %v13079_v32 = vld [vmem:[#allocation3 + $0x1e] sm:$0x3] }
0x21a6   :  { %17496 = vpow2.f32 %v13678_v40 }
0x21a7   :  { %17498 = vtanh.f32 %v12598_v31 }
0x21a8   :  { %v17493_v55 = vpop.eup %17492 }
0x21a9   :  { %v17495_v33 = vpop.eup %17494  ;;  %v12446_v22 = vadd.f32 1.0, %v17493_v55 }
0x21aa   :  { %v12524_v35 = vadd.f32 1.0, %v17495_v33 }
0x21ab   :  { %17500 = vrcp.f32 %v12446_v22 }
0x21ac   :  { %17502 = vrcp.f32 %v12524_v35  ;;  %v13230_v35 = vld [vmem:[#allocation3 + $0x3e] sm:$0x3] }
0x21b0   :  { %v17497_v39 = vpop.eup %17496 }
0x21b1   :  { %v17499_v41 = vpop.eup %17498  ;;  %v12675_v49 = vadd.f32 1.0, %v17497_v39 }
0x21b3   :  { %17504 = vrcp.f32 %v12675_v49 }
0x21b5   :  { %v17501_v44 = vpop.eup %17500 }
0x21b6   :  { %v17503_v45 = vpop.eup %17502  ;;  %v12679_v47 = vmul.f32 %v17501_v44, %v17499_v41 }
0x21b7   :  { %v12678_v51 = vmul.f32 %v17503_v45, %v19242_v14 }
0x21b9   :  { %v19274_v52 = vadd.f32 %v12679_v47, %v12678_v51 }
0x21bb   :  { %17506 = vtanh.f32 %v19274_v52 }
0x21bd   :  { %v17505_v29 = vpop.eup %17504 }
0x21c5   :  { %v17507_v10 = vpop.eup %17506 }
0x21c6   :  { %v12682_v54 = vmul.f32 %v17507_v10, %v17505_v29 }
0x21c8   :  { %15993 = vmatmul.mubr.msk.f32.vlgmr.msra.gmra.mrb[140].mxu0 %vm436_vm6, %v12682_v54  ;;  %16004 = vmatmul.mubr.msk.f32.vlgmr.msra.gmra.mrb[136].mxu1 %vm436_vm6, %v12682_v54 }
0x21c9   :  { %16975 = vmatpush3.bf16.msra.mxu0 %v19016_v38  ;;  %16981 = vmatpush3.bf16.msra.mxu1 %v19018_v57 }
0x21ca   :  { %16976 = vmatprep.subr.bf16.mxu0 %v17622_v34  ;;  %16982 = vmatprep.subr.bf16.mxu1 %v17622_v34 }
0x21cb   :  { %16014 = vmatprep.mubr.msk.f32.mxu0 %vm17623_vm10, %v17618_v11  ;;  %16025 = vmatprep.mubr.msk.f32.mxu1 %vm17623_vm10, %v17618_v11 }
0x21cd   :  { %16978 = vmatpush3.bf16.msra.mxu0 %v19026_v62  ;;  %16984 = vmatpush3.bf16.msra.mxu1 %v19028_v43 }
0x21ce   :  { %16985 = vmatprep.subr.bf16.mxu0 %v17622_v34  ;;  %16991 = vmatprep.subr.bf16.mxu1 %v17622_v34 }
0x21d0   :  { %16015 = vmatmul.mubr.msk.f32.vlgmr.msra.gmra.mrb[142].mxu0 %vm436_vm6, %v12682_v54  ;;  %16026 = vmatmul.mubr.msk.f32.vlgmr.msra.gmra.mrb[138].mxu1 %vm436_vm6, %v12682_v54 }
0x21d1   :  { %16987 = vmatpush3.bf16.msra.mxu0 %v18994_v27  ;;  %16993 = vmatpush3.bf16.msra.mxu1 %v18996_v28  ;;  %v12683_v27 = vld [vmem:[#allocation3 + $0xc] sm:$0x3] }
0x21d2   :  { %16988 = vmatprep.subr.bf16.mxu0 %v17622_v34  ;;  %16994 = vmatprep.subr.bf16.mxu1 %v17622_v34 }
0x21d3   :  { %16036 = vmatprep.mubr.msk.f32.mxu0 %vm17623_vm10, %v17618_v11  ;;  %16047 = vmatprep.mubr.msk.f32.mxu1 %vm17623_vm10, %v17618_v11 }
0x21d5   :  { %16990 = vmatpush3.bf16.msra.mxu0 %v19004_v50  ;;  %16996 = vmatpush3.bf16.msra.mxu1 %v19006_v53  ;;  %v12915_v50 = vld [vmem:[#allocation3 + $0x3c] sm:$0x3] }
0x21d6   :  { %16997 = vmatprep.subr.bf16.mxu0 %v17622_v34  ;;  %17003 = vmatprep.subr.bf16.mxu1 %v17622_v34 }
0x229b   :  { %v12753_v28 = vpop.f32.mrb[140].mxu0  ;;  %v12831_v58 = vpop.f32.mrb[136].mxu1 }
0x229c   :  { %v12757_v59 = vadd.f32 %v12753_v28, %v12683_v27  ;;  %v12835_v60 = vadd.f32 %v12831_v58, %v12764_v56  ;;  %v15994_v61 = vpop.f32.mrb[141].mxu0  ;;  %v16005_v63 = vpop.f32.mrb[137].mxu1 }
0x229e   :  { %v13680_v46 = vmul.f32 -1.442695, %v12757_v59  ;;  %v13682_v0 = vmul.f32 -1.442695, %v12835_v60 }
0x22a0   :  { %17508 = vpow2.f32 %v13680_v46 }
0x22a1   :  { %17510 = vpow2.f32 %v13682_v0 }
0x22a3   :  { %v12909_v1 = vpop.f32.mrb[142].mxu0  ;;  %v12982_v4 = vpop.f32.mrb[138].mxu1 }
0x22a4   :  { %v12986_v53 = vadd.f32 %v12982_v4, %v12915_v50  ;;  %v16016_v5 = vpop.f32.mrb[143].mxu0  ;;  %v16027_v6 = vpop.f32.mrb[139].mxu1  ;;  %v12913_v9 = vadd.f32 %v12909_v1, %v12842_v36  ;;  %v13693_v1 = vld [vmem:[%s19365_s9] ss:$0 sm:$0xff] }
0x22a6   :  { %v13685_v7 = vmul.f32 -1.442695, %v12986_v53 }
0x22a8   :  { %17512 = vpow2.f32 %v13685_v7 }
0x22a9   :  { %17514 = vtanh.f32 %v12913_v9 }
0x22aa   :  { %v17509_v12 = vpop.eup %17508 }
0x22ab   :  { %v17511_v14 = vpop.eup %17510  ;;  %v12761_v15 = vadd.f32 1.0, %v17509_v12 }
0x22ac   :  { %v12839_v16 = vadd.f32 1.0, %v17511_v14 }
0x22ad   :  { %17516 = vrcp.f32 %v12761_v15 }
0x22ae   :  { %17518 = vrcp.f32 %v12839_v16 }
0x22b2   :  { %v17513_v37 = vpop.eup %17512 }
0x22b3   :  { %v17515_v17 = vpop.eup %17514  ;;  %v12990_v13 = vadd.f32 1.0, %v17513_v37 }
0x22b5   :  { %17520 = vrcp.f32 %v12990_v13 }
0x22b7   :  { %v17517_v8 = vpop.eup %17516 }
0x22b8   :  { %v17519_v2 = vpop.eup %17518  ;;  %v12994_v19 = vmul.f32 %v17517_v8, %v17515_v17 }
0x22b9   :  { %v12993_v26 = vmul.f32 %v17519_v2, %v19274_v52 }
0x22bb   :  { %v19306_v42 = vadd.f32 %v12994_v19, %v12993_v26 }
0x22bd   :  { %17522 = vtanh.f32 %v19306_v42 }
0x22bf   :  { %v17521_v20 = vpop.eup %17520 }
0x22c7   :  { %v17523_v21 = vpop.eup %17522 }
0x22c8   :  { %v12997_v3 = vmul.f32 %v17523_v21, %v17521_v20 }
0x22ca   :  { %16037 = vmatmul.mubr.msk.f32.vlgmr.msra.gmra.mrb[144].mxu0 %vm436_vm6, %v12997_v3  ;;  %16048 = vmatmul.mubr.msk.f32.vlgmr.msra.gmra.mrb[140].mxu1 %vm436_vm6, %v12997_v3 }
0x22cb   :  { %16999 = vmatpush3.bf16.msra.mxu0 %v19016_v38  ;;  %17005 = vmatpush3.bf16.msra.mxu1 %v19018_v57  ;;  %v13313_v38 = vld [vmem:[%s19364_s8] sm:$0xff]  ;;  %v13314_v57 = vld [vmem:[%s19364_s8 + $0x8] sm:$0xff] }
0x22cc   :  { %17000 = vmatprep.subr.bf16.mxu0 %v17622_v34  ;;  %17006 = vmatprep.subr.bf16.mxu1 %v17622_v34 }
0x22cd   :  { %16058 = vmatprep.mubr.msk.f32.mxu0 %vm17623_vm10, %v17618_v11  ;;  %16069 = vmatprep.mubr.msk.f32.mxu1 %vm17623_vm10, %v17618_v11 }
0x22cf   :  { %17002 = vmatpush3.bf16.msra.mxu0 %v19026_v62  ;;  %17008 = vmatpush3.bf16.msra.mxu1 %v19028_v43  ;;  %v13315_v62 = vld [vmem:[%s19364_s8 + $0x10] sm:$0xff]  ;;  %v17010_v43 = vpack.c.bf16 %v13314_v57, %v13313_v38 }
0x22d0   :  { %17009 = vmatprep.subr.bf16.mxu0 %v17622_v34  ;;  %v17013_v48 = vpack.c.bf16 %v13316_v23, %v13315_v62 }
0x22d2   :  { %16059 = vmatmul.mubr.msk.f32.vlgmr.msra.gmra.mrb[146].mxu0 %vm436_vm6, %v12997_v3  ;;  %16070 = vmatmul.mubr.msk.f32.vlgmr.msra.gmra.mrb[142].mxu1 %vm436_vm6, %v12997_v3 }
0x22d3   :  { %16080 = vmatprep.mubr.msk.f32.mxu0 %vm17623_vm10, %v17618_v11  ;;  %17011 = vmatpush3.bf16.msra.mxu0 %v17010_v43  ;;  %v12998_v11 = vld [vmem:[#allocation3 + $0xe] sm:$0x3] }
0x22d4   :  { %17012 = vmatprep.subr.bf16.mxu0 %v17622_v34  ;;  %v13157_v34 = vld [vmem:[#allocation3 + $0x2e] sm:$0x3] }
0x22d7   :  { %17014 = vmatpush3.bf16.msra.mxu0 %v17013_v48 }
0x239d   :  { %v13068_v24 = vpop.f32.mrb[144].mxu0  ;;  %v13146_v18 = vpop.f32.mrb[140].mxu1 }
0x239e   :  { %v13072_v25 = vadd.f32 %v13068_v24, %v12998_v11  ;;  %v13150_v30 = vadd.f32 %v13146_v18, %v13079_v32  ;;  %v16038_v40 = vpop.f32.mrb[145].mxu0  ;;  %v16049_v31 = vpop.f32.mrb[141].mxu1 }
0x23a0   :  { %v13687_v55 = vmul.f32 -1.442695, %v13072_v25  ;;  %v13689_v33 = vmul.f32 -1.442695, %v13150_v30 }
0x23a2   :  { %17524 = vpow2.f32 %v13687_v55 }
0x23a3   :  { %17526 = vpow2.f32 %v13689_v33 }
0x23a5   :  { %v13224_v22 = vpop.f32.mrb[146].mxu0  ;;  %v13297_v39 = vpop.f32.mrb[142].mxu1 }
0x23a6   :  { %v13301_v41 = vadd.f32 %v13297_v39, %v13230_v35  ;;  %v16060_v44 = vpop.f32.mrb[147].mxu0  ;;  %v16071_v45 = vpop.f32.mrb[143].mxu1  ;;  %v13228_v49 = vadd.f32 %v13224_v22, %v13157_v34 }
0x23a8   :  { %v13692_v47 = vmul.f32 -1.442695, %v13301_v41 }
0x23aa   :  { %17528 = vpow2.f32 %v13692_v47 }
0x23ab   :  { %17530 = vtanh.f32 %v13228_v49 }
0x23ac   :  { %v17525_v51 = vpop.eup %17524 }
0x23ad   :  { %v17527_v52 = vpop.eup %17526  ;;  %v13076_v29 = vadd.f32 1.0, %v17525_v51 }
0x23ae   :  { %v13154_v10 = vadd.f32 1.0, %v17527_v52 }
0x23af   :  { %17532 = vrcp.f32 %v13076_v29 }
0x23b0   :  { %17534 = vrcp.f32 %v13154_v10 }
0x23b4   :  { %v17529_v54 = vpop.eup %17528 }
0x23b5   :  { %v17531_v27 = vpop.eup %17530  ;;  %v13305_v59 = vadd.f32 1.0, %v17529_v54 }
0x23b7   :  { %17536 = vrcp.f32 %v13305_v59 }
0x23b9   :  { %v17533_v28 = vpop.eup %17532 }
0x23ba   :  { %v17535_v56 = vpop.eup %17534  ;;  %v13309_v58 = vmul.f32 %v17533_v28, %v17531_v27 }
0x23bb   :  { %v13308_v60 = vmul.f32 %v17535_v56, %v19306_v42 }
0x23bd   :  { %v13310_v61 = vadd.f32 %v13309_v58, %v13308_v60 }
0x23bf   :  { %17538 = vtanh.f32 %v13310_v61 }
0x23c1   :  { %v17537_v63 = vpop.eup %17536 }
0x23c9   :  { %v17539_v46 = vpop.eup %17538 }
0x23ca   :  { %v13312_v0 = vmul.f32 %v17539_v46, %v17537_v63 }
0x23cc   :  { %16081 = vmatmul.mubr.msk.f32.vlgmr.msra.gmra.mrb[148].mxu0 %vm436_vm6, %v13312_v0 }
0x249f   :  { %v13393_v50 = vpop.f32.mrb[148].mxu0 }
0x24a0   :  { %v13394_v4 = vadd.f32 %v13693_v1, %v13393_v50  ;;  %v16082_v53 = vpop.f32.mrb[149].mxu0 }
0x24a2   :  { %13398 = vst.msk [vmem:[#allocation9] sm:$0x3] %vm13397_vm11, %v13394_v4 }
0x24a3   :  { %17595 = shalt.err (!%p17592_p6)
}
0x24a4   :  { %s17596_s16 = scalar_lea.hbm %s19366_s10, 32 }
0x24a5   :  { %p17597_p7 = scmp.ne.s32.totalorder %s19366_s10, %s17596_s16  ;;  %p17600_p8 = scmp.lt.u32.totalorder %s17596_s16, %s19366_s10 }
0x24a7   :  { %p17602_p9 = pnand %p17600_p8, %p17597_p7 }
0x24a9   :  { %17605 = shalt.err (!%p17602_p9)
}
0x24aa   :  { %13408 = dma.vmem_to_hbm [thread:$0]  %s13406_s11, 32, %s19366_s10, [#allocation6]  }
0x24ab   :  { %17610 = dma.done.wait [#allocation6], 32  }
0x24ac   :  { %17611 = vsyncadd [#allocation6], 4294967264 }
0x24ad   :  { %13412 = vsyncpa [#allocation5], 1 }
0x24ae   :  { %13413 = vsyncpa [#allocation8], 1 }
0x24af   :  { %13414 = vsyncpa [#allocation6], 1 }

</bundles_post_ra>
